<compile_context>
chip_gen: v5e
topology: v5e:2x2
jax: 0.10.0
libtpu: 0.0.40
codegen_flags: <defaults>
</compile_context>

<pallas_src>
import jax
import jax.numpy as jnp
from jax.experimental import pallas as pl
from jax.experimental.pallas import tpu as pltpu

# ----------------------------- model hyper-params -----------------------------
B = 2          # batch
N = 128        # points per cloud
G = 16         # number of tokens (groups / centers)
K = 16         # neighbours per group
D = 32         # transformer embedding dim
H_ENC = 64     # hidden dim of token / pos encoders
HEADS = 4
HEAD_DIM = D // HEADS
MLP_HIDDEN = 64
LAYERS = 2
EPS = 1e-5


# ================================ fused Pallas kernel ================================

def _layer_norm(v, g, b):
    mu = jnp.mean(v, axis=-1, keepdims=True)
    var = jnp.mean((v - mu) ** 2, axis=-1, keepdims=True)
    return (v - mu) * jax.lax.rsqrt(var + EPS) * g + b


def _ript_fused_kernel(
    local_ref, cen_ref,
    enc_w1_ref, enc_b1_ref, enc_w2_ref, enc_b2_ref,
    pos_w1_ref, pos_b1_ref, pos_w2_ref, pos_b2_ref,
    ln1_g_ref, ln1_b_ref, qkv_w_ref, qkv_b_ref,
    proj_w_ref, proj_b_ref, ln2_g_ref, ln2_b_ref,
    fc1_w_ref, fc1_b_ref, fc2_w_ref, fc2_b_ref,
    lnf_g_ref, lnf_b_ref,
    o_ref,
):
    # ------------- token encoder: shared MLP + max-pool over K neighbours -------------
    p = local_ref[0]                                     # (G, K, 3) rotation-invariant coords
    w_e1 = enc_w1_ref[...]                               # (3, H_ENC)
    # contraction dim is only 3 -> 3-term VPU FMA instead of an MXU matmul
    h = (p[:, :, 0:1] * w_e1[0][None, None, :]
         + p[:, :, 1:2] * w_e1[1][None, None, :]
         + p[:, :, 2:3] * w_e1[2][None, None, :]
         + enc_b1_ref[0][None, None, :])                 # (G, K, H_ENC)
    h = jnp.maximum(h, 0.0)
    tok = jnp.einsum("gkh,hd->gkd", h, enc_w2_ref[...],
                     preferred_element_type=jnp.float32) + enc_b2_ref[0][None, None, :]
    tok = jnp.max(tok, axis=1)                           # (G, D)  max over neighbourhood

    # ------------- positional embedding MLP on group centers -------------
    # TODO(synk): actual RIPT uses an LRF-relative rotation-invariant positional encoding;
    # a plain MLP on the centers is used here (same as the previous version).
    c = cen_ref[0]                                       # (G, 3)
    w_p1 = pos_w1_ref[...]                               # (3, H_ENC)
    ph = (c[:, 0:1] * w_p1[0][None, :]
          + c[:, 1:2] * w_p1[1][None, :]
          + c[:, 2:3] * w_p1[2][None, :]
          + pos_b1_ref[...])                             # (G, H_ENC)
    ph = jnp.maximum(ph, 0.0)
    pos = jnp.dot(ph, pos_w2_ref[...],
                  preferred_element_type=jnp.float32) + pos_b2_ref[...]

    x = tok + pos                                        # (G, D)

    # ------------- transformer layers (static unroll, weights VMEM-resident) -------------
    scale = 1.0 / (HEAD_DIM ** 0.5)
    for l in range(LAYERS):
        # --- multi-head self-attention ---
        h1 = _layer_norm(x, ln1_g_ref[l], ln1_b_ref[l])
        qkv = jnp.dot(h1, qkv_w_ref[l],
                      preferred_element_type=jnp.float32) + qkv_b_ref[l]      # (G, 3D)
        q = qkv[:, 0:D] * scale                          # fold softmax scale into q
        k = qkv[:, D:2 * D]
        v = qkv[:, 2 * D:3 * D]
        head_outs = []
        for hh in range(HEADS):                          # static lane slices, no transposes
            lo = hh * HEAD_DIM
            qh = q[:, lo:lo + HEAD_DIM]
            kh = k[:, lo:lo + HEAD_DIM]
            vh = v[:, lo:lo + HEAD_DIM]
            s = jnp.einsum("qd,kd->qk", qh, kh,
                           preferred_element_type=jnp.float32)                # (G, G)
            s = s - jnp.max(s, axis=-1, keepdims=True)
            e = jnp.exp(s)
            inv = pl.reciprocal(jnp.sum(e, axis=-1, keepdims=True), approx=True)
            head_outs.append(jnp.dot(e * inv, vh,
                                     preferred_element_type=jnp.float32))     # (G, hd)
        attn = jnp.concatenate(head_outs, axis=-1)       # (G, D)
        x = x + jnp.dot(attn, proj_w_ref[l],
                        preferred_element_type=jnp.float32) + proj_b_ref[l]

        # --- feed-forward ---
        h2 = _layer_norm(x, ln2_g_ref[l], ln2_b_ref[l])
        f = jnp.dot(h2, fc1_w_ref[l],
                    preferred_element_type=jnp.float32) + fc1_b_ref[l]
        # TODO(synk): PyTorch nn.GELU default is exact erf GELU; tanh approximation used here.
        f = jax.nn.gelu(f)
        x = x + jnp.dot(f, fc2_w_ref[l],
                        preferred_element_type=jnp.float32) + fc2_b_ref[l]

    x = _layer_norm(x, lnf_g_ref[...], lnf_b_ref[...])
    o_ref[0] = x.astype(o_ref.dtype)


def ript_fused(inv_local, centers, params):
    """inv_local: (B, G, K, 3), centers: (B, G, 3) -> feats (B, G, D). One pallas_call."""
    Bn = inv_local.shape[0]

    def rep(shape):
        nd = len(shape)
        return pl.BlockSpec(shape, lambda b, _nd=nd: (0,) * _nd)

    in_specs = [
        pl.BlockSpec((1, G, K, 3), lambda b: (b, 0, 0, 0)),     # inv_local (per batch)
        pl.BlockSpec((1, G, 3), lambda b: (b, 0, 0)),           # centers   (per batch)
        rep((3, H_ENC)), rep((1, H_ENC)), rep((H_ENC, D)), rep((1, D)),          # enc
        rep((3, H_ENC)), rep((1, H_ENC)), rep((H_ENC, D)), rep((1, D)),          # pos
        rep((LAYERS, 1, D)), rep((LAYERS, 1, D)),                                 # ln1
        rep((LAYERS, D, 3 * D)), rep((LAYERS, 1, 3 * D)),                         # qkv
        rep((LAYERS, D, D)), rep((LAYERS, 1, D)),                                 # proj
        rep((LAYERS, 1, D)), rep((LAYERS, 1, D)),                                 # ln2
        rep((LAYERS, D, MLP_HIDDEN)), rep((LAYERS, 1, MLP_HIDDEN)),               # fc1
        rep((LAYERS, MLP_HIDDEN, D)), rep((LAYERS, 1, D)),                        # fc2
        rep((1, D)), rep((1, D)),                                                 # lnf
    ]
    return pl.pallas_call(
        _ript_fused_kernel,
        out_shape=jax.ShapeDtypeStruct((Bn, G, D), jnp.float32),
        grid_spec=pltpu.PrefetchScalarGridSpec(
            num_scalar_prefetch=0,
            grid=(Bn,),
            in_specs=in_specs,
            out_specs=pl.BlockSpec((1, G, D), lambda b: (b, 0, 0)),
        ),
        compiler_params=pltpu.CompilerParams(
            dimension_semantics=("parallel",)),   # batch-level megacore split on v7x
    )(
        inv_local, centers,
        params["enc_w1"], params["enc_b1"], params["enc_w2"], params["enc_b2"],
        params["pos_w1"], params["pos_b1"], params["pos_w2"], params["pos_b2"],
        params["ln1_g"], params["ln1_b"], params["qkv_w"], params["qkv_b"],
        params["proj_w"], params["proj_b"], params["ln2_g"], params["ln2_b"],
        params["fc1_w"], params["fc1_b"], params["fc2_w"], params["fc2_b"],
        params["lnf_g"], params["lnf_b"],
    )


# ================================ JAX glue (model) ================================

def init_params(key):
    def dense(k, fi, fo):
        w = jax.random.normal(k, (fi, fo), jnp.float32) / jnp.sqrt(fi)
        b = jnp.zeros((1, fo), jnp.float32)      # biases pre-shaped (1, fo): no per-call reshape
        return w, b

    keys = iter(jax.random.split(key, 64))
    p = {}
    p["enc_w1"], p["enc_b1"] = dense(next(keys), 3, H_ENC)
    p["enc_w2"], p["enc_b2"] = dense(next(keys), H_ENC, D)
    p["pos_w1"], p["pos_b1"] = dense(next(keys), 3, H_ENC)
    p["pos_w2"], p["pos_b2"] = dense(next(keys), H_ENC, D)

    qkv_w, qkv_b, proj_w, proj_b = [], [], [], []
    fc1_w, fc1_b, fc2_w, fc2_b = [], [], [], []
    for _ in range(LAYERS):
        w, b = dense(next(keys), D, 3 * D); qkv_w.append(w); qkv_b.append(b)
        w, b = dense(next(keys), D, D);     proj_w.append(w); proj_b.append(b)
        w, b = dense(next(keys), D, MLP_HIDDEN); fc1_w.append(w); fc1_b.append(b)
        w, b = dense(next(keys), MLP_HIDDEN, D); fc2_w.append(w); fc2_b.append(b)
    # stacked per-layer weights: one VMEM-resident tensor per role
    p["qkv_w"] = jnp.stack(qkv_w);   p["qkv_b"] = jnp.stack(qkv_b)
    p["proj_w"] = jnp.stack(proj_w); p["proj_b"] = jnp.stack(proj_b)
    p["fc1_w"] = jnp.stack(fc1_w);   p["fc1_b"] = jnp.stack(fc1_b)
    p["fc2_w"] = jnp.stack(fc2_w);   p["fc2_b"] = jnp.stack(fc2_b)
    p["ln1_g"] = jnp.ones((LAYERS, 1, D), jnp.float32)
    p["ln1_b"] = jnp.zeros((LAYERS, 1, D), jnp.float32)
    p["ln2_g"] = jnp.ones((LAYERS, 1, D), jnp.float32)
    p["ln2_b"] = jnp.zeros((LAYERS, 1, D), jnp.float32)
    p["lnf_g"] = jnp.ones((1, D), jnp.float32)
    p["lnf_b"] = jnp.zeros((1, D), jnp.float32)
    return p


def tokenizer_geometry(x):
    """x: (B, N, 3) -> rotation-invariant local coords (B, G, K, 3), centers, lrfs.

    Geometry preprocessing (sampling, kNN, LRF) stays in plain JAX glue.
    """
    Bn, Nn, _ = x.shape
    # TODO(synk): farthest-point sampling has no clean Pallas equivalent; strided sampling used.
    idx = jnp.arange(G) * (Nn // G)
    centers = x[:, idx, :]                                           # (B, G, 3)

    # kNN grouping. TODO(synk): top-k kept in plain JAX glue.
    d2 = jnp.sum((x[:, None, :, :] - centers[:, :, None, :]) ** 2, axis=-1)   # (B, G, N)
    _, nn_idx = jax.lax.top_k(-d2, K)                                # (B, G, K)
    grouped = jnp.take_along_axis(
        jnp.broadcast_to(x[:, None, :, :], (Bn, G, Nn, 3)),
        nn_idx[..., None], axis=2)                                   # (B, G, K, 3)
    local = grouped - centers[:, :, None, :]                         # (B, G, K, 3)

    # Local reference frames via PCA of the neighbourhood covariance.
    # TODO(synk): 3x3 eigendecomposition stays in plain JAX (no Pallas eigh).
    cov = jnp.einsum("bgki,bgkj->bgij", local, local) / K            # (B, G, 3, 3)
    _, eigvecs = jnp.linalg.eigh(cov)                                # (B, G, 3, 3)
    proj = jnp.einsum("bgkc,bgcd->bgkd", local, eigvecs)             # (B, G, K, 3)
    sign = jnp.sign(jnp.sum(proj, axis=2))                           # (B, G, 3)
    sign = jnp.where(sign == 0, 1.0, sign)
    lrfs = eigvecs * sign[:, :, None, :]
    inv_local = proj * sign[:, :, None, :]                           # rotation-invariant coords
    return inv_local, centers, lrfs


def model_ript_forward(input_bcn, params):
    # PyTorch: input.permute(0, 2, 1)  -- (B, 3, N) -> (B, N, 3)
    x = jnp.transpose(input_bcn, (0, 2, 1))
    inv_local, centers, lrfs = tokenizer_geometry(x)
    # Token encoder + positional MLP + full transformer stack in one fused Pallas kernel.
    feats = ript_fused(inv_local, centers, params)
    return feats


# ===================================== main =====================================

if __name__ == "__main__":
    key = jax.random.PRNGKey(0)
    key_in, key_p = jax.random.split(key)

    # input layout: (B, 3, N) -- matches the PyTorch module's expected permute(0, 2, 1).
    x = jax.random.normal(key_in, (B, 3, N), jnp.float32)
    params = init_params(key_p)

    feats = jax.jit(model_ript_forward)(x, params)
    feats = jax.block_until_ready(feats)

    assert feats.shape == (B, G, D), feats.shape
    assert jnp.all(jnp.isfinite(feats))
    print("KERNEL_OK")
</pallas_src>

<mosaic_0001>
module attributes {stable_mosaic.version = 11 : i64} {
  func.func @_ript_fused_kernel(%arg0: i32, %arg1: memref<1x16x16x3xf32, #tpu.memory_space<vmem>>, %arg2: memref<1x16x3xf32, #tpu.memory_space<vmem>>, %arg3: memref<3x64xf32, #tpu.memory_space<vmem>>, %arg4: memref<1x64xf32, #tpu.memory_space<vmem>>, %arg5: memref<64x32xf32, #tpu.memory_space<vmem>>, %arg6: memref<1x32xf32, #tpu.memory_space<vmem>>, %arg7: memref<3x64xf32, #tpu.memory_space<vmem>>, %arg8: memref<1x64xf32, #tpu.memory_space<vmem>>, %arg9: memref<64x32xf32, #tpu.memory_space<vmem>>, %arg10: memref<1x32xf32, #tpu.memory_space<vmem>>, %arg11: memref<2x1x32xf32, #tpu.memory_space<vmem>>, %arg12: memref<2x1x32xf32, #tpu.memory_space<vmem>>, %arg13: memref<2x32x96xf32, #tpu.memory_space<vmem>>, %arg14: memref<2x1x96xf32, #tpu.memory_space<vmem>>, %arg15: memref<2x32x32xf32, #tpu.memory_space<vmem>>, %arg16: memref<2x1x32xf32, #tpu.memory_space<vmem>>, %arg17: memref<2x1x32xf32, #tpu.memory_space<vmem>>, %arg18: memref<2x1x32xf32, #tpu.memory_space<vmem>>, %arg19: memref<2x32x64xf32, #tpu.memory_space<vmem>>, %arg20: memref<2x1x64xf32, #tpu.memory_space<vmem>>, %arg21: memref<2x64x32xf32, #tpu.memory_space<vmem>>, %arg22: memref<2x1x32xf32, #tpu.memory_space<vmem>>, %arg23: memref<1x32xf32, #tpu.memory_space<vmem>>, %arg24: memref<1x32xf32, #tpu.memory_space<vmem>>, %arg25: memref<1x16x32xf32, #tpu.memory_space<vmem>>) attributes {dimension_semantics = [#tpu.dimension_semantics<parallel>], iteration_bounds = array<i64: 2>, scalar_prefetch = 0 : i64, scratch_operands = 0 : i64, tpu.core_type = #tpu.core_type<tc>, window_params = [{transform_indices = @transform_0, window_bounds = array<i64: 1, 16, 16, 3>}, {transform_indices = @transform_1, window_bounds = array<i64: 1, 16, 3>}, {pipeline_mode = #tpu.pipeline_mode<synchronous>, transform_indices = @transform_2, window_bounds = array<i64: 3, 64>}, {pipeline_mode = #tpu.pipeline_mode<synchronous>, transform_indices = @transform_3, window_bounds = array<i64: 1, 64>}, {pipeline_mode = #tpu.pipeline_mode<synchronous>, transform_indices = @transform_4, window_bounds = array<i64: 64, 32>}, {pipeline_mode = #tpu.pipeline_mode<synchronous>, transform_indices = @transform_5, window_bounds = array<i64: 1, 32>}, {pipeline_mode = #tpu.pipeline_mode<synchronous>, transform_indices = @transform_6, window_bounds = array<i64: 3, 64>}, {pipeline_mode = #tpu.pipeline_mode<synchronous>, transform_indices = @transform_7, window_bounds = array<i64: 1, 64>}, {pipeline_mode = #tpu.pipeline_mode<synchronous>, transform_indices = @transform_8, window_bounds = array<i64: 64, 32>}, {pipeline_mode = #tpu.pipeline_mode<synchronous>, transform_indices = @transform_9, window_bounds = array<i64: 1, 32>}, {pipeline_mode = #tpu.pipeline_mode<synchronous>, transform_indices = @transform_10, window_bounds = array<i64: 2, 1, 32>}, {pipeline_mode = #tpu.pipeline_mode<synchronous>, transform_indices = @transform_11, window_bounds = array<i64: 2, 1, 32>}, {pipeline_mode = #tpu.pipeline_mode<synchronous>, transform_indices = @transform_12, window_bounds = array<i64: 2, 32, 96>}, {pipeline_mode = #tpu.pipeline_mode<synchronous>, transform_indices = @transform_13, window_bounds = array<i64: 2, 1, 96>}, {pipeline_mode = #tpu.pipeline_mode<synchronous>, transform_indices = @transform_14, window_bounds = array<i64: 2, 32, 32>}, {pipeline_mode = #tpu.pipeline_mode<synchronous>, transform_indices = @transform_15, window_bounds = array<i64: 2, 1, 32>}, {pipeline_mode = #tpu.pipeline_mode<synchronous>, transform_indices = @transform_16, window_bounds = array<i64: 2, 1, 32>}, {pipeline_mode = #tpu.pipeline_mode<synchronous>, transform_indices = @transform_17, window_bounds = array<i64: 2, 1, 32>}, {pipeline_mode = #tpu.pipeline_mode<synchronous>, transform_indices = @transform_18, window_bounds = array<i64: 2, 32, 64>}, {pipeline_mode = #tpu.pipeline_mode<synchronous>, transform_indices = @transform_19, window_bounds = array<i64: 2, 1, 64>}, {pipeline_mode = #tpu.pipeline_mode<synchronous>, transform_indices = @transform_20, window_bounds = array<i64: 2, 64, 32>}, {pipeline_mode = #tpu.pipeline_mode<synchronous>, transform_indices = @transform_21, window_bounds = array<i64: 2, 1, 32>}, {pipeline_mode = #tpu.pipeline_mode<synchronous>, transform_indices = @transform_22, window_bounds = array<i64: 1, 32>}, {pipeline_mode = #tpu.pipeline_mode<synchronous>, transform_indices = @transform_23, window_bounds = array<i64: 1, 32>}, {transform_indices = @transform_24, window_bounds = array<i64: 1, 16, 32>}]} {
    %c0 = arith.constant 0 : index
    %c0_0 = arith.constant 0 : index
    %c0_1 = arith.constant 0 : index
    %c0_2 = arith.constant 0 : index
    %0 = vector.load %arg1[%c0, %c0_0, %c0_1, %c0_2] : memref<1x16x16x3xf32, #tpu.memory_space<vmem>>, vector<1x16x16x3xf32>
    %1 = vector.shape_cast %0 : vector<1x16x16x3xf32> to vector<16x16x3xf32>
    %c0_3 = arith.constant 0 : index
    %c0_4 = arith.constant 0 : index
    %2 = vector.load %arg3[%c0_3, %c0_4] : memref<3x64xf32, #tpu.memory_space<vmem>>, vector<3x64xf32>
    %3 = vector.extract_strided_slice %1 {offsets = [0, 0, 0], sizes = [16, 16, 1], strides = [1, 1, 1]} : vector<16x16x3xf32> to vector<16x16x1xf32>
    %4 = vector.extract_strided_slice %2 {offsets = [0, 0], sizes = [1, 64], strides = [1, 1]} : vector<3x64xf32> to vector<1x64xf32>
    %5 = vector.shape_cast %4 : vector<1x64xf32> to vector<64xf32>
    %6 = vector.shape_cast %5 : vector<64xf32> to vector<1x1x64xf32>
    %7 = vector.broadcast %3 : vector<16x16x1xf32> to vector<16x16x64xf32>
    %8 = vector.broadcast %6 : vector<1x1x64xf32> to vector<16x16x64xf32>
    %9 = arith.mulf %7, %8 : vector<16x16x64xf32>
    %10 = vector.extract_strided_slice %1 {offsets = [0, 0, 1], sizes = [16, 16, 1], strides = [1, 1, 1]} : vector<16x16x3xf32> to vector<16x16x1xf32>
    %11 = vector.extract_strided_slice %2 {offsets = [1, 0], sizes = [1, 64], strides = [1, 1]} : vector<3x64xf32> to vector<1x64xf32>
    %12 = vector.shape_cast %11 : vector<1x64xf32> to vector<64xf32>
    %13 = vector.shape_cast %12 : vector<64xf32> to vector<1x1x64xf32>
    %14 = vector.broadcast %10 : vector<16x16x1xf32> to vector<16x16x64xf32>
    %15 = vector.broadcast %13 : vector<1x1x64xf32> to vector<16x16x64xf32>
    %16 = arith.mulf %14, %15 : vector<16x16x64xf32>
    %17 = arith.addf %9, %16 : vector<16x16x64xf32>
    %18 = vector.extract_strided_slice %1 {offsets = [0, 0, 2], sizes = [16, 16, 1], strides = [1, 1, 1]} : vector<16x16x3xf32> to vector<16x16x1xf32>
    %19 = vector.extract_strided_slice %2 {offsets = [2, 0], sizes = [1, 64], strides = [1, 1]} : vector<3x64xf32> to vector<1x64xf32>
    %20 = vector.shape_cast %19 : vector<1x64xf32> to vector<64xf32>
    %21 = vector.shape_cast %20 : vector<64xf32> to vector<1x1x64xf32>
    %22 = vector.broadcast %18 : vector<16x16x1xf32> to vector<16x16x64xf32>
    %23 = vector.broadcast %21 : vector<1x1x64xf32> to vector<16x16x64xf32>
    %24 = arith.mulf %22, %23 : vector<16x16x64xf32>
    %25 = arith.addf %17, %24 : vector<16x16x64xf32>
    %c0_5 = arith.constant 0 : index
    %c0_6 = arith.constant 0 : index
    %26 = vector.load %arg4[%c0_5, %c0_6] : memref<1x64xf32, #tpu.memory_space<vmem>>, vector<1x64xf32>
    %27 = vector.shape_cast %26 : vector<1x64xf32> to vector<64xf32>
    %28 = vector.shape_cast %27 : vector<64xf32> to vector<1x1x64xf32>
    %29 = vector.broadcast %28 : vector<1x1x64xf32> to vector<16x16x64xf32>
    %30 = arith.addf %25, %29 : vector<16x16x64xf32>
    %cst = arith.constant 0.000000e+00 : f32
    %31 = vector.broadcast %cst : f32 to vector<16x16x64xf32>
    %32 = arith.maximumf %30, %31 : vector<16x16x64xf32>
    %c0_7 = arith.constant 0 : index
    %c0_8 = arith.constant 0 : index
    %33 = vector.load %arg5[%c0_7, %c0_8] : memref<64x32xf32, #tpu.memory_space<vmem>>, vector<64x32xf32>
    "tpu.trace_start"() <{level = 10 : i32, message = "gkh,hd->gkd"}> : () -> ()
    %cst_9 = arith.constant dense<0.000000e+00> : vector<16x16x32xf32>
    %34 = tpu.matmul %32, %33, %cst_9 {dimension_numbers = #tpu.dot_dimension_numbers<[2], [0], [0, 1], [1], [0, 0, 0, 1, 1, 1], [], []>} : vector<16x16x64xf32>, vector<64x32xf32>, vector<16x16x32xf32> -> vector<16x16x32xf32>
    "tpu.trace_stop"() : () -> ()
    %c0_10 = arith.constant 0 : index
    %c0_11 = arith.constant 0 : index
    %35 = vector.load %arg6[%c0_10, %c0_11] : memref<1x32xf32, #tpu.memory_space<vmem>>, vector<1x32xf32>
    %36 = vector.shape_cast %35 : vector<1x32xf32> to vector<32xf32>
    %37 = vector.shape_cast %36 : vector<32xf32> to vector<1x1x32xf32>
    %38 = vector.broadcast %37 : vector<1x1x32xf32> to vector<16x16x32xf32>
    %39 = arith.addf %34, %38 : vector<16x16x32xf32>
    %cst_12 = arith.constant dense<0xFF800000> : vector<16x32xf32>
    %40 = vector.multi_reduction <maximumf>, %39, %cst_12 [1] : vector<16x16x32xf32> to vector<16x32xf32>
    %c0_13 = arith.constant 0 : index
    %c0_14 = arith.constant 0 : index
    %c0_15 = arith.constant 0 : index
    %41 = vector.load %arg2[%c0_13, %c0_14, %c0_15] : memref<1x16x3xf32, #tpu.memory_space<vmem>>, vector<1x16x3xf32>
    %42 = vector.shape_cast %41 : vector<1x16x3xf32> to vector<16x3xf32>
    %c0_16 = arith.constant 0 : index
    %c0_17 = arith.constant 0 : index
    %43 = vector.load %arg7[%c0_16, %c0_17] : memref<3x64xf32, #tpu.memory_space<vmem>>, vector<3x64xf32>
    %44 = vector.extract_strided_slice %42 {offsets = [0, 0], sizes = [16, 1], strides = [1, 1]} : vector<16x3xf32> to vector<16x1xf32>
    %45 = vector.extract_strided_slice %43 {offsets = [0, 0], sizes = [1, 64], strides = [1, 1]} : vector<3x64xf32> to vector<1x64xf32>
    %46 = vector.shape_cast %45 : vector<1x64xf32> to vector<64xf32>
    %47 = vector.shape_cast %46 : vector<64xf32> to vector<1x64xf32>
    %48 = vector.broadcast %44 : vector<16x1xf32> to vector<16x64xf32>
    %49 = vector.broadcast %47 : vector<1x64xf32> to vector<16x64xf32>
    %50 = arith.mulf %48, %49 : vector<16x64xf32>
    %51 = vector.extract_strided_slice %42 {offsets = [0, 1], sizes = [16, 1], strides = [1, 1]} : vector<16x3xf32> to vector<16x1xf32>
    %52 = vector.extract_strided_slice %43 {offsets = [1, 0], sizes = [1, 64], strides = [1, 1]} : vector<3x64xf32> to vector<1x64xf32>
    %53 = vector.shape_cast %52 : vector<1x64xf32> to vector<64xf32>
    %54 = vector.shape_cast %53 : vector<64xf32> to vector<1x64xf32>
    %55 = vector.broadcast %51 : vector<16x1xf32> to vector<16x64xf32>
    %56 = vector.broadcast %54 : vector<1x64xf32> to vector<16x64xf32>
    %57 = arith.mulf %55, %56 : vector<16x64xf32>
    %58 = arith.addf %50, %57 : vector<16x64xf32>
    %59 = vector.extract_strided_slice %42 {offsets = [0, 2], sizes = [16, 1], strides = [1, 1]} : vector<16x3xf32> to vector<16x1xf32>
    %60 = vector.extract_strided_slice %43 {offsets = [2, 0], sizes = [1, 64], strides = [1, 1]} : vector<3x64xf32> to vector<1x64xf32>
    %61 = vector.shape_cast %60 : vector<1x64xf32> to vector<64xf32>
    %62 = vector.shape_cast %61 : vector<64xf32> to vector<1x64xf32>
    %63 = vector.broadcast %59 : vector<16x1xf32> to vector<16x64xf32>
    %64 = vector.broadcast %62 : vector<1x64xf32> to vector<16x64xf32>
    %65 = arith.mulf %63, %64 : vector<16x64xf32>
    %66 = arith.addf %58, %65 : vector<16x64xf32>
    %c0_18 = arith.constant 0 : index
    %c0_19 = arith.constant 0 : index
    %67 = vector.load %arg8[%c0_18, %c0_19] : memref<1x64xf32, #tpu.memory_space<vmem>>, vector<1x64xf32>
    %68 = vector.broadcast %67 : vector<1x64xf32> to vector<16x64xf32>
    %69 = arith.addf %66, %68 : vector<16x64xf32>
    %cst_20 = arith.constant 0.000000e+00 : f32
    %70 = vector.broadcast %cst_20 : f32 to vector<16x64xf32>
    %71 = arith.maximumf %69, %70 : vector<16x64xf32>
    %c0_21 = arith.constant 0 : index
    %c0_22 = arith.constant 0 : index
    %72 = vector.load %arg9[%c0_21, %c0_22] : memref<64x32xf32, #tpu.memory_space<vmem>>, vector<64x32xf32>
    %cst_23 = arith.constant dense<0.000000e+00> : vector<16x32xf32>
    %73 = tpu.matmul %71, %72, %cst_23 {dimension_numbers = #tpu.dot_dimension_numbers<[1], [0], [0], [1], [0, 0, 1, 1], [], []>} : vector<16x64xf32>, vector<64x32xf32>, vector<16x32xf32> -> vector<16x32xf32>
    %c0_24 = arith.constant 0 : index
    %c0_25 = arith.constant 0 : index
    %74 = vector.load %arg10[%c0_24, %c0_25] : memref<1x32xf32, #tpu.memory_space<vmem>>, vector<1x32xf32>
    %75 = vector.broadcast %74 : vector<1x32xf32> to vector<16x32xf32>
    %76 = arith.addf %73, %75 : vector<16x32xf32>
    %77 = arith.addf %40, %76 : vector<16x32xf32>
    %c0_26 = arith.constant 0 : index
    %c0_27 = arith.constant 0 : index
    %c0_28 = arith.constant 0 : index
    %78 = vector.load %arg11[%c0_26, %c0_27, %c0_28] : memref<2x1x32xf32, #tpu.memory_space<vmem>>, vector<1x1x32xf32>
    %79 = vector.shape_cast %78 : vector<1x1x32xf32> to vector<1x32xf32>
    %c0_29 = arith.constant 0 : index
    %c0_30 = arith.constant 0 : index
    %c0_31 = arith.constant 0 : index
    %80 = vector.load %arg12[%c0_29, %c0_30, %c0_31] : memref<2x1x32xf32, #tpu.memory_space<vmem>>, vector<1x1x32xf32>
    %81 = vector.shape_cast %80 : vector<1x1x32xf32> to vector<1x32xf32>
    %cst_32 = arith.constant dense<0.000000e+00> : vector<16xf32>
    %82 = vector.multi_reduction <add>, %77, %cst_32 [1] : vector<16x32xf32> to vector<16xf32>
    %83 = vector.shape_cast %82 : vector<16xf32> to vector<16x1xf32>
    %cst_33 = arith.constant 3.200000e+01 : f32
    %84 = vector.broadcast %cst_33 : f32 to vector<16x1xf32>
    %85 = arith.divf %83, %84 : vector<16x1xf32>
    %86 = vector.broadcast %85 : vector<16x1xf32> to vector<16x32xf32>
    %87 = arith.subf %77, %86 : vector<16x32xf32>
    %88 = arith.mulf %87, %87 : vector<16x32xf32>
    %cst_34 = arith.constant dense<0.000000e+00> : vector<16xf32>
    %89 = vector.multi_reduction <add>, %88, %cst_34 [1] : vector<16x32xf32> to vector<16xf32>
    %90 = vector.shape_cast %89 : vector<16xf32> to vector<16x1xf32>
    %cst_35 = arith.constant 3.200000e+01 : f32
    %91 = vector.broadcast %cst_35 : f32 to vector<16x1xf32>
    %92 = arith.divf %90, %91 : vector<16x1xf32>
    %93 = vector.broadcast %85 : vector<16x1xf32> to vector<16x32xf32>
    %94 = arith.subf %77, %93 : vector<16x32xf32>
    %cst_36 = arith.constant 9.99999974E-6 : f32
    %95 = vector.broadcast %cst_36 : f32 to vector<16x1xf32>
    %96 = arith.addf %92, %95 : vector<16x1xf32>
    %97 = math.rsqrt %96 : vector<16x1xf32>
    %98 = vector.broadcast %97 : vector<16x1xf32> to vector<16x32xf32>
    %99 = arith.mulf %94, %98 : vector<16x32xf32>
    %100 = vector.broadcast %79 : vector<1x32xf32> to vector<16x32xf32>
    %101 = arith.mulf %99, %100 : vector<16x32xf32>
    %102 = vector.broadcast %81 : vector<1x32xf32> to vector<16x32xf32>
    %103 = arith.addf %101, %102 : vector<16x32xf32>
    %c0_37 = arith.constant 0 : index
    %c0_38 = arith.constant 0 : index
    %c0_39 = arith.constant 0 : index
    %104 = vector.load %arg13[%c0_37, %c0_38, %c0_39] : memref<2x32x96xf32, #tpu.memory_space<vmem>>, vector<1x32x96xf32>
    %105 = vector.shape_cast %104 : vector<1x32x96xf32> to vector<32x96xf32>
    %cst_40 = arith.constant dense<0.000000e+00> : vector<16x96xf32>
    %106 = tpu.matmul %103, %105, %cst_40 {dimension_numbers = #tpu.dot_dimension_numbers<[1], [0], [0], [1], [0, 0, 1, 1], [], []>} : vector<16x32xf32>, vector<32x96xf32>, vector<16x96xf32> -> vector<16x96xf32>
    %c0_41 = arith.constant 0 : index
    %c0_42 = arith.constant 0 : index
    %c0_43 = arith.constant 0 : index
    %107 = vector.load %arg14[%c0_41, %c0_42, %c0_43] : memref<2x1x96xf32, #tpu.memory_space<vmem>>, vector<1x1x96xf32>
    %108 = vector.shape_cast %107 : vector<1x1x96xf32> to vector<1x96xf32>
    %109 = vector.broadcast %108 : vector<1x96xf32> to vector<16x96xf32>
    %110 = arith.addf %106, %109 : vector<16x96xf32>
    %111 = vector.extract_strided_slice %110 {offsets = [0, 0], sizes = [16, 32], strides = [1, 1]} : vector<16x96xf32> to vector<16x32xf32>
    %cst_44 = arith.constant 0.353553385 : f32
    %112 = vector.broadcast %cst_44 : f32 to vector<16x32xf32>
    %113 = arith.mulf %111, %112 : vector<16x32xf32>
    %114 = vector.extract_strided_slice %110 {offsets = [0, 32], sizes = [16, 32], strides = [1, 1]} : vector<16x96xf32> to vector<16x32xf32>
    %115 = vector.extract_strided_slice %110 {offsets = [0, 64], sizes = [16, 32], strides = [1, 1]} : vector<16x96xf32> to vector<16x32xf32>
    %116 = vector.extract_strided_slice %113 {offsets = [0, 0], sizes = [16, 8], strides = [1, 1]} : vector<16x32xf32> to vector<16x8xf32>
    %117 = vector.extract_strided_slice %114 {offsets = [0, 0], sizes = [16, 8], strides = [1, 1]} : vector<16x32xf32> to vector<16x8xf32>
    %118 = vector.extract_strided_slice %115 {offsets = [0, 0], sizes = [16, 8], strides = [1, 1]} : vector<16x32xf32> to vector<16x8xf32>
    "tpu.trace_start"() <{level = 10 : i32, message = "qd,kd->qk"}> : () -> ()
    %cst_45 = arith.constant dense<0.000000e+00> : vector<16x16xf32>
    %119 = tpu.matmul %116, %117, %cst_45 {dimension_numbers = #tpu.dot_dimension_numbers<[1], [1], [0], [0], [0, 0, 1, 0], [], []>} : vector<16x8xf32>, vector<16x8xf32>, vector<16x16xf32> -> vector<16x16xf32>
    "tpu.trace_stop"() : () -> ()
    %cst_46 = arith.constant dense<0xFF800000> : vector<16xf32>
    %120 = vector.multi_reduction <maximumf>, %119, %cst_46 [1] : vector<16x16xf32> to vector<16xf32>
    %121 = vector.shape_cast %120 : vector<16xf32> to vector<16x1xf32>
    %122 = vector.broadcast %121 : vector<16x1xf32> to vector<16x16xf32>
    %123 = arith.subf %119, %122 : vector<16x16xf32>
    %124 = math.exp %123 : vector<16x16xf32>
    %cst_47 = arith.constant dense<0.000000e+00> : vector<16xf32>
    %125 = vector.multi_reduction <add>, %124, %cst_47 [1] : vector<16x16xf32> to vector<16xf32>
    %126 = vector.shape_cast %125 : vector<16xf32> to vector<16x1xf32>
    %127 = tpu.reciprocal %126 {approx = true} : vector<16x1xf32> -> vector<16x1xf32>
    %128 = vector.broadcast %127 : vector<16x1xf32> to vector<16x16xf32>
    %129 = arith.mulf %124, %128 : vector<16x16xf32>
    %cst_48 = arith.constant dense<0.000000e+00> : vector<16x8xf32>
    %130 = tpu.matmul %129, %118, %cst_48 {dimension_numbers = #tpu.dot_dimension_numbers<[1], [0], [0], [1], [0, 0, 1, 1], [], []>} : vector<16x16xf32>, vector<16x8xf32>, vector<16x8xf32> -> vector<16x8xf32>
    %131 = vector.extract_strided_slice %113 {offsets = [0, 8], sizes = [16, 8], strides = [1, 1]} : vector<16x32xf32> to vector<16x8xf32>
    %132 = vector.extract_strided_slice %114 {offsets = [0, 8], sizes = [16, 8], strides = [1, 1]} : vector<16x32xf32> to vector<16x8xf32>
    %133 = vector.extract_strided_slice %115 {offsets = [0, 8], sizes = [16, 8], strides = [1, 1]} : vector<16x32xf32> to vector<16x8xf32>
    "tpu.trace_start"() <{level = 10 : i32, message = "qd,kd->qk"}> : () -> ()
    %cst_49 = arith.constant dense<0.000000e+00> : vector<16x16xf32>
    %134 = tpu.matmul %131, %132, %cst_49 {dimension_numbers = #tpu.dot_dimension_numbers<[1], [1], [0], [0], [0, 0, 1, 0], [], []>} : vector<16x8xf32>, vector<16x8xf32>, vector<16x16xf32> -> vector<16x16xf32>
    "tpu.trace_stop"() : () -> ()
    %cst_50 = arith.constant dense<0xFF800000> : vector<16xf32>
    %135 = vector.multi_reduction <maximumf>, %134, %cst_50 [1] : vector<16x16xf32> to vector<16xf32>
    %136 = vector.shape_cast %135 : vector<16xf32> to vector<16x1xf32>
    %137 = vector.broadcast %136 : vector<16x1xf32> to vector<16x16xf32>
    %138 = arith.subf %134, %137 : vector<16x16xf32>
    %139 = math.exp %138 : vector<16x16xf32>
    %cst_51 = arith.constant dense<0.000000e+00> : vector<16xf32>
    %140 = vector.multi_reduction <add>, %139, %cst_51 [1] : vector<16x16xf32> to vector<16xf32>
    %141 = vector.shape_cast %140 : vector<16xf32> to vector<16x1xf32>
    %142 = tpu.reciprocal %141 {approx = true} : vector<16x1xf32> -> vector<16x1xf32>
    %143 = vector.broadcast %142 : vector<16x1xf32> to vector<16x16xf32>
    %144 = arith.mulf %139, %143 : vector<16x16xf32>
    %cst_52 = arith.constant dense<0.000000e+00> : vector<16x8xf32>
    %145 = tpu.matmul %144, %133, %cst_52 {dimension_numbers = #tpu.dot_dimension_numbers<[1], [0], [0], [1], [0, 0, 1, 1], [], []>} : vector<16x16xf32>, vector<16x8xf32>, vector<16x8xf32> -> vector<16x8xf32>
    %146 = vector.extract_strided_slice %113 {offsets = [0, 16], sizes = [16, 8], strides = [1, 1]} : vector<16x32xf32> to vector<16x8xf32>
    %147 = vector.extract_strided_slice %114 {offsets = [0, 16], sizes = [16, 8], strides = [1, 1]} : vector<16x32xf32> to vector<16x8xf32>
    %148 = vector.extract_strided_slice %115 {offsets = [0, 16], sizes = [16, 8], strides = [1, 1]} : vector<16x32xf32> to vector<16x8xf32>
    "tpu.trace_start"() <{level = 10 : i32, message = "qd,kd->qk"}> : () -> ()
    %cst_53 = arith.constant dense<0.000000e+00> : vector<16x16xf32>
    %149 = tpu.matmul %146, %147, %cst_53 {dimension_numbers = #tpu.dot_dimension_numbers<[1], [1], [0], [0], [0, 0, 1, 0], [], []>} : vector<16x8xf32>, vector<16x8xf32>, vector<16x16xf32> -> vector<16x16xf32>
    "tpu.trace_stop"() : () -> ()
    %cst_54 = arith.constant dense<0xFF800000> : vector<16xf32>
    %150 = vector.multi_reduction <maximumf>, %149, %cst_54 [1] : vector<16x16xf32> to vector<16xf32>
    %151 = vector.shape_cast %150 : vector<16xf32> to vector<16x1xf32>
    %152 = vector.broadcast %151 : vector<16x1xf32> to vector<16x16xf32>
    %153 = arith.subf %149, %152 : vector<16x16xf32>
    %154 = math.exp %153 : vector<16x16xf32>
    %cst_55 = arith.constant dense<0.000000e+00> : vector<16xf32>
    %155 = vector.multi_reduction <add>, %154, %cst_55 [1] : vector<16x16xf32> to vector<16xf32>
    %156 = vector.shape_cast %155 : vector<16xf32> to vector<16x1xf32>
    %157 = tpu.reciprocal %156 {approx = true} : vector<16x1xf32> -> vector<16x1xf32>
    %158 = vector.broadcast %157 : vector<16x1xf32> to vector<16x16xf32>
    %159 = arith.mulf %154, %158 : vector<16x16xf32>
    %cst_56 = arith.constant dense<0.000000e+00> : vector<16x8xf32>
    %160 = tpu.matmul %159, %148, %cst_56 {dimension_numbers = #tpu.dot_dimension_numbers<[1], [0], [0], [1], [0, 0, 1, 1], [], []>} : vector<16x16xf32>, vector<16x8xf32>, vector<16x8xf32> -> vector<16x8xf32>
    %161 = vector.extract_strided_slice %113 {offsets = [0, 24], sizes = [16, 8], strides = [1, 1]} : vector<16x32xf32> to vector<16x8xf32>
    %162 = vector.extract_strided_slice %114 {offsets = [0, 24], sizes = [16, 8], strides = [1, 1]} : vector<16x32xf32> to vector<16x8xf32>
    %163 = vector.extract_strided_slice %115 {offsets = [0, 24], sizes = [16, 8], strides = [1, 1]} : vector<16x32xf32> to vector<16x8xf32>
    "tpu.trace_start"() <{level = 10 : i32, message = "qd,kd->qk"}> : () -> ()
    %cst_57 = arith.constant dense<0.000000e+00> : vector<16x16xf32>
    %164 = tpu.matmul %161, %162, %cst_57 {dimension_numbers = #tpu.dot_dimension_numbers<[1], [1], [0], [0], [0, 0, 1, 0], [], []>} : vector<16x8xf32>, vector<16x8xf32>, vector<16x16xf32> -> vector<16x16xf32>
    "tpu.trace_stop"() : () -> ()
    %cst_58 = arith.constant dense<0xFF800000> : vector<16xf32>
    %165 = vector.multi_reduction <maximumf>, %164, %cst_58 [1] : vector<16x16xf32> to vector<16xf32>
    %166 = vector.shape_cast %165 : vector<16xf32> to vector<16x1xf32>
    %167 = vector.broadcast %166 : vector<16x1xf32> to vector<16x16xf32>
    %168 = arith.subf %164, %167 : vector<16x16xf32>
    %169 = math.exp %168 : vector<16x16xf32>
    %cst_59 = arith.constant dense<0.000000e+00> : vector<16xf32>
    %170 = vector.multi_reduction <add>, %169, %cst_59 [1] : vector<16x16xf32> to vector<16xf32>
    %171 = vector.shape_cast %170 : vector<16xf32> to vector<16x1xf32>
    %172 = tpu.reciprocal %171 {approx = true} : vector<16x1xf32> -> vector<16x1xf32>
    %173 = vector.broadcast %172 : vector<16x1xf32> to vector<16x16xf32>
    %174 = arith.mulf %169, %173 : vector<16x16xf32>
    %cst_60 = arith.constant dense<0.000000e+00> : vector<16x8xf32>
    %175 = tpu.matmul %174, %163, %cst_60 {dimension_numbers = #tpu.dot_dimension_numbers<[1], [0], [0], [1], [0, 0, 1, 1], [], []>} : vector<16x16xf32>, vector<16x8xf32>, vector<16x8xf32> -> vector<16x8xf32>
    %176 = tpu.concatenate %130, %145, %160, %175 in 1 : vector<16x8xf32>, vector<16x8xf32>, vector<16x8xf32>, vector<16x8xf32> -> vector<16x32xf32>
    %c0_61 = arith.constant 0 : index
    %c0_62 = arith.constant 0 : index
    %c0_63 = arith.constant 0 : index
    %177 = vector.load %arg15[%c0_61, %c0_62, %c0_63] : memref<2x32x32xf32, #tpu.memory_space<vmem>>, vector<1x32x32xf32>
    %178 = vector.shape_cast %177 : vector<1x32x32xf32> to vector<32x32xf32>
    %cst_64 = arith.constant dense<0.000000e+00> : vector<16x32xf32>
    %179 = tpu.matmul %176, %178, %cst_64 {dimension_numbers = #tpu.dot_dimension_numbers<[1], [0], [0], [1], [0, 0, 1, 1], [], []>} : vector<16x32xf32>, vector<32x32xf32>, vector<16x32xf32> -> vector<16x32xf32>
    %180 = arith.addf %77, %179 : vector<16x32xf32>
    %c0_65 = arith.constant 0 : index
    %c0_66 = arith.constant 0 : index
    %c0_67 = arith.constant 0 : index
    %181 = vector.load %arg16[%c0_65, %c0_66, %c0_67] : memref<2x1x32xf32, #tpu.memory_space<vmem>>, vector<1x1x32xf32>
    %182 = vector.shape_cast %181 : vector<1x1x32xf32> to vector<1x32xf32>
    %183 = vector.broadcast %182 : vector<1x32xf32> to vector<16x32xf32>
    %184 = arith.addf %180, %183 : vector<16x32xf32>
    %c0_68 = arith.constant 0 : index
    %c0_69 = arith.constant 0 : index
    %c0_70 = arith.constant 0 : index
    %185 = vector.load %arg17[%c0_68, %c0_69, %c0_70] : memref<2x1x32xf32, #tpu.memory_space<vmem>>, vector<1x1x32xf32>
    %186 = vector.shape_cast %185 : vector<1x1x32xf32> to vector<1x32xf32>
    %c0_71 = arith.constant 0 : index
    %c0_72 = arith.constant 0 : index
    %c0_73 = arith.constant 0 : index
    %187 = vector.load %arg18[%c0_71, %c0_72, %c0_73] : memref<2x1x32xf32, #tpu.memory_space<vmem>>, vector<1x1x32xf32>
    %188 = vector.shape_cast %187 : vector<1x1x32xf32> to vector<1x32xf32>
    %cst_74 = arith.constant dense<0.000000e+00> : vector<16xf32>
    %189 = vector.multi_reduction <add>, %184, %cst_74 [1] : vector<16x32xf32> to vector<16xf32>
    %190 = vector.shape_cast %189 : vector<16xf32> to vector<16x1xf32>
    %cst_75 = arith.constant 3.200000e+01 : f32
    %191 = vector.broadcast %cst_75 : f32 to vector<16x1xf32>
    %192 = arith.divf %190, %191 : vector<16x1xf32>
    %193 = vector.broadcast %192 : vector<16x1xf32> to vector<16x32xf32>
    %194 = arith.subf %184, %193 : vector<16x32xf32>
    %195 = arith.mulf %194, %194 : vector<16x32xf32>
    %cst_76 = arith.constant dense<0.000000e+00> : vector<16xf32>
    %196 = vector.multi_reduction <add>, %195, %cst_76 [1] : vector<16x32xf32> to vector<16xf32>
    %197 = vector.shape_cast %196 : vector<16xf32> to vector<16x1xf32>
    %cst_77 = arith.constant 3.200000e+01 : f32
    %198 = vector.broadcast %cst_77 : f32 to vector<16x1xf32>
    %199 = arith.divf %197, %198 : vector<16x1xf32>
    %200 = vector.broadcast %192 : vector<16x1xf32> to vector<16x32xf32>
    %201 = arith.subf %184, %200 : vector<16x32xf32>
    %cst_78 = arith.constant 9.99999974E-6 : f32
    %202 = vector.broadcast %cst_78 : f32 to vector<16x1xf32>
    %203 = arith.addf %199, %202 : vector<16x1xf32>
    %204 = math.rsqrt %203 : vector<16x1xf32>
    %205 = vector.broadcast %204 : vector<16x1xf32> to vector<16x32xf32>
    %206 = arith.mulf %201, %205 : vector<16x32xf32>
    %207 = vector.broadcast %186 : vector<1x32xf32> to vector<16x32xf32>
    %208 = arith.mulf %206, %207 : vector<16x32xf32>
    %209 = vector.broadcast %188 : vector<1x32xf32> to vector<16x32xf32>
    %210 = arith.addf %208, %209 : vector<16x32xf32>
    %c0_79 = arith.constant 0 : index
    %c0_80 = arith.constant 0 : index
    %c0_81 = arith.constant 0 : index
    %211 = vector.load %arg19[%c0_79, %c0_80, %c0_81] : memref<2x32x64xf32, #tpu.memory_space<vmem>>, vector<1x32x64xf32>
    %212 = vector.shape_cast %211 : vector<1x32x64xf32> to vector<32x64xf32>
    %cst_82 = arith.constant dense<0.000000e+00> : vector<16x64xf32>
    %213 = tpu.matmul %210, %212, %cst_82 {dimension_numbers = #tpu.dot_dimension_numbers<[1], [0], [0], [1], [0, 0, 1, 1], [], []>} : vector<16x32xf32>, vector<32x64xf32>, vector<16x64xf32> -> vector<16x64xf32>
    %c0_83 = arith.constant 0 : index
    %c0_84 = arith.constant 0 : index
    %c0_85 = arith.constant 0 : index
    %214 = vector.load %arg20[%c0_83, %c0_84, %c0_85] : memref<2x1x64xf32, #tpu.memory_space<vmem>>, vector<1x1x64xf32>
    %215 = vector.shape_cast %214 : vector<1x1x64xf32> to vector<1x64xf32>
    %216 = vector.broadcast %215 : vector<1x64xf32> to vector<16x64xf32>
    %217 = arith.addf %213, %216 : vector<16x64xf32>
    %218 = arith.mulf %217, %217 : vector<16x64xf32>
    %219 = arith.mulf %217, %218 : vector<16x64xf32>
    %cst_86 = arith.constant 4.471500e-02 : f32
    %220 = vector.broadcast %cst_86 : f32 to vector<16x64xf32>
    %221 = arith.mulf %220, %219 : vector<16x64xf32>
    %222 = arith.addf %217, %221 : vector<16x64xf32>
    %cst_87 = arith.constant 0.797884583 : f32
    %223 = vector.broadcast %cst_87 : f32 to vector<16x64xf32>
    %224 = arith.mulf %223, %222 : vector<16x64xf32>
    %225 = math.tanh %224 : vector<16x64xf32>
    %cst_88 = arith.constant 1.000000e+00 : f32
    %226 = vector.broadcast %cst_88 : f32 to vector<16x64xf32>
    %227 = arith.addf %226, %225 : vector<16x64xf32>
    %cst_89 = arith.constant 5.000000e-01 : f32
    %228 = vector.broadcast %cst_89 : f32 to vector<16x64xf32>
    %229 = arith.mulf %228, %227 : vector<16x64xf32>
    %230 = arith.mulf %217, %229 : vector<16x64xf32>
    %c0_90 = arith.constant 0 : index
    %c0_91 = arith.constant 0 : index
    %c0_92 = arith.constant 0 : index
    %231 = vector.load %arg21[%c0_90, %c0_91, %c0_92] : memref<2x64x32xf32, #tpu.memory_space<vmem>>, vector<1x64x32xf32>
    %232 = vector.shape_cast %231 : vector<1x64x32xf32> to vector<64x32xf32>
    %cst_93 = arith.constant dense<0.000000e+00> : vector<16x32xf32>
    %233 = tpu.matmul %230, %232, %cst_93 {dimension_numbers = #tpu.dot_dimension_numbers<[1], [0], [0], [1], [0, 0, 1, 1], [], []>} : vector<16x64xf32>, vector<64x32xf32>, vector<16x32xf32> -> vector<16x32xf32>
    %234 = arith.addf %184, %233 : vector<16x32xf32>
    %c0_94 = arith.constant 0 : index
    %c0_95 = arith.constant 0 : index
    %c0_96 = arith.constant 0 : index
    %235 = vector.load %arg22[%c0_94, %c0_95, %c0_96] : memref<2x1x32xf32, #tpu.memory_space<vmem>>, vector<1x1x32xf32>
    %236 = vector.shape_cast %235 : vector<1x1x32xf32> to vector<1x32xf32>
    %237 = vector.broadcast %236 : vector<1x32xf32> to vector<16x32xf32>
    %238 = arith.addf %234, %237 : vector<16x32xf32>
    %c1 = arith.constant 1 : index
    %c0_97 = arith.constant 0 : index
    %c0_98 = arith.constant 0 : index
    %239 = vector.load %arg11[%c1, %c0_97, %c0_98] : memref<2x1x32xf32, #tpu.memory_space<vmem>>, vector<1x1x32xf32>
    %240 = vector.shape_cast %239 : vector<1x1x32xf32> to vector<1x32xf32>
    %c1_99 = arith.constant 1 : index
    %c0_100 = arith.constant 0 : index
    %c0_101 = arith.constant 0 : index
    %241 = vector.load %arg12[%c1_99, %c0_100, %c0_101] : memref<2x1x32xf32, #tpu.memory_space<vmem>>, vector<1x1x32xf32>
    %242 = vector.shape_cast %241 : vector<1x1x32xf32> to vector<1x32xf32>
    %cst_102 = arith.constant dense<0.000000e+00> : vector<16xf32>
    %243 = vector.multi_reduction <add>, %238, %cst_102 [1] : vector<16x32xf32> to vector<16xf32>
    %244 = vector.shape_cast %243 : vector<16xf32> to vector<16x1xf32>
    %cst_103 = arith.constant 3.200000e+01 : f32
    %245 = vector.broadcast %cst_103 : f32 to vector<16x1xf32>
    %246 = arith.divf %244, %245 : vector<16x1xf32>
    %247 = vector.broadcast %246 : vector<16x1xf32> to vector<16x32xf32>
    %248 = arith.subf %238, %247 : vector<16x32xf32>
    %249 = arith.mulf %248, %248 : vector<16x32xf32>
    %cst_104 = arith.constant dense<0.000000e+00> : vector<16xf32>
    %250 = vector.multi_reduction <add>, %249, %cst_104 [1] : vector<16x32xf32> to vector<16xf32>
    %251 = vector.shape_cast %250 : vector<16xf32> to vector<16x1xf32>
    %cst_105 = arith.constant 3.200000e+01 : f32
    %252 = vector.broadcast %cst_105 : f32 to vector<16x1xf32>
    %253 = arith.divf %251, %252 : vector<16x1xf32>
    %254 = vector.broadcast %246 : vector<16x1xf32> to vector<16x32xf32>
    %255 = arith.subf %238, %254 : vector<16x32xf32>
    %cst_106 = arith.constant 9.99999974E-6 : f32
    %256 = vector.broadcast %cst_106 : f32 to vector<16x1xf32>
    %257 = arith.addf %253, %256 : vector<16x1xf32>
    %258 = math.rsqrt %257 : vector<16x1xf32>
    %259 = vector.broadcast %258 : vector<16x1xf32> to vector<16x32xf32>
    %260 = arith.mulf %255, %259 : vector<16x32xf32>
    %261 = vector.broadcast %240 : vector<1x32xf32> to vector<16x32xf32>
    %262 = arith.mulf %260, %261 : vector<16x32xf32>
    %263 = vector.broadcast %242 : vector<1x32xf32> to vector<16x32xf32>
    %264 = arith.addf %262, %263 : vector<16x32xf32>
    %c1_107 = arith.constant 1 : index
    %c0_108 = arith.constant 0 : index
    %c0_109 = arith.constant 0 : index
    %265 = vector.load %arg13[%c1_107, %c0_108, %c0_109] : memref<2x32x96xf32, #tpu.memory_space<vmem>>, vector<1x32x96xf32>
    %266 = vector.shape_cast %265 : vector<1x32x96xf32> to vector<32x96xf32>
    %cst_110 = arith.constant dense<0.000000e+00> : vector<16x96xf32>
    %267 = tpu.matmul %264, %266, %cst_110 {dimension_numbers = #tpu.dot_dimension_numbers<[1], [0], [0], [1], [0, 0, 1, 1], [], []>} : vector<16x32xf32>, vector<32x96xf32>, vector<16x96xf32> -> vector<16x96xf32>
    %c1_111 = arith.constant 1 : index
    %c0_112 = arith.constant 0 : index
    %c0_113 = arith.constant 0 : index
    %268 = vector.load %arg14[%c1_111, %c0_112, %c0_113] : memref<2x1x96xf32, #tpu.memory_space<vmem>>, vector<1x1x96xf32>
    %269 = vector.shape_cast %268 : vector<1x1x96xf32> to vector<1x96xf32>
    %270 = vector.broadcast %269 : vector<1x96xf32> to vector<16x96xf32>
    %271 = arith.addf %267, %270 : vector<16x96xf32>
    %272 = vector.extract_strided_slice %271 {offsets = [0, 0], sizes = [16, 32], strides = [1, 1]} : vector<16x96xf32> to vector<16x32xf32>
    %cst_114 = arith.constant 0.353553385 : f32
    %273 = vector.broadcast %cst_114 : f32 to vector<16x32xf32>
    %274 = arith.mulf %272, %273 : vector<16x32xf32>
    %275 = vector.extract_strided_slice %271 {offsets = [0, 32], sizes = [16, 32], strides = [1, 1]} : vector<16x96xf32> to vector<16x32xf32>
    %276 = vector.extract_strided_slice %271 {offsets = [0, 64], sizes = [16, 32], strides = [1, 1]} : vector<16x96xf32> to vector<16x32xf32>
    %277 = vector.extract_strided_slice %274 {offsets = [0, 0], sizes = [16, 8], strides = [1, 1]} : vector<16x32xf32> to vector<16x8xf32>
    %278 = vector.extract_strided_slice %275 {offsets = [0, 0], sizes = [16, 8], strides = [1, 1]} : vector<16x32xf32> to vector<16x8xf32>
    %279 = vector.extract_strided_slice %276 {offsets = [0, 0], sizes = [16, 8], strides = [1, 1]} : vector<16x32xf32> to vector<16x8xf32>
    "tpu.trace_start"() <{level = 10 : i32, message = "qd,kd->qk"}> : () -> ()
    %cst_115 = arith.constant dense<0.000000e+00> : vector<16x16xf32>
    %280 = tpu.matmul %277, %278, %cst_115 {dimension_numbers = #tpu.dot_dimension_numbers<[1], [1], [0], [0], [0, 0, 1, 0], [], []>} : vector<16x8xf32>, vector<16x8xf32>, vector<16x16xf32> -> vector<16x16xf32>
    "tpu.trace_stop"() : () -> ()
    %cst_116 = arith.constant dense<0xFF800000> : vector<16xf32>
    %281 = vector.multi_reduction <maximumf>, %280, %cst_116 [1] : vector<16x16xf32> to vector<16xf32>
    %282 = vector.shape_cast %281 : vector<16xf32> to vector<16x1xf32>
    %283 = vector.broadcast %282 : vector<16x1xf32> to vector<16x16xf32>
    %284 = arith.subf %280, %283 : vector<16x16xf32>
    %285 = math.exp %284 : vector<16x16xf32>
    %cst_117 = arith.constant dense<0.000000e+00> : vector<16xf32>
    %286 = vector.multi_reduction <add>, %285, %cst_117 [1] : vector<16x16xf32> to vector<16xf32>
    %287 = vector.shape_cast %286 : vector<16xf32> to vector<16x1xf32>
    %288 = tpu.reciprocal %287 {approx = true} : vector<16x1xf32> -> vector<16x1xf32>
    %289 = vector.broadcast %288 : vector<16x1xf32> to vector<16x16xf32>
    %290 = arith.mulf %285, %289 : vector<16x16xf32>
    %cst_118 = arith.constant dense<0.000000e+00> : vector<16x8xf32>
    %291 = tpu.matmul %290, %279, %cst_118 {dimension_numbers = #tpu.dot_dimension_numbers<[1], [0], [0], [1], [0, 0, 1, 1], [], []>} : vector<16x16xf32>, vector<16x8xf32>, vector<16x8xf32> -> vector<16x8xf32>
    %292 = vector.extract_strided_slice %274 {offsets = [0, 8], sizes = [16, 8], strides = [1, 1]} : vector<16x32xf32> to vector<16x8xf32>
    %293 = vector.extract_strided_slice %275 {offsets = [0, 8], sizes = [16, 8], strides = [1, 1]} : vector<16x32xf32> to vector<16x8xf32>
    %294 = vector.extract_strided_slice %276 {offsets = [0, 8], sizes = [16, 8], strides = [1, 1]} : vector<16x32xf32> to vector<16x8xf32>
    "tpu.trace_start"() <{level = 10 : i32, message = "qd,kd->qk"}> : () -> ()
    %cst_119 = arith.constant dense<0.000000e+00> : vector<16x16xf32>
    %295 = tpu.matmul %292, %293, %cst_119 {dimension_numbers = #tpu.dot_dimension_numbers<[1], [1], [0], [0], [0, 0, 1, 0], [], []>} : vector<16x8xf32>, vector<16x8xf32>, vector<16x16xf32> -> vector<16x16xf32>
    "tpu.trace_stop"() : () -> ()
    %cst_120 = arith.constant dense<0xFF800000> : vector<16xf32>
    %296 = vector.multi_reduction <maximumf>, %295, %cst_120 [1] : vector<16x16xf32> to vector<16xf32>
    %297 = vector.shape_cast %296 : vector<16xf32> to vector<16x1xf32>
    %298 = vector.broadcast %297 : vector<16x1xf32> to vector<16x16xf32>
    %299 = arith.subf %295, %298 : vector<16x16xf32>
    %300 = math.exp %299 : vector<16x16xf32>
    %cst_121 = arith.constant dense<0.000000e+00> : vector<16xf32>
    %301 = vector.multi_reduction <add>, %300, %cst_121 [1] : vector<16x16xf32> to vector<16xf32>
    %302 = vector.shape_cast %301 : vector<16xf32> to vector<16x1xf32>
    %303 = tpu.reciprocal %302 {approx = true} : vector<16x1xf32> -> vector<16x1xf32>
    %304 = vector.broadcast %303 : vector<16x1xf32> to vector<16x16xf32>
    %305 = arith.mulf %300, %304 : vector<16x16xf32>
    %cst_122 = arith.constant dense<0.000000e+00> : vector<16x8xf32>
    %306 = tpu.matmul %305, %294, %cst_122 {dimension_numbers = #tpu.dot_dimension_numbers<[1], [0], [0], [1], [0, 0, 1, 1], [], []>} : vector<16x16xf32>, vector<16x8xf32>, vector<16x8xf32> -> vector<16x8xf32>
    %307 = vector.extract_strided_slice %274 {offsets = [0, 16], sizes = [16, 8], strides = [1, 1]} : vector<16x32xf32> to vector<16x8xf32>
    %308 = vector.extract_strided_slice %275 {offsets = [0, 16], sizes = [16, 8], strides = [1, 1]} : vector<16x32xf32> to vector<16x8xf32>
    %309 = vector.extract_strided_slice %276 {offsets = [0, 16], sizes = [16, 8], strides = [1, 1]} : vector<16x32xf32> to vector<16x8xf32>
    "tpu.trace_start"() <{level = 10 : i32, message = "qd,kd->qk"}> : () -> ()
    %cst_123 = arith.constant dense<0.000000e+00> : vector<16x16xf32>
    %310 = tpu.matmul %307, %308, %cst_123 {dimension_numbers = #tpu.dot_dimension_numbers<[1], [1], [0], [0], [0, 0, 1, 0], [], []>} : vector<16x8xf32>, vector<16x8xf32>, vector<16x16xf32> -> vector<16x16xf32>
    "tpu.trace_stop"() : () -> ()
    %cst_124 = arith.constant dense<0xFF800000> : vector<16xf32>
    %311 = vector.multi_reduction <maximumf>, %310, %cst_124 [1] : vector<16x16xf32> to vector<16xf32>
    %312 = vector.shape_cast %311 : vector<16xf32> to vector<16x1xf32>
    %313 = vector.broadcast %312 : vector<16x1xf32> to vector<16x16xf32>
    %314 = arith.subf %310, %313 : vector<16x16xf32>
    %315 = math.exp %314 : vector<16x16xf32>
    %cst_125 = arith.constant dense<0.000000e+00> : vector<16xf32>
    %316 = vector.multi_reduction <add>, %315, %cst_125 [1] : vector<16x16xf32> to vector<16xf32>
    %317 = vector.shape_cast %316 : vector<16xf32> to vector<16x1xf32>
    %318 = tpu.reciprocal %317 {approx = true} : vector<16x1xf32> -> vector<16x1xf32>
    %319 = vector.broadcast %318 : vector<16x1xf32> to vector<16x16xf32>
    %320 = arith.mulf %315, %319 : vector<16x16xf32>
    %cst_126 = arith.constant dense<0.000000e+00> : vector<16x8xf32>
    %321 = tpu.matmul %320, %309, %cst_126 {dimension_numbers = #tpu.dot_dimension_numbers<[1], [0], [0], [1], [0, 0, 1, 1], [], []>} : vector<16x16xf32>, vector<16x8xf32>, vector<16x8xf32> -> vector<16x8xf32>
    %322 = vector.extract_strided_slice %274 {offsets = [0, 24], sizes = [16, 8], strides = [1, 1]} : vector<16x32xf32> to vector<16x8xf32>
    %323 = vector.extract_strided_slice %275 {offsets = [0, 24], sizes = [16, 8], strides = [1, 1]} : vector<16x32xf32> to vector<16x8xf32>
    %324 = vector.extract_strided_slice %276 {offsets = [0, 24], sizes = [16, 8], strides = [1, 1]} : vector<16x32xf32> to vector<16x8xf32>
    "tpu.trace_start"() <{level = 10 : i32, message = "qd,kd->qk"}> : () -> ()
    %cst_127 = arith.constant dense<0.000000e+00> : vector<16x16xf32>
    %325 = tpu.matmul %322, %323, %cst_127 {dimension_numbers = #tpu.dot_dimension_numbers<[1], [1], [0], [0], [0, 0, 1, 0], [], []>} : vector<16x8xf32>, vector<16x8xf32>, vector<16x16xf32> -> vector<16x16xf32>
    "tpu.trace_stop"() : () -> ()
    %cst_128 = arith.constant dense<0xFF800000> : vector<16xf32>
    %326 = vector.multi_reduction <maximumf>, %325, %cst_128 [1] : vector<16x16xf32> to vector<16xf32>
    %327 = vector.shape_cast %326 : vector<16xf32> to vector<16x1xf32>
    %328 = vector.broadcast %327 : vector<16x1xf32> to vector<16x16xf32>
    %329 = arith.subf %325, %328 : vector<16x16xf32>
    %330 = math.exp %329 : vector<16x16xf32>
    %cst_129 = arith.constant dense<0.000000e+00> : vector<16xf32>
    %331 = vector.multi_reduction <add>, %330, %cst_129 [1] : vector<16x16xf32> to vector<16xf32>
    %332 = vector.shape_cast %331 : vector<16xf32> to vector<16x1xf32>
    %333 = tpu.reciprocal %332 {approx = true} : vector<16x1xf32> -> vector<16x1xf32>
    %334 = vector.broadcast %333 : vector<16x1xf32> to vector<16x16xf32>
    %335 = arith.mulf %330, %334 : vector<16x16xf32>
    %cst_130 = arith.constant dense<0.000000e+00> : vector<16x8xf32>
    %336 = tpu.matmul %335, %324, %cst_130 {dimension_numbers = #tpu.dot_dimension_numbers<[1], [0], [0], [1], [0, 0, 1, 1], [], []>} : vector<16x16xf32>, vector<16x8xf32>, vector<16x8xf32> -> vector<16x8xf32>
    %337 = tpu.concatenate %291, %306, %321, %336 in 1 : vector<16x8xf32>, vector<16x8xf32>, vector<16x8xf32>, vector<16x8xf32> -> vector<16x32xf32>
    %c1_131 = arith.constant 1 : index
    %c0_132 = arith.constant 0 : index
    %c0_133 = arith.constant 0 : index
    %338 = vector.load %arg15[%c1_131, %c0_132, %c0_133] : memref<2x32x32xf32, #tpu.memory_space<vmem>>, vector<1x32x32xf32>
    %339 = vector.shape_cast %338 : vector<1x32x32xf32> to vector<32x32xf32>
    %cst_134 = arith.constant dense<0.000000e+00> : vector<16x32xf32>
    %340 = tpu.matmul %337, %339, %cst_134 {dimension_numbers = #tpu.dot_dimension_numbers<[1], [0], [0], [1], [0, 0, 1, 1], [], []>} : vector<16x32xf32>, vector<32x32xf32>, vector<16x32xf32> -> vector<16x32xf32>
    %341 = arith.addf %238, %340 : vector<16x32xf32>
    %c1_135 = arith.constant 1 : index
    %c0_136 = arith.constant 0 : index
    %c0_137 = arith.constant 0 : index
    %342 = vector.load %arg16[%c1_135, %c0_136, %c0_137] : memref<2x1x32xf32, #tpu.memory_space<vmem>>, vector<1x1x32xf32>
    %343 = vector.shape_cast %342 : vector<1x1x32xf32> to vector<1x32xf32>
    %344 = vector.broadcast %343 : vector<1x32xf32> to vector<16x32xf32>
    %345 = arith.addf %341, %344 : vector<16x32xf32>
    %c1_138 = arith.constant 1 : index
    %c0_139 = arith.constant 0 : index
    %c0_140 = arith.constant 0 : index
    %346 = vector.load %arg17[%c1_138, %c0_139, %c0_140] : memref<2x1x32xf32, #tpu.memory_space<vmem>>, vector<1x1x32xf32>
    %347 = vector.shape_cast %346 : vector<1x1x32xf32> to vector<1x32xf32>
    %c1_141 = arith.constant 1 : index
    %c0_142 = arith.constant 0 : index
    %c0_143 = arith.constant 0 : index
    %348 = vector.load %arg18[%c1_141, %c0_142, %c0_143] : memref<2x1x32xf32, #tpu.memory_space<vmem>>, vector<1x1x32xf32>
    %349 = vector.shape_cast %348 : vector<1x1x32xf32> to vector<1x32xf32>
    %cst_144 = arith.constant dense<0.000000e+00> : vector<16xf32>
    %350 = vector.multi_reduction <add>, %345, %cst_144 [1] : vector<16x32xf32> to vector<16xf32>
    %351 = vector.shape_cast %350 : vector<16xf32> to vector<16x1xf32>
    %cst_145 = arith.constant 3.200000e+01 : f32
    %352 = vector.broadcast %cst_145 : f32 to vector<16x1xf32>
    %353 = arith.divf %351, %352 : vector<16x1xf32>
    %354 = vector.broadcast %353 : vector<16x1xf32> to vector<16x32xf32>
    %355 = arith.subf %345, %354 : vector<16x32xf32>
    %356 = arith.mulf %355, %355 : vector<16x32xf32>
    %cst_146 = arith.constant dense<0.000000e+00> : vector<16xf32>
    %357 = vector.multi_reduction <add>, %356, %cst_146 [1] : vector<16x32xf32> to vector<16xf32>
    %358 = vector.shape_cast %357 : vector<16xf32> to vector<16x1xf32>
    %cst_147 = arith.constant 3.200000e+01 : f32
    %359 = vector.broadcast %cst_147 : f32 to vector<16x1xf32>
    %360 = arith.divf %358, %359 : vector<16x1xf32>
    %361 = vector.broadcast %353 : vector<16x1xf32> to vector<16x32xf32>
    %362 = arith.subf %345, %361 : vector<16x32xf32>
    %cst_148 = arith.constant 9.99999974E-6 : f32
    %363 = vector.broadcast %cst_148 : f32 to vector<16x1xf32>
    %364 = arith.addf %360, %363 : vector<16x1xf32>
    %365 = math.rsqrt %364 : vector<16x1xf32>
    %366 = vector.broadcast %365 : vector<16x1xf32> to vector<16x32xf32>
    %367 = arith.mulf %362, %366 : vector<16x32xf32>
    %368 = vector.broadcast %347 : vector<1x32xf32> to vector<16x32xf32>
    %369 = arith.mulf %367, %368 : vector<16x32xf32>
    %370 = vector.broadcast %349 : vector<1x32xf32> to vector<16x32xf32>
    %371 = arith.addf %369, %370 : vector<16x32xf32>
    %c1_149 = arith.constant 1 : index
    %c0_150 = arith.constant 0 : index
    %c0_151 = arith.constant 0 : index
    %372 = vector.load %arg19[%c1_149, %c0_150, %c0_151] : memref<2x32x64xf32, #tpu.memory_space<vmem>>, vector<1x32x64xf32>
    %373 = vector.shape_cast %372 : vector<1x32x64xf32> to vector<32x64xf32>
    %cst_152 = arith.constant dense<0.000000e+00> : vector<16x64xf32>
    %374 = tpu.matmul %371, %373, %cst_152 {dimension_numbers = #tpu.dot_dimension_numbers<[1], [0], [0], [1], [0, 0, 1, 1], [], []>} : vector<16x32xf32>, vector<32x64xf32>, vector<16x64xf32> -> vector<16x64xf32>
    %c1_153 = arith.constant 1 : index
    %c0_154 = arith.constant 0 : index
    %c0_155 = arith.constant 0 : index
    %375 = vector.load %arg20[%c1_153, %c0_154, %c0_155] : memref<2x1x64xf32, #tpu.memory_space<vmem>>, vector<1x1x64xf32>
    %376 = vector.shape_cast %375 : vector<1x1x64xf32> to vector<1x64xf32>
    %377 = vector.broadcast %376 : vector<1x64xf32> to vector<16x64xf32>
    %378 = arith.addf %374, %377 : vector<16x64xf32>
    %379 = arith.mulf %378, %378 : vector<16x64xf32>
    %380 = arith.mulf %378, %379 : vector<16x64xf32>
    %cst_156 = arith.constant 4.471500e-02 : f32
    %381 = vector.broadcast %cst_156 : f32 to vector<16x64xf32>
    %382 = arith.mulf %381, %380 : vector<16x64xf32>
    %383 = arith.addf %378, %382 : vector<16x64xf32>
    %cst_157 = arith.constant 0.797884583 : f32
    %384 = vector.broadcast %cst_157 : f32 to vector<16x64xf32>
    %385 = arith.mulf %384, %383 : vector<16x64xf32>
    %386 = math.tanh %385 : vector<16x64xf32>
    %cst_158 = arith.constant 1.000000e+00 : f32
    %387 = vector.broadcast %cst_158 : f32 to vector<16x64xf32>
    %388 = arith.addf %387, %386 : vector<16x64xf32>
    %cst_159 = arith.constant 5.000000e-01 : f32
    %389 = vector.broadcast %cst_159 : f32 to vector<16x64xf32>
    %390 = arith.mulf %389, %388 : vector<16x64xf32>
    %391 = arith.mulf %378, %390 : vector<16x64xf32>
    %c1_160 = arith.constant 1 : index
    %c0_161 = arith.constant 0 : index
    %c0_162 = arith.constant 0 : index
    %392 = vector.load %arg21[%c1_160, %c0_161, %c0_162] : memref<2x64x32xf32, #tpu.memory_space<vmem>>, vector<1x64x32xf32>
    %393 = vector.shape_cast %392 : vector<1x64x32xf32> to vector<64x32xf32>
    %cst_163 = arith.constant dense<0.000000e+00> : vector<16x32xf32>
    %394 = tpu.matmul %391, %393, %cst_163 {dimension_numbers = #tpu.dot_dimension_numbers<[1], [0], [0], [1], [0, 0, 1, 1], [], []>} : vector<16x64xf32>, vector<64x32xf32>, vector<16x32xf32> -> vector<16x32xf32>
    %395 = arith.addf %345, %394 : vector<16x32xf32>
    %c1_164 = arith.constant 1 : index
    %c0_165 = arith.constant 0 : index
    %c0_166 = arith.constant 0 : index
    %396 = vector.load %arg22[%c1_164, %c0_165, %c0_166] : memref<2x1x32xf32, #tpu.memory_space<vmem>>, vector<1x1x32xf32>
    %397 = vector.shape_cast %396 : vector<1x1x32xf32> to vector<1x32xf32>
    %398 = vector.broadcast %397 : vector<1x32xf32> to vector<16x32xf32>
    %399 = arith.addf %395, %398 : vector<16x32xf32>
    %c0_167 = arith.constant 0 : index
    %c0_168 = arith.constant 0 : index
    %400 = vector.load %arg23[%c0_167, %c0_168] : memref<1x32xf32, #tpu.memory_space<vmem>>, vector<1x32xf32>
    %c0_169 = arith.constant 0 : index
    %c0_170 = arith.constant 0 : index
    %401 = vector.load %arg24[%c0_169, %c0_170] : memref<1x32xf32, #tpu.memory_space<vmem>>, vector<1x32xf32>
    %cst_171 = arith.constant dense<0.000000e+00> : vector<16xf32>
    %402 = vector.multi_reduction <add>, %399, %cst_171 [1] : vector<16x32xf32> to vector<16xf32>
    %403 = vector.shape_cast %402 : vector<16xf32> to vector<16x1xf32>
    %cst_172 = arith.constant 3.200000e+01 : f32
    %404 = vector.broadcast %cst_172 : f32 to vector<16x1xf32>
    %405 = arith.divf %403, %404 : vector<16x1xf32>
    %406 = vector.broadcast %405 : vector<16x1xf32> to vector<16x32xf32>
    %407 = arith.subf %399, %406 : vector<16x32xf32>
    %408 = arith.mulf %407, %407 : vector<16x32xf32>
    %cst_173 = arith.constant dense<0.000000e+00> : vector<16xf32>
    %409 = vector.multi_reduction <add>, %408, %cst_173 [1] : vector<16x32xf32> to vector<16xf32>
    %410 = vector.shape_cast %409 : vector<16xf32> to vector<16x1xf32>
    %cst_174 = arith.constant 3.200000e+01 : f32
    %411 = vector.broadcast %cst_174 : f32 to vector<16x1xf32>
    %412 = arith.divf %410, %411 : vector<16x1xf32>
    %413 = vector.broadcast %405 : vector<16x1xf32> to vector<16x32xf32>
    %414 = arith.subf %399, %413 : vector<16x32xf32>
    %cst_175 = arith.constant 9.99999974E-6 : f32
    %415 = vector.broadcast %cst_175 : f32 to vector<16x1xf32>
    %416 = arith.addf %412, %415 : vector<16x1xf32>
    %417 = math.rsqrt %416 : vector<16x1xf32>
    %418 = vector.broadcast %417 : vector<16x1xf32> to vector<16x32xf32>
    %419 = arith.mulf %414, %418 : vector<16x32xf32>
    %420 = vector.broadcast %400 : vector<1x32xf32> to vector<16x32xf32>
    %421 = arith.mulf %419, %420 : vector<16x32xf32>
    %422 = vector.broadcast %401 : vector<1x32xf32> to vector<16x32xf32>
    %423 = arith.addf %421, %422 : vector<16x32xf32>
    %c0_176 = arith.constant 0 : index
    %c0_177 = arith.constant 0 : index
    %c0_178 = arith.constant 0 : index
    %424 = vector.load %arg25[%c0_176, %c0_177, %c0_178] : memref<1x16x32xf32, #tpu.memory_space<vmem>>, vector<1x16x32xf32>
    %425 = vector.shape_cast %424 : vector<1x16x32xf32> to vector<16x32xf32>
    %426 = vector.shape_cast %423 : vector<16x32xf32> to vector<1x16x32xf32>
    tpu.vector_store %arg25[%c0_176, %c0_177, %c0_178], %426 {strides = array<i32>} : memref<1x16x32xf32, #tpu.memory_space<vmem>>, vector<1x16x32xf32>,
    return
  }
  func.func @transform_0(%arg0: i32) -> (i32, i32, i32, i32) {
    %c0_i32 = arith.constant 0 : i32
    %c0_i32_0 = arith.constant 0 : i32
    %c0_i32_1 = arith.constant 0 : i32
    %c0_i32_2 = arith.constant 0 : i32
    return %arg0, %c0_i32, %c0_i32_0, %c0_i32_1 : i32, i32, i32, i32
  }
  func.func @transform_1(%arg0: i32) -> (i32, i32, i32) {
    %c0_i32 = arith.constant 0 : i32
    %c0_i32_0 = arith.constant 0 : i32
    %c0_i32_1 = arith.constant 0 : i32
    return %arg0, %c0_i32, %c0_i32_0 : i32, i32, i32
  }
  func.func @transform_2(%arg0: i32) -> (i32, i32) {
    %c0_i32 = arith.constant 0 : i32
    %c0_i32_0 = arith.constant 0 : i32
    %c0_i32_1 = arith.constant 0 : i32
    return %c0_i32, %c0_i32_0 : i32, i32
  }
  func.func @transform_3(%arg0: i32) -> (i32, i32) {
    %c0_i32 = arith.constant 0 : i32
    %c0_i32_0 = arith.constant 0 : i32
    %c0_i32_1 = arith.constant 0 : i32
    return %c0_i32, %c0_i32_0 : i32, i32
  }
  func.func @transform_4(%arg0: i32) -> (i32, i32) {
    %c0_i32 = arith.constant 0 : i32
    %c0_i32_0 = arith.constant 0 : i32
    %c0_i32_1 = arith.constant 0 : i32
    return %c0_i32, %c0_i32_0 : i32, i32
  }
  func.func @transform_5(%arg0: i32) -> (i32, i32) {
    %c0_i32 = arith.constant 0 : i32
    %c0_i32_0 = arith.constant 0 : i32
    %c0_i32_1 = arith.constant 0 : i32
    return %c0_i32, %c0_i32_0 : i32, i32
  }
  func.func @transform_6(%arg0: i32) -> (i32, i32) {
    %c0_i32 = arith.constant 0 : i32
    %c0_i32_0 = arith.constant 0 : i32
    %c0_i32_1 = arith.constant 0 : i32
    return %c0_i32, %c0_i32_0 : i32, i32
  }
  func.func @transform_7(%arg0: i32) -> (i32, i32) {
    %c0_i32 = arith.constant 0 : i32
    %c0_i32_0 = arith.constant 0 : i32
    %c0_i32_1 = arith.constant 0 : i32
    return %c0_i32, %c0_i32_0 : i32, i32
  }
  func.func @transform_8(%arg0: i32) -> (i32, i32) {
    %c0_i32 = arith.constant 0 : i32
    %c0_i32_0 = arith.constant 0 : i32
    %c0_i32_1 = arith.constant 0 : i32
    return %c0_i32, %c0_i32_0 : i32, i32
  }
  func.func @transform_9(%arg0: i32) -> (i32, i32) {
    %c0_i32 = arith.constant 0 : i32
    %c0_i32_0 = arith.constant 0 : i32
    %c0_i32_1 = arith.constant 0 : i32
    return %c0_i32, %c0_i32_0 : i32, i32
  }
  func.func @transform_10(%arg0: i32) -> (i32, i32, i32) {
    %c0_i32 = arith.constant 0 : i32
    %c0_i32_0 = arith.constant 0 : i32
    %c0_i32_1 = arith.constant 0 : i32
    %c0_i32_2 = arith.constant 0 : i32
    return %c0_i32, %c0_i32_0, %c0_i32_1 : i32, i32, i32
  }
  func.func @transform_11(%arg0: i32) -> (i32, i32, i32) {
    %c0_i32 = arith.constant 0 : i32
    %c0_i32_0 = arith.constant 0 : i32
    %c0_i32_1 = arith.constant 0 : i32
    %c0_i32_2 = arith.constant 0 : i32
    return %c0_i32, %c0_i32_0, %c0_i32_1 : i32, i32, i32
  }
  func.func @transform_12(%arg0: i32) -> (i32, i32, i32) {
    %c0_i32 = arith.constant 0 : i32
    %c0_i32_0 = arith.constant 0 : i32
    %c0_i32_1 = arith.constant 0 : i32
    %c0_i32_2 = arith.constant 0 : i32
    return %c0_i32, %c0_i32_0, %c0_i32_1 : i32, i32, i32
  }
  func.func @transform_13(%arg0: i32) -> (i32, i32, i32) {
    %c0_i32 = arith.constant 0 : i32
    %c0_i32_0 = arith.constant 0 : i32
    %c0_i32_1 = arith.constant 0 : i32
    %c0_i32_2 = arith.constant 0 : i32
    return %c0_i32, %c0_i32_0, %c0_i32_1 : i32, i32, i32
  }
  func.func @transform_14(%arg0: i32) -> (i32, i32, i32) {
    %c0_i32 = arith.constant 0 : i32
    %c0_i32_0 = arith.constant 0 : i32
    %c0_i32_1 = arith.constant 0 : i32
    %c0_i32_2 = arith.constant 0 : i32
    return %c0_i32, %c0_i32_0, %c0_i32_1 : i32, i32, i32
  }
  func.func @transform_15(%arg0: i32) -> (i32, i32, i32) {
    %c0_i32 = arith.constant 0 : i32
    %c0_i32_0 = arith.constant 0 : i32
    %c0_i32_1 = arith.constant 0 : i32
    %c0_i32_2 = arith.constant 0 : i32
    return %c0_i32, %c0_i32_0, %c0_i32_1 : i32, i32, i32
  }
  func.func @transform_16(%arg0: i32) -> (i32, i32, i32) {
    %c0_i32 = arith.constant 0 : i32
    %c0_i32_0 = arith.constant 0 : i32
    %c0_i32_1 = arith.constant 0 : i32
    %c0_i32_2 = arith.constant 0 : i32
    return %c0_i32, %c0_i32_0, %c0_i32_1 : i32, i32, i32
  }
  func.func @transform_17(%arg0: i32) -> (i32, i32, i32) {
    %c0_i32 = arith.constant 0 : i32
    %c0_i32_0 = arith.constant 0 : i32
    %c0_i32_1 = arith.constant 0 : i32
    %c0_i32_2 = arith.constant 0 : i32
    return %c0_i32, %c0_i32_0, %c0_i32_1 : i32, i32, i32
  }
  func.func @transform_18(%arg0: i32) -> (i32, i32, i32) {
    %c0_i32 = arith.constant 0 : i32
    %c0_i32_0 = arith.constant 0 : i32
    %c0_i32_1 = arith.constant 0 : i32
    %c0_i32_2 = arith.constant 0 : i32
    return %c0_i32, %c0_i32_0, %c0_i32_1 : i32, i32, i32
  }
  func.func @transform_19(%arg0: i32) -> (i32, i32, i32) {
    %c0_i32 = arith.constant 0 : i32
    %c0_i32_0 = arith.constant 0 : i32
    %c0_i32_1 = arith.constant 0 : i32
    %c0_i32_2 = arith.constant 0 : i32
    return %c0_i32, %c0_i32_0, %c0_i32_1 : i32, i32, i32
  }
  func.func @transform_20(%arg0: i32) -> (i32, i32, i32) {
    %c0_i32 = arith.constant 0 : i32
    %c0_i32_0 = arith.constant 0 : i32
    %c0_i32_1 = arith.constant 0 : i32
    %c0_i32_2 = arith.constant 0 : i32
    return %c0_i32, %c0_i32_0, %c0_i32_1 : i32, i32, i32
  }
  func.func @transform_21(%arg0: i32) -> (i32, i32, i32) {
    %c0_i32 = arith.constant 0 : i32
    %c0_i32_0 = arith.constant 0 : i32
    %c0_i32_1 = arith.constant 0 : i32
    %c0_i32_2 = arith.constant 0 : i32
    return %c0_i32, %c0_i32_0, %c0_i32_1 : i32, i32, i32
  }
  func.func @transform_22(%arg0: i32) -> (i32, i32) {
    %c0_i32 = arith.constant 0 : i32
    %c0_i32_0 = arith.constant 0 : i32
    %c0_i32_1 = arith.constant 0 : i32
    return %c0_i32, %c0_i32_0 : i32, i32
  }
  func.func @transform_23(%arg0: i32) -> (i32, i32) {
    %c0_i32 = arith.constant 0 : i32
    %c0_i32_0 = arith.constant 0 : i32
    %c0_i32_1 = arith.constant 0 : i32
    return %c0_i32, %c0_i32_0 : i32, i32
  }
  func.func @transform_24(%arg0: i32) -> (i32, i32, i32) {
    %c0_i32 = arith.constant 0 : i32
    %c0_i32_0 = arith.constant 0 : i32
    %c0_i32_1 = arith.constant 0 : i32
    return %arg0, %c0_i32, %c0_i32_0 : i32, i32, i32
  }
}

</mosaic_0001>

<bundles_post_ra>
// kernel: neg.1
= control target key start
LH: loop header
LB: loop body
LE: loop exit
PB: predicated region body
PF: predicated region fallthrough
CT: control target
= control target key end

     0   :  { %s72_s0 = inlined_call_operand.vmem [shape: f32[2,16,128], index: 0, kind: input, shape index: {}]   ;;  %s73_s1 = inlined_call_operand.vmem [shape: f32[2,16,128], index: 1, kind: output, shape index: {}]  }
   0x1   :  { %v2_v0 = vld [vmem:[%s72_s0] sm:$0xff]  ;;  %v32_v1 = vld [vmem:[%s72_s0 + $0x10] sm:$0xff]  ;;  %v34_v2 = vld [vmem:[%s72_s0 + $0x8] sm:$0xff] }
   0x2   :  { %v5_v3 = vxor.u32 2147483648, %v2_v0  ;;  %v12_v4 = vxor.u32 2147483648, %v32_v1  ;;  %v20_v5 = vxor.u32 2147483648, %v34_v2  ;;  %v36_v6 = vld [vmem:[%s72_s0 + $0x18] sm:$0xff] }
   0x3   :  { %v28_v7 = vxor.u32 2147483648, %v36_v6 }
   0x4   :  { %7 = vst [vmem:[%s73_s1] sm:$0xff] %v5_v3 }
   0x5   :  { %33 = vst [vmem:[%s73_s1 + $0x10] sm:$0xff] %v12_v4 }
   0x6   :  { %35 = vst [vmem:[%s73_s1 + $0x8] sm:$0xff] %v20_v5 }
   0x7   :  { %37 = vst [vmem:[%s73_s1 + $0x18] sm:$0xff] %v28_v7 }

// kernel: sub.13
= control target key start
LH: loop header
LB: loop body
LE: loop exit
PB: predicated region body
PF: predicated region fallthrough
CT: control target
= control target key end

     0   :  { %s3274_s0 = inlined_call_operand.vmem [shape: f32[2,128,3], index: 0, kind: input, shape index: {}]   ;;  %s3275_s1 = inlined_call_operand.vmem [shape: f32[2,16,128,3], index: 1, kind: output, shape index: {}]  }
   0x1   :  { %v4_v0 = vld [vmem:[%s3274_s0] sm:$0xff]  ;;  %v1122_v2 = vld [vmem:[%s3274_s0 + $0x8] sm:$0xff]  ;;  %v1156_v4 = vld [vmem:[%s3274_s0 + $0x10] sm:$0xff] }
   0x2   :  { %v1090_v1 = vld [vmem:[%s3274_s0 + $0x80] sm:$0xff]  ;;  %5 = vst [vmem:[%s3275_s1] sm:$0xff] %v4_v0  ;;  %v1124_v3 = vld [vmem:[%s3274_s0 + $0x88] sm:$0xff]  ;;  %v1158_v5 = vld [vmem:[%s3274_s0 + $0x90] sm:$0xff] }
   0x3   :  { %1091 = vst [vmem:[%s3275_s1 + $0x800] sm:$0xff] %v1090_v1  ;;  %v1190_v6 = vld [vmem:[%s3274_s0 + $0x18] sm:$0xff]  ;;  %v1224_v8 = vld [vmem:[%s3274_s0 + $0x20] sm:$0xff]  ;;  %v1258_v10 = vld [vmem:[%s3274_s0 + $0x28] sm:$0xff] }
   0x4   :  { %1092 = vst [vmem:[%s3275_s1 + $0x80] sm:$0xff] %v4_v0  ;;  %v1192_v7 = vld [vmem:[%s3274_s0 + $0x98] sm:$0xff]  ;;  %v1226_v9 = vld [vmem:[%s3274_s0 + $0xa0] sm:$0xff]  ;;  %v1260_v11 = vld [vmem:[%s3274_s0 + $0xa8] sm:$0xff] }
   0x5   :  { %1093 = vst [vmem:[%s3275_s1 + $0x880] sm:$0xff] %v1090_v1  ;;  %v1292_v12 = vld [vmem:[%s3274_s0 + $0x30] sm:$0xff]  ;;  %v1326_v14 = vld [vmem:[%s3274_s0 + $0x38] sm:$0xff]  ;;  %v1360_v16 = vld [vmem:[%s3274_s0 + $0x40] sm:$0xff] }
   0x6   :  { %1094 = vst [vmem:[%s3275_s1 + $0x100] sm:$0xff] %v4_v0  ;;  %v1294_v13 = vld [vmem:[%s3274_s0 + $0xb0] sm:$0xff]  ;;  %v1328_v15 = vld [vmem:[%s3274_s0 + $0xb8] sm:$0xff]  ;;  %v1362_v17 = vld [vmem:[%s3274_s0 + $0xc0] sm:$0xff] }
   0x7   :  { %1095 = vst [vmem:[%s3275_s1 + $0x900] sm:$0xff] %v1090_v1  ;;  %v1394_v18 = vld [vmem:[%s3274_s0 + $0x48] sm:$0xff]  ;;  %v1428_v20 = vld [vmem:[%s3274_s0 + $0x50] sm:$0xff]  ;;  %v1462_v22 = vld [vmem:[%s3274_s0 + $0x58] sm:$0xff] }
   0x8   :  { %1096 = vst [vmem:[%s3275_s1 + $0x180] sm:$0xff] %v4_v0  ;;  %v1396_v19 = vld [vmem:[%s3274_s0 + $0xc8] sm:$0xff]  ;;  %v1430_v21 = vld [vmem:[%s3274_s0 + $0xd0] sm:$0xff]  ;;  %v1464_v23 = vld [vmem:[%s3274_s0 + $0xd8] sm:$0xff] }
   0x9   :  { %1097 = vst [vmem:[%s3275_s1 + $0x980] sm:$0xff] %v1090_v1  ;;  %v1496_v24 = vld [vmem:[%s3274_s0 + $0x60] sm:$0xff]  ;;  %v1530_v26 = vld [vmem:[%s3274_s0 + $0x68] sm:$0xff]  ;;  %v1564_v28 = vld [vmem:[%s3274_s0 + $0x70] sm:$0xff] }
   0xa   :  { %1098 = vst [vmem:[%s3275_s1 + $0x200] sm:$0xff] %v4_v0  ;;  %v1498_v25 = vld [vmem:[%s3274_s0 + $0xe0] sm:$0xff]  ;;  %v1532_v27 = vld [vmem:[%s3274_s0 + $0xe8] sm:$0xff]  ;;  %v1566_v29 = vld [vmem:[%s3274_s0 + $0xf0] sm:$0xff] }
   0xb   :  { %1099 = vst [vmem:[%s3275_s1 + $0xa00] sm:$0xff] %v1090_v1  ;;  %v1598_v30 = vld [vmem:[%s3274_s0 + $0x78] sm:$0xff] }
   0xc   :  { %1100 = vst [vmem:[%s3275_s1 + $0x280] sm:$0xff] %v4_v0  ;;  %v1600_v31 = vld [vmem:[%s3274_s0 + $0xf8] sm:$0xff] }
   0xd   :  { %1101 = vst [vmem:[%s3275_s1 + $0xa80] sm:$0xff] %v1090_v1 }
   0xe   :  { %1102 = vst [vmem:[%s3275_s1 + $0x300] sm:$0xff] %v4_v0 }
   0xf   :  { %1103 = vst [vmem:[%s3275_s1 + $0xb00] sm:$0xff] %v1090_v1 }
  0x10   :  { %1104 = vst [vmem:[%s3275_s1 + $0x380] sm:$0xff] %v4_v0 }
  0x11   :  { %1105 = vst [vmem:[%s3275_s1 + $0xb80] sm:$0xff] %v1090_v1 }
  0x12   :  { %1106 = vst [vmem:[%s3275_s1 + $0x400] sm:$0xff] %v4_v0 }
  0x13   :  { %1107 = vst [vmem:[%s3275_s1 + $0xc00] sm:$0xff] %v1090_v1 }
  0x14   :  { %1108 = vst [vmem:[%s3275_s1 + $0x480] sm:$0xff] %v4_v0 }
  0x15   :  { %1109 = vst [vmem:[%s3275_s1 + $0xc80] sm:$0xff] %v1090_v1 }
  0x16   :  { %1110 = vst [vmem:[%s3275_s1 + $0x500] sm:$0xff] %v4_v0 }
  0x17   :  { %1111 = vst [vmem:[%s3275_s1 + $0xd00] sm:$0xff] %v1090_v1 }
  0x18   :  { %1112 = vst [vmem:[%s3275_s1 + $0x580] sm:$0xff] %v4_v0 }
  0x19   :  { %1113 = vst [vmem:[%s3275_s1 + $0xd80] sm:$0xff] %v1090_v1 }
  0x1a   :  { %1114 = vst [vmem:[%s3275_s1 + $0x600] sm:$0xff] %v4_v0 }
  0x1b   :  { %1115 = vst [vmem:[%s3275_s1 + $0xe00] sm:$0xff] %v1090_v1 }
  0x1c   :  { %1116 = vst [vmem:[%s3275_s1 + $0x680] sm:$0xff] %v4_v0 }
  0x1d   :  { %1117 = vst [vmem:[%s3275_s1 + $0xe80] sm:$0xff] %v1090_v1 }
  0x1e   :  { %1118 = vst [vmem:[%s3275_s1 + $0x700] sm:$0xff] %v4_v0 }
  0x1f   :  { %1119 = vst [vmem:[%s3275_s1 + $0xf00] sm:$0xff] %v1090_v1 }
  0x20   :  { %1120 = vst [vmem:[%s3275_s1 + $0x780] sm:$0xff] %v4_v0 }
  0x21   :  { %1121 = vst [vmem:[%s3275_s1 + $0xf80] sm:$0xff] %v1090_v1 }
  0x22   :  { %1123 = vst [vmem:[%s3275_s1 + $0x8] sm:$0xff] %v1122_v2 }
  0x23   :  { %1125 = vst [vmem:[%s3275_s1 + $0x808] sm:$0xff] %v1124_v3 }
  0x24   :  { %1126 = vst [vmem:[%s3275_s1 + $0x88] sm:$0xff] %v1122_v2 }
  0x25   :  { %1127 = vst [vmem:[%s3275_s1 + $0x888] sm:$0xff] %v1124_v3 }
  0x26   :  { %1128 = vst [vmem:[%s3275_s1 + $0x108] sm:$0xff] %v1122_v2 }
  0x27   :  { %1129 = vst [vmem:[%s3275_s1 + $0x908] sm:$0xff] %v1124_v3 }
  0x28   :  { %1130 = vst [vmem:[%s3275_s1 + $0x188] sm:$0xff] %v1122_v2 }
  0x29   :  { %1131 = vst [vmem:[%s3275_s1 + $0x988] sm:$0xff] %v1124_v3 }
  0x2a   :  { %1132 = vst [vmem:[%s3275_s1 + $0x208] sm:$0xff] %v1122_v2 }
  0x2b   :  { %1133 = vst [vmem:[%s3275_s1 + $0xa08] sm:$0xff] %v1124_v3 }
  0x2c   :  { %1134 = vst [vmem:[%s3275_s1 + $0x288] sm:$0xff] %v1122_v2 }
  0x2d   :  { %1135 = vst [vmem:[%s3275_s1 + $0xa88] sm:$0xff] %v1124_v3 }
  0x2e   :  { %1136 = vst [vmem:[%s3275_s1 + $0x308] sm:$0xff] %v1122_v2 }
  0x2f   :  { %1137 = vst [vmem:[%s3275_s1 + $0xb08] sm:$0xff] %v1124_v3 }
  0x30   :  { %1138 = vst [vmem:[%s3275_s1 + $0x388] sm:$0xff] %v1122_v2 }
  0x31   :  { %1139 = vst [vmem:[%s3275_s1 + $0xb88] sm:$0xff] %v1124_v3 }
  0x32   :  { %1140 = vst [vmem:[%s3275_s1 + $0x408] sm:$0xff] %v1122_v2 }
  0x33   :  { %1141 = vst [vmem:[%s3275_s1 + $0xc08] sm:$0xff] %v1124_v3 }
  0x34   :  { %1142 = vst [vmem:[%s3275_s1 + $0x488] sm:$0xff] %v1122_v2 }
  0x35   :  { %1143 = vst [vmem:[%s3275_s1 + $0xc88] sm:$0xff] %v1124_v3 }
  0x36   :  { %1144 = vst [vmem:[%s3275_s1 + $0x508] sm:$0xff] %v1122_v2 }
  0x37   :  { %1145 = vst [vmem:[%s3275_s1 + $0xd08] sm:$0xff] %v1124_v3 }
  0x38   :  { %1146 = vst [vmem:[%s3275_s1 + $0x588] sm:$0xff] %v1122_v2 }
  0x39   :  { %1147 = vst [vmem:[%s3275_s1 + $0xd88] sm:$0xff] %v1124_v3 }
  0x3a   :  { %1148 = vst [vmem:[%s3275_s1 + $0x608] sm:$0xff] %v1122_v2 }
  0x3b   :  { %1149 = vst [vmem:[%s3275_s1 + $0xe08] sm:$0xff] %v1124_v3 }
  0x3c   :  { %1150 = vst [vmem:[%s3275_s1 + $0x688] sm:$0xff] %v1122_v2 }
  0x3d   :  { %1151 = vst [vmem:[%s3275_s1 + $0xe88] sm:$0xff] %v1124_v3 }
  0x3e   :  { %1152 = vst [vmem:[%s3275_s1 + $0x708] sm:$0xff] %v1122_v2 }
  0x3f   :  { %1153 = vst [vmem:[%s3275_s1 + $0xf08] sm:$0xff] %v1124_v3 }
  0x40   :  { %1154 = vst [vmem:[%s3275_s1 + $0x788] sm:$0xff] %v1122_v2 }
  0x41   :  { %1155 = vst [vmem:[%s3275_s1 + $0xf88] sm:$0xff] %v1124_v3 }
  0x42   :  { %1157 = vst [vmem:[%s3275_s1 + $0x10] sm:$0xff] %v1156_v4 }
  0x43   :  { %1159 = vst [vmem:[%s3275_s1 + $0x810] sm:$0xff] %v1158_v5 }
  0x44   :  { %1160 = vst [vmem:[%s3275_s1 + $0x90] sm:$0xff] %v1156_v4 }
  0x45   :  { %1161 = vst [vmem:[%s3275_s1 + $0x890] sm:$0xff] %v1158_v5 }
  0x46   :  { %1162 = vst [vmem:[%s3275_s1 + $0x110] sm:$0xff] %v1156_v4 }
  0x47   :  { %1163 = vst [vmem:[%s3275_s1 + $0x910] sm:$0xff] %v1158_v5 }
  0x48   :  { %1164 = vst [vmem:[%s3275_s1 + $0x190] sm:$0xff] %v1156_v4 }
  0x49   :  { %1165 = vst [vmem:[%s3275_s1 + $0x990] sm:$0xff] %v1158_v5 }
  0x4a   :  { %1166 = vst [vmem:[%s3275_s1 + $0x210] sm:$0xff] %v1156_v4 }
  0x4b   :  { %1167 = vst [vmem:[%s3275_s1 + $0xa10] sm:$0xff] %v1158_v5 }
  0x4c   :  { %1168 = vst [vmem:[%s3275_s1 + $0x290] sm:$0xff] %v1156_v4 }
  0x4d   :  { %1169 = vst [vmem:[%s3275_s1 + $0xa90] sm:$0xff] %v1158_v5 }
  0x4e   :  { %1170 = vst [vmem:[%s3275_s1 + $0x310] sm:$0xff] %v1156_v4 }
  0x4f   :  { %1171 = vst [vmem:[%s3275_s1 + $0xb10] sm:$0xff] %v1158_v5 }
  0x50   :  { %1172 = vst [vmem:[%s3275_s1 + $0x390] sm:$0xff] %v1156_v4 }
  0x51   :  { %1173 = vst [vmem:[%s3275_s1 + $0xb90] sm:$0xff] %v1158_v5 }
  0x52   :  { %1174 = vst [vmem:[%s3275_s1 + $0x410] sm:$0xff] %v1156_v4 }
  0x53   :  { %1175 = vst [vmem:[%s3275_s1 + $0xc10] sm:$0xff] %v1158_v5 }
  0x54   :  { %1176 = vst [vmem:[%s3275_s1 + $0x490] sm:$0xff] %v1156_v4 }
  0x55   :  { %1177 = vst [vmem:[%s3275_s1 + $0xc90] sm:$0xff] %v1158_v5 }
  0x56   :  { %1178 = vst [vmem:[%s3275_s1 + $0x510] sm:$0xff] %v1156_v4 }
  0x57   :  { %1179 = vst [vmem:[%s3275_s1 + $0xd10] sm:$0xff] %v1158_v5 }
  0x58   :  { %1180 = vst [vmem:[%s3275_s1 + $0x590] sm:$0xff] %v1156_v4 }
  0x59   :  { %1181 = vst [vmem:[%s3275_s1 + $0xd90] sm:$0xff] %v1158_v5 }
  0x5a   :  { %1182 = vst [vmem:[%s3275_s1 + $0x610] sm:$0xff] %v1156_v4 }
  0x5b   :  { %1183 = vst [vmem:[%s3275_s1 + $0xe10] sm:$0xff] %v1158_v5 }
  0x5c   :  { %1184 = vst [vmem:[%s3275_s1 + $0x690] sm:$0xff] %v1156_v4 }
  0x5d   :  { %1185 = vst [vmem:[%s3275_s1 + $0xe90] sm:$0xff] %v1158_v5 }
  0x5e   :  { %1186 = vst [vmem:[%s3275_s1 + $0x710] sm:$0xff] %v1156_v4 }
  0x5f   :  { %1187 = vst [vmem:[%s3275_s1 + $0xf10] sm:$0xff] %v1158_v5 }
  0x60   :  { %1188 = vst [vmem:[%s3275_s1 + $0x790] sm:$0xff] %v1156_v4 }
  0x61   :  { %1189 = vst [vmem:[%s3275_s1 + $0xf90] sm:$0xff] %v1158_v5 }
  0x62   :  { %1191 = vst [vmem:[%s3275_s1 + $0x18] sm:$0xff] %v1190_v6 }
  0x63   :  { %1193 = vst [vmem:[%s3275_s1 + $0x818] sm:$0xff] %v1192_v7 }
  0x64   :  { %1194 = vst [vmem:[%s3275_s1 + $0x98] sm:$0xff] %v1190_v6 }
  0x65   :  { %1195 = vst [vmem:[%s3275_s1 + $0x898] sm:$0xff] %v1192_v7 }
  0x66   :  { %1196 = vst [vmem:[%s3275_s1 + $0x118] sm:$0xff] %v1190_v6 }
  0x67   :  { %1197 = vst [vmem:[%s3275_s1 + $0x918] sm:$0xff] %v1192_v7 }
  0x68   :  { %1198 = vst [vmem:[%s3275_s1 + $0x198] sm:$0xff] %v1190_v6 }
  0x69   :  { %1199 = vst [vmem:[%s3275_s1 + $0x998] sm:$0xff] %v1192_v7 }
  0x6a   :  { %1200 = vst [vmem:[%s3275_s1 + $0x218] sm:$0xff] %v1190_v6 }
  0x6b   :  { %1201 = vst [vmem:[%s3275_s1 + $0xa18] sm:$0xff] %v1192_v7 }
  0x6c   :  { %1202 = vst [vmem:[%s3275_s1 + $0x298] sm:$0xff] %v1190_v6 }
  0x6d   :  { %1203 = vst [vmem:[%s3275_s1 + $0xa98] sm:$0xff] %v1192_v7 }
  0x6e   :  { %1204 = vst [vmem:[%s3275_s1 + $0x318] sm:$0xff] %v1190_v6 }
  0x6f   :  { %1205 = vst [vmem:[%s3275_s1 + $0xb18] sm:$0xff] %v1192_v7 }
  0x70   :  { %1206 = vst [vmem:[%s3275_s1 + $0x398] sm:$0xff] %v1190_v6 }
  0x71   :  { %1207 = vst [vmem:[%s3275_s1 + $0xb98] sm:$0xff] %v1192_v7 }
  0x72   :  { %1208 = vst [vmem:[%s3275_s1 + $0x418] sm:$0xff] %v1190_v6 }
  0x73   :  { %1209 = vst [vmem:[%s3275_s1 + $0xc18] sm:$0xff] %v1192_v7 }
  0x74   :  { %1210 = vst [vmem:[%s3275_s1 + $0x498] sm:$0xff] %v1190_v6 }
  0x75   :  { %1211 = vst [vmem:[%s3275_s1 + $0xc98] sm:$0xff] %v1192_v7 }
  0x76   :  { %1212 = vst [vmem:[%s3275_s1 + $0x518] sm:$0xff] %v1190_v6 }
  0x77   :  { %1213 = vst [vmem:[%s3275_s1 + $0xd18] sm:$0xff] %v1192_v7 }
  0x78   :  { %1214 = vst [vmem:[%s3275_s1 + $0x598] sm:$0xff] %v1190_v6 }
  0x79   :  { %1215 = vst [vmem:[%s3275_s1 + $0xd98] sm:$0xff] %v1192_v7 }
  0x7a   :  { %1216 = vst [vmem:[%s3275_s1 + $0x618] sm:$0xff] %v1190_v6 }
  0x7b   :  { %1217 = vst [vmem:[%s3275_s1 + $0xe18] sm:$0xff] %v1192_v7 }
  0x7c   :  { %1218 = vst [vmem:[%s3275_s1 + $0x698] sm:$0xff] %v1190_v6 }
  0x7d   :  { %1219 = vst [vmem:[%s3275_s1 + $0xe98] sm:$0xff] %v1192_v7 }
  0x7e   :  { %1220 = vst [vmem:[%s3275_s1 + $0x718] sm:$0xff] %v1190_v6 }
  0x7f   :  { %1221 = vst [vmem:[%s3275_s1 + $0xf18] sm:$0xff] %v1192_v7 }
  0x80   :  { %1222 = vst [vmem:[%s3275_s1 + $0x798] sm:$0xff] %v1190_v6 }
  0x81   :  { %1223 = vst [vmem:[%s3275_s1 + $0xf98] sm:$0xff] %v1192_v7 }
  0x82   :  { %1225 = vst [vmem:[%s3275_s1 + $0x20] sm:$0xff] %v1224_v8 }
  0x83   :  { %1227 = vst [vmem:[%s3275_s1 + $0x820] sm:$0xff] %v1226_v9 }
  0x84   :  { %1228 = vst [vmem:[%s3275_s1 + $0xa0] sm:$0xff] %v1224_v8 }
  0x85   :  { %1229 = vst [vmem:[%s3275_s1 + $0x8a0] sm:$0xff] %v1226_v9 }
  0x86   :  { %1230 = vst [vmem:[%s3275_s1 + $0x120] sm:$0xff] %v1224_v8 }
  0x87   :  { %1231 = vst [vmem:[%s3275_s1 + $0x920] sm:$0xff] %v1226_v9 }
  0x88   :  { %1232 = vst [vmem:[%s3275_s1 + $0x1a0] sm:$0xff] %v1224_v8 }
  0x89   :  { %1233 = vst [vmem:[%s3275_s1 + $0x9a0] sm:$0xff] %v1226_v9 }
  0x8a   :  { %1234 = vst [vmem:[%s3275_s1 + $0x220] sm:$0xff] %v1224_v8 }
  0x8b   :  { %1235 = vst [vmem:[%s3275_s1 + $0xa20] sm:$0xff] %v1226_v9 }
  0x8c   :  { %1236 = vst [vmem:[%s3275_s1 + $0x2a0] sm:$0xff] %v1224_v8 }
  0x8d   :  { %1237 = vst [vmem:[%s3275_s1 + $0xaa0] sm:$0xff] %v1226_v9 }
  0x8e   :  { %1238 = vst [vmem:[%s3275_s1 + $0x320] sm:$0xff] %v1224_v8 }
  0x8f   :  { %1239 = vst [vmem:[%s3275_s1 + $0xb20] sm:$0xff] %v1226_v9 }
  0x90   :  { %1240 = vst [vmem:[%s3275_s1 + $0x3a0] sm:$0xff] %v1224_v8 }
  0x91   :  { %1241 = vst [vmem:[%s3275_s1 + $0xba0] sm:$0xff] %v1226_v9 }
  0x92   :  { %1242 = vst [vmem:[%s3275_s1 + $0x420] sm:$0xff] %v1224_v8 }
  0x93   :  { %1243 = vst [vmem:[%s3275_s1 + $0xc20] sm:$0xff] %v1226_v9 }
  0x94   :  { %1244 = vst [vmem:[%s3275_s1 + $0x4a0] sm:$0xff] %v1224_v8 }
  0x95   :  { %1245 = vst [vmem:[%s3275_s1 + $0xca0] sm:$0xff] %v1226_v9 }
  0x96   :  { %1246 = vst [vmem:[%s3275_s1 + $0x520] sm:$0xff] %v1224_v8 }
  0x97   :  { %1247 = vst [vmem:[%s3275_s1 + $0xd20] sm:$0xff] %v1226_v9 }
  0x98   :  { %1248 = vst [vmem:[%s3275_s1 + $0x5a0] sm:$0xff] %v1224_v8 }
  0x99   :  { %1249 = vst [vmem:[%s3275_s1 + $0xda0] sm:$0xff] %v1226_v9 }
  0x9a   :  { %1250 = vst [vmem:[%s3275_s1 + $0x620] sm:$0xff] %v1224_v8 }
  0x9b   :  { %1251 = vst [vmem:[%s3275_s1 + $0xe20] sm:$0xff] %v1226_v9 }
  0x9c   :  { %1252 = vst [vmem:[%s3275_s1 + $0x6a0] sm:$0xff] %v1224_v8 }
  0x9d   :  { %1253 = vst [vmem:[%s3275_s1 + $0xea0] sm:$0xff] %v1226_v9 }
  0x9e   :  { %1254 = vst [vmem:[%s3275_s1 + $0x720] sm:$0xff] %v1224_v8 }
  0x9f   :  { %1255 = vst [vmem:[%s3275_s1 + $0xf20] sm:$0xff] %v1226_v9 }
  0xa0   :  { %1256 = vst [vmem:[%s3275_s1 + $0x7a0] sm:$0xff] %v1224_v8 }
  0xa1   :  { %1257 = vst [vmem:[%s3275_s1 + $0xfa0] sm:$0xff] %v1226_v9 }
  0xa2   :  { %1259 = vst [vmem:[%s3275_s1 + $0x28] sm:$0xff] %v1258_v10 }
  0xa3   :  { %1261 = vst [vmem:[%s3275_s1 + $0x828] sm:$0xff] %v1260_v11 }
  0xa4   :  { %1262 = vst [vmem:[%s3275_s1 + $0xa8] sm:$0xff] %v1258_v10 }
  0xa5   :  { %1263 = vst [vmem:[%s3275_s1 + $0x8a8] sm:$0xff] %v1260_v11 }
  0xa6   :  { %1264 = vst [vmem:[%s3275_s1 + $0x128] sm:$0xff] %v1258_v10 }
  0xa7   :  { %1265 = vst [vmem:[%s3275_s1 + $0x928] sm:$0xff] %v1260_v11 }
  0xa8   :  { %1266 = vst [vmem:[%s3275_s1 + $0x1a8] sm:$0xff] %v1258_v10 }
  0xa9   :  { %1267 = vst [vmem:[%s3275_s1 + $0x9a8] sm:$0xff] %v1260_v11 }
  0xaa   :  { %1268 = vst [vmem:[%s3275_s1 + $0x228] sm:$0xff] %v1258_v10 }
  0xab   :  { %1269 = vst [vmem:[%s3275_s1 + $0xa28] sm:$0xff] %v1260_v11 }
  0xac   :  { %1270 = vst [vmem:[%s3275_s1 + $0x2a8] sm:$0xff] %v1258_v10 }
  0xad   :  { %1271 = vst [vmem:[%s3275_s1 + $0xaa8] sm:$0xff] %v1260_v11 }
  0xae   :  { %1272 = vst [vmem:[%s3275_s1 + $0x328] sm:$0xff] %v1258_v10 }
  0xaf   :  { %1273 = vst [vmem:[%s3275_s1 + $0xb28] sm:$0xff] %v1260_v11 }
  0xb0   :  { %1274 = vst [vmem:[%s3275_s1 + $0x3a8] sm:$0xff] %v1258_v10 }
  0xb1   :  { %1275 = vst [vmem:[%s3275_s1 + $0xba8] sm:$0xff] %v1260_v11 }
  0xb2   :  { %1276 = vst [vmem:[%s3275_s1 + $0x428] sm:$0xff] %v1258_v10 }
  0xb3   :  { %1277 = vst [vmem:[%s3275_s1 + $0xc28] sm:$0xff] %v1260_v11 }
  0xb4   :  { %1278 = vst [vmem:[%s3275_s1 + $0x4a8] sm:$0xff] %v1258_v10 }
  0xb5   :  { %1279 = vst [vmem:[%s3275_s1 + $0xca8] sm:$0xff] %v1260_v11 }
  0xb6   :  { %1280 = vst [vmem:[%s3275_s1 + $0x528] sm:$0xff] %v1258_v10 }
  0xb7   :  { %1281 = vst [vmem:[%s3275_s1 + $0xd28] sm:$0xff] %v1260_v11 }
  0xb8   :  { %1282 = vst [vmem:[%s3275_s1 + $0x5a8] sm:$0xff] %v1258_v10 }
  0xb9   :  { %1283 = vst [vmem:[%s3275_s1 + $0xda8] sm:$0xff] %v1260_v11 }
  0xba   :  { %1284 = vst [vmem:[%s3275_s1 + $0x628] sm:$0xff] %v1258_v10 }
  0xbb   :  { %1285 = vst [vmem:[%s3275_s1 + $0xe28] sm:$0xff] %v1260_v11 }
  0xbc   :  { %1286 = vst [vmem:[%s3275_s1 + $0x6a8] sm:$0xff] %v1258_v10 }
  0xbd   :  { %1287 = vst [vmem:[%s3275_s1 + $0xea8] sm:$0xff] %v1260_v11 }
  0xbe   :  { %1288 = vst [vmem:[%s3275_s1 + $0x728] sm:$0xff] %v1258_v10 }
  0xbf   :  { %1289 = vst [vmem:[%s3275_s1 + $0xf28] sm:$0xff] %v1260_v11 }
  0xc0   :  { %1290 = vst [vmem:[%s3275_s1 + $0x7a8] sm:$0xff] %v1258_v10 }
  0xc1   :  { %1291 = vst [vmem:[%s3275_s1 + $0xfa8] sm:$0xff] %v1260_v11 }
  0xc2   :  { %1293 = vst [vmem:[%s3275_s1 + $0x30] sm:$0xff] %v1292_v12 }
  0xc3   :  { %1295 = vst [vmem:[%s3275_s1 + $0x830] sm:$0xff] %v1294_v13 }
  0xc4   :  { %1296 = vst [vmem:[%s3275_s1 + $0xb0] sm:$0xff] %v1292_v12 }
  0xc5   :  { %1297 = vst [vmem:[%s3275_s1 + $0x8b0] sm:$0xff] %v1294_v13 }
  0xc6   :  { %1298 = vst [vmem:[%s3275_s1 + $0x130] sm:$0xff] %v1292_v12 }
  0xc7   :  { %1299 = vst [vmem:[%s3275_s1 + $0x930] sm:$0xff] %v1294_v13 }
  0xc8   :  { %1300 = vst [vmem:[%s3275_s1 + $0x1b0] sm:$0xff] %v1292_v12 }
  0xc9   :  { %1301 = vst [vmem:[%s3275_s1 + $0x9b0] sm:$0xff] %v1294_v13 }
  0xca   :  { %1302 = vst [vmem:[%s3275_s1 + $0x230] sm:$0xff] %v1292_v12 }
  0xcb   :  { %1303 = vst [vmem:[%s3275_s1 + $0xa30] sm:$0xff] %v1294_v13 }
  0xcc   :  { %1304 = vst [vmem:[%s3275_s1 + $0x2b0] sm:$0xff] %v1292_v12 }
  0xcd   :  { %1305 = vst [vmem:[%s3275_s1 + $0xab0] sm:$0xff] %v1294_v13 }
  0xce   :  { %1306 = vst [vmem:[%s3275_s1 + $0x330] sm:$0xff] %v1292_v12 }
  0xcf   :  { %1307 = vst [vmem:[%s3275_s1 + $0xb30] sm:$0xff] %v1294_v13 }
  0xd0   :  { %1308 = vst [vmem:[%s3275_s1 + $0x3b0] sm:$0xff] %v1292_v12 }
  0xd1   :  { %1309 = vst [vmem:[%s3275_s1 + $0xbb0] sm:$0xff] %v1294_v13 }
  0xd2   :  { %1310 = vst [vmem:[%s3275_s1 + $0x430] sm:$0xff] %v1292_v12 }
  0xd3   :  { %1311 = vst [vmem:[%s3275_s1 + $0xc30] sm:$0xff] %v1294_v13 }
  0xd4   :  { %1312 = vst [vmem:[%s3275_s1 + $0x4b0] sm:$0xff] %v1292_v12 }
  0xd5   :  { %1313 = vst [vmem:[%s3275_s1 + $0xcb0] sm:$0xff] %v1294_v13 }
  0xd6   :  { %1314 = vst [vmem:[%s3275_s1 + $0x530] sm:$0xff] %v1292_v12 }
  0xd7   :  { %1315 = vst [vmem:[%s3275_s1 + $0xd30] sm:$0xff] %v1294_v13 }
  0xd8   :  { %1316 = vst [vmem:[%s3275_s1 + $0x5b0] sm:$0xff] %v1292_v12 }
  0xd9   :  { %1317 = vst [vmem:[%s3275_s1 + $0xdb0] sm:$0xff] %v1294_v13 }
  0xda   :  { %1318 = vst [vmem:[%s3275_s1 + $0x630] sm:$0xff] %v1292_v12 }
  0xdb   :  { %1319 = vst [vmem:[%s3275_s1 + $0xe30] sm:$0xff] %v1294_v13 }
  0xdc   :  { %1320 = vst [vmem:[%s3275_s1 + $0x6b0] sm:$0xff] %v1292_v12 }
  0xdd   :  { %1321 = vst [vmem:[%s3275_s1 + $0xeb0] sm:$0xff] %v1294_v13 }
  0xde   :  { %1322 = vst [vmem:[%s3275_s1 + $0x730] sm:$0xff] %v1292_v12 }
  0xdf   :  { %1323 = vst [vmem:[%s3275_s1 + $0xf30] sm:$0xff] %v1294_v13 }
  0xe0   :  { %1324 = vst [vmem:[%s3275_s1 + $0x7b0] sm:$0xff] %v1292_v12 }
  0xe1   :  { %1325 = vst [vmem:[%s3275_s1 + $0xfb0] sm:$0xff] %v1294_v13 }
  0xe2   :  { %1327 = vst [vmem:[%s3275_s1 + $0x38] sm:$0xff] %v1326_v14 }
  0xe3   :  { %1329 = vst [vmem:[%s3275_s1 + $0x838] sm:$0xff] %v1328_v15 }
  0xe4   :  { %1330 = vst [vmem:[%s3275_s1 + $0xb8] sm:$0xff] %v1326_v14 }
  0xe5   :  { %1331 = vst [vmem:[%s3275_s1 + $0x8b8] sm:$0xff] %v1328_v15 }
  0xe6   :  { %1332 = vst [vmem:[%s3275_s1 + $0x138] sm:$0xff] %v1326_v14 }
  0xe7   :  { %1333 = vst [vmem:[%s3275_s1 + $0x938] sm:$0xff] %v1328_v15 }
  0xe8   :  { %1334 = vst [vmem:[%s3275_s1 + $0x1b8] sm:$0xff] %v1326_v14 }
  0xe9   :  { %1335 = vst [vmem:[%s3275_s1 + $0x9b8] sm:$0xff] %v1328_v15 }
  0xea   :  { %1336 = vst [vmem:[%s3275_s1 + $0x238] sm:$0xff] %v1326_v14 }
  0xeb   :  { %1337 = vst [vmem:[%s3275_s1 + $0xa38] sm:$0xff] %v1328_v15 }
  0xec   :  { %1338 = vst [vmem:[%s3275_s1 + $0x2b8] sm:$0xff] %v1326_v14 }
  0xed   :  { %1339 = vst [vmem:[%s3275_s1 + $0xab8] sm:$0xff] %v1328_v15 }
  0xee   :  { %1340 = vst [vmem:[%s3275_s1 + $0x338] sm:$0xff] %v1326_v14 }
  0xef   :  { %1341 = vst [vmem:[%s3275_s1 + $0xb38] sm:$0xff] %v1328_v15 }
  0xf0   :  { %1342 = vst [vmem:[%s3275_s1 + $0x3b8] sm:$0xff] %v1326_v14 }
  0xf1   :  { %1343 = vst [vmem:[%s3275_s1 + $0xbb8] sm:$0xff] %v1328_v15 }
  0xf2   :  { %1344 = vst [vmem:[%s3275_s1 + $0x438] sm:$0xff] %v1326_v14 }
  0xf3   :  { %1345 = vst [vmem:[%s3275_s1 + $0xc38] sm:$0xff] %v1328_v15 }
  0xf4   :  { %1346 = vst [vmem:[%s3275_s1 + $0x4b8] sm:$0xff] %v1326_v14 }
  0xf5   :  { %1347 = vst [vmem:[%s3275_s1 + $0xcb8] sm:$0xff] %v1328_v15 }
  0xf6   :  { %1348 = vst [vmem:[%s3275_s1 + $0x538] sm:$0xff] %v1326_v14 }
  0xf7   :  { %1349 = vst [vmem:[%s3275_s1 + $0xd38] sm:$0xff] %v1328_v15 }
  0xf8   :  { %1350 = vst [vmem:[%s3275_s1 + $0x5b8] sm:$0xff] %v1326_v14 }
  0xf9   :  { %1351 = vst [vmem:[%s3275_s1 + $0xdb8] sm:$0xff] %v1328_v15 }
  0xfa   :  { %1352 = vst [vmem:[%s3275_s1 + $0x638] sm:$0xff] %v1326_v14 }
  0xfb   :  { %1353 = vst [vmem:[%s3275_s1 + $0xe38] sm:$0xff] %v1328_v15 }
  0xfc   :  { %1354 = vst [vmem:[%s3275_s1 + $0x6b8] sm:$0xff] %v1326_v14 }
  0xfd   :  { %1355 = vst [vmem:[%s3275_s1 + $0xeb8] sm:$0xff] %v1328_v15 }
  0xfe   :  { %1356 = vst [vmem:[%s3275_s1 + $0x738] sm:$0xff] %v1326_v14 }
  0xff   :  { %1357 = vst [vmem:[%s3275_s1 + $0xf38] sm:$0xff] %v1328_v15 }
 0x100   :  { %1358 = vst [vmem:[%s3275_s1 + $0x7b8] sm:$0xff] %v1326_v14 }
 0x101   :  { %1359 = vst [vmem:[%s3275_s1 + $0xfb8] sm:$0xff] %v1328_v15 }
 0x102   :  { %1361 = vst [vmem:[%s3275_s1 + $0x40] sm:$0xff] %v1360_v16 }
 0x103   :  { %1363 = vst [vmem:[%s3275_s1 + $0x840] sm:$0xff] %v1362_v17 }
 0x104   :  { %1364 = vst [vmem:[%s3275_s1 + $0xc0] sm:$0xff] %v1360_v16 }
 0x105   :  { %1365 = vst [vmem:[%s3275_s1 + $0x8c0] sm:$0xff] %v1362_v17 }
 0x106   :  { %1366 = vst [vmem:[%s3275_s1 + $0x140] sm:$0xff] %v1360_v16 }
 0x107   :  { %1367 = vst [vmem:[%s3275_s1 + $0x940] sm:$0xff] %v1362_v17 }
 0x108   :  { %1368 = vst [vmem:[%s3275_s1 + $0x1c0] sm:$0xff] %v1360_v16 }
 0x109   :  { %1369 = vst [vmem:[%s3275_s1 + $0x9c0] sm:$0xff] %v1362_v17 }
 0x10a   :  { %1370 = vst [vmem:[%s3275_s1 + $0x240] sm:$0xff] %v1360_v16 }
 0x10b   :  { %1371 = vst [vmem:[%s3275_s1 + $0xa40] sm:$0xff] %v1362_v17 }
 0x10c   :  { %1372 = vst [vmem:[%s3275_s1 + $0x2c0] sm:$0xff] %v1360_v16 }
 0x10d   :  { %1373 = vst [vmem:[%s3275_s1 + $0xac0] sm:$0xff] %v1362_v17 }
 0x10e   :  { %1374 = vst [vmem:[%s3275_s1 + $0x340] sm:$0xff] %v1360_v16 }
 0x10f   :  { %1375 = vst [vmem:[%s3275_s1 + $0xb40] sm:$0xff] %v1362_v17 }
 0x110   :  { %1376 = vst [vmem:[%s3275_s1 + $0x3c0] sm:$0xff] %v1360_v16 }
 0x111   :  { %1377 = vst [vmem:[%s3275_s1 + $0xbc0] sm:$0xff] %v1362_v17 }
 0x112   :  { %1378 = vst [vmem:[%s3275_s1 + $0x440] sm:$0xff] %v1360_v16 }
 0x113   :  { %1379 = vst [vmem:[%s3275_s1 + $0xc40] sm:$0xff] %v1362_v17 }
 0x114   :  { %1380 = vst [vmem:[%s3275_s1 + $0x4c0] sm:$0xff] %v1360_v16 }
 0x115   :  { %1381 = vst [vmem:[%s3275_s1 + $0xcc0] sm:$0xff] %v1362_v17 }
 0x116   :  { %1382 = vst [vmem:[%s3275_s1 + $0x540] sm:$0xff] %v1360_v16 }
 0x117   :  { %1383 = vst [vmem:[%s3275_s1 + $0xd40] sm:$0xff] %v1362_v17 }
 0x118   :  { %1384 = vst [vmem:[%s3275_s1 + $0x5c0] sm:$0xff] %v1360_v16 }
 0x119   :  { %1385 = vst [vmem:[%s3275_s1 + $0xdc0] sm:$0xff] %v1362_v17 }
 0x11a   :  { %1386 = vst [vmem:[%s3275_s1 + $0x640] sm:$0xff] %v1360_v16 }
 0x11b   :  { %1387 = vst [vmem:[%s3275_s1 + $0xe40] sm:$0xff] %v1362_v17 }
 0x11c   :  { %1388 = vst [vmem:[%s3275_s1 + $0x6c0] sm:$0xff] %v1360_v16 }
 0x11d   :  { %1389 = vst [vmem:[%s3275_s1 + $0xec0] sm:$0xff] %v1362_v17 }
 0x11e   :  { %1390 = vst [vmem:[%s3275_s1 + $0x740] sm:$0xff] %v1360_v16 }
 0x11f   :  { %1391 = vst [vmem:[%s3275_s1 + $0xf40] sm:$0xff] %v1362_v17 }
 0x120   :  { %1392 = vst [vmem:[%s3275_s1 + $0x7c0] sm:$0xff] %v1360_v16 }
 0x121   :  { %1393 = vst [vmem:[%s3275_s1 + $0xfc0] sm:$0xff] %v1362_v17 }
 0x122   :  { %1395 = vst [vmem:[%s3275_s1 + $0x48] sm:$0xff] %v1394_v18 }
 0x123   :  { %1397 = vst [vmem:[%s3275_s1 + $0x848] sm:$0xff] %v1396_v19 }
 0x124   :  { %1398 = vst [vmem:[%s3275_s1 + $0xc8] sm:$0xff] %v1394_v18 }
 0x125   :  { %1399 = vst [vmem:[%s3275_s1 + $0x8c8] sm:$0xff] %v1396_v19 }
 0x126   :  { %1400 = vst [vmem:[%s3275_s1 + $0x148] sm:$0xff] %v1394_v18 }
 0x127   :  { %1401 = vst [vmem:[%s3275_s1 + $0x948] sm:$0xff] %v1396_v19 }
 0x128   :  { %1402 = vst [vmem:[%s3275_s1 + $0x1c8] sm:$0xff] %v1394_v18 }
 0x129   :  { %1403 = vst [vmem:[%s3275_s1 + $0x9c8] sm:$0xff] %v1396_v19 }
 0x12a   :  { %1404 = vst [vmem:[%s3275_s1 + $0x248] sm:$0xff] %v1394_v18 }
 0x12b   :  { %1405 = vst [vmem:[%s3275_s1 + $0xa48] sm:$0xff] %v1396_v19 }
 0x12c   :  { %1406 = vst [vmem:[%s3275_s1 + $0x2c8] sm:$0xff] %v1394_v18 }
 0x12d   :  { %1407 = vst [vmem:[%s3275_s1 + $0xac8] sm:$0xff] %v1396_v19 }
 0x12e   :  { %1408 = vst [vmem:[%s3275_s1 + $0x348] sm:$0xff] %v1394_v18 }
 0x12f   :  { %1409 = vst [vmem:[%s3275_s1 + $0xb48] sm:$0xff] %v1396_v19 }
 0x130   :  { %1410 = vst [vmem:[%s3275_s1 + $0x3c8] sm:$0xff] %v1394_v18 }
 0x131   :  { %1411 = vst [vmem:[%s3275_s1 + $0xbc8] sm:$0xff] %v1396_v19 }
 0x132   :  { %1412 = vst [vmem:[%s3275_s1 + $0x448] sm:$0xff] %v1394_v18 }
 0x133   :  { %1413 = vst [vmem:[%s3275_s1 + $0xc48] sm:$0xff] %v1396_v19 }
 0x134   :  { %1414 = vst [vmem:[%s3275_s1 + $0x4c8] sm:$0xff] %v1394_v18 }
 0x135   :  { %1415 = vst [vmem:[%s3275_s1 + $0xcc8] sm:$0xff] %v1396_v19 }
 0x136   :  { %1416 = vst [vmem:[%s3275_s1 + $0x548] sm:$0xff] %v1394_v18 }
 0x137   :  { %1417 = vst [vmem:[%s3275_s1 + $0xd48] sm:$0xff] %v1396_v19 }
 0x138   :  { %1418 = vst [vmem:[%s3275_s1 + $0x5c8] sm:$0xff] %v1394_v18 }
 0x139   :  { %1419 = vst [vmem:[%s3275_s1 + $0xdc8] sm:$0xff] %v1396_v19 }
 0x13a   :  { %1420 = vst [vmem:[%s3275_s1 + $0x648] sm:$0xff] %v1394_v18 }
 0x13b   :  { %1421 = vst [vmem:[%s3275_s1 + $0xe48] sm:$0xff] %v1396_v19 }
 0x13c   :  { %1422 = vst [vmem:[%s3275_s1 + $0x6c8] sm:$0xff] %v1394_v18 }
 0x13d   :  { %1423 = vst [vmem:[%s3275_s1 + $0xec8] sm:$0xff] %v1396_v19 }
 0x13e   :  { %1424 = vst [vmem:[%s3275_s1 + $0x748] sm:$0xff] %v1394_v18 }
 0x13f   :  { %1425 = vst [vmem:[%s3275_s1 + $0xf48] sm:$0xff] %v1396_v19 }
 0x140   :  { %1426 = vst [vmem:[%s3275_s1 + $0x7c8] sm:$0xff] %v1394_v18 }
 0x141   :  { %1427 = vst [vmem:[%s3275_s1 + $0xfc8] sm:$0xff] %v1396_v19 }
 0x142   :  { %1429 = vst [vmem:[%s3275_s1 + $0x50] sm:$0xff] %v1428_v20 }
 0x143   :  { %1431 = vst [vmem:[%s3275_s1 + $0x850] sm:$0xff] %v1430_v21 }
 0x144   :  { %1432 = vst [vmem:[%s3275_s1 + $0xd0] sm:$0xff] %v1428_v20 }
 0x145   :  { %1433 = vst [vmem:[%s3275_s1 + $0x8d0] sm:$0xff] %v1430_v21 }
 0x146   :  { %1434 = vst [vmem:[%s3275_s1 + $0x150] sm:$0xff] %v1428_v20 }
 0x147   :  { %1435 = vst [vmem:[%s3275_s1 + $0x950] sm:$0xff] %v1430_v21 }
 0x148   :  { %1436 = vst [vmem:[%s3275_s1 + $0x1d0] sm:$0xff] %v1428_v20 }
 0x149   :  { %1437 = vst [vmem:[%s3275_s1 + $0x9d0] sm:$0xff] %v1430_v21 }
 0x14a   :  { %1438 = vst [vmem:[%s3275_s1 + $0x250] sm:$0xff] %v1428_v20 }
 0x14b   :  { %1439 = vst [vmem:[%s3275_s1 + $0xa50] sm:$0xff] %v1430_v21 }
 0x14c   :  { %1440 = vst [vmem:[%s3275_s1 + $0x2d0] sm:$0xff] %v1428_v20 }
 0x14d   :  { %1441 = vst [vmem:[%s3275_s1 + $0xad0] sm:$0xff] %v1430_v21 }
 0x14e   :  { %1442 = vst [vmem:[%s3275_s1 + $0x350] sm:$0xff] %v1428_v20 }
 0x14f   :  { %1443 = vst [vmem:[%s3275_s1 + $0xb50] sm:$0xff] %v1430_v21 }
 0x150   :  { %1444 = vst [vmem:[%s3275_s1 + $0x3d0] sm:$0xff] %v1428_v20 }
 0x151   :  { %1445 = vst [vmem:[%s3275_s1 + $0xbd0] sm:$0xff] %v1430_v21 }
 0x152   :  { %1446 = vst [vmem:[%s3275_s1 + $0x450] sm:$0xff] %v1428_v20 }
 0x153   :  { %1447 = vst [vmem:[%s3275_s1 + $0xc50] sm:$0xff] %v1430_v21 }
 0x154   :  { %1448 = vst [vmem:[%s3275_s1 + $0x4d0] sm:$0xff] %v1428_v20 }
 0x155   :  { %1449 = vst [vmem:[%s3275_s1 + $0xcd0] sm:$0xff] %v1430_v21 }
 0x156   :  { %1450 = vst [vmem:[%s3275_s1 + $0x550] sm:$0xff] %v1428_v20 }
 0x157   :  { %1451 = vst [vmem:[%s3275_s1 + $0xd50] sm:$0xff] %v1430_v21 }
 0x158   :  { %1452 = vst [vmem:[%s3275_s1 + $0x5d0] sm:$0xff] %v1428_v20 }
 0x159   :  { %1453 = vst [vmem:[%s3275_s1 + $0xdd0] sm:$0xff] %v1430_v21 }
 0x15a   :  { %1454 = vst [vmem:[%s3275_s1 + $0x650] sm:$0xff] %v1428_v20 }
 0x15b   :  { %1455 = vst [vmem:[%s3275_s1 + $0xe50] sm:$0xff] %v1430_v21 }
 0x15c   :  { %1456 = vst [vmem:[%s3275_s1 + $0x6d0] sm:$0xff] %v1428_v20 }
 0x15d   :  { %1457 = vst [vmem:[%s3275_s1 + $0xed0] sm:$0xff] %v1430_v21 }
 0x15e   :  { %1458 = vst [vmem:[%s3275_s1 + $0x750] sm:$0xff] %v1428_v20 }
 0x15f   :  { %1459 = vst [vmem:[%s3275_s1 + $0xf50] sm:$0xff] %v1430_v21 }
 0x160   :  { %1460 = vst [vmem:[%s3275_s1 + $0x7d0] sm:$0xff] %v1428_v20 }
 0x161   :  { %1461 = vst [vmem:[%s3275_s1 + $0xfd0] sm:$0xff] %v1430_v21 }
 0x162   :  { %1463 = vst [vmem:[%s3275_s1 + $0x58] sm:$0xff] %v1462_v22 }
 0x163   :  { %1465 = vst [vmem:[%s3275_s1 + $0x858] sm:$0xff] %v1464_v23 }
 0x164   :  { %1466 = vst [vmem:[%s3275_s1 + $0xd8] sm:$0xff] %v1462_v22 }
 0x165   :  { %1467 = vst [vmem:[%s3275_s1 + $0x8d8] sm:$0xff] %v1464_v23 }
 0x166   :  { %1468 = vst [vmem:[%s3275_s1 + $0x158] sm:$0xff] %v1462_v22 }
 0x167   :  { %1469 = vst [vmem:[%s3275_s1 + $0x958] sm:$0xff] %v1464_v23 }
 0x168   :  { %1470 = vst [vmem:[%s3275_s1 + $0x1d8] sm:$0xff] %v1462_v22 }
 0x169   :  { %1471 = vst [vmem:[%s3275_s1 + $0x9d8] sm:$0xff] %v1464_v23 }
 0x16a   :  { %1472 = vst [vmem:[%s3275_s1 + $0x258] sm:$0xff] %v1462_v22 }
 0x16b   :  { %1473 = vst [vmem:[%s3275_s1 + $0xa58] sm:$0xff] %v1464_v23 }
 0x16c   :  { %1474 = vst [vmem:[%s3275_s1 + $0x2d8] sm:$0xff] %v1462_v22 }
 0x16d   :  { %1475 = vst [vmem:[%s3275_s1 + $0xad8] sm:$0xff] %v1464_v23 }
 0x16e   :  { %1476 = vst [vmem:[%s3275_s1 + $0x358] sm:$0xff] %v1462_v22 }
 0x16f   :  { %1477 = vst [vmem:[%s3275_s1 + $0xb58] sm:$0xff] %v1464_v23 }
 0x170   :  { %1478 = vst [vmem:[%s3275_s1 + $0x3d8] sm:$0xff] %v1462_v22 }
 0x171   :  { %1479 = vst [vmem:[%s3275_s1 + $0xbd8] sm:$0xff] %v1464_v23 }
 0x172   :  { %1480 = vst [vmem:[%s3275_s1 + $0x458] sm:$0xff] %v1462_v22 }
 0x173   :  { %1481 = vst [vmem:[%s3275_s1 + $0xc58] sm:$0xff] %v1464_v23 }
 0x174   :  { %1482 = vst [vmem:[%s3275_s1 + $0x4d8] sm:$0xff] %v1462_v22 }
 0x175   :  { %1483 = vst [vmem:[%s3275_s1 + $0xcd8] sm:$0xff] %v1464_v23 }
 0x176   :  { %1484 = vst [vmem:[%s3275_s1 + $0x558] sm:$0xff] %v1462_v22 }
 0x177   :  { %1485 = vst [vmem:[%s3275_s1 + $0xd58] sm:$0xff] %v1464_v23 }
 0x178   :  { %1486 = vst [vmem:[%s3275_s1 + $0x5d8] sm:$0xff] %v1462_v22 }
 0x179   :  { %1487 = vst [vmem:[%s3275_s1 + $0xdd8] sm:$0xff] %v1464_v23 }
 0x17a   :  { %1488 = vst [vmem:[%s3275_s1 + $0x658] sm:$0xff] %v1462_v22 }
 0x17b   :  { %1489 = vst [vmem:[%s3275_s1 + $0xe58] sm:$0xff] %v1464_v23 }
 0x17c   :  { %1490 = vst [vmem:[%s3275_s1 + $0x6d8] sm:$0xff] %v1462_v22 }
 0x17d   :  { %1491 = vst [vmem:[%s3275_s1 + $0xed8] sm:$0xff] %v1464_v23 }
 0x17e   :  { %1492 = vst [vmem:[%s3275_s1 + $0x758] sm:$0xff] %v1462_v22 }
 0x17f   :  { %1493 = vst [vmem:[%s3275_s1 + $0xf58] sm:$0xff] %v1464_v23 }
 0x180   :  { %1494 = vst [vmem:[%s3275_s1 + $0x7d8] sm:$0xff] %v1462_v22 }
 0x181   :  { %1495 = vst [vmem:[%s3275_s1 + $0xfd8] sm:$0xff] %v1464_v23 }
 0x182   :  { %1497 = vst [vmem:[%s3275_s1 + $0x60] sm:$0xff] %v1496_v24 }
 0x183   :  { %1499 = vst [vmem:[%s3275_s1 + $0x860] sm:$0xff] %v1498_v25 }
 0x184   :  { %1500 = vst [vmem:[%s3275_s1 + $0xe0] sm:$0xff] %v1496_v24 }
 0x185   :  { %1501 = vst [vmem:[%s3275_s1 + $0x8e0] sm:$0xff] %v1498_v25 }
 0x186   :  { %1502 = vst [vmem:[%s3275_s1 + $0x160] sm:$0xff] %v1496_v24 }
 0x187   :  { %1503 = vst [vmem:[%s3275_s1 + $0x960] sm:$0xff] %v1498_v25 }
 0x188   :  { %1504 = vst [vmem:[%s3275_s1 + $0x1e0] sm:$0xff] %v1496_v24 }
 0x189   :  { %1505 = vst [vmem:[%s3275_s1 + $0x9e0] sm:$0xff] %v1498_v25 }
 0x18a   :  { %1506 = vst [vmem:[%s3275_s1 + $0x260] sm:$0xff] %v1496_v24 }
 0x18b   :  { %1507 = vst [vmem:[%s3275_s1 + $0xa60] sm:$0xff] %v1498_v25 }
 0x18c   :  { %1508 = vst [vmem:[%s3275_s1 + $0x2e0] sm:$0xff] %v1496_v24 }
 0x18d   :  { %1509 = vst [vmem:[%s3275_s1 + $0xae0] sm:$0xff] %v1498_v25 }
 0x18e   :  { %1510 = vst [vmem:[%s3275_s1 + $0x360] sm:$0xff] %v1496_v24 }
 0x18f   :  { %1511 = vst [vmem:[%s3275_s1 + $0xb60] sm:$0xff] %v1498_v25 }
 0x190   :  { %1512 = vst [vmem:[%s3275_s1 + $0x3e0] sm:$0xff] %v1496_v24 }
 0x191   :  { %1513 = vst [vmem:[%s3275_s1 + $0xbe0] sm:$0xff] %v1498_v25 }
 0x192   :  { %1514 = vst [vmem:[%s3275_s1 + $0x460] sm:$0xff] %v1496_v24 }
 0x193   :  { %1515 = vst [vmem:[%s3275_s1 + $0xc60] sm:$0xff] %v1498_v25 }
 0x194   :  { %1516 = vst [vmem:[%s3275_s1 + $0x4e0] sm:$0xff] %v1496_v24 }
 0x195   :  { %1517 = vst [vmem:[%s3275_s1 + $0xce0] sm:$0xff] %v1498_v25 }
 0x196   :  { %1518 = vst [vmem:[%s3275_s1 + $0x560] sm:$0xff] %v1496_v24 }
 0x197   :  { %1519 = vst [vmem:[%s3275_s1 + $0xd60] sm:$0xff] %v1498_v25 }
 0x198   :  { %1520 = vst [vmem:[%s3275_s1 + $0x5e0] sm:$0xff] %v1496_v24 }
 0x199   :  { %1521 = vst [vmem:[%s3275_s1 + $0xde0] sm:$0xff] %v1498_v25 }
 0x19a   :  { %1522 = vst [vmem:[%s3275_s1 + $0x660] sm:$0xff] %v1496_v24 }
 0x19b   :  { %1523 = vst [vmem:[%s3275_s1 + $0xe60] sm:$0xff] %v1498_v25 }
 0x19c   :  { %1524 = vst [vmem:[%s3275_s1 + $0x6e0] sm:$0xff] %v1496_v24 }
 0x19d   :  { %1525 = vst [vmem:[%s3275_s1 + $0xee0] sm:$0xff] %v1498_v25 }
 0x19e   :  { %1526 = vst [vmem:[%s3275_s1 + $0x760] sm:$0xff] %v1496_v24 }
 0x19f   :  { %1527 = vst [vmem:[%s3275_s1 + $0xf60] sm:$0xff] %v1498_v25 }
 0x1a0   :  { %1528 = vst [vmem:[%s3275_s1 + $0x7e0] sm:$0xff] %v1496_v24 }
 0x1a1   :  { %1529 = vst [vmem:[%s3275_s1 + $0xfe0] sm:$0xff] %v1498_v25 }
 0x1a2   :  { %1531 = vst [vmem:[%s3275_s1 + $0x68] sm:$0xff] %v1530_v26 }
 0x1a3   :  { %1533 = vst [vmem:[%s3275_s1 + $0x868] sm:$0xff] %v1532_v27 }
 0x1a4   :  { %1534 = vst [vmem:[%s3275_s1 + $0xe8] sm:$0xff] %v1530_v26 }
 0x1a5   :  { %1535 = vst [vmem:[%s3275_s1 + $0x8e8] sm:$0xff] %v1532_v27 }
 0x1a6   :  { %1536 = vst [vmem:[%s3275_s1 + $0x168] sm:$0xff] %v1530_v26 }
 0x1a7   :  { %1537 = vst [vmem:[%s3275_s1 + $0x968] sm:$0xff] %v1532_v27 }
 0x1a8   :  { %1538 = vst [vmem:[%s3275_s1 + $0x1e8] sm:$0xff] %v1530_v26 }
 0x1a9   :  { %1539 = vst [vmem:[%s3275_s1 + $0x9e8] sm:$0xff] %v1532_v27 }
 0x1aa   :  { %1540 = vst [vmem:[%s3275_s1 + $0x268] sm:$0xff] %v1530_v26 }
 0x1ab   :  { %1541 = vst [vmem:[%s3275_s1 + $0xa68] sm:$0xff] %v1532_v27 }
 0x1ac   :  { %1542 = vst [vmem:[%s3275_s1 + $0x2e8] sm:$0xff] %v1530_v26 }
 0x1ad   :  { %1543 = vst [vmem:[%s3275_s1 + $0xae8] sm:$0xff] %v1532_v27 }
 0x1ae   :  { %1544 = vst [vmem:[%s3275_s1 + $0x368] sm:$0xff] %v1530_v26 }
 0x1af   :  { %1545 = vst [vmem:[%s3275_s1 + $0xb68] sm:$0xff] %v1532_v27 }
 0x1b0   :  { %1546 = vst [vmem:[%s3275_s1 + $0x3e8] sm:$0xff] %v1530_v26 }
 0x1b1   :  { %1547 = vst [vmem:[%s3275_s1 + $0xbe8] sm:$0xff] %v1532_v27 }
 0x1b2   :  { %1548 = vst [vmem:[%s3275_s1 + $0x468] sm:$0xff] %v1530_v26 }
 0x1b3   :  { %1549 = vst [vmem:[%s3275_s1 + $0xc68] sm:$0xff] %v1532_v27 }
 0x1b4   :  { %1550 = vst [vmem:[%s3275_s1 + $0x4e8] sm:$0xff] %v1530_v26 }
 0x1b5   :  { %1551 = vst [vmem:[%s3275_s1 + $0xce8] sm:$0xff] %v1532_v27 }
 0x1b6   :  { %1552 = vst [vmem:[%s3275_s1 + $0x568] sm:$0xff] %v1530_v26 }
 0x1b7   :  { %1553 = vst [vmem:[%s3275_s1 + $0xd68] sm:$0xff] %v1532_v27 }
 0x1b8   :  { %1554 = vst [vmem:[%s3275_s1 + $0x5e8] sm:$0xff] %v1530_v26 }
 0x1b9   :  { %1555 = vst [vmem:[%s3275_s1 + $0xde8] sm:$0xff] %v1532_v27 }
 0x1ba   :  { %1556 = vst [vmem:[%s3275_s1 + $0x668] sm:$0xff] %v1530_v26 }
 0x1bb   :  { %1557 = vst [vmem:[%s3275_s1 + $0xe68] sm:$0xff] %v1532_v27 }
 0x1bc   :  { %1558 = vst [vmem:[%s3275_s1 + $0x6e8] sm:$0xff] %v1530_v26 }
 0x1bd   :  { %1559 = vst [vmem:[%s3275_s1 + $0xee8] sm:$0xff] %v1532_v27 }
 0x1be   :  { %1560 = vst [vmem:[%s3275_s1 + $0x768] sm:$0xff] %v1530_v26 }
 0x1bf   :  { %1561 = vst [vmem:[%s3275_s1 + $0xf68] sm:$0xff] %v1532_v27 }
 0x1c0   :  { %1562 = vst [vmem:[%s3275_s1 + $0x7e8] sm:$0xff] %v1530_v26 }
 0x1c1   :  { %1563 = vst [vmem:[%s3275_s1 + $0xfe8] sm:$0xff] %v1532_v27 }
 0x1c2   :  { %1565 = vst [vmem:[%s3275_s1 + $0x70] sm:$0xff] %v1564_v28 }
 0x1c3   :  { %1567 = vst [vmem:[%s3275_s1 + $0x870] sm:$0xff] %v1566_v29 }
 0x1c4   :  { %1568 = vst [vmem:[%s3275_s1 + $0xf0] sm:$0xff] %v1564_v28 }
 0x1c5   :  { %1569 = vst [vmem:[%s3275_s1 + $0x8f0] sm:$0xff] %v1566_v29 }
 0x1c6   :  { %1570 = vst [vmem:[%s3275_s1 + $0x170] sm:$0xff] %v1564_v28 }
 0x1c7   :  { %1571 = vst [vmem:[%s3275_s1 + $0x970] sm:$0xff] %v1566_v29 }
 0x1c8   :  { %1572 = vst [vmem:[%s3275_s1 + $0x1f0] sm:$0xff] %v1564_v28 }
 0x1c9   :  { %1573 = vst [vmem:[%s3275_s1 + $0x9f0] sm:$0xff] %v1566_v29 }
 0x1ca   :  { %1574 = vst [vmem:[%s3275_s1 + $0x270] sm:$0xff] %v1564_v28 }
 0x1cb   :  { %1575 = vst [vmem:[%s3275_s1 + $0xa70] sm:$0xff] %v1566_v29 }
 0x1cc   :  { %1576 = vst [vmem:[%s3275_s1 + $0x2f0] sm:$0xff] %v1564_v28 }
 0x1cd   :  { %1577 = vst [vmem:[%s3275_s1 + $0xaf0] sm:$0xff] %v1566_v29 }
 0x1ce   :  { %1578 = vst [vmem:[%s3275_s1 + $0x370] sm:$0xff] %v1564_v28 }
 0x1cf   :  { %1579 = vst [vmem:[%s3275_s1 + $0xb70] sm:$0xff] %v1566_v29 }
 0x1d0   :  { %1580 = vst [vmem:[%s3275_s1 + $0x3f0] sm:$0xff] %v1564_v28 }
 0x1d1   :  { %1581 = vst [vmem:[%s3275_s1 + $0xbf0] sm:$0xff] %v1566_v29 }
 0x1d2   :  { %1582 = vst [vmem:[%s3275_s1 + $0x470] sm:$0xff] %v1564_v28 }
 0x1d3   :  { %1583 = vst [vmem:[%s3275_s1 + $0xc70] sm:$0xff] %v1566_v29 }
 0x1d4   :  { %1584 = vst [vmem:[%s3275_s1 + $0x4f0] sm:$0xff] %v1564_v28 }
 0x1d5   :  { %1585 = vst [vmem:[%s3275_s1 + $0xcf0] sm:$0xff] %v1566_v29 }
 0x1d6   :  { %1586 = vst [vmem:[%s3275_s1 + $0x570] sm:$0xff] %v1564_v28 }
 0x1d7   :  { %1587 = vst [vmem:[%s3275_s1 + $0xd70] sm:$0xff] %v1566_v29 }
 0x1d8   :  { %1588 = vst [vmem:[%s3275_s1 + $0x5f0] sm:$0xff] %v1564_v28 }
 0x1d9   :  { %1589 = vst [vmem:[%s3275_s1 + $0xdf0] sm:$0xff] %v1566_v29 }
 0x1da   :  { %1590 = vst [vmem:[%s3275_s1 + $0x670] sm:$0xff] %v1564_v28 }
 0x1db   :  { %1591 = vst [vmem:[%s3275_s1 + $0xe70] sm:$0xff] %v1566_v29 }
 0x1dc   :  { %1592 = vst [vmem:[%s3275_s1 + $0x6f0] sm:$0xff] %v1564_v28 }
 0x1dd   :  { %1593 = vst [vmem:[%s3275_s1 + $0xef0] sm:$0xff] %v1566_v29 }
 0x1de   :  { %1594 = vst [vmem:[%s3275_s1 + $0x770] sm:$0xff] %v1564_v28 }
 0x1df   :  { %1595 = vst [vmem:[%s3275_s1 + $0xf70] sm:$0xff] %v1566_v29 }
 0x1e0   :  { %1596 = vst [vmem:[%s3275_s1 + $0x7f0] sm:$0xff] %v1564_v28 }
 0x1e1   :  { %1597 = vst [vmem:[%s3275_s1 + $0xff0] sm:$0xff] %v1566_v29 }
 0x1e2   :  { %1599 = vst [vmem:[%s3275_s1 + $0x78] sm:$0xff] %v1598_v30 }
 0x1e3   :  { %1601 = vst [vmem:[%s3275_s1 + $0x878] sm:$0xff] %v1600_v31 }
 0x1e4   :  { %1602 = vst [vmem:[%s3275_s1 + $0xf8] sm:$0xff] %v1598_v30 }
 0x1e5   :  { %1603 = vst [vmem:[%s3275_s1 + $0x8f8] sm:$0xff] %v1600_v31 }
 0x1e6   :  { %1604 = vst [vmem:[%s3275_s1 + $0x178] sm:$0xff] %v1598_v30 }
 0x1e7   :  { %1605 = vst [vmem:[%s3275_s1 + $0x978] sm:$0xff] %v1600_v31 }
 0x1e8   :  { %1606 = vst [vmem:[%s3275_s1 + $0x1f8] sm:$0xff] %v1598_v30 }
 0x1e9   :  { %1607 = vst [vmem:[%s3275_s1 + $0x9f8] sm:$0xff] %v1600_v31 }
 0x1ea   :  { %1608 = vst [vmem:[%s3275_s1 + $0x278] sm:$0xff] %v1598_v30 }
 0x1eb   :  { %1609 = vst [vmem:[%s3275_s1 + $0xa78] sm:$0xff] %v1600_v31 }
 0x1ec   :  { %1610 = vst [vmem:[%s3275_s1 + $0x2f8] sm:$0xff] %v1598_v30 }
 0x1ed   :  { %1611 = vst [vmem:[%s3275_s1 + $0xaf8] sm:$0xff] %v1600_v31 }
 0x1ee   :  { %1612 = vst [vmem:[%s3275_s1 + $0x378] sm:$0xff] %v1598_v30 }
 0x1ef   :  { %1613 = vst [vmem:[%s3275_s1 + $0xb78] sm:$0xff] %v1600_v31 }
 0x1f0   :  { %1614 = vst [vmem:[%s3275_s1 + $0x3f8] sm:$0xff] %v1598_v30 }
 0x1f1   :  { %1615 = vst [vmem:[%s3275_s1 + $0xbf8] sm:$0xff] %v1600_v31 }
 0x1f2   :  { %1616 = vst [vmem:[%s3275_s1 + $0x478] sm:$0xff] %v1598_v30 }
 0x1f3   :  { %1617 = vst [vmem:[%s3275_s1 + $0xc78] sm:$0xff] %v1600_v31 }
 0x1f4   :  { %1618 = vst [vmem:[%s3275_s1 + $0x4f8] sm:$0xff] %v1598_v30 }
 0x1f5   :  { %1619 = vst [vmem:[%s3275_s1 + $0xcf8] sm:$0xff] %v1600_v31 }
 0x1f6   :  { %1620 = vst [vmem:[%s3275_s1 + $0x578] sm:$0xff] %v1598_v30 }
 0x1f7   :  { %1621 = vst [vmem:[%s3275_s1 + $0xd78] sm:$0xff] %v1600_v31 }
 0x1f8   :  { %1622 = vst [vmem:[%s3275_s1 + $0x5f8] sm:$0xff] %v1598_v30 }
 0x1f9   :  { %1623 = vst [vmem:[%s3275_s1 + $0xdf8] sm:$0xff] %v1600_v31 }
 0x1fa   :  { %1624 = vst [vmem:[%s3275_s1 + $0x678] sm:$0xff] %v1598_v30 }
 0x1fb   :  { %1625 = vst [vmem:[%s3275_s1 + $0xe78] sm:$0xff] %v1600_v31 }
 0x1fc   :  { %1626 = vst [vmem:[%s3275_s1 + $0x6f8] sm:$0xff] %v1598_v30 }
 0x1fd   :  { %1627 = vst [vmem:[%s3275_s1 + $0xef8] sm:$0xff] %v1600_v31 }
 0x1fe   :  { %1628 = vst [vmem:[%s3275_s1 + $0x778] sm:$0xff] %v1598_v30 }
 0x1ff   :  { %1629 = vst [vmem:[%s3275_s1 + $0xf78] sm:$0xff] %v1600_v31 }
 0x200   :  { %1630 = vst [vmem:[%s3275_s1 + $0x7f8] sm:$0xff] %v1598_v30 }
 0x201   :  { %1631 = vst [vmem:[%s3275_s1 + $0xff8] sm:$0xff] %v1600_v31 }

// kernel: custom-call.2
= control target key start
LH: loop header
LB: loop body
LE: loop exit
PB: predicated region body
PF: predicated region fallthrough
CT: control target
= control target key end

     0   :  { %s2268_s0 = inlined_call_operand.vmem [shape: f32[2,16,2,2], index: 0, kind: input, shape index: {}]   ;;  %s2269_s1 = inlined_call_operand.vmem [shape: f32[2,16,2,2], index: 1, kind: input, shape index: {}]   ;;  %s2270_s2 = inlined_call_operand.vmem [shape: f32[2,16,2,2], index: 2, kind: input, shape index: {}]   ;;  %s2271_s3 = inlined_call_operand.vmem [shape: f32[2,16,2,2], index: 3, kind: input, shape index: {}]   ;;  %s2272_s4 = inlined_call_operand.vmem [shape: f32[2,16,2], index: 4, kind: output, shape index: {0}]   ;;  %s2273_s5 = inlined_call_operand.vmem [shape: f32[2,16,2], index: 5, kind: output, shape index: {1}]   ;;  %s2274_s6 = inlined_call_operand.vmem [shape: f32[2,16,2,2], index: 6, kind: output, shape index: {2}]   ;;  %s2275_s7 = inlined_call_operand.vmem [shape: f32[2,16,2,2], index: 7, kind: output, shape index: {3}]   ;;  %s2276_s8 = inlined_call_operand.vmem [shape: f32[2,16,2,2], index: 8, kind: output, shape index: {4}]   ;;  %s2277_s9 = inlined_call_operand.vmem [shape: f32[2,16,2,2], index: 9, kind: output, shape index: {5}]  }
   0x1   :  { %2283 = sst [smem:[#allocation36_spill]] %s2277_s9 }
   0x2   :  { %s1894_s30 = smov 0   ;;  %s1896_s10 = smov 0  }
   0x3   :  { %s1898_s11 = smov 0   ;;  %s1900_s12 = smov 0  }
   0x4   :  { %s1902_s13 = smov 0   ;;  %s1904_s14 = smov 0  }
   0x5   :  { %s1906_s15 = smov 0  }
   0x6 LB: > { %2284 = sst [smem:[#allocation31_spill]] %s1811_s10  ;;  %s25_s16 = sadd.s32 1, %s1823_s13  ;;  %s1831_s15 = sphi %s1906_s15, %s16_s15   ;;  %s1827_s14 = sphi %s1904_s14, %s2307_s14   ;;  %s1823_s13 = sphi %s1902_s13, %s2309_s13   ;;  %s1819_s12 = sphi %s1900_s12, %s2305_s12   ;;  %s1815_s11 = sphi %s1898_s11, %s2308_s11   ;;  %s1811_s10 = sphi %s1896_s10, %s2304_s10   ;;  %s1807_s30 = sphi %s1894_s30, %s2303_s30  }
   0x7   : > { %2285 = sst [smem:[#allocation32_spill]] %s1827_s14  ;;  %p26_p0 = scmp.ge.s32.totalorder %s25_s16, 16 }
   0x8   : > { %s28_s17 = sadd.s32 1, %s1827_s14  ;;  %s2278_s18 = sadd.s32 4294967295, %s1831_s15  }
   0x9   : > { %s32_s19 = sshrl.u32 %s1823_s13, 3  ;;  %s2311_s16 = smov (%p26_p0, %s25_s16), 0 }
   0xa   : > { %2286 = sst [smem:[#allocation33_spill]] %s2311_s16  ;;  %s2313_s17 = smov (!%p26_p0, %s28_s17), %s1827_s14 }
   0xb   : > { %s33_s20 = sshrl.u32 %s2311_s16, 3  ;;  %p49_p1 = scmp.ne.s32.totalorder %s1811_s10, %s1807_s30 }
   0xc   : > { %p30_p2 = scmp.ge.s32.totalorder %s2313_s17, 2  ;;  %s35_s21 = ssub.s32 %s32_s19, %s33_s20 }
   0xd   : > { %p50_p3 = scmp.eq.s32.totalorder %s2278_s18, 31  ;;  %s39_s25 = sadd.s32 1, %s1811_s10 }
   0xe   : > { %s2315_s17 = smov (%p30_p2, %s2313_s17), 0  ;;  %p1618_p6 = scmp.ge.s32.totalorder %s1831_s15, 32 }
   0xf   : > { %2287 = sst [smem:[#allocation34_spill]] %s2315_s17  ;;  %p1943_p4 = por %p50_p3, %p49_p1 }
  0x10   : > { %s34_s23 = ssub.s32 %s1827_s14, %s2315_s17  ;;  %s104_s27 = sand.u32 (!%p1618_p6), 1, %s1831_s15  }
  0x11   : > { %s36_s24 = sor.u32 %s35_s21, %s34_s23  ;;  %s1620_s28 = sshll.u32 (!%p1618_p6), %s1827_s14, 4 }
  0x12   : > { %p37_p5 = scmp.eq.s32.totalorder %s36_s24, 0  ;;  %102 = sbr.rel (%p1618_p6) target bundleno = 28 (0x1c), region = 16 }
  0x13   : > { %s1619_s29 = sshll.u32 (!%p1618_p6), %s104_s27, 1  ;;  %s108_s19 = sadd.s32 (!%p1618_p6), %s1823_s13, %s1620_s28 }
  0x14   : > { %s1951_s26 = scalar_select %p37_p5, %s1811_s10, %s39_s25  }
  0x15   : > { %s1621_s20 = sshll.u32 (!%p1618_p6), %s108_s19, 1  ;;  %s106_s25 = scalar_lea.vmem (!%p1618_p6), [#allocation1], %s1619_s29 }
  0x16   : > { %2289 = sst [smem:[#allocation35_spill]] %s1951_s26  ;;  %s110_s17 = scalar_lea.vmem (!%p1618_p6), %s2268_s0, %s1621_s20 }
  0x17   : > { %v127_v0 = vld [vmem:[%s110_s17] sm:$0x3]  ;;  %s151_s24 = scalar_lea.vmem %s2269_s1, %s1621_s20  ;;  %s192_s9 = scalar_lea.vmem %s2270_s2, %s1621_s20 }
  0x18   : > { %128 = vst [vmem:[%s106_s25] sm:$0x3] %v127_v0  ;;  %v168_v1 = vld [vmem:[%s151_s24] sm:$0x3]  ;;  %s147_s14 = scalar_lea.vmem [#allocation3], %s1619_s29  ;;  %s233_s16 = scalar_lea.vmem %s2271_s3, %s1621_s20 }
  0x19   : > { %169 = vst [vmem:[%s147_s14] sm:$0x3] %v168_v1  ;;  %v209_v2 = vld [vmem:[%s192_s9] sm:$0x3]  ;;  %s188_s18 = scalar_lea.vmem [#allocation5], %s1619_s29  ;;  %s229_s17 = scalar_lea.vmem [#allocation7], %s1619_s29 }
  0x1a   : > { %210 = vst [vmem:[%s188_s18] sm:$0x3] %v209_v2  ;;  %v250_v3 = vld [vmem:[%s233_s16] sm:$0x3] }
  0x1b   : > { %251 = vst [vmem:[%s229_s17] sm:$0x3] %v250_v3 }
  0x1c PF: > { %p1631_p7 = scmp.ge.s32.totalorder %s1831_s15, 1  ;;  %p268_p8 = scmp.lt.s32.totalorder %s1831_s15, 33 }
  0x1e   : > { %p269_p9 = pnand %p1631_p7, %p268_p8 }
  0x20   : > { %272 = sbr.rel (%p269_p9) target bundleno = 959 (0x3bf), region = 140 }
  0x25   : > { %s2290_s10 = sadd.s32 4294967295, %s1831_s15   ;;  %s309_s14 = sand.u32 1, %s1807_s30   ;;  %v369_v4 = vlaneseq  ;;  %v1841_v5 = vmov 0.0  }
  0x26   : > { %s291_s9 = sand.u32 1, %s2290_s10   ;;  %s1976_s29 = sshll.u32 %s309_s14, 3  ;;  %364 = vst [vmem:[#allocation10] sm:$0xff] %v1841_v5 }
  0x27   : > { %s1974_s26 = sshll.u32 %s291_s9, 1  ;;  %365 = vst [vmem:[#allocation12] sm:$0xff] %v1841_v5  ;;  %v1978_v6 = vand.u32 127, %v369_v4  ;;  %v1980_v7 = vshrl.u32 %v369_v4, 7  ;;  %s352_s23 = smov [#allocation18] }
  0x28   : > { %s293_s19 = scalar_lea.vmem [#allocation1], %s1974_s26  ;;  %s297_s20 = scalar_lea.vmem [#allocation3], %s1974_s26  ;;  %366 = vst [vmem:[#allocation14] sm:$0xff] %v1841_v5 }
  0x29   : > { %v336_v8 = vld [vmem:[%s293_s19] sm:$0x3]  ;;  %v340_v9 = vld [vmem:[%s297_s20] sm:$0x3]  ;;  %s301_s30 = scalar_lea.vmem [#allocation5], %s1974_s26  ;;  %s305_s21 = scalar_lea.vmem [#allocation7], %s1974_s26  ;;  %v371_v6 = vmov %v1978_v6  ;;  %v374_v7 = vmov %v1980_v7 }
  0x2a   : > { %337 = vst [vmem:[#allocation0] sm:$0x3] %v336_v8  ;;  %v344_v10 = vld [vmem:[%s301_s30] sm:$0x3]  ;;  %v348_v11 = vld [vmem:[%s305_s21] sm:$0x3]  ;;  %vm378_vm0 = vcmp.eq.s32.totalorder %v374_v7, %v371_v6  ;;  %v384_v6 = vmov %v1978_v6  ;;  %v387_v7 = vmov %v1980_v7 }
  0x2b   : > { %341 = vst [vmem:[#allocation2] sm:$0x3] %v340_v9  ;;  %s368_s24 = smov [#allocation10]  ;;  %s355_s25 = smov [#allocation19]  ;;  %vm391_vm1 = vcmp.eq.s32.totalorder %v387_v7, %v384_v6  ;;  %vm1495_vm2 = vcmp.lt.s32.totalorder %v1978_v6, 2  ;;  %v1487_v6 = vmov %v1978_v6  ;;  %v1490_v7 = vmov %v1980_v7 }
  0x2c   : > { %345 = vst [vmem:[#allocation4] sm:$0x3] %v344_v10  ;;  %s358_s27 = smov [#allocation20]  ;;  %s361_s28 = smov [#allocation21]  ;;  %v1504_v6 = vmov %v1978_v6  ;;  %v1507_v7 = vmov %v1980_v7  ;;  %vm1500_vm3 = vcmp.eq.s32.totalorder %v1490_v7, %v1487_v6 }
  0x2d   : > { %349 = vst [vmem:[#allocation6] sm:$0x3] %v348_v11  ;;  %v375_v12 = vld [vmem:[%s368_s24] sm:$0x3]  ;;  %s381_s16 = smov [#allocation16]  ;;  %s321_s10 = scalar_lea.vmem [#allocation11], %s1974_s26  ;;  %v1521_v6 = vmov %v1978_v6  ;;  %v1524_v7 = vmov %v1980_v7 }
  0x2e   : > { %367 = vst [vmem:[#allocation16] sm:$0xff] %v1841_v5  ;;  %v379_v16 = vsel %vm378_vm0, 1.0, %v375_v12  ;;  %s1491_s20 = smov [#allocation18]  ;;  %s1508_s30 = smov [#allocation19]  ;;  %v1538_v6 = vmov %v1978_v6  ;;  %v1541_v7 = vmov %v1980_v7 }
  0x2f   : > { %380 = vst [vmem:[%s368_s24] sm:$0x3] %v379_v16  ;;  %s1525_s21 = smov [#allocation20]  ;;  %vm1551_vm4 = vcmp.eq.s32.totalorder %v1541_v7, %v1538_v6 }
  0x31   : > { %v353_v13 = vld [vmem:[#allocation0] sm:$0xff] }
  0x32   : > { %354 = vst [vmem:[%s352_s23] sm:$0xff] %v353_v13  ;;  %v356_v14 = vld [vmem:[#allocation2] sm:$0xff]  ;;  %s1542_s23 = smov [#allocation21] }
  0x33   : > { %357 = vst [vmem:[%s355_s25] sm:$0xff] %v356_v14  ;;  %v359_v15 = vld [vmem:[#allocation4] sm:$0xff] }
  0x34   : > { %360 = vst [vmem:[%s358_s27] sm:$0xff] %v359_v15  ;;  %v362_v17 = vld [vmem:[#allocation6] sm:$0xff] }
  0x35   : > { %363 = vst [vmem:[%s361_s28] sm:$0xff] %v362_v17  ;;  %v388_v18 = vld [vmem:[%s381_s16] sm:$0x3] }
  0x36   : > { %v392_v19 = vsel %vm391_vm1, 1.0, %v388_v18 }
  0x37   : > { %393 = vst [vmem:[%s381_s16] sm:$0x3] %v392_v19 }
  0x39   : > { %v1497_v20 = vld [vmem:[%s1491_s20] sm:$0x3] }
  0x3a   : > { %v1514_v21 = vld [vmem:[%s1508_s30] sm:$0x3]  ;;  %v1498_v22 = vsel %vm1495_vm2, %v1497_v20, 0.0 }
  0x3b   : > { %v1515_v23 = vsel %vm1495_vm2, %v1514_v21, 0.0  ;;  %v1531_v24 = vld [vmem:[%s1525_s21] sm:$0x3]  ;;  %v1499_v26 = vmul.f32 %v1498_v22, %v1498_v22 }
  0x3c   : > { %v1548_v25 = vld [vmem:[%s1542_s23] sm:$0x3]  ;;  %v1516_v27 = vmul.f32 %v1515_v23, %v1515_v23  ;;  %v1532_v28 = vsel %vm1495_vm2, %v1531_v24, 0.0 }
  0x3d   : > { %v1549_v29 = vsel %vm1495_vm2, %v1548_v25, 0.0  ;;  %v1533_v30 = vmul.f32 %v1532_v28, %v1532_v28  ;;  %v1501_v33 = vsel %vm1500_vm3, 0.0, %v1499_v26 }
  0x3e   : > { %v1518_v31 = vadd.f32 %v1516_v27, %v1499_v26  ;;  %v1550_v32 = vmul.f32 %v1549_v29, %v1549_v29  ;;  %v1517_v35 = vadd.f32 %v1516_v27, %v1501_v33 }
  0x40   : > { %v1535_v34 = vadd.f32 %v1533_v30, %v1518_v31  ;;  %v1534_v37 = vadd.f32 %v1533_v30, %v1517_v35  ;;  %v1552_v38 = vsel %vm1551_vm4, 0.0, %v1550_v32 }
  0x42   : > { %v1554_v36 = vadd.f32 %v1550_v32, %v1535_v34  ;;  %v1553_v39 = vadd.f32 %v1552_v38, %v1534_v37 }
  0x44   : > { %1555 = vadd.xlane.f32.xlu0 %v1554_v36 }
  0x4c   : > { %1563 = vadd.xlane.f32.xlu0 %v1553_v39 }
  0xb7   : > { %v1556_v40 = vpop.xlane.xlu0 %1555 }
  0xb8   : > { %v1557_v41 = vrot.slane %v1556_v40, 4 }
  0xba   : > { %v1558_v42 = vadd.f32 %v1557_v41, %v1556_v40 }
  0xbc   : > { %v1559_v43 = vrot.slane %v1558_v42, 2 }
  0xbe   : > { %v1560_v47 = vadd.f32 %v1559_v43, %v1558_v42 }
  0xbf   : > { %v1564_v44 = vpop.xlane.xlu0 %1563 }
  0xc0   : > { %v1565_v45 = vrot.slane %v1564_v44, 4  ;;  %v1561_v50 = vrot.slane %v1560_v47, 1 }
  0xc2   : > { %v1566_v46 = vadd.f32 %v1565_v45, %v1564_v44  ;;  %v1562_v53 = vadd.f32 %v1561_v50, %v1560_v47 }
  0xc4   : > { %v1567_v48 = vrot.slane %v1566_v46, 2 }
  0xc6   : > { %v1568_v49 = vadd.f32 %v1567_v48, %v1566_v46 }
  0xc8   : > { %v1569_v51 = vrot.slane %v1568_v49, 1 }
  0xca   : > { %v1570_v52 = vadd.f32 %v1569_v51, %v1568_v49 }
  0xcc   : > { %1678 = vpush %v1570_v52 }
  0xcd   : > { %1680 = vpush %v1562_v53 }
  0xfd   : > { %s1679_s24 = spop %1678 }
  0xfe   : > { %s1681_s25 = spop %1680 }
  0xff   : > { %s1573_s27 = smul.f32 1e-10, %s1681_s25 }
 0x101   : > { %p1574_p10 = scmp.le.f32.partialorder %s1679_s24, %s1573_s27 }
 0x102   : > { %s2013_s28 = smov (!%p1574_p10), 0  }
 0x103   : > { %1577 = sbr.rel (%p1574_p10) target bundleno = 917 (0x395), region = 475 }
 0x108 LB: >> { %s2018_s16 = smov 0   ;;  %s1835_s28 = sphi %s2013_s28, %s2291_s28  }
 0x109 LB: >>> { %s498_s20 = smov [#allocation18]  ;;  %v502_v6 = vmov %v1978_v6  ;;  %v505_v7 = vmov %v1980_v7  ;;  %s518_s30 = smov [#allocation19]  ;;  %s1839_s16 = sphi %s2018_s16, %s497_s16  }
 0x10a   : >>> { %v522_v6 = vmov %v1978_v6  ;;  %v525_v7 = vmov %v1980_v7  ;;  %v506_v54 = vld [vmem:[%s498_s20] sm:$0x3]  ;;  %vm509_vm5 = vcmp.eq.s32.totalorder %v505_v7, %v502_v6  ;;  %s538_s21 = smov [#allocation21]  ;;  %s499_s23 = smov [#allocation22] }
 0x10b   : >>> { %vm529_vm6 = vcmp.eq.s32.totalorder %v525_v7, %v522_v6  ;;  %v542_v6 = vmov %v1978_v6  ;;  %v545_v7 = vmov %v1980_v7  ;;  %v510_v55 = vsel %vm509_vm5, %v506_v54, 0.0  ;;  %v526_v56 = vld [vmem:[%s518_s30] sm:$0x3]  ;;  %s519_s24 = smov [#allocation23]  ;;  %s539_s25 = smov [#allocation24] }
 0x10c   : >>> { %vm549_vm7 = vcmp.eq.s32.totalorder %v545_v7, %v542_v6  ;;  %v511_v57 = vrot.slane %v510_v55, 4  ;;  %v530_v58 = vsel %vm529_vm6, %v526_v56, 0.0  ;;  %v546_v59 = vld [vmem:[%s538_s21] sm:$0x3]  ;;  %s562_s27 = smov [#allocation23]  ;;  %s560_s20 = smov [#allocation22]  ;;  %v651_v6 = vmov %v1978_v6 }
 0x10d   : >>> { %v531_v60 = vrot.slane %v530_v58, 4  ;;  %v550_v61 = vsel %vm549_vm7, %v546_v59, 0.0  ;;  %s564_s30 = smov [#allocation24]  ;;  %s639_s21 = smov [#allocation25]  ;;  %v654_v7 = vmov %v1980_v7 }
 0x10e   : >>> { %v512_v62 = vadd.f32 %v511_v57, %v510_v55  ;;  %v551_v63 = vrot.slane %v550_v61, 4  ;;  %s2044_s17 = smov [#allocation10]  ;;  %s2046_s18 = smov [#allocation12] }
 0x10f   : >>> { %v532_v0 = vadd.f32 %v531_v60, %v530_v58  ;;  %s2051_s19 = smov [#allocation14]  ;;  %s903_s14 = smov [#allocation30] }
 0x110   : >>> { %v513_v1 = vrot.slane %v512_v62, 2  ;;  %v552_v2 = vadd.f32 %v551_v63, %v550_v61  ;;  %s2054_s9 = smov [#allocation16]  ;;  %s497_s16 = sadd.s32 1, %s1839_s16  }
 0x111   : >>> { %v533_v3 = vrot.slane %v532_v0, 2  ;;  %p494_p11 = scmp.ge.s32.totalorder %s497_s16, 3  }
 0x112   : >>> { %v514_v4 = vadd.f32 %v513_v1, %v512_v62  ;;  %v553_v5 = vrot.slane %v552_v2, 2 }
 0x113   : >>> { %v534_v8 = vadd.f32 %v533_v3, %v532_v0 }
 0x114   : >>> { %v515_v9 = vrot.slane %v514_v4, 1  ;;  %v554_v10 = vadd.f32 %v553_v5, %v552_v2 }
 0x115   : >>> { %v535_v11 = vrot.slane %v534_v8, 1 }
 0x116   : >>> { %v516_v12 = vadd.f32 %v515_v9, %v514_v4  ;;  %v555_v13 = vrot.slane %v554_v10, 1 }
 0x117   : >>> { %v536_v14 = vadd.f32 %v535_v11, %v534_v8 }
 0x118   : >>> { %517 = vst [vmem:[%s499_s23] sm:$0x1] %v516_v12  ;;  %v556_v15 = vadd.f32 %v555_v13, %v554_v10  ;;  %s641_s23 = smov [#allocation26] }
 0x119   : >>> { %537 = vst [vmem:[%s519_s24] sm:$0x1] %v536_v14  ;;  %s558_s24 = smov [#allocation27] }
 0x11a   : >>> { %557 = vst [vmem:[%s539_s25] sm:$0x1] %v556_v15  ;;  %s559_s25 = smov [#allocation28]  ;;  %s643_s24 = smov %s558_s24 }
 0x11b   : >>> { %s645_s25 = smov %s559_s25 }
 0x11f   : >>> { %v561_v23 = vld [vmem:[%s560_s20] sm:$0xff]  ;;  %s662_s20 = smov [#allocation28] }
 0x120   : >>> { %v2029_v16 = vld [vmem:[%s562_s27] sm:$0xff]  ;;  %v615_v47 = vand.u32 2147483647, %v561_v23  ;;  %s647_s27 = smov [#allocation27] }
 0x121   : >>> { %v567_v17 = vmul.f32 2.0, %v2029_v16  ;;  %v565_v24 = vld [vmem:[%s564_s30] sm:$0xff]  ;;  %v616_v55 = vand.u32 2147483647, %v2029_v16  ;;  %s660_s30 = smov [#allocation29] }
 0x122   : >>> { %v566_v27 = vsub.f32 %v565_v24, %v561_v23  ;;  %v617_v48 = vand.u32 2147483647, %v565_v24 }
 0x123   : >>> { %1761 = vrcp.f32 %v567_v17  ;;  %v579_v20 = vand.u32 2147483648, %v567_v17  ;;  %vm573_vm8 = vweird.f32 %v567_v17  ;;  %v577_v22 = vand.u32 2147483647, %v567_v17 }
 0x124   : >>> { %v618_v50 = vmin.f32 %v615_v47, %v617_v48 }
 0x125   : >>> { %v580_v26 = vor.u32 1.1754944e-38, %v579_v20  ;;  %vm578_vm11 = vcmp.eq.f32.partialorder %v577_v22, 8.507059e+37 }
 0x126   : >>> { %v619_v56 = vmul.f32 1.1920929e-08, %v618_v50 }
 0x128   : >>> { %vm620_vm4 = vcmp.le.f32.partialorder %v616_v55, %v619_v56 }
 0x129   : >>> { %v1762_v18 = vpop.eup %1761 }
 0x12a   : >>> { %v569_v19 = vmul.f32 %v1762_v18, %v567_v17  ;;  %vm574_vm9 = vweird.f32 %v1762_v18 }
 0x12b   : >>> { %vm575_vm10 = vmor %vm573_vm8, %vm574_vm9  ;;  %vm656_vm8 = vcmp.eq.s32.totalorder %v654_v7, %v651_v6  ;;  %v666_v6 = vmov %v1978_v6  ;;  %v669_v7 = vmov %v1980_v7 }
 0x12c   : >>> { %v570_v21 = vsub.f32 1.0, %v569_v19  ;;  %vm671_vm9 = vcmp.eq.s32.totalorder %v669_v7, %v666_v6  ;;  %v737_v6 = vmov %v1978_v6 }
 0x12d   : >>> { %v778_v6 = vmov %v1978_v6 }
 0x12e   : >>> { %v571_v25 = vmul.f32 %v1762_v18, %v570_v21  ;;  %v764_v6 = vmov %v1978_v6 }
 0x130   : >>> { %v572_v28 = vadd.f32 %v1762_v18, %v571_v25 }
 0x132   : >>> { %v576_v29 = vsel %vm575_vm10, %v1762_v18, %v572_v28  ;;  %v911_v28 = vld [vmem:[%s2051_s19] sm:$0x3]  ;;  %vm861_vm10 = vcmp.eq.s32.totalorder %v1980_v7, 0 }
 0x133   : >>> { %v581_v30 = vsel %vm578_vm11, %v580_v26, %v576_v29  ;;  %vm873_vm11 = vcmp.eq.s32.totalorder %v1980_v7, 1  ;;  %v740_v7 = vmov %v1980_v7 }
 0x134   : >>> { %v582_v31 = vmul.f32 %v581_v30, %v566_v27  ;;  %v781_v7 = vmov %v1980_v7 }
 0x135   : >>> { %v767_v7 = vmov %v1980_v7 }
 0x136   : >>> { %v584_v32 = vmul.f32 %v582_v31, %v582_v31  ;;  %vm583_vm14 = vcmp.ge.f32.partialorder %v582_v31, 0.0 }
 0x138   : >>> { %v585_v33 = vadd.f32 1.0, %v584_v32 }
 0x13a   : >>> { %1763 = vrsqrt.f32 %v585_v33  ;;  %vm593_vm12 = vcmp.eq.f32.partialorder %v585_v33, inf  ;;  %v596_v40 = vand.u32 2147483648, %v585_v33  ;;  %vm595_vm13 = vcmp.eq.f32.partialorder %v585_v33, 0.0 }
 0x140   : >>> { %v1764_v34 = vpop.eup %1763 }
 0x141   : >>> { %v587_v35 = vmul.f32 %v1764_v34, %v585_v33 }
 0x143   : >>> { %v588_v36 = vmul.f32 %v1764_v34, %v587_v35 }
 0x145   : >>> { %v589_v37 = vmul.f32 0.5, %v588_v36 }
 0x147   : >>> { %v590_v38 = vsub.f32 1.5, %v589_v37 }
 0x149   : >>> { %v591_v39 = vmul.f32 %v1764_v34, %v590_v38 }
 0x14b   : >>> { %v592_v41 = vmul.f32 %v591_v39, %v585_v33 }
 0x14d   : >>> { %v594_v42 = vsel %vm593_vm12, %v585_v33, %v592_v41  ;;  %v912_v33 = vld [vmem:[%s2054_s9] sm:$0x3]  ;;  %vm745_vm12 = vcmp.eq.s32.totalorder %v740_v7, %v737_v6  ;;  %v751_v6 = vmov %v1978_v6  ;;  %v754_v7 = vmov %v1980_v7 }
 0x14e   : >>> { %v597_v43 = vsel %vm595_vm13, %v596_v40, %v594_v42  ;;  %vm786_vm13 = vcmp.eq.s32.totalorder %v781_v7, %v778_v6 }
 0x14f   : >>> { %v598_v44 = vxor.u32 2147483648, %v597_v43 }
 0x151   : >>> { %v599_v45 = vsel %vm583_vm14, %v597_v43, %v598_v44  ;;  %vm771_vm14 = vcmp.eq.s32.totalorder %v767_v7, %v764_v6 }
 0x152   : >>> { %v600_v46 = vadd.f32 %v599_v45, %v582_v31 }
 0x154   : >>> { %1765 = vrcp.f32 %v600_v46  ;;  %v612_v52 = vand.u32 2147483648, %v600_v46  ;;  %vm606_vm15 = vweird.f32 %v600_v46  ;;  %v610_v54 = vand.u32 2147483647, %v600_v46 }
 0x156   : >>> { %v613_v58 = vor.u32 1.1754944e-38, %v612_v52  ;;  %vm611_vm3 = vcmp.eq.f32.partialorder %v610_v54, 8.507059e+37 }
 0x15a   : >>> { %v1766_v49 = vpop.eup %1765 }
 0x15b   : >>> { %v602_v51 = vmul.f32 %v1766_v49, %v600_v46  ;;  %vm607_vm0 = vweird.f32 %v1766_v49 }
 0x15c   : >>> { %vm608_vm1 = vmor %vm606_vm15, %vm607_vm0  ;;  %vm758_vm15 = vcmp.eq.s32.totalorder %v754_v7, %v751_v6  ;;  %vm804_vm0 = vcmp.eq.s32.totalorder %v1978_v6, 1  ;;  %v401_v7 = vmov (%p494_p11), %v1980_v7 }
 0x15d   : >>> { %v603_v53 = vsub.f32 1.0, %v602_v51 }
 0x15f   : >>> { %v604_v57 = vmul.f32 %v1766_v49, %v603_v53 }
 0x161   : >>> { %v605_v59 = vadd.f32 %v1766_v49, %v604_v57 }
 0x163   : >>> { %v609_v60 = vsel %vm608_vm1, %v1766_v49, %v605_v59  ;;  %vm800_vm1 = vcmp.eq.s32.totalorder %v1978_v6, 0  ;;  %v398_v6 = vmov (%p494_p11), %v1978_v6 }
 0x164   : >>> { %v614_v61 = vsel %vm611_vm3, %v613_v58, %v609_v60  ;;  %vm413_vm3 = vcmp.eq.s32.totalorder (%p494_p11), %v401_v7, %v398_v6  ;;  %v417_v6 = vmov (%p494_p11), %v1978_v6  ;;  %v420_v7 = vmov (%p494_p11), %v1980_v7 }
 0x165   : >>> { %v621_v62 = vsel %vm620_vm4, 0.0, %v614_v61  ;;  %v434_v6 = vmov (%p494_p11), %v1978_v6  ;;  %v437_v7 = vmov (%p494_p11), %v1980_v7 }
 0x166   : >>> { %v622_v63 = vmul.f32 %v621_v62, %v621_v62  ;;  %v635_v0 = vmul.f32 %v621_v62, %v2029_v16  ;;  %v451_v6 = vmov (%p494_p11), %v1978_v6  ;;  %v454_v7 = vmov (%p494_p11), %v1980_v7 }
 0x167   : >> { %vm466_vm4 = vcmp.eq.s32.totalorder (%p494_p11), %v454_v7, %v451_v6 }
 0x168   : >>> { %v623_v1 = vadd.f32 1.0, %v622_v63  ;;  %v636_v2 = vsub.f32 %v561_v23, %v635_v0  ;;  %v638_v3 = vadd.f32 %v635_v0, %v565_v24  ;;  %v909_v23 = vld [vmem:[%s2044_s17] sm:$0x3] }
 0x169   : >>> { %v910_v24 = vld [vmem:[%s2046_s18] sm:$0x3] }
 0x16a   : >>> { %1767 = vrsqrt.f32 %v623_v1  ;;  %640 = vst [vmem:[%s639_s21] sm:$0xff] %v636_v2  ;;  %vm630_vm5 = vweird.f32 %v623_v1  ;;  %s675_s21 = smov [#allocation30] }
 0x16b   : >>> { %642 = vst [vmem:[%s641_s23] sm:$0xff] %v638_v3  ;;  %s677_s23 = smov [#allocation29] }
 0x170   : >>> { %v1768_v4 = vpop.eup %1767 }
 0x171   : >>> { %v625_v5 = vmul.f32 %v1768_v4, %v623_v1  ;;  %vm631_vm6 = vweird.f32 %v1768_v4 }
 0x172   : >>> { %vm632_vm7 = vmor %vm630_vm5, %vm631_vm6 }
 0x173   : >>> { %v626_v8 = vmul.f32 %v1768_v4, %v625_v5 }
 0x175   : >>> { %v627_v9 = vmul.f32 0.5, %v626_v8 }
 0x177   : >>> { %v628_v10 = vsub.f32 1.5, %v627_v9 }
 0x179   : >>> { %v629_v11 = vmul.f32 %v1768_v4, %v628_v10 }
 0x17b   : >>> { %v633_v12 = vsel %vm632_vm7, %v1768_v4, %v629_v11 }
 0x17c   : >>> { %644 = vst [vmem:[%s643_s24] sm:$0xff] %v633_v12  ;;  %v634_v13 = vmul.f32 %v633_v12, %v621_v62  ;;  %s2038_s24 = smov [#allocation18] }
 0x17d   : >>> { %v685_v26 = vld [vmem:[%s2038_s24] sm:$0x3] }
 0x17e   : >>> { %646 = vst [vmem:[%s645_s25] sm:$0xff] %v634_v13  ;;  %s2040_s25 = smov [#allocation19] }
 0x17f   : >>> { %v686_v20 = vld [vmem:[%s2040_s25] sm:$0x3] }
 0x183   : >>> { %v648_v14 = vld [vmem:[%s647_s27] ss:$0 sm:$0xff]  ;;  %s2042_s27 = smov [#allocation20] }
 0x184   : >>> { %v657_v15 = vsel %vm656_vm8, %v648_v14, 0.0  ;;  %v687_v21 = vld [vmem:[%s2042_s27] sm:$0x3] }
 0x185   : >>> { %658 = vadd.xlane.f32.xlu0 %v657_v15  ;;  %v663_v16 = vld [vmem:[%s662_s20] ss:$0 sm:$0xff]  ;;  %s901_s20 = smov [#allocation29] }
 0x186   : >>> { %v672_v17 = vsel %vm671_vm9, %v663_v16, 0.0 }
 0x18d   : >>> { %673 = vadd.xlane.f32.xlu0 %v672_v17 }
 0x1f8   : >>> { %v659_v18 = vpop.xlane.xlu0 %658 }
 0x1f9   : >>> { %661 = vst [vmem:[%s660_s30] sm:$0xff] %v659_v18  ;;  %s2048_s30 = smov [#allocation21] }
 0x1fa   : >>> { %v688_v27 = vld [vmem:[%s2048_s30] sm:$0x3] }
 0x200   : >>> { %v674_v19 = vpop.xlane.xlu0 %673  ;;  %v678_v22 = vld [vmem:[%s677_s23] sm:$0xff]  ;;  %s705_s23 = smov [#allocation27] }
 0x201   : >>> { %676 = vst [vmem:[%s675_s21] sm:$0xff] %v674_v19  ;;  %s679_s21 = smov [#allocation30]  ;;  %v902_v25 = vld [vmem:[%s901_s20] sm:$0xff]  ;;  %v692_v29 = vmul.f32 %v686_v20, %v678_v22  ;;  %v696_v30 = vmul.f32 %v687_v21, %v678_v22  ;;  %v689_v50 = vmul.f32 %v685_v26, %v678_v22  ;;  %v699_v52 = vmul.f32 %v688_v27, %v678_v22  ;;  %s707_s20 = smov [#allocation28] }
 0x202   : >>> { %v913_v34 = vmul.f32 %v909_v23, %v902_v25  ;;  %v916_v35 = vmul.f32 %v910_v24, %v902_v25  ;;  %v920_v42 = vmul.f32 %v911_v28, %v902_v25  ;;  %v923_v46 = vmul.f32 %v912_v33, %v902_v25  ;;  %v706_v56 = vld [vmem:[%s705_s23] ss:$0 sm:$0xff]  ;;  %s774_s23 = smov [#allocation21] }
 0x203   : >>> { %v708_v57 = vld [vmem:[%s707_s20] ss:$0 sm:$0xff]  ;;  %s761_s20 = smov [#allocation20] }
 0x208   : >>> { %v680_v31 = vld [vmem:[%s679_s21] sm:$0xff]  ;;  %s2070_s21 = smov [#allocation20] }
 0x209   : >>> { %v904_v32 = vld [vmem:[%s903_s14] sm:$0xff]  ;;  %v693_v36 = vmul.f32 %v688_v27, %v680_v31  ;;  %v695_v37 = vmul.f32 %v685_v26, %v680_v31  ;;  %v690_v43 = vmul.f32 %v687_v21, %v680_v31  ;;  %v698_v47 = vmul.f32 %v686_v20, %v680_v31  ;;  %s2065_s14 = smov [#allocation10] }
 0x20a   : >>> { %v914_v38 = vmul.f32 %v911_v28, %v904_v32  ;;  %v917_v39 = vmul.f32 %v912_v33, %v904_v32  ;;  %v919_v40 = vmul.f32 %v909_v23, %v904_v32  ;;  %v922_v41 = vmul.f32 %v910_v24, %v904_v32 }
 0x20b   : >>> { %v694_v44 = vsub.f32 %v692_v29, %v693_v36  ;;  %v697_v45 = vadd.f32 %v696_v30, %v695_v37  ;;  %v691_v54 = vsub.f32 %v689_v50, %v690_v43  ;;  %v700_v55 = vadd.f32 %v699_v52, %v698_v47 }
 0x20c   : >>> { %v915_v48 = vsub.f32 %v913_v34, %v914_v38  ;;  %v918_v49 = vsub.f32 %v916_v35, %v917_v39  ;;  %v921_v51 = vadd.f32 %v920_v42, %v919_v40  ;;  %v924_v53 = vadd.f32 %v923_v46, %v922_v41 }
 0x20d   : >>> { %702 = vst [vmem:[%s2040_s25] sm:$0x3] %v694_v44  ;;  %s2072_s25 = smov [#allocation19] }
 0x20e   : >>> { %703 = vst [vmem:[%s2042_s27] sm:$0x3] %v697_v45  ;;  %s930_s27 = smov [#allocation14] }
 0x20f   : >>> { %925 = vst [vmem:[%s2044_s17] sm:$0x3] %v915_v48  ;;  %s2074_s17 = smov [#allocation12] }
 0x210   : >>> { %926 = vst [vmem:[%s2046_s18] sm:$0x3] %v918_v49  ;;  %s2079_s18 = smov [#allocation16] }
 0x211   : >>> { %927 = vst [vmem:[%s2051_s19] sm:$0x3] %v921_v51  ;;  %s712_s19 = smov [#allocation21] }
 0x212   : >>> { %928 = vst [vmem:[%s2054_s9] sm:$0x3] %v924_v53  ;;  %s2082_s9 = smov [#allocation18] }
 0x213   : >>> { %701 = vst [vmem:[%s2038_s24] sm:$0x3] %v691_v54  ;;  %s734_s24 = smov [#allocation25] }
 0x214   : >>> { %704 = vst [vmem:[%s2048_s30] sm:$0x3] %v700_v55  ;;  %v714_v59 = vld [vmem:[%s2072_s25] sm:$0x3]  ;;  %s775_s30 = smov [#allocation26] }
 0x215   : >>> { %v715_v58 = vld [vmem:[%s2070_s21] sm:$0x3]  ;;  %v718_v10 = vmul.f32 %v714_v59, %v708_v57  ;;  %v721_v16 = vmul.f32 %v714_v59, %v706_v56 }
 0x216   : >>> { %v931_v60 = vld [vmem:[%s2065_s14] ss:$0 sm:$0xff]  ;;  %v1651_v62 = vld [vmem:[%s2065_s14 + $0x1] ss:$0 sm:$0xff]  ;;  %v726_v13 = vmul.f32 %v715_v58, %v708_v57  ;;  %v723_v14 = vmul.f32 %v715_v58, %v706_v56 }
 0x217   : >>> { %v1650_v61 = vld [vmem:[%s2065_s14 - $0x1] sm:$0x2]  ;;  %v1655_v2 = vld [vmem:[%s2074_s17 + $0x1] ss:$0 sm:$0xff] }
 0x218   : >>> { %v938_v63 = vsel %vm861_vm10, %v931_v60, %v1650_v61  ;;  %v955_v0 = vld [vmem:[%s2074_s17] ss:$0 sm:$0xff]  ;;  %v1653_v4 = vld [vmem:[%s930_s27 + $0x1] sm:$0x1] }
 0x219   : >>> { %v1654_v1 = vld [vmem:[%s2074_s17 - $0x1] sm:$0x2]  ;;  %941 = vst [vmem:[%s2065_s14] sm:$0x3] %v938_v63  ;;  %v950_v8 = vsel %vm873_vm11, %v1651_v62, %v1653_v4  ;;  %v1657_v9 = vld [vmem:[%s2079_s18 + $0x1] sm:$0x1] }
 0x21a   : >>> { %v942_v3 = vld [vmem:[%s930_s27] ss:$0 sm:$0xff]  ;;  %v962_v5 = vsel %vm861_vm10, %v955_v0, %v1654_v1  ;;  %v974_v12 = vsel %vm873_vm11, %v1655_v2, %v1657_v9 }
 0x21b   : >>> { %1652 = vst [vmem:[%s2065_s14 + $0x1] sm:$0x1] %v942_v3  ;;  %v966_v11 = vld [vmem:[%s2079_s18] ss:$0 sm:$0xff]  ;;  %s733_s14 = smov [#allocation18] }
 0x21c   : >>> { %952 = vst [vmem:[%s930_s27] sm:$0x3] %v950_v8  ;;  %v713_v15 = vld [vmem:[%s2082_s9] sm:$0x3]  ;;  %s2121_s27 = smov [#allocation21] }
 0x21d   : >>> { %965 = vst [vmem:[%s2074_s17] sm:$0x3] %v962_v5  ;;  %v716_v17 = vld [vmem:[%s712_s19] sm:$0x3]  ;;  %v717_v18 = vmul.f32 %v713_v15, %v706_v56  ;;  %v720_v19 = vmul.f32 %v713_v15, %v708_v57 }
 0x21e   : >>> { %1656 = vst [vmem:[%s2074_s17 + $0x1] sm:$0x1] %v966_v11  ;;  %v727_v20 = vmul.f32 %v716_v17, %v706_v56  ;;  %v724_v21 = vmul.f32 %v716_v17, %v708_v57  ;;  %v741_v26 = vld [vmem:[%s734_s24] ss:$0 sm:$0xff]  ;;  %s2123_s17 = smov [#allocation20]  ;;  %s2133_s24 = smov [#allocation19] }
 0x21f   : >>> { %976 = vst [vmem:[%s2079_s18] sm:$0x3] %v974_v12  ;;  %v719_v22 = vsub.f32 %v717_v18, %v718_v10  ;;  %v722_v25 = vadd.f32 %v721_v16, %v720_v19  ;;  %v782_v27 = vld [vmem:[%s775_s30] ss:$0 sm:$0xff]  ;;  %s1842_s18 = smov 1   ;;  %s854_s30 = smov [#allocation20] }
 0x220   : >>> { %v728_v23 = vadd.f32 %v727_v20, %v726_v13  ;;  %v725_v24 = vsub.f32 %v723_v14, %v724_v21 }
 0x221   : >>> { %729 = vst [vmem:[%s2082_s9] sm:$0x3] %v719_v22  ;;  %s790_s9 = smov [#allocation19] }
 0x222   : >>> { %732 = vst [vmem:[%s712_s19] sm:$0x3] %v728_v23  ;;  %s1843_s19 = smov 127  }
 0x223   : >>> { %731 = vst [vmem:[%s2070_s21] sm:$0x3] %v725_v24  ;;  %s748_s21 = smov [#allocation19] }
 0x224   : >>> { %730 = vst [vmem:[%s2072_s25] sm:$0x3] %v722_v25  ;;  %s2119_s25 = smov [#allocation18] }
 0x228   : >>> { %v742_v28 = vld [vmem:[%s733_s14] sm:$0x3] }
 0x229   : >>> { %v783_v29 = vld [vmem:[%s774_s23] sm:$0x3]  ;;  %v746_v30 = vsel %vm745_vm12, %v741_v26, %v742_v28 }
 0x22a   : >>> { %v787_v31 = vsel %vm786_vm13, %v782_v27, %v783_v29  ;;  %v768_v32 = vld [vmem:[%s761_s20] sm:$0x3]  ;;  %747 = vst [vmem:[%s733_s14] sm:$0x3] %v746_v30  ;;  %s853_s14 = smov [#allocation18] }
 0x22b   : >>> { %788 = vst [vmem:[%s774_s23] sm:$0x3] %v787_v31  ;;  %v772_v33 = vsel %vm771_vm14, 0.0, %v768_v32  ;;  %v755_v34 = vld [vmem:[%s748_s21] sm:$0x3]  ;;  %s878_s23 = smov [#allocation21] }
 0x22c   : >>> { %773 = vst [vmem:[%s761_s20] sm:$0x3] %v772_v33  ;;  %v759_v35 = vsel %vm758_vm15, 0.0, %v755_v34  ;;  %s977_s20 = sadd.s32 (%p494_p11), 1, %s1835_s28  }
 0x22d   : >>> { %760 = vst [vmem:[%s748_s21] sm:$0x3] %v759_v35  ;;  %s402_s21 = smov (%p494_p11), [#allocation18]  ;;  %p490_p12 = scmp.ge.s32.totalorder (%p494_p11), %s977_s20, 15 }
 0x22e   : >> { %s2291_s28 = smov (%p494_p11), %s977_s20 }
 0x231   : >>> { %v795_v36 = vld [vmem:[%s2119_s25] sm:$0x3] }
 0x232   : >>> { %v823_v37 = vld [vmem:[%s2121_s27] sm:$0x3]  ;;  %796 = vrot.lane.b32.xlu1 %v795_v36, %s1842_s18 }
 0x233   : >>> { %824 = vrot.lane.b32.xlu0 %v823_v37, %s1842_s18  ;;  %v827_v38 = vld [vmem:[%s2123_s17] sm:$0x3] }
 0x234   : >>> { %828 = vrot.lane.b32.xlu2 %v827_v38, %s1842_s18  ;;  %v791_v39 = vld [vmem:[%s790_s9] sm:$0x3] }
 0x235   : >>> { %v812_v40 = vld [vmem:[%s790_s9] sm:$0x3] }
 0x236   : >>> { %v844_v41 = vld [vmem:[%s2121_s27] sm:$0x3] }
 0x237   : >>> { %v794_v44 = vld [vmem:[%s2119_s25] sm:$0x3] }
 0x238   : >>> { %v826_v55 = vld [vmem:[%s2123_s17] sm:$0x3] }
 0x23a   : >>> { %792 = vrot.lane.b32.xlu1 %v791_v39, %s1842_s18 }
 0x23c   : >>> { %813 = vrot.lane.b32.xlu2 %v812_v40, %s1843_s19 }
 0x242   : >>> { %845 = vrot.lane.b32.xlu1 %v844_v41, %s1843_s19 }
 0x28e   : >>> { %v829_v42 = vpop.permute.xlu2 %828 }
 0x28f   : >>> { %v833_v51 = vsel %vm800_vm1, %v827_v38, %v829_v42 }
 0x296   : >>> { %v814_v43 = vpop.permute.xlu2 %813 }
 0x297   : >>> { %v818_v45 = vsel %vm804_vm0, %v794_v44, %v814_v43 }
 0x298   : >>> { %820 = vst [vmem:[%s790_s9] sm:$0x3] %v818_v45 }
 0x29f   : >>> { %v879_v46 = vld [vmem:[%s2133_s24] ss:$0 sm:$0xff]  ;;  %v1647_v48 = vld [vmem:[%s2133_s24 + $0x1] ss:$0 sm:$0xff] }
 0x2a0   : >>> { %v1646_v47 = vld [vmem:[%s2133_s24 - $0x1] sm:$0x2] }
 0x2a1   : >>> { %v886_v49 = vsel %vm861_vm10, %v879_v46, %v1646_v47 }
 0x2a2   : >>> { %889 = vst [vmem:[%s2133_s24] sm:$0x3] %v886_v49 }
 0x2a4   : >>> { %v797_v50 = vpop.permute.xlu1 %796 }
 0x2a5   : >>> { %v825_v52 = vpop.permute.xlu0 %824  ;;  %v801_v56 = vsel %vm800_vm1, %v795_v36, %v797_v50 }
 0x2a6   : >>> { %v837_v53 = vsel %vm804_vm0, %v825_v52, %v833_v51 }
 0x2a7   : >>> { %v843_v54 = vsel %vm1495_vm2, %v837_v53, 0.0 }
 0x2a8   : >>> { %851 = vst [vmem:[%s2123_s17] sm:$0x3] %v843_v54  ;;  %s455_s17 = smov (%p494_p11), [#allocation21] }
 0x2ac   : >>> { %v793_v57 = vpop.permute.xlu1 %792 }
 0x2ad   : >>> { %v805_v58 = vsel %vm804_vm0, %v793_v57, %v801_v56 }
 0x2ae   : >>> { %v811_v59 = vsel %vm1495_vm2, %v805_v58, 0.0 }
 0x2af   : >>> { %819 = vst [vmem:[%s2119_s25] sm:$0x3] %v811_v59  ;;  %v1645_v61 = vld [vmem:[%s854_s30 + $0x1] sm:$0x1]  ;;  %v866_v4 = vld [vmem:[%s854_s30] ss:$0 sm:$0xff]  ;;  %s421_s25 = smov (%p494_p11), [#allocation19] }
 0x2b4   : >>> { %v846_v60 = vpop.permute.xlu1 %845 }
 0x2b5   : >>> { %v850_v62 = vsel %vm804_vm0, %v826_v55, %v846_v60 }
 0x2b6   : >>> { %v855_v63 = vld [vmem:[%s853_s14] ss:$0 sm:$0xff]  ;;  %v1643_v1 = vld [vmem:[%s853_s14 + $0x1] ss:$0 sm:$0xff]  ;;  %852 = vst [vmem:[%s2121_s27] sm:$0x3] %v850_v62  ;;  %s438_s27 = smov (%p494_p11), [#allocation20] }
 0x2b7   : >>> { %v1642_v0 = vld [vmem:[%s853_s14 - $0x1] sm:$0x2]  ;;  %v874_v3 = vsel %vm873_vm11, %v1643_v1, %v1645_v61 }
 0x2b8   : >>> { %v862_v2 = vsel %vm861_vm10, %v855_v63, %v1642_v0  ;;  %876 = vst [vmem:[%s854_s30] sm:$0x3] %v874_v3 }
 0x2b9   : >>> { %865 = vst [vmem:[%s853_s14] sm:$0x3] %v862_v2 }
 0x2ba   : >>> { %1644 = vst [vmem:[%s853_s14 + $0x1] sm:$0x1] %v866_v4 }
 0x2bd   : >>> { %v890_v5 = vld [vmem:[%s878_s23] ss:$0 sm:$0xff]  ;;  %v1649_v8 = vld [vmem:[%s878_s23 + $0x1] sm:$0x1] }
 0x2be   : >>> { %1648 = vst [vmem:[%s2133_s24 + $0x1] sm:$0x1] %v890_v5  ;;  %v898_v9 = vsel %vm873_vm11, %v1647_v48, %v1649_v8  ;;  %496 = sbr.rel (!%p494_p11) target bundleno = 265 (0x109), region = 470 }
 0x2bf   : >>> { %900 = vst [vmem:[%s878_s23] sm:$0x3] %v898_v9  ;;  %v444_v14 = vld [vmem:[%s438_s27] sm:$0x3] (%p494_p11) }
 0x2c0   : >> { %v445_v18 = vsel (%p494_p11), %vm1495_vm2, %v444_v14, 0.0 }
 0x2c1   : >> { %v408_v10 = vld [vmem:[%s402_s21] sm:$0x3] (%p494_p11)  ;;  %v446_v20 = vmul.f32 (%p494_p11), %v445_v18, %v445_v18 }
 0x2c2   : >> { %v409_v12 = vsel (%p494_p11), %vm1495_vm2, %v408_v10, 0.0 }
 0x2c3   : >> { %v410_v16 = vmul.f32 %v409_v12, %v409_v12 }
 0x2c5   : >> { %v427_v11 = vld [vmem:[%s421_s25] sm:$0x3]  ;;  %v414_v23 = vsel %vm413_vm3, 0.0, %v410_v16 }
 0x2c6   : >> { %v428_v13 = vsel %vm1495_vm2, %v427_v11, 0.0  ;;  %v461_v15 = vld [vmem:[%s455_s17] sm:$0x3] }
 0x2c7   : >> { %v429_v17 = vmul.f32 %v428_v13, %v428_v13  ;;  %v462_v19 = vsel %vm1495_vm2, %v461_v15, 0.0 }
 0x2c8   : >> { %v463_v22 = vmul.f32 %v462_v19, %v462_v19 }
 0x2c9   : >> { %v431_v21 = vadd.f32 %v429_v17, %v410_v16  ;;  %v430_v25 = vadd.f32 %v429_v17, %v414_v23 }
 0x2ca   : >> { %v467_v28 = vsel %vm466_vm4, 0.0, %v463_v22 }
 0x2cb   : >> { %v448_v24 = vadd.f32 %v446_v20, %v431_v21  ;;  %v447_v27 = vadd.f32 %v446_v20, %v430_v25 }
 0x2cd   : >> { %v469_v26 = vadd.f32 %v463_v22, %v448_v24  ;;  %v468_v29 = vadd.f32 %v467_v28, %v447_v27 }
 0x2cf   : >> { %470 = vadd.xlane.f32.xlu0 %v469_v26 }
 0x2d7   : >> { %478 = vadd.xlane.f32.xlu0 %v468_v29 }
 0x342   : >> { %v471_v30 = vpop.xlane.xlu0 %470 }
 0x343   : >> { %v472_v31 = vrot.slane %v471_v30, 4 }
 0x345   : >> { %v473_v32 = vadd.f32 %v472_v31, %v471_v30 }
 0x347   : >> { %v474_v33 = vrot.slane %v473_v32, 2 }
 0x349   : >> { %v475_v37 = vadd.f32 %v474_v33, %v473_v32 }
 0x34a   : >> { %v479_v34 = vpop.xlane.xlu0 %478 }
 0x34b   : >> { %v480_v35 = vrot.slane %v479_v34, 4  ;;  %v476_v40 = vrot.slane %v475_v37, 1 }
 0x34d   : >> { %v481_v36 = vadd.f32 %v480_v35, %v479_v34  ;;  %v477_v43 = vadd.f32 %v476_v40, %v475_v37 }
 0x34f   : >> { %v482_v38 = vrot.slane %v481_v36, 2 }
 0x351   : >> { %v483_v39 = vadd.f32 %v482_v38, %v481_v36 }
 0x353   : >> { %v484_v41 = vrot.slane %v483_v39, 1 }
 0x355   : >> { %v485_v42 = vadd.f32 %v484_v41, %v483_v39 }
 0x357   : >> { %1682 = vpush %v485_v42 }
 0x358   : >> { %1684 = vpush %v477_v43 }
 0x388   : >> { %s1683_s16 = spop %1682 }
 0x389   : >> { %s1685_s18 = spop %1684 }
 0x38a   : >> { %s488_s9 = smul.f32 1e-10, %s1685_s18 }
 0x38c   : >> { %p489_p13 = scmp.le.f32.partialorder %s1683_s16, %s488_s9 }
 0x38e   : >> { %p491_p0 = por %p490_p12, %p489_p13 }
 0x390   : > { %979 = sbr.rel (!%p491_p0) target bundleno = 264 (0x108), region = 481 }
 0x395 PF: > { %s984_s19 = smov [#allocation18]  ;;  %v988_v6 = vmov %v1978_v6  ;;  %v991_v7 = vmov %v1980_v7  ;;  %v1026_v44 = vld [vmem:[#allocation10] sm:$0x3]  ;;  %v1032_v45 = vld [vmem:[#allocation12] sm:$0x3]  ;;  %s1004_s28 = smov [#allocation21] }
 0x396   : > { %v1008_v6 = vmov %v1978_v6  ;;  %v1011_v7 = vmov %v1980_v7  ;;  %v992_v46 = vld [vmem:[%s984_s19] sm:$0x3]  ;;  %vm995_vm5 = vcmp.eq.s32.totalorder %v991_v7, %v988_v6  ;;  %1029 = vst [vmem:[%s321_s10] sm:$0x3] %v1026_v44  ;;  %v1038_v47 = vld [vmem:[#allocation14] sm:$0x3]  ;;  %s2292_s24 = scalar_lea.vmem [#allocation13], %s1974_s26 }
 0x397   : > { %vm1015_vm6 = vcmp.eq.s32.totalorder %v1011_v7, %v1008_v6  ;;  %v996_v48 = vsel %vm995_vm5, %v992_v46, 0.0  ;;  %1035 = vst [vmem:[%s2292_s24] sm:$0x3] %v1032_v45  ;;  %v1044_v49 = vld [vmem:[#allocation16] sm:$0x3]  ;;  %v1012_v51 = vld [vmem:[%s1004_s28] sm:$0x3] }
 0x398   : > { %v997_v50 = vrot.slane %v996_v48, 4  ;;  %s2293_s30 = scalar_lea.vmem [#allocation15], %s1974_s26  ;;  %v1016_v52 = vsel %vm1015_vm6, %v1012_v51, 0.0  ;;  %s2294_s14 = scalar_lea.vmem [#allocation17], %s1974_s26 }
 0x399   : > { %1041 = vst [vmem:[%s2293_s30] sm:$0x3] %v1038_v47  ;;  %v1017_v54 = vrot.slane %v1016_v52, 4  ;;  %s980_s23 = sand.u32 7, %s1815_s11   ;;  %s2295_s20 = scalar_lea.vmem [#allocation8], %s1976_s29 }
 0x39a   : > { %1047 = vst [vmem:[%s2294_s14] sm:$0x3] %v1044_v49  ;;  %v998_v53 = vadd.f32 %v997_v50, %v996_v48  ;;  %s981_s21 = scalar_lea.vmem %s2295_s20, %s980_s23 [#allocation8]  ;;  %s2296_s25 = scalar_lea.vmem [#allocation9], %s1976_s29 }
 0x39b   : > { %v1018_v7 = vadd.f32 %v1017_v54, %v1016_v52  ;;  %s983_s27 = scalar_lea.vmem %s2296_s25, %s980_s23 [#allocation9]  ;;  %s985_s21 = smov %s981_s21 }
 0x39c   : > { %v999_v6 = vrot.slane %v998_v53, 2  ;;  %s1005_s27 = smov %s983_s27  ;;  %s1075_s17 = sshrl.u32 (%p1943_p4), %s1815_s11, 3 }
 0x39d   : > { %v1019_v56 = vrot.slane %v1018_v7, 2  ;;  %s1664_s16 = sshll.u32 (%p1943_p4), %s1819_s12, 1  ;;  %s2297_s9 = scalar_lea.vmem (%p1943_p4), [#allocation8], %s1976_s29 }
 0x39e   : > { %v1000_v55 = vadd.f32 %v999_v6, %v998_v53  ;;  %s1077_s18 = sadd.s32 (%p1943_p4), %s1664_s16, %s1075_s17 }
 0x39f   : > { %v1020_v58 = vadd.f32 %v1019_v56, %v1018_v7  ;;  %s1665_s19 = sshll.u32 (%p1943_p4), %s1077_s18, 3 }
 0x3a0   : > { %v1001_v57 = vrot.slane %v1000_v55, 1  ;;  %s1079_s30 = scalar_lea.vmem (%p1943_p4), %s2272_s4, %s1665_s19 }
 0x3a1   : > { %v1021_v60 = vrot.slane %v1020_v58, 1  ;;  %1074 = sbr.rel (!%p1943_p4) target bundleno = 941 (0x3ad), region = 158 }
 0x3a2   : > { %v1002_v59 = vadd.f32 %v1001_v57, %v1000_v55 }
 0x3a3   : > { %v1022_v61 = vadd.f32 %v1021_v60, %v1020_v58 }
 0x3a4   : > { %1003 = vst [vmem:[%s985_s21] sm:$0x1] %v1002_v59 }
 0x3a5   : > { %1023 = vst [vmem:[%s1005_s27] sm:$0x1] %v1022_v61 }
 0x3ab   : > { %v1108_v62 = vld [vmem:[%s2297_s9] sm:$0xff] }
 0x3ac   : > { %1109 = vst [vmem:[%s1079_s30] sm:$0xff] %v1108_v62 }
 0x3ad PF: > { %1115 = sbr.rel (!%p1943_p4) target bundleno = 949 (0x3b5), region = 196  ;;  %s1116_s14 = sshrl.u32 (%p1943_p4), %s1815_s11, 3 }
 0x3ae   : > { %s1666_s23 = sshll.u32 (%p1943_p4), %s1819_s12, 1  ;;  %s2298_s21 = scalar_lea.vmem (%p1943_p4), [#allocation9], %s1976_s29 }
 0x3af   : > { %s1118_s20 = sadd.s32 (%p1943_p4), %s1666_s23, %s1116_s14 }
 0x3b0   : > { %s1667_s25 = sshll.u32 (%p1943_p4), %s1118_s20, 3 }
 0x3b1   : > { %s1120_s16 = scalar_lea.vmem (%p1943_p4), %s2273_s5, %s1667_s25 }
 0x3b3   : > { %v1149_v63 = vld [vmem:[%s2298_s21] sm:$0xff] }
 0x3b4   : > { %1150 = vst [vmem:[%s1120_s16] sm:$0xff] %v1149_v63 }
 0x3b5 PF: > { %s1668_s22 = sshll.u32 %s1819_s12, 4  ;;  %v1174_v0 = vld [vmem:[%s321_s10] sm:$0x3]  ;;  %s2299_s29 = scalar_lea.vmem [#allocation13], %s1974_s26 }
 0x3b6   : > { %s1155_s18 = sadd.s32 %s1815_s11, %s1668_s22  ;;  %v1211_v1 = vld [vmem:[%s2299_s29] sm:$0x3]  ;;  %s2300_s20 = scalar_lea.vmem [#allocation15], %s1974_s26 }
 0x3b7   : > { %s1669_s9 = sshll.u32 %s1155_s18, 1  ;;  %v1248_v2 = vld [vmem:[%s2300_s20] sm:$0x3]  ;;  %s2301_s27 = sld [smem:[#allocation36_spill]] }
 0x3b8   : > { %s1157_s24 = scalar_lea.vmem %s2274_s6, %s1669_s9  ;;  %s1194_s23 = scalar_lea.vmem %s2275_s7, %s1669_s9 }
 0x3b9   : > { %1175 = vst [vmem:[%s1157_s24] sm:$0x3] %v1174_v0  ;;  %s1231_s11 = scalar_lea.vmem %s2276_s8, %s1669_s9  ;;  %s2302_s16 = scalar_lea.vmem [#allocation17], %s1974_s26 }
 0x3ba   : > { %v1285_v3 = vld [vmem:[%s2302_s16] sm:$0x3]  ;;  %1212 = vst [vmem:[%s1194_s23] sm:$0x3] %v1211_v1 }
 0x3bb   : > { %1249 = vst [vmem:[%s1231_s11] sm:$0x3] %v1248_v2 }
 0x3bd   : > { %s1268_s17 = scalar_lea.vmem %s2301_s27, %s1669_s9 }
 0x3be   : > { %1286 = vst [vmem:[%s1268_s17] sm:$0x3] %v1285_v3 }
 0x3bf PF: > { %s16_s15 = sadd.s32 1, %s1831_s15   ;;  %s2303_s30 = sld [smem:[#allocation31_spill]] }
 0x3c0   : > { %p13_p1 = scmp.ge.s32.totalorder %s16_s15, 34   ;;  %s2304_s10 = sld [smem:[#allocation35_spill]] }
 0x3c1   : > { %s2305_s12 = sld [smem:[#allocation32_spill]]  ;;  %s2308_s11 = smov %s1823_s13 }
 0x3c2   : > { %s2306_s22 = sld [smem:[#allocation33_spill]] }
 0x3c3   : > { %s2307_s14 = sld [smem:[#allocation34_spill]] }
 0x3c4   :  { %15 = sbr.rel (!%p13_p1) target bundleno = 6 (0x6), region = 492 }
 0x3c8   : > { %s2309_s13 = smov %s2306_s22 }

// kernel: model_ript_forward.1
= control target key start
LH: loop header
LB: loop body
LE: loop exit
PB: predicated region body
PF: predicated region fallthrough
CT: control target
= control target key end

     0   :  { %s8022_s0 = inlined_call_operand.vmem [shape: f32[2,16,16,3], index: 0, kind: input, shape index: {}]   ;;  %s8023_s1 = inlined_call_operand.vmem [shape: f32[2,16,3], index: 1, kind: input, shape index: {}]   ;;  %s8024_s2 = inlined_call_operand.vmem [shape: f32[3,64], index: 2, kind: input, shape index: {}]   ;;  %s8025_s3 = inlined_call_operand.vmem [shape: f32[1,64], index: 3, kind: input, shape index: {}]   ;;  %s8026_s4 = inlined_call_operand.vmem [shape: f32[64,32], index: 4, kind: input, shape index: {}]   ;;  %s8027_s5 = inlined_call_operand.vmem [shape: f32[1,32], index: 5, kind: input, shape index: {}]   ;;  %s8028_s6 = inlined_call_operand.vmem [shape: f32[3,64], index: 6, kind: input, shape index: {}]   ;;  %s8029_s7 = inlined_call_operand.vmem [shape: f32[1,64], index: 7, kind: input, shape index: {}]   ;;  %s8030_s8 = inlined_call_operand.vmem [shape: f32[64,32], index: 8, kind: input, shape index: {}]   ;;  %s8031_s9 = inlined_call_operand.vmem [shape: f32[1,32], index: 9, kind: input, shape index: {}]   ;;  %s8032_s10 = inlined_call_operand.vmem [shape: f32[2,1,32], index: 10, kind: input, shape index: {}]   ;;  %s8033_s11 = inlined_call_operand.vmem [shape: f32[2,1,32], index: 11, kind: input, shape index: {}]   ;;  %s8034_s12 = inlined_call_operand.vmem [shape: f32[2,32,96], index: 12, kind: input, shape index: {}]   ;;  %s8035_s13 = inlined_call_operand.vmem [shape: f32[2,1,96], index: 13, kind: input, shape index: {}]   ;;  %s8036_s14 = inlined_call_operand.vmem [shape: f32[2,32,32], index: 14, kind: input, shape index: {}]   ;;  %s8037_s15 = inlined_call_operand.vmem [shape: f32[2,1,32], index: 15, kind: input, shape index: {}]   ;;  %s8038_s16 = inlined_call_operand.vmem [shape: f32[2,1,32], index: 16, kind: input, shape index: {}]   ;;  %s8039_s17 = inlined_call_operand.vmem [shape: f32[2,1,32], index: 17, kind: input, shape index: {}]   ;;  %s8040_s18 = inlined_call_operand.vmem [shape: f32[2,32,64], index: 18, kind: input, shape index: {}]   ;;  %s8041_s19 = inlined_call_operand.vmem [shape: f32[2,1,64], index: 19, kind: input, shape index: {}]   ;;  %s8042_s20 = inlined_call_operand.vmem [shape: f32[2,64,32], index: 20, kind: input, shape index: {}]   ;;  %s8043_s21 = inlined_call_operand.vmem [shape: f32[2,1,32], index: 21, kind: input, shape index: {}]   ;;  %s8044_s22 = inlined_call_operand.vmem [shape: f32[1,32], index: 22, kind: input, shape index: {}]   ;;  %s8045_s23 = inlined_call_operand.vmem [shape: f32[1,32], index: 23, kind: input, shape index: {}]   ;;  %s8046_s24 = inlined_call_operand.hbm [shape: f32[2,16,32], index: 24, kind: output, shape index: {}]  }
   0x1   :  { %8079 = sst [smem:[#allocation9_spill]] %s8022_s0 }
   0x2   :  { %8080 = sst [smem:[#allocation10_spill]] %s8023_s1 }
   0x3   :  { %8081 = sst [smem:[#allocation11_spill]] %s8024_s2 }
   0x4   :  { %8082 = sst [smem:[#allocation12_spill]] %s8025_s3 }
   0x5   :  { %8083 = sst [smem:[#allocation13_spill]] %s8026_s4 }
   0x6   :  { %8084 = sst [smem:[#allocation14_spill]] %s8027_s5 }
   0x7   :  { %8085 = sst [smem:[#allocation15_spill]] %s8028_s6 }
   0x8   :  { %8086 = sst [smem:[#allocation16_spill]] %s8029_s7 }
   0x9   :  { %8087 = sst [smem:[#allocation17_spill]] %s8030_s8 }
   0xa   :  { %8088 = sst [smem:[#allocation18_spill]] %s8031_s9 }
   0xb   :  { %8089 = sst [smem:[#allocation19_spill]] %s8032_s10 }
   0xc   :  { %8090 = sst [smem:[#allocation20_spill]] %s8033_s11 }
   0xd   :  { %29 = vsyncpa [#allocation3], 0 }
   0xe   :  { %31 = vsyncpa [#allocation3 + $0x1], 0  ;;  %s5757_s5 = smov 0   ;;  %s5759_s26 = smov 0  }
   0xf   :  { %s5761_s27 = smov 0   ;;  %s5763_s28 = smov 0  }
  0x10 LB: > { %8091 = sst [smem:[#allocation5_spill]] %s5607_s27  ;;  %s5778_s6 = sadd.s32 4294967295, %s5611_s28   ;;  %s5611_s28 = sphi %s5763_s28, %s8126_s28   ;;  %s5607_s27 = sphi %s5761_s27, %s8128_s27   ;;  %s5603_s26 = sphi %s5759_s26, %s8130_s26   ;;  %s5599_s5 = sphi %s5757_s5, %s8129_s5  }
  0x11   : > { %s5115_s2 = sadd.s32 4294967294, %s5611_s28   ;;  %s5782_s29 = sadd.s32 1, %s5611_s28  }
  0x12   : > { %8092 = sst [smem:[#allocation6_spill]] %s5782_s29  ;;  %s558_s0 = sadd.s32 1, %s5607_s27 }
  0x13   : > { %s555_s7 = ssub.s32 %s5611_s28, %s5782_s29  ;;  %p568_p0 = scmp.ne.s32.totalorder %s5607_s27, %s5603_s26 }
  0x14   : > { %p556_p1 = scmp.eq.s32.totalorder %s555_s7, 0  ;;  %p569_p2 = scmp.eq.s32.totalorder %s5778_s6, 1 }
  0x15   : > { %p574_p3 = scmp.ne.s32.totalorder %s5603_s26, %s5599_s5  ;;  %p575_p4 = scmp.eq.s32.totalorder %s5115_s2, 1 }
  0x16   : > { %s5793_s30 = scalar_select %p556_p1, %s5607_s27, %s558_s0  }
  0x17   : > { %p5795_p5 = por %p569_p2, %p568_p0  ;;  %p5799_p6 = por %p575_p4, %p574_p3 }
  0x18   : > { %8093 = sst [smem:[#allocation7_spill]] %s5793_s30  ;;  %p5118_p7 = scmp.ge.s32.totalorder %s5611_s28, 1 }
  0x19   : > { %s8095_s25 = scalar_select %p5799_p6, 1, 0 }
  0x1a   : > { %p675_p8 = scmp.lt.s32.totalorder %s5611_s28, 3 }
  0x1b   : > { %8096 = sst [smem:[#allocation8_spill]] %s8095_s25 }
  0x1c   : > { %p676_p9 = pnand %p5118_p7, %p675_p8 }
  0x1d   : > { %p746_p10 = scmp.lt.s32.totalorder (!%p676_p9), %s5778_s6, 1  ;;  %s8097_s0 = sld [smem:[#allocation9_spill]] (!%p676_p9) }
  0x1e   : > { %679 = sbr.rel (%p676_p9) target bundleno = 5724 (0x165c), region = 116  ;;  %s8098_s2 = sld [smem:[#allocation13_spill]] (!%p676_p9) }
  0x1f   : > { %s8099_s27 = sld [smem:[#allocation11_spill]] (!%p676_p9)  ;;  %s8071_s29 = smov (!%p676_p9), 96  }
  0x20   : > { %s8100_s1 = sld [smem:[#allocation12_spill]] (!%p676_p9) }
  0x21   : > { %s8103_s25 = sld [smem:[#allocation17_spill]] (!%p676_p9) }
  0x22   : > { %s8106_s9 = sld [smem:[#allocation18_spill]] (!%p676_p9) }
  0x23   : > { %v5613_v0 = vmov 2   ;;  %v5614_v1 = vmov 1   ;;  %s5810_s8 = scalar_select %p746_p10, %s5778_s6, 1  ;;  %v5615_v5 = vmov 0   ;;  %vm1448_vm0 = vcmask 523264  }
  0x24   : > { %5337 = vset.pattern.permute.xlu0 %v5613_v0  ;;  %5332 = vset.pattern.permute.xlu1 %v5613_v0  ;;  %v1443_v21 = vld [vmem:[%s8098_s2 + $0x38] sm:$0xff]  ;;  %v1442_v22 = vld [vmem:[%s8098_s2 + $0x30] sm:$0xff]  ;;  %v1441_v23 = vld [vmem:[%s8098_s2 + $0x28] sm:$0xff]  ;;  %vm1658_vm1 = vcmask 261120   ;;  %vm1961_vm2 = vcmask 1041409   ;;  %vm1964_vm3 = vcmask 1042434  }
  0x25   : > { %5334 = vset.pattern.permute.xlu2 %v5614_v1  ;;  %s5255_s4 = sshll.u32 %s5810_s8, 8  ;;  %1553 = vmatpush.msra.mxu0 %v1443_v21  ;;  %v1440_v25 = vld [vmem:[%s8098_s2 + $0x20] sm:$0xff]  ;;  %v1439_v26 = vld [vmem:[%s8098_s2 + $0x18] sm:$0xff]  ;;  %v1438_v28 = vld [vmem:[%s8098_s2 + $0x10] sm:$0xff]  ;;  %s5256_s30 = sshll.u32 %s5810_s8, 4  ;;  %vm1967_vm4 = vcmask 1043459  }
  0x26   : > { %s5816_s7 = scalar_lea.vmem %s8097_s0, %s5255_s4  ;;  %5258 = vmatpush.msra.mxu1 %v1443_v21  ;;  %5259 = vmatpush.msra.mxu3 %v1443_v21  ;;  %v1437_v29 = vld [vmem:[%s8098_s2 + $0x8] sm:$0xff]  ;;  %v1436_v32 = vld [vmem:[%s8098_s2] sm:$0xff]  ;;  %s8101_s0 = sld [smem:[#allocation10_spill]]  ;;  %vm1970_vm5 = vcmask 1044484   ;;  %vm1973_vm6 = vcmask 1045509   ;;  %vm1976_vm7 = vcmask 1046534  }
  0x27   : > { %v758_v2 = vld [vmem:[%s5816_s7 + $0x10] sm:$0xff]  ;;  %v757_v3 = vld [vmem:[%s5816_s7 + $0x8] sm:$0xff]  ;;  %v756_v4 = vld [vmem:[%s5816_s7] sm:$0xff]  ;;  %1554 = vmatpush.msra.mxu0 %v1442_v22  ;;  %s8102_s4 = sld [smem:[#allocation14_spill]]  ;;  %vm1979_vm8 = vcmask 1047559   ;;  %s8118_s2 = smov 48  }
  0x28   : > { %1184 = vperm.xlu0 %5337, %v758_v2   ;;  %987 = vperm.xlu2 %5334, %v757_v3   ;;  %v762_v6 = vld [vmem:[%s5816_s7 + $0x30] sm:$0xff]  ;;  %v759_v7 = vld [vmem:[%s5816_s7 + $0x18] sm:$0xff]  ;;  %v760_v8 = vld [vmem:[%s5816_s7 + $0x20] sm:$0xff]  ;;  %s8105_s8 = sld [smem:[#allocation16_spill]] }
  0x29   : > { %1176 = vperm.xlu1 %5332, %v756_v4   ;;  %v761_v9 = vld [vmem:[%s5816_s7 + $0x28] sm:$0xff]  ;;  %v5834_v11 = vld [vmem:[%s5816_s7 + $0x70] sm:$0xff]  ;;  %v763_v12 = vld [vmem:[%s5816_s7 + $0x38] sm:$0xff]  ;;  %5260 = vmatpush.msra.mxu1 %v1442_v22  ;;  %s8107_s10 = sld [smem:[#allocation19_spill]] }
  0x2a   : > { %v765_v10 = vld [vmem:[%s5816_s7 + $0x48] sm:$0xff]  ;;  %v5842_v13 = vld [vmem:[%s5816_s7 + $0x60] sm:$0xff]  ;;  %v5853_v16 = vld [vmem:[%s5816_s7 + $0x90] sm:$0xff]  ;;  %5261 = vmatpush.msra.mxu3 %v1442_v22  ;;  %1555 = vmatpush.msra.mxu0 %v1441_v23  ;;  %s8108_s11 = sld [smem:[#allocation20_spill]] }
  0x2b   : > { %v764_v14 = vld [vmem:[%s5816_s7 + $0x40] sm:$0xff]  ;;  %v766_v18 = vld [vmem:[%s5816_s7 + $0x50] sm:$0xff]  ;;  %v767_v19 = vld [vmem:[%s5816_s7 + $0x58] sm:$0xff]  ;;  %5262 = vmatpush.msra.mxu1 %v1441_v23 }
  0x2c   : > { %v5849_v15 = vld [vmem:[%s5816_s7 + $0x80] sm:$0xff]  ;;  %5263 = vmatpush.msra.mxu3 %v1441_v23  ;;  %1556 = vmatpush.msra.mxu0 %v1440_v25  ;;  %v5902_v33 = vld [vmem:[%s5816_s7 + $0xa8] sm:$0xff]  ;;  %v5922_v43 = vld [vmem:[%s5816_s7 + $0xb8] sm:$0xff] }
  0x2d   : > { %5264 = vmatpush.msra.mxu1 %v1440_v25  ;;  %v769_v36 = vld [vmem:[%s5816_s7 + $0x68] sm:$0xff]  ;;  %v788_v41 = vld [vmem:[%s8099_s27] sm:$0x7]  ;;  %v771_v51 = vld [vmem:[%s5816_s7 + $0x78] sm:$0xff]  ;;  %s6111_s27 = scalar_lea.vmem %s8101_s0, %s5256_s30  ;;  %s8053_s30 = smov 56  }
  0x2e   : > { %1557 = vmatpush.msra.mxu0 %v1439_v26  ;;  %5265 = vmatpush.msra.mxu3 %v1440_v25  ;;  %v5918_v42 = vperm.slane %v788_v41, 0  ;;  %v5924_v44 = vperm.slane %v788_v41, 1  ;;  %v5926_v45 = vperm.slane %v788_v41, 2  ;;  %v5944_v59 = vld [vmem:[%s8100_s1] ss:$0 sm:$0xff]  ;;  %v5971_v21 = vld [vmem:[%s5816_s7 + $0xf8] sm:$0xff] }
  0x2f   : > { %5266 = vmatpush.msra.mxu1 %v1439_v26  ;;  %s8065_s1 = smov 120   ;;  %s8060_s0 = smov 64  }
  0x30   : > { %5338 = vset.pattern.permute.xlu0 %v5615_v5  ;;  %5335 = vset.pattern.permute.xlu2 %v5613_v0 }
  0x31   : > { %5333 = vset.pattern.permute.xlu1 %v5615_v5  ;;  %1180 = vperm.xlu2 %5335, %v757_v3  }
  0x32   : > { %791 = vperm.xlu0 %5338, %v756_v4   ;;  %796 = vperm.xlu1 %5333, %v757_v3  }
  0x33   : > { %1558 = vmatpush.msra.mxu0 %v1438_v28  ;;  %5267 = vmatpush.msra.mxu3 %v1439_v26 }
  0x34   : > { %5268 = vmatpush.msra.mxu1 %v1438_v28 }
  0x35   : > { %1559 = vmatpush.msra.mxu0 %v1437_v29  ;;  %5269 = vmatpush.msra.mxu3 %v1438_v28 }
  0x36   : > { %5270 = vmatpush.msra.mxu1 %v1437_v29 }
  0x37   : > { %1560 = vmatpush.msra.mxu0 %v1436_v32  ;;  %5271 = vmatpush.msra.mxu3 %v1437_v29  ;;  %v783_v29 = vld [vmem:[%s5816_s7 + $0xd8] sm:$0xff] }
  0x38   : > { %5272 = vmatpush.msra.mxu1 %v1436_v32 }
  0x39   : > { %5336 = vset.pattern.permute.xlu2 %v5614_v1  ;;  %5273 = vmatpush.msra.mxu3 %v1436_v32 }
  0x3a   : > { %821 = vperm.xlu0 %5338, %v762_v6   ;;  %801 = vperm.xlu1 %5333, %v758_v2  }
  0x3b   : > { %991 = vperm.xlu2 %5336, %v758_v2  }
  0x42   : > { %5343 = vset.pattern.permute.xlu0 %v5614_v1  ;;  %806 = vperm.xlu1 %5333, %v759_v7  }
  0x43   : > { %995 = vperm.xlu2 %5336, %v759_v7   ;;  %983 = vperm.xlu0 %5343, %v756_v4  }
  0x4a   : > { %5339 = vset.pattern.permute.xlu1 %v5613_v0 }
  0x4b   : > { %5340 = vset.pattern.permute.xlu2 %v5615_v5  ;;  %1188 = vperm.xlu1 %5339, %v759_v7  }
  0x4c   : > { %811 = vperm.xlu2 %5340, %v760_v8   ;;  %999 = vperm.xlu0 %5343, %v760_v8  }
  0x53   : > { %1192 = vperm.xlu1 %5339, %v760_v8  }
  0x54   : > { %816 = vperm.xlu2 %5340, %v761_v9   ;;  %1019 = vperm.xlu0 %5343, %v765_v10  }
  0x5b   : > { %5341 = vset.pattern.permute.xlu1 %v5614_v1 }
  0x5c   : > { %5342 = vset.pattern.permute.xlu2 %v5613_v0  ;;  %1003 = vperm.xlu1 %5341, %v761_v9  }
  0x5d   : > { %1196 = vperm.xlu2 %5342, %v761_v9   ;;  %1039 = vperm.xlu0 %5343, %v5834_v11  }
  0x64   : > { %1007 = vperm.xlu1 %5341, %v762_v6  }
  0x65   : > { %1200 = vperm.xlu2 %5342, %v762_v6   ;;  %5354 = vset.pattern.permute.xlu0 %v5613_v0 }
  0x66   : > { %1204 = vperm.xlu0 %5354, %v763_v12  }
  0x6c   : > { %5344 = vset.pattern.permute.xlu1 %v5615_v5 }
  0x6d   : > { %5345 = vset.pattern.permute.xlu2 %v5614_v1  ;;  %826 = vperm.xlu1 %5344, %v763_v12  }
  0x6e   : > { %1011 = vperm.xlu2 %5345, %v763_v12   ;;  %1224 = vperm.xlu0 %5354, %v5842_v13  }
  0x75   : > { %831 = vperm.xlu1 %5344, %v764_v14  }
  0x76   : > { %1015 = vperm.xlu2 %5345, %v764_v14   ;;  %1240 = vperm.xlu0 %5354, %v5849_v15  }
  0x7d   : > { %5346 = vset.pattern.permute.xlu1 %v5613_v0 }
  0x7e   : > { %5347 = vset.pattern.permute.xlu2 %v5615_v5  ;;  %1208 = vperm.xlu1 %5346, %v764_v14  }
  0x7f   : > { %836 = vperm.xlu2 %5347, %v765_v10   ;;  %1248 = vperm.xlu0 %5354, %v5853_v16  }
  0x82   : > { %v5858_v17 = vpop.permute.xlu2 %987 }
  0x83   : > { %v1112_v53 = vmul.f32 %v5924_v44, %v5858_v17 }
  0x86   : > { %1212 = vperm.xlu1 %5346, %v765_v10   ;;  %v5960_v10 = vld [vmem:[%s5816_s7 + $0xc8] sm:$0xff] }
  0x87   : > { %841 = vperm.xlu2 %5347, %v766_v18   ;;  %5374 = vset.pattern.permute.xlu0 %v5615_v5 }
  0x88   : > { %846 = vperm.xlu0 %5374, %v767_v19  }
  0x8b   : > { %v5863_v20 = vpop.permute.xlu2 %1180 }
  0x8c   : > { %v1305_v56 = vmul.f32 %v5926_v45, %v5863_v20 }
  0x8e   : > { %5348 = vset.pattern.permute.xlu1 %v5614_v1 }
  0x8f   : > { %5349 = vset.pattern.permute.xlu2 %v5613_v0  ;;  %1023 = vperm.xlu1 %5348, %v766_v18  }
  0x90   : > { %1216 = vperm.xlu2 %5349, %v766_v18   ;;  %896 = vperm.xlu0 %5374, %v5902_v33  }
  0x95   : > { %v5876_v24 = vpop.permute.xlu2 %991 }
  0x96   : > { %v1113_v63 = vmul.f32 %v5924_v44, %v5876_v24 }
  0x97   : > { %1027 = vperm.xlu1 %5348, %v767_v19  }
  0x98   : > { %1220 = vperm.xlu2 %5349, %v767_v19   ;;  %871 = vperm.xlu0 %5374, %v5849_v15  }
  0x9a   : > { %v5884_v27 = vpop.permute.xlu0 %1184 }
  0x9b   : > { %v1177_v30 = vpop.permute.xlu1 %1176  ;;  %v1306_v6 = vmul.f32 %v5926_v45, %v5884_v27 }
  0x9c   : > { %v1304_v54 = vmul.f32 %v5926_v45, %v1177_v30 }
  0x9d   : > { %v5892_v31 = vpop.permute.xlu2 %995 }
  0x9e   : > { %v1114_v14 = vmul.f32 %v5924_v44, %v5892_v31 }
  0x9f   : > { %5350 = vset.pattern.permute.xlu1 %v5615_v5 }
  0xa0   : > { %5351 = vset.pattern.permute.xlu2 %v5614_v1  ;;  %851 = vperm.xlu1 %5350, %v5842_v13  }
  0xa1   : > { %1031 = vperm.xlu2 %5351, %v5842_v13   ;;  %906 = vperm.xlu0 %5374, %v5922_v43  }
  0xa4   : > { %v797_v34 = vpop.permute.xlu1 %796  ;;  %v792_v35 = vpop.permute.xlu0 %791 }
  0xa5   : > { %v950_v46 = vmul.f32 %v5918_v42, %v792_v35  ;;  %v951_v49 = vmul.f32 %v5918_v42, %v797_v34  ;;  %v5987_v34 = vld [vmem:[%s5816_s7 + $0xe0] sm:$0xff] }
  0xa6   : > { %v5906_v37 = vpop.permute.xlu2 %811 }
  0xa7   : > { %v1144_v57 = vadd.f32 %v1112_v53, %v951_v49  ;;  %v954_v24 = vmul.f32 %v5918_v42, %v5906_v37 }
  0xa8   : > { %856 = vperm.xlu1 %5350, %v769_v36  }
  0xa9   : > { %1035 = vperm.xlu2 %5351, %v769_v36   ;;  %881 = vperm.xlu0 %5374, %v5853_v16   ;;  %v1337_v62 = vadd.f32 %v1305_v56, %v1144_v57 }
  0xab   : > { %v1373_v8 = vadd.f32 %v5944_v59, %v1337_v62 }
  0xac   : > { %v802_v38 = vpop.permute.xlu1 %801  ;;  %v5908_v39 = vpop.permute.xlu0 %821 }
  0xad   : > { %v952_v2 = vmul.f32 %v5918_v42, %v802_v38  ;;  %v1405_v13 = vmax.f32 %v1373_v8, 0.0 }
  0xae   : > { %v5911_v40 = vpop.permute.xlu2 %816 }
  0xaf   : > { %v1145_v7 = vadd.f32 %v1113_v63, %v952_v2 }
  0xb0   : > { %5352 = vset.pattern.permute.xlu1 %v5613_v0 }
  0xb1   : > { %5353 = vset.pattern.permute.xlu2 %v5615_v5  ;;  %1228 = vperm.xlu1 %5352, %v769_v36   ;;  %v1338_v12 = vadd.f32 %v1306_v6, %v1145_v7 }
  0xb2   : > { %861 = vperm.xlu2 %5353, %v5834_v11   ;;  %916 = vperm.xlu0 %5374, %v5960_v10  }
  0xb3   : > { %v1374_v20 = vadd.f32 %v5944_v59, %v1338_v12 }
  0xb4   : > { %v807_v47 = vpop.permute.xlu1 %806 }
  0xb5   : > { %v984_v48 = vpop.permute.xlu0 %983  ;;  %v953_v17 = vmul.f32 %v5918_v42, %v807_v47  ;;  %v1406_v28 = vmax.f32 %v1374_v20, 0.0 }
  0xb6   : > { %v1111_v50 = vmul.f32 %v5924_v44, %v984_v48 }
  0xb7   : > { %v5933_v52 = vpop.permute.xlu2 %1196  ;;  %v1146_v23 = vadd.f32 %v1114_v14, %v953_v17 }
  0xb8   : > { %v1143_v55 = vadd.f32 %v1111_v50, %v950_v46  ;;  %v955_v46 = vmul.f32 %v5918_v42, %v5911_v40  ;;  %v1309_v48 = vmul.f32 %v5926_v45, %v5933_v52  ;;  %v956_v40 = vmul.f32 %v5918_v42, %v5908_v39 }
  0xb9   : > { %1232 = vperm.xlu1 %5352, %v5834_v11  }
  0xba   : > { %v1336_v58 = vadd.f32 %v1304_v54, %v1143_v55  ;;  %866 = vperm.xlu2 %5353, %v771_v51   ;;  %946 = vperm.xlu0 %5374, %v5971_v21  }
  0xbc   : > { %v1372_v60 = vadd.f32 %v5944_v59, %v1336_v58  ;;  %v778_v58 = vld [vmem:[%s5816_s7 + $0xb0] sm:$0xff] }
  0xbd   : > { %v1189_v61 = vpop.permute.xlu1 %1188 }
  0xbe   : > { %v1404_v3 = vmax.f32 %v1372_v60, 0.0  ;;  %v1000_v9 = vpop.permute.xlu0 %999  ;;  %v1307_v19 = vmul.f32 %v5926_v45, %v1189_v61 }
  0xbf   : > { %v5951_v4 = vpop.permute.xlu2 %1200  ;;  %v1115_v26 = vmul.f32 %v5924_v44, %v1000_v9 }
  0xc0   : > { %5124 = vmatmul.msk.f32.vlgmr.msra.gmra.mxu0 %vm1448_vm0, %v1404_v3  ;;  %v1339_v25 = vadd.f32 %v1307_v19, %v1146_v23  ;;  %v773_v23 = vld [vmem:[%s5816_s7 + $0x88] sm:$0xff] }
  0xc1   : > { %5355 = vset.pattern.permute.xlu1 %v5614_v1  ;;  %v1147_v31 = vadd.f32 %v1115_v26, %v954_v24 }
  0xc2   : > { %5356 = vset.pattern.permute.xlu2 %v5613_v0  ;;  %1043 = vperm.xlu1 %5355, %v771_v51  }
  0xc3   : > { %1236 = vperm.xlu2 %5356, %v771_v51   ;;  %5386 = vset.pattern.permute.xlu0 %v5614_v1 }
  0xc4   : > { %1095 = vperm.xlu0 %5386, %v5987_v34  }
  0xc5   : > { %v1193_v11 = vpop.permute.xlu1 %1192 }
  0xc6   : > { %v5974_v22 = vpop.permute.xlu0 %1019  ;;  %v1308_v32 = vmul.f32 %v5926_v45, %v1193_v11 }
  0xc7   : > { %v1120_v26 = vmul.f32 %v5924_v44, %v5974_v22 }
  0xc8   : > { %5125 = vmatmul.msk.f32.gmra.mxu0 %vm1448_vm0, %v1405_v13  ;;  %v1012_v18 = vpop.permute.xlu2 %1011  ;;  %v1340_v36 = vadd.f32 %v1308_v32, %v1147_v31 }
  0xc9   : > { %v1118_v61 = vmul.f32 %v5924_v44, %v1012_v18 }
  0xca   : > { %1067 = vperm.xlu1 %5355, %v5902_v33   ;;  %v1376_v50 = vadd.f32 %v5944_v59, %v1340_v36 }
  0xcb   : > { %1260 = vperm.xlu2 %5356, %v5902_v33   ;;  %v1375_v33 = vadd.f32 %v5944_v59, %v1339_v25 }
  0xcc   : > { %v1408_v54 = vmax.f32 %v1376_v50, 0.0 }
  0xcd   : > { %v1407_v41 = vmax.f32 %v1375_v33, 0.0 }
  0xce   : > { %v1004_v27 = vpop.permute.xlu1 %1003 }
  0xcf   : > { %v5990_v35 = vpop.permute.xlu0 %1039  ;;  %v1116_v37 = vmul.f32 %v5924_v44, %v1004_v27 }
  0xd0   : > { %5126 = vmatmul.msk.f32.gmra.mxu0 %vm1448_vm0, %v1406_v28  ;;  %v1016_v30 = vpop.permute.xlu2 %1015 }
  0xd1   : > { %v1148_v49 = vadd.f32 %v1116_v37, %v955_v46  ;;  %v1119_v13 = vmul.f32 %v5924_v44, %v1016_v30 }
  0xd2   : > { %5357 = vset.pattern.permute.xlu1 %v5615_v5 }
  0xd3   : > { %5358 = vset.pattern.permute.xlu2 %v5614_v1  ;;  %926 = vperm.xlu1 %5357, %v783_v29   ;;  %v1341_v51 = vadd.f32 %v1309_v48, %v1148_v49 }
  0xd4   : > { %1091 = vperm.xlu2 %5358, %v783_v29  }
  0xd5   : > { %v1377_v60 = vadd.f32 %v5944_v59, %v1341_v51 }
  0xd6   : > { %v1008_v38 = vpop.permute.xlu1 %1007 }
  0xd7   : > { %v1117_v53 = vmul.f32 %v5924_v44, %v1008_v38  ;;  %v1409_v63 = vmax.f32 %v1377_v60, 0.0  ;;  %v6058_v60 = vld [vmem:[%s5816_s7 + $0xf0] sm:$0xff] }
  0xd8   : > { %5127 = vmatmul.msk.f32.gmra.mxu0 %vm1448_vm0, %v1407_v41  ;;  %v1205_v52 = vpop.permute.xlu0 %1204  ;;  %1103 = vperm.xlu0 %5386, %v6058_v60  }
  0xd9   : > { %v837_v47 = vpop.permute.xlu2 %836  ;;  %v1149_v57 = vadd.f32 %v1117_v53, %v956_v40 }
  0xda   : > { %v959_v27 = vmul.f32 %v5918_v42, %v837_v47 }
  0xdb   : > { %5359 = vset.pattern.permute.xlu1 %v5614_v1 }
  0xdc   : > { %5360 = vset.pattern.permute.xlu2 %v5613_v0  ;;  %1047 = vperm.xlu1 %5359, %v5849_v15   ;;  %v1310_v15 = vmul.f32 %v5926_v45, %v5951_v4  ;;  %v1311_v4 = vmul.f32 %v5926_v45, %v1205_v52  ;;  %v1152_v30 = vadd.f32 %v1120_v26, %v959_v27 }
  0xdd   : > { %1284 = vperm.xlu2 %5360, %v783_v29  }
  0xde   : > { %v1342_v39 = vadd.f32 %v1310_v15, %v1149_v57 }
  0xdf   : > { %v827_v55 = vpop.permute.xlu1 %826 }
  0xe0   : > { %5128 = vmatmul.msk.f32.gmra.mxu0 %vm1448_vm0, %v1408_v54  ;;  %v957_v62 = vmul.f32 %v5918_v42, %v827_v55  ;;  %v6015_v3 = vpop.permute.xlu0 %1224  ;;  %v1378_v7 = vadd.f32 %v5944_v59, %v1342_v39 }
  0xe1   : > { %v842_v56 = vpop.permute.xlu2 %841 }
  0xe2   : > { %v1150_v6 = vadd.f32 %v1118_v61, %v957_v62  ;;  %v1410_v11 = vmax.f32 %v1378_v7, 0.0  ;;  %v960_v41 = vmul.f32 %v5918_v42, %v842_v56  ;;  %v785_v61 = vld [vmem:[%s5816_s7 + $0xe8] sm:$0xff] }
  0xe4   : > { %5361 = vset.pattern.permute.xlu1 %v5615_v5  ;;  %v1343_v9 = vadd.f32 %v1311_v4, %v1150_v6 }
  0xe5   : > { %5362 = vset.pattern.permute.xlu2 %v5614_v1  ;;  %901 = vperm.xlu1 %5361, %v778_v58  }
  0xe6   : > { %1071 = vperm.xlu2 %5362, %v778_v58   ;;  %v1379_v18 = vadd.f32 %v5944_v59, %v1343_v9 }
  0xe7   : > { %v832_v2 = vpop.permute.xlu1 %831 }
  0xe8   : > { %5129 = vmatmul.msk.f32.gmra.mxu0 %vm1448_vm0, %v1409_v63  ;;  %v958_v14 = vmul.f32 %v5918_v42, %v832_v2  ;;  %v6026_v17 = vpop.permute.xlu0 %1240  ;;  %v1411_v25 = vmax.f32 %v1379_v18, 0.0  ;;  %v1316_v63 = vmul.f32 %v5926_v45, %v6015_v3 }
  0xea   : > { %v1217_v8 = vpop.permute.xlu2 %1216  ;;  %v1151_v24 = vadd.f32 %v1119_v13, %v958_v14 }
  0xeb   : > { %v1314_v47 = vmul.f32 %v5926_v45, %v1217_v8 }
  0xed   : > { %5363 = vset.pattern.permute.xlu1 %v5613_v0 }
  0xee   : > { %5364 = vset.pattern.permute.xlu2 %v5615_v5  ;;  %1264 = vperm.xlu1 %5363, %v778_v58  }
  0xef   : > { %931 = vperm.xlu2 %5364, %v5987_v34  }
  0xf0   : > { %5130 = vmatmul.msk.f32.gmra.mxu0 %vm1448_vm0, %v1410_v11  ;;  %v1209_v12 = vpop.permute.xlu1 %1208 }
  0xf1   : > { %v1312_v20 = vmul.f32 %v5926_v45, %v1209_v12  ;;  %v6039_v33 = vpop.permute.xlu0 %1248 }
  0xf2   : > { %v1221_v19 = vpop.permute.xlu2 %1220 }
  0xf3   : > { %v1344_v28 = vadd.f32 %v1312_v20, %v1151_v24  ;;  %v1315_v58 = vmul.f32 %v5926_v45, %v1221_v19  ;;  %v780_v19 = vld [vmem:[%s5816_s7 + $0xc0] sm:$0xff] }
  0xf5   : > { %v1380_v32 = vadd.f32 %v5944_v59, %v1344_v28 }
  0xf6   : > { %5365 = vset.pattern.permute.xlu1 %v5615_v5 }
  0xf7   : > { %5366 = vset.pattern.permute.xlu2 %v5614_v1  ;;  %876 = vperm.xlu1 %5365, %v773_v23   ;;  %v1412_v22 = vmax.f32 %v1380_v32, 0.0 }
  0xf8   : > { %1051 = vperm.xlu2 %5366, %v773_v23   ;;  %5131 = vmatmul.msk.f32.gmra.mxu0 %vm1448_vm0, %v1411_v25  ;;  %v1213_v29 = vpop.permute.xlu1 %1212  ;;  %v1125_v25 = vmul.f32 %v5924_v44, %v5990_v35 }
  0xf9   : > { %v1313_v31 = vmul.f32 %v5926_v45, %v1213_v29  ;;  %v6087_v29 = vld [vmem:[%s5816_s7 + $0xa0] sm:$0xff] }
  0xfa   : > { %v847_v40 = vpop.permute.xlu0 %846  ;;  %1063 = vperm.xlu0 %5386, %v6087_v29  }
  0xfb   : > { %v1032_v36 = vpop.permute.xlu2 %1031  ;;  %v1345_v37 = vadd.f32 %v1313_v31, %v1152_v30 }
  0xfc   : > { %v1123_v62 = vmul.f32 %v5924_v44, %v1032_v36 }
  0xfd   : > { %v1381_v48 = vadd.f32 %v5944_v59, %v1345_v37 }
  0xff   : > { %5367 = vset.pattern.permute.xlu1 %v5613_v0  ;;  %v1413_v53 = vmax.f32 %v1381_v48, 0.0 }
 0x100   : > { %5368 = vset.pattern.permute.xlu2 %v5613_v0  ;;  %1288 = vperm.xlu1 %5367, %v5987_v34   ;;  %v961_v34 = vmul.f32 %v5918_v42, %v847_v40 }
 0x101   : > { %5132 = vmatmul.msk.f32.gmra.mxu0 %vm1448_vm0, %v1412_v22  ;;  %1244 = vperm.xlu2 %5368, %v773_v23   ;;  %v1024_v38 = vpop.permute.xlu1 %1023 }
 0x102   : > { %v1121_v46 = vmul.f32 %v5924_v44, %v1024_v38  ;;  %v897_v38 = vpop.permute.xlu0 %896 }
 0x103   : > { %v1036_v49 = vpop.permute.xlu2 %1035 }
 0x104   : > { %v1153_v50 = vadd.f32 %v1121_v46, %v960_v41  ;;  %v1124_v14 = vmul.f32 %v5924_v44, %v1036_v49  ;;  %v6097_v41 = vld [vmem:[%s5816_s7 + $0xd0] sm:$0xff] }
 0x105   : > { %1087 = vperm.xlu0 %5386, %v6097_v41  }
 0x106   : > { %v1346_v51 = vadd.f32 %v1314_v47, %v1153_v50  ;;  %v775_v47 = vld [vmem:[%s5816_s7 + $0x98] sm:$0xff]  ;;  %s8104_s7 = sld [smem:[#allocation15_spill]] }
 0x108   : > { %5369 = vset.pattern.permute.xlu1 %v5614_v1  ;;  %v1382_v52 = vadd.f32 %v5944_v59, %v1346_v51 }
 0x109   : > { %5133 = vmatmul.msk.f32.gmra.mxu0 %vm1448_vm0, %v1413_v53  ;;  %1268 = vperm.xlu2 %5368, %v5922_v43   ;;  %v1028_v54 = vpop.permute.xlu1 %1027 }
 0x10a   : > { %1075 = vperm.xlu1 %5369, %v5922_v43   ;;  %v1122_v55 = vmul.f32 %v5924_v44, %v1028_v54  ;;  %v1414_v39 = vmax.f32 %v1382_v52, 0.0  ;;  %v6114_v54 = vld [vmem:[%s6111_s27 + $0x8] sm:$0xff]  ;;  %v971_v52 = vmul.f32 %v5918_v42, %v897_v38 }
 0x10c   : > { %v1154_v56 = vadd.f32 %v1122_v55, %v961_v34  ;;  %v862_v57 = vpop.permute.xlu2 %861  ;;  %v872_v55 = vpop.permute.xlu0 %871 }
 0x10d   : > { %v964_v26 = vmul.f32 %v5918_v42, %v862_v57  ;;  %1824 = vperm.xlu0 %5386, %v6114_v54  }
 0x10e   : > { %v1347_v15 = vadd.f32 %v1315_v58, %v1154_v56 }
 0x10f   : > { %v1157_v30 = vadd.f32 %v1125_v25, %v964_v26  ;;  %v966_v25 = vmul.f32 %v5918_v42, %v872_v55 }
 0x110   : > { %v1383_v6 = vadd.f32 %v5944_v59, %v1347_v15 }
 0x111   : > { %5134 = vmatmul.msk.f32.gmra.mxu0 %vm1448_vm0, %v1414_v39  ;;  %5371 = vset.pattern.permute.xlu2 %v5614_v1 }
 0x112   : > { %5370 = vset.pattern.permute.xlu1 %v5615_v5  ;;  %1099 = vperm.xlu2 %5371, %v785_v61   ;;  %v852_v43 = vpop.permute.xlu1 %851  ;;  %v1415_v9 = vmax.f32 %v1383_v6, 0.0 }
 0x113   : > { %936 = vperm.xlu1 %5370, %v785_v61   ;;  %v962_v2 = vmul.f32 %v5918_v42, %v852_v43  ;;  %v6126_v43 = vld [vmem:[%s8102_s4] ss:$0 sm:$0xff]  ;;  %s8067_s4 = smov 88  }
 0x114   : > { %v867_v4 = vpop.permute.xlu2 %866 }
 0x115   : > { %v1155_v7 = vadd.f32 %v1123_v62, %v962_v2  ;;  %v965_v49 = vmul.f32 %v5918_v42, %v867_v4  ;;  %5432 = vset.pattern.permute.xlu0 %v5613_v0 }
 0x117   : > { %v1348_v8 = vadd.f32 %v1316_v63, %v1155_v7 }
 0x119   : > { %5135 = vmatmul.msk.f32.gmra.mxu0 %vm1448_vm0, %v1415_v9  ;;  %v1384_v3 = vadd.f32 %v5944_v59, %v1348_v8  ;;  %v6134_v8 = vpop.permute.xlu0 %906 }
 0x11a   : > { %5373 = vset.pattern.permute.xlu2 %v5613_v0  ;;  %v857_v11 = vpop.permute.xlu1 %856 }
 0x11b   : > { %5372 = vset.pattern.permute.xlu1 %v5614_v1  ;;  %1292 = vperm.xlu2 %5373, %v785_v61   ;;  %v1416_v13 = vmax.f32 %v1384_v3, 0.0  ;;  %v963_v18 = vmul.f32 %v5918_v42, %v857_v11 }
 0x11c   : > { %1055 = vperm.xlu1 %5372, %v5853_v16  }
 0x11d   : > { %v1237_v12 = vpop.permute.xlu2 %1236  ;;  %v1156_v23 = vadd.f32 %v1124_v14, %v963_v18 }
 0x11e   : > { %v1319_v50 = vmul.f32 %v5926_v45, %v1237_v12 }
 0x121   : > { %5136 = vmatmul.msk.f32.gmra.mxu0 %vm1448_vm0, %v1416_v13 }
 0x123   : > { %5376 = vset.pattern.permute.xlu2 %v5614_v1  ;;  %v1229_v20 = vpop.permute.xlu1 %1228 }
 0x124   : > { %5375 = vset.pattern.permute.xlu1 %v5615_v5  ;;  %v1317_v24 = vmul.f32 %v5926_v45, %v1229_v20  ;;  %1079 = vperm.xlu2 %5376, %v780_v19  }
 0x125   : > { %911 = vperm.xlu1 %5375, %v780_v19   ;;  %v1261_v16 = vpop.permute.xlu2 %1260 }
 0x126   : > { %v1349_v27 = vadd.f32 %v1317_v24, %v1156_v23  ;;  %v1325_v61 = vmul.f32 %v5926_v45, %v1261_v16 }
 0x128   : > { %v1385_v28 = vadd.f32 %v5944_v59, %v1349_v27  ;;  %v1803_v27 = vld [vmem:[%s6111_s27] sm:$0xff]  ;;  %s8061_s27 = smov 80  }
 0x12a   : > { %v1417_v31 = vmax.f32 %v1385_v28, 0.0 }
 0x12b   : > { %v1233_v32 = vpop.permute.xlu1 %1232 }
 0x12c   : > { %v1318_v36 = vmul.f32 %v5926_v45, %v1233_v32  ;;  %5378 = vset.pattern.permute.xlu2 %v5615_v5  ;;  %5137 = vmatmul.msk.f32.gmra.mxu0 %vm1448_vm0, %v1417_v31  ;;  %v1320_v32 = vmul.f32 %v5926_v45, %v6026_v17 }
 0x12d   : > { %5377 = vset.pattern.permute.xlu1 %v5613_v0  ;;  %941 = vperm.xlu2 %5378, %v6058_v60  }
 0x12e   : > { %v1350_v35 = vadd.f32 %v1318_v36, %v1157_v30  ;;  %1272 = vperm.xlu1 %5377, %v780_v19   ;;  %v1092_v37 = vpop.permute.xlu2 %1091  ;;  %v6152_v30 = vpop.permute.xlu0 %881 }
 0x12f   : > { %v1138_v4 = vmul.f32 %v5924_v44, %v1092_v37 }
 0x130   : > { %v1386_v22 = vadd.f32 %v5944_v59, %v1350_v35 }
 0x132   : > { %v1418_v46 = vmax.f32 %v1386_v22, 0.0 }
 0x134   : > { %5138 = vmatmul.msk.f32.gmra.mxu0 %vm1448_vm0, %v1418_v46  ;;  %v1044_v48 = vpop.permute.xlu1 %1043 }
 0x135   : > { %v1126_v40 = vmul.f32 %v5924_v44, %v1044_v48  ;;  %5380 = vset.pattern.permute.xlu2 %v5614_v1 }
 0x136   : > { %5379 = vset.pattern.permute.xlu1 %v5615_v5  ;;  %1059 = vperm.xlu2 %5380, %v775_v47  }
 0x137   : > { %v1158_v51 = vadd.f32 %v1126_v40, %v965_v49  ;;  %886 = vperm.xlu1 %5379, %v775_v47   ;;  %v1285_v53 = vpop.permute.xlu2 %1284  ;;  %v6165_v40 = vpop.permute.xlu0 %916 }
 0x139   : > { %v1351_v34 = vadd.f32 %v1319_v50, %v1158_v51 }
 0x13b   : > { %v1387_v56 = vadd.f32 %v5944_v59, %v1351_v34 }
 0x13c   : > { %v1068_v57 = vpop.permute.xlu1 %1067 }
 0x13d   : > { %v1132_v58 = vmul.f32 %v5924_v44, %v1068_v57  ;;  %v1562_v15 = vpop.f32.mrf.mxu0  ;;  %v1419_v39 = vmax.f32 %v1387_v56, 0.0 }
 0x13e   : > { %5382 = vset.pattern.permute.xlu2 %v5613_v0  ;;  %v1563_v7 = vadd.f32 %v6126_v43, %v1562_v15 }
 0x13f   : > { %v1164_v62 = vadd.f32 %v1132_v58, %v971_v52  ;;  %5381 = vset.pattern.permute.xlu1 %v5613_v0  ;;  %1252 = vperm.xlu2 %5382, %v775_v47   ;;  %v6178_v15 = vpop.permute.xlu0 %946 }
 0x140   : > { %1296 = vperm.xlu1 %5381, %v6058_v60   ;;  %5139 = vmatmul.msk.f32.gmra.mxu0 %vm1448_vm0, %v1419_v39  ;;  %v1072_v2 = vpop.permute.xlu2 %1071  ;;  %v1331_v60 = vmul.f32 %v5926_v45, %v1285_v53  ;;  %v1659_v14 = vsel %vm1658_vm1, %v1563_v7, -inf }
 0x141   : > { %v1357_v63 = vadd.f32 %v1325_v61, %v1164_v62  ;;  %v1133_v53 = vmul.f32 %v5924_v44, %v1072_v2 }
 0x143   : > { %v1393_v6 = vadd.f32 %v5944_v59, %v1357_v63 }
 0x145   : > { %v1565_v9 = vpop.f32.mrf.mxu0  ;;  %v927_v11 = vpop.permute.xlu1 %926  ;;  %v1425_v3 = vmax.f32 %v1393_v6, 0.0 }
 0x146   : > { %v1566_v12 = vadd.f32 %v6126_v43, %v1565_v9  ;;  %v977_v13 = vmul.f32 %v5918_v42, %v927_v11 }
 0x147   : > { %1276 = vperm.xlu2 %5382, %v5960_v10   ;;  %5145 = vmatmul.msk.f32.vlgmr.msra.gmra.mxu1 %vm1448_vm0, %v1425_v3 }
 0x148   : > { %v1660_v18 = vsel %vm1658_vm1, %v1566_v12, -inf  ;;  %v1170_v19 = vadd.f32 %v1138_v4, %v977_v13  ;;  %5383 = vset.pattern.permute.xlu1 %v5614_v1 }
 0x149   : > { %v6144_v20 = vmax.f32 %v1659_v14, %v1660_v18  ;;  %1083 = vperm.xlu1 %5383, %v5960_v10   ;;  %v6147_v24 = vpop.permute.xlu2 %931 }
 0x14a   : > { %v1363_v23 = vadd.f32 %v1331_v60, %v1170_v19  ;;  %v1096_v60 = vpop.permute.xlu0 %1095  ;;  %v978_v18 = vmul.f32 %v5918_v42, %v6147_v24 }
 0x14b   : > { %v1139_v19 = vmul.f32 %v5924_v44, %v1096_v60 }
 0x14c   : > { %v1399_v16 = vadd.f32 %v5944_v59, %v1363_v23 }
 0x14d   : > { %v1568_v26 = vpop.f32.mrf.mxu0 }
 0x14e   : > { %v1048_v28 = vpop.permute.xlu1 %1047  ;;  %v1431_v31 = vmax.f32 %v1399_v16, 0.0  ;;  %v1569_v37 = vadd.f32 %v6126_v43, %v1568_v26  ;;  %v1171_v26 = vadd.f32 %v1139_v19, %v978_v18 }
 0x14f   : > { %v1127_v36 = vmul.f32 %v5924_v44, %v1048_v28  ;;  %5385 = vset.pattern.permute.xlu2 %v5614_v1 }
 0x150   : > { %1820 = vperm.xlu2 %5385, %v1803_v27   ;;  %5151 = vmatmul.msk.f32.vlgmr.msra.gmra.mxu3 %vm1448_vm0, %v1431_v31  ;;  %v1668_v49 = vsel %vm1658_vm1, %v1569_v37, -inf }
 0x151   : > { %v1159_v10 = vadd.f32 %v1127_v36, %v966_v25  ;;  %5384 = vset.pattern.permute.xlu1 %v5615_v5 }
 0x152   : > { %1808 = vperm.xlu1 %5384, %v1803_v27   ;;  %v1052_v46 = vpop.permute.xlu2 %1051 }
 0x153   : > { %v1352_v35 = vadd.f32 %v1320_v32, %v1159_v10  ;;  %v1128_v6 = vmul.f32 %v5924_v44, %v1052_v46 }
 0x155   : > { %v1571_v22 = vpop.f32.mrf.mxu0  ;;  %v1388_v38 = vadd.f32 %v5944_v59, %v1352_v35 }
 0x156   : > { %v1572_v17 = vadd.f32 %v6126_v43, %v1571_v22  ;;  %v973_v22 = vmul.f32 %v5918_v42, %v6134_v8 }
 0x157   : > { %v902_v47 = vpop.permute.xlu1 %901  ;;  %v1420_v48 = vmax.f32 %v1388_v38, 0.0 }
 0x158   : > { %v1669_v50 = vsel %vm1658_vm1, %v1572_v17, -inf  ;;  %5388 = vset.pattern.permute.xlu2 %v5615_v5  ;;  %v972_v34 = vmul.f32 %v5918_v42, %v902_v47 }
 0x159   : > { %v6168_v51 = vmax.f32 %v1668_v49, %v1669_v50  ;;  %891 = vperm.xlu2 %5388, %v6087_v29   ;;  %5140 = vmatmul.msk.f32.gmra.mxu0 %vm1448_vm0, %v1420_v48 }
 0x15a   : > { %5387 = vset.pattern.permute.xlu1 %v5614_v1  ;;  %v1165_v57 = vadd.f32 %v1133_v53, %v972_v34 }
 0x15b   : > { %1107 = vperm.xlu1 %5387, %v5971_v21   ;;  %v1245_v52 = vpop.permute.xlu2 %1244 }
 0x15c   : > { %v1321_v11 = vmul.f32 %v5926_v45, %v1245_v52 }
 0x15d   : > { %v1574_v55 = vpop.f32.mrf.mxu0 }
 0x15e   : > { %v1575_v1 = vadd.f32 %v6126_v43, %v1574_v55 }
 0x160   : > { %v1265_v56 = vpop.permute.xlu1 %1264  ;;  %v1677_v4 = vsel %vm1658_vm1, %v1575_v1, -inf }
 0x161   : > { %v1326_v58 = vmul.f32 %v5926_v45, %v1265_v56  ;;  %5390 = vset.pattern.permute.xlu2 %v5613_v0 }
 0x162   : > { %1300 = vperm.xlu2 %5390, %v5971_v21  }
 0x163   : > { %v1358_v39 = vadd.f32 %v1326_v58, %v1165_v57  ;;  %5389 = vset.pattern.permute.xlu1 %v5613_v0  ;;  %v1269_v21 = vpop.permute.xlu2 %1268 }
 0x164   : > { %1833 = vperm.xlu1 %5389, %v1803_v27   ;;  %v1327_v47 = vmul.f32 %v5926_v45, %v1269_v21  ;;  %v1322_v21 = vmul.f32 %v5926_v45, %v6039_v33 }
 0x165   : > { %v1577_v61 = vpop.f32.mrf.mxu0  ;;  %v1394_v62 = vadd.f32 %v5944_v59, %v1358_v39 }
 0x166   : > { %v1578_v63 = vadd.f32 %v6126_v43, %v1577_v61 }
 0x167   : > { %v1426_v2 = vmax.f32 %v1394_v62, 0.0 }
 0x168   : > { %v1678_v7 = vsel %vm1658_vm1, %v1578_v63, -inf }
 0x169   : > { %v6188_v9 = vmax.f32 %v1677_v4, %v1678_v7  ;;  %5146 = vmatmul.msk.f32.gmra.mxu1 %vm1448_vm0, %v1426_v2  ;;  %v877_v0 = vpop.permute.xlu1 %876 }
 0x16a   : > { %v967_v3 = vmul.f32 %v5918_v42, %v877_v0  ;;  %5391 = vset.pattern.permute.xlu2 %v5615_v5 }
 0x16b   : > { %921 = vperm.xlu2 %5391, %v6097_v41  }
 0x16c   : > { %v1160_v12 = vadd.f32 %v1128_v6, %v967_v3  ;;  %1256 = vperm.xlu1 %5389, %v6087_v29   ;;  %v1100_v27 = vpop.permute.xlu2 %1099  ;;  %v968_v6 = vmul.f32 %v5918_v42, %v6152_v30 }
 0x16d   : > { %v1580_v13 = vpop.f32.mrf.mxu0  ;;  %v1140_v53 = vmul.f32 %v5924_v44, %v1100_v27 }
 0x16e   : > { %v1353_v14 = vadd.f32 %v1321_v11, %v1160_v12  ;;  %v1581_v28 = vadd.f32 %v6126_v43, %v1580_v13 }
 0x170   : > { %v1389_v23 = vadd.f32 %v5944_v59, %v1353_v14  ;;  %v1686_v36 = vsel %vm1658_vm1, %v1581_v28, -inf }
 0x172   : > { %v1289_v16 = vpop.permute.xlu1 %1288  ;;  %v1421_v25 = vmax.f32 %v1389_v23, 0.0 }
 0x173   : > { %v1332_v5 = vmul.f32 %v5926_v45, %v1289_v16  ;;  %1813 = vperm.xlu2 %5391, %v6114_v54  }
 0x174   : > { %1280 = vperm.xlu1 %5389, %v6097_v41   ;;  %5141 = vmatmul.msk.f32.gmra.mxu0 %vm1448_vm0, %v1421_v25 }
 0x175   : > { %v1364_v29 = vadd.f32 %v1332_v5, %v1171_v26  ;;  %v1583_v24 = vpop.f32.mrf.mxu0  ;;  %v1293_v46 = vpop.permute.xlu2 %1292 }
 0x176   : > { %v1584_v31 = vadd.f32 %v6126_v43, %v1583_v24  ;;  %v1333_v52 = vmul.f32 %v5926_v45, %v1293_v46 }
 0x177   : > { %v1400_v32 = vadd.f32 %v5944_v59, %v1364_v29 }
 0x178   : > { %v1687_v10 = vsel %vm1658_vm1, %v1584_v31, -inf }
 0x179   : > { %v6209_v35 = vmax.f32 %v1686_v36, %v1687_v10  ;;  %v1432_v37 = vmax.f32 %v1400_v32, 0.0  ;;  %v1104_v32 = vpop.permute.xlu0 %1103 }
 0x17b   : > { %5152 = vmatmul.msk.f32.gmra.mxu3 %vm1448_vm0, %v1432_v37 }
 0x17c   : > { %1837 = vperm.xlu1 %5389, %v6114_v54   ;;  %v1076_v41 = vpop.permute.xlu1 %1075 }
 0x17d   : > { %v1134_v38 = vmul.f32 %v5924_v44, %v1076_v41  ;;  %v1141_v41 = vmul.f32 %v5924_v44, %v1104_v32 }
 0x17e   : > { %v1586_v17 = vpop.f32.mrf.mxu0  ;;  %v1080_v57 = vpop.permute.xlu2 %1079 }
 0x17f   : > { %v1166_v48 = vadd.f32 %v1134_v38, %v973_v22  ;;  %v1587_v34 = vadd.f32 %v6126_v43, %v1586_v17  ;;  %v1135_v30 = vmul.f32 %v5924_v44, %v1080_v57  ;;  %v1860_v38 = vld [vmem:[%s8103_s25 + $0x38] sm:$0xff]  ;;  %v1859_v17 = vld [vmem:[%s8103_s25 + $0x30] sm:$0xff] }
 0x180   : > { %1879 = vmatpush.msra.mxu2 %v1860_v38  ;;  %v1855_v57 = vld [vmem:[%s8103_s25 + $0x10] sm:$0xff] }
 0x181   : > { %v1359_v49 = vadd.f32 %v1327_v47, %v1166_v48  ;;  %v1695_v1 = vsel %vm1658_vm1, %v1587_v34, -inf }
 0x182   : > { %1880 = vmatpush.msra.mxu2 %v1859_v17 }
 0x183   : > { %v1395_v50 = vadd.f32 %v5944_v59, %v1359_v49 }
 0x185   : > { %v937_v8 = vpop.permute.xlu1 %936  ;;  %v1427_v55 = vmax.f32 %v1395_v50, 0.0 }
 0x186   : > { %v979_v54 = vmul.f32 %v5918_v42, %v937_v8  ;;  %v1589_v56 = vpop.f32.mrf.mxu0  ;;  %v1857_v8 = vld [vmem:[%s8103_s25 + $0x20] sm:$0xff] }
 0x187   : > { %v1590_v58 = vadd.f32 %v6126_v43, %v1589_v56  ;;  %5147 = vmatmul.msk.f32.gmra.mxu1 %vm1448_vm0, %v1427_v55  ;;  %v942_v11 = vpop.permute.xlu2 %941 }
 0x188   : > { %v1172_v39 = vadd.f32 %v1140_v53, %v979_v54  ;;  %v980_v37 = vmul.f32 %v5918_v42, %v942_v11  ;;  %v1858_v53 = vld [vmem:[%s8103_s25 + $0x28] sm:$0xff] }
 0x189   : > { %v1696_v61 = vsel %vm1658_vm1, %v1590_v58, -inf  ;;  %1881 = vmatpush.msra.mxu2 %v1858_v53  ;;  %v1854_v58 = vld [vmem:[%s8103_s25 + $0x8] sm:$0xff] }
 0x18a   : > { %v1365_v62 = vadd.f32 %v1333_v52, %v1172_v39  ;;  %v6226_v63 = vmax.f32 %v1695_v1, %v1696_v61  ;;  %v1173_v49 = vadd.f32 %v1141_v41, %v980_v37  ;;  %v1856_v52 = vld [vmem:[%s8103_s25 + $0x18] sm:$0xff]  ;;  %v1853_v1 = vld [vmem:[%s8103_s25] sm:$0xff]  ;;  %v975_v61 = vmul.f32 %v5918_v42, %v6165_v40 }
 0x18b   : > { %1882 = vmatpush.msra.mxu2 %v1857_v8 }
 0x18c   : > { %v1401_v2 = vadd.f32 %v5944_v59, %v1365_v62 }
 0x18d   : > { %1883 = vmatpush.msra.mxu2 %v1856_v52 }
 0x18e   : > { %v1056_v4 = vpop.permute.xlu1 %1055  ;;  %v1433_v7 = vmax.f32 %v1401_v2, 0.0 }
 0x18f   : > { %v1129_v0 = vmul.f32 %v5924_v44, %v1056_v4  ;;  %1884 = vmatpush.msra.mxu2 %v1855_v57 }
 0x190   : > { %5153 = vmatmul.msk.f32.gmra.mxu3 %vm1448_vm0, %v1433_v7  ;;  %v1060_v18 = vpop.permute.xlu2 %1059 }
 0x191   : > { %v1161_v3 = vadd.f32 %v1129_v0, %v968_v6  ;;  %v1130_v28 = vmul.f32 %v5924_v44, %v1060_v18  ;;  %1885 = vmatpush.msra.mxu2 %v1854_v58 }
 0x193   : > { %v1354_v60 = vadd.f32 %v1322_v21, %v1161_v3  ;;  %1886 = vmatpush.msra.mxu2 %v1853_v1  ;;  %v1805_v3 = vld [vmem:[%s8104_s7] sm:$0x7]  ;;  %s8063_s7 = smov 112  }
 0x194   : > { %v1827_v18 = vperm.slane %v1805_v3, 1 }
 0x195   : > { %v1390_v12 = vadd.f32 %v5944_v59, %v1354_v60 }
 0x197   : > { %v912_v13 = vpop.permute.xlu1 %911  ;;  %v1422_v14 = vmax.f32 %v1390_v12, 0.0  ;;  %v981_v12 = vmul.f32 %v5918_v42, %v6178_v15  ;;  %v5435_v15 = vld [vmem:[%s8105_s8] ss:$0 sm:$0xff]  ;;  %s8057_s8 = smov 72  }
 0x198   : > { %v974_v19 = vmul.f32 %v5918_v42, %v912_v13 }
 0x199   : > { %5142 = vmatmul.msk.f32.gmra.mxu0 %vm1448_vm0, %v1422_v14  ;;  %v1253_v33 = vpop.permute.xlu2 %1252 }
 0x19a   : > { %v1167_v16 = vadd.f32 %v1135_v30, %v974_v19  ;;  %v1323_v24 = vmul.f32 %v5926_v45, %v1253_v33  ;;  %v1816_v30 = vperm.slane %v1805_v3, 0 }
 0x1a0   : > { %v1273_v23 = vpop.permute.xlu1 %1272 }
 0x1a1   : > { %v1328_v25 = vmul.f32 %v5926_v45, %v1273_v23  ;;  %v1277_v22 = vpop.permute.xlu2 %1276 }
 0x1a2   : > { %v1329_v2 = vmul.f32 %v5926_v45, %v1277_v22 }
 0x1a3   : > { %v1360_v26 = vadd.f32 %v1328_v25, %v1167_v16 }
 0x1a5   : > { %v1396_v5 = vadd.f32 %v5944_v59, %v1360_v26  ;;  %v1840_v26 = vperm.slane %v1805_v3, 2 }
 0x1a7   : > { %v1428_v27 = vmax.f32 %v1396_v5, 0.0  ;;  %v1064_v5 = vpop.permute.xlu0 %1063 }
 0x1a9   : > { %5148 = vmatmul.msk.f32.gmra.mxu1 %vm1448_vm0, %v1428_v27  ;;  %v887_v29 = vpop.permute.xlu1 %886 }
 0x1aa   : > { %v969_v31 = vmul.f32 %v5918_v42, %v887_v29  ;;  %v1821_v54 = vpop.permute.xlu2 %1820 }
 0x1ab   : > { %v1828_v16 = vmul.f32 %v1827_v18, %v1821_v54 }
 0x1ac   : > { %v1162_v36 = vadd.f32 %v1130_v28, %v969_v31 }
 0x1ae   : > { %v1355_v10 = vadd.f32 %v1323_v24, %v1162_v36  ;;  %v1131_v36 = vmul.f32 %v5924_v44, %v1064_v5 }
 0x1af   : > { %v1088_v17 = vpop.permute.xlu0 %1087 }
 0x1b0   : > { %v1391_v46 = vadd.f32 %v5944_v59, %v1355_v10 }
 0x1b2   : > { %v1297_v47 = vpop.permute.xlu1 %1296  ;;  %v1423_v48 = vmax.f32 %v1391_v46, 0.0 }
 0x1b3   : > { %v1334_v50 = vmul.f32 %v5926_v45, %v1297_v47  ;;  %v892_v0 = vpop.permute.xlu2 %891 }
 0x1b4   : > { %5143 = vmatmul.msk.f32.gmra.mxu0 %vm1448_vm0, %v1423_v48  ;;  %v970_v32 = vmul.f32 %v5918_v42, %v892_v0  ;;  %v1137_v48 = vmul.f32 %v5924_v44, %v1088_v17  ;;  %v1698_v17 = vrot.slane %v6226_v63, 4 }
 0x1b5   : > { %v1366_v34 = vadd.f32 %v1334_v50, %v1173_v49 }
 0x1b6   : > { %v1163_v38 = vadd.f32 %v1131_v36, %v970_v32 }
 0x1b7   : > { %v1402_v55 = vadd.f32 %v5944_v59, %v1366_v34 }
 0x1b9   : > { %v1434_v56 = vmax.f32 %v1402_v55, 0.0 }
 0x1bb   : > { %5154 = vmatmul.msk.f32.gmra.mxu3 %vm1448_vm0, %v1434_v56  ;;  %v1084_v39 = vpop.permute.xlu1 %1083  ;;  %v1825_v56 = vpop.permute.xlu0 %1824 }
 0x1bc   : > { %v1136_v62 = vmul.f32 %v5924_v44, %v1084_v39  ;;  %v1301_v40 = vpop.permute.xlu2 %1300  ;;  %v1829_v39 = vmul.f32 %v1827_v18, %v1825_v56 }
 0x1bd   : > { %v1335_v13 = vmul.f32 %v5926_v45, %v1301_v40 }
 0x1be   : > { %v1168_v6 = vadd.f32 %v1136_v62, %v975_v61 }
 0x1c0   : > { %v1361_v4 = vadd.f32 %v1329_v2, %v1168_v6 }
 0x1c2   : > { %v1397_v7 = vadd.f32 %v5944_v59, %v1361_v4 }
 0x1c4   : > { %v1809_v21 = vpop.permute.xlu1 %1808  ;;  %v1429_v11 = vmax.f32 %v1397_v7, 0.0  ;;  %v6306_v3 = vpop.f32.mrf.mxu1 }
 0x1c5   : > { %v1817_v25 = vmul.f32 %v1816_v30, %v1809_v21  ;;  %v922_v22 = vpop.permute.xlu2 %921 }
 0x1c6   : > { %5149 = vmatmul.msk.f32.gmra.mxu1 %vm1448_vm0, %v1429_v11  ;;  %v976_v49 = vmul.f32 %v5918_v42, %v922_v22 }
 0x1c7   : > { %v1830_v29 = vadd.f32 %v1828_v16, %v1817_v25 }
 0x1c8   : > { %v1169_v8 = vadd.f32 %v1137_v48, %v976_v49 }
 0x1cd   : > { %v1108_v60 = vpop.permute.xlu1 %1107  ;;  %v1814_v52 = vpop.permute.xlu2 %1813 }
 0x1ce   : > { %v1142_v14 = vmul.f32 %v5924_v44, %v1108_v60  ;;  %v1818_v57 = vmul.f32 %v1816_v30, %v1814_v52 }
 0x1d0   : > { %v1174_v19 = vadd.f32 %v1142_v14, %v981_v12  ;;  %v1831_v61 = vadd.f32 %v1829_v39, %v1818_v57 }
 0x1d2   : > { %v1367_v23 = vadd.f32 %v1335_v13, %v1174_v19  ;;  %v1662_v13 = vrot.slane %v6144_v20, 4 }
 0x1d3   : > { %v6308_v60 = vpop.f32.mrf.mxu3 }
 0x1d4   : > { %v1403_v33 = vadd.f32 %v5944_v59, %v1367_v23  ;;  %v1663_v5 = vmax.f32 %v6144_v20, %v1662_v13 }
 0x1d6   : > { %v1834_v27 = vpop.permute.xlu1 %1833  ;;  %v1435_v28 = vmax.f32 %v1403_v33, 0.0  ;;  %v1664_v22 = vrot.slane %v1663_v5, 2 }
 0x1d7   : > { %v1841_v24 = vmul.f32 %v1840_v26, %v1834_v27 }
 0x1d8   : > { %5155 = vmatmul.msk.f32.gmra.mxu3 %vm1448_vm0, %v1435_v28 }
 0x1d9   : > { %v1843_v31 = vadd.f32 %v1841_v24, %v1830_v29  ;;  %v1671_v24 = vrot.slane %v6168_v51, 4 }
 0x1db   : > { %v1849_v10 = vadd.f32 %v5435_v15, %v1843_v31  ;;  %v1672_v20 = vmax.f32 %v6168_v51, %v1671_v24  ;;  %v1699_v51 = vmax.f32 %v6226_v63, %v1698_v17 }
 0x1dd   : > { %v1851_v37 = vmax.f32 %v1849_v10, 0.0 }
 0x1de   : > { %v1257_v41 = vpop.permute.xlu1 %1256 }
 0x1df   : > { %v1324_v46 = vmul.f32 %v5926_v45, %v1257_v41  ;;  %5156 = vmatmul.msk.f32.vlgmr.msra.gmra.mxu2 %vm1448_vm0, %v1851_v37  ;;  %v1680_v41 = vrot.slane %v6188_v9, 4 }
 0x1e1   : > { %v1356_v47 = vadd.f32 %v1324_v46, %v1163_v38  ;;  %v1689_v38 = vrot.slane %v6209_v35, 4 }
 0x1e3   : > { %v1392_v50 = vadd.f32 %v5944_v59, %v1356_v47  ;;  %v1690_v52 = vmax.f32 %v6209_v35, %v1689_v38 }
 0x1e5   : > { %v1424_v53 = vmax.f32 %v1392_v50, 0.0 }
 0x1e6   : > { %v1281_v34 = vpop.permute.xlu1 %1280  ;;  %v1628_v40 = vpop.f32.mrf.mxu1 }
 0x1e7   : > { %v1330_v55 = vmul.f32 %v5926_v45, %v1281_v34  ;;  %5144 = vmatmul.msk.f32.gmra.mxu0 %vm1448_vm0, %v1424_v53  ;;  %v1592_v45 = vpop.f32.mrf.mxu0  ;;  %v1665_v34 = vmax.f32 %v1663_v5, %v1664_v22 }
 0x1e8   : > { %v1593_v23 = vadd.f32 %v6126_v43, %v1592_v45 }
 0x1e9   : > { %v1362_v54 = vadd.f32 %v1330_v55, %v1169_v8  ;;  %v1673_v8 = vrot.slane %v1672_v20, 2  ;;  %v1681_v55 = vmax.f32 %v6188_v9, %v1680_v41 }
 0x1eb   : > { %v1398_v58 = vadd.f32 %v5944_v59, %v1362_v54 }
 0x1ed   : > { %v1430_v1 = vmax.f32 %v1398_v58, 0.0 }
 0x1ee   : > { %v1838_v44 = vpop.permute.xlu1 %1837 }
 0x1ef   : > { %v1842_v42 = vmul.f32 %v1840_v26, %v1838_v44  ;;  %5150 = vmatmul.msk.f32.gmra.mxu1 %vm1448_vm0, %v1430_v1  ;;  %v1595_v4 = vpop.f32.mrf.mxu0  ;;  %v1666_v1 = vrot.slane %v1665_v34, 1  ;;  %v1629_v44 = vadd.f32 %v6126_v43, %v1628_v40 }
 0x1f0   : > { %v1596_v14 = vadd.f32 %v6126_v43, %v1595_v4 }
 0x1f1   : > { %v1844_v62 = vadd.f32 %v1842_v42, %v1831_v61  ;;  %v1674_v42 = vmax.f32 %v1672_v20, %v1673_v8  ;;  %v1758_v13 = vsel %vm1658_vm1, %v1629_v44, -inf }
 0x1f2   : > { %v1705_v27 = vsel %vm1658_vm1, %v1596_v14, -inf }
 0x1f3   : > { %v1850_v2 = vadd.f32 %v5435_v15, %v1844_v62  ;;  %v1704_v15 = vsel %vm1658_vm1, %v1593_v23, -inf  ;;  %v1682_v62 = vrot.slane %v1681_v55, 2 }
 0x1f4   : > { %v1706_v36 = vmax.f32 %v1704_v15, %v1705_v27 }
 0x1f5   : > { %v1852_v6 = vmax.f32 %v1850_v2, 0.0  ;;  %v1691_v2 = vrot.slane %v1690_v52, 2 }
 0x1f6   : > { %v1707_v48 = vrot.slane %v1706_v36, 4 }
 0x1f7   : > { %5157 = vmatmul.msk.f32.gmra.mxu2 %vm1448_vm0, %v1852_v6  ;;  %v1598_v7 = vpop.f32.mrf.mxu0  ;;  %v1700_v6 = vrot.slane %v1699_v51, 2 }
 0x1f8   : > { %v1599_v16 = vadd.f32 %v6126_v43, %v1598_v7  ;;  %v1708_v57 = vmax.f32 %v1706_v36, %v1707_v48  ;;  %v1667_v36 = vmax.f32 %v1665_v34, %v1666_v1  ;;  %v1644_v34 = vadd.f32 %v6126_v43, %v6308_v60 }
 0x1fa   : > { %v1713_v31 = vsel %vm1658_vm1, %v1599_v16, -inf }
 0x1fe   : > { %v1646_v26 = vpop.f32.mrf.mxu3 }
 0x1ff   : > { %v1601_v0 = vpop.f32.mrf.mxu0  ;;  %v1647_v14 = vadd.f32 %v6126_v43, %v1646_v26 }
 0x200   : > { %v1602_v18 = vadd.f32 %v6126_v43, %v1601_v0  ;;  %v1709_v0 = vrot.slane %v1708_v57, 2 }
 0x202   : > { %v1714_v28 = vsel %vm1658_vm1, %v1602_v18, -inf }
 0x203   : > { %v1715_v10 = vmax.f32 %v1713_v31, %v1714_v28  ;;  %v1710_v28 = vmax.f32 %v1708_v57, %v1709_v0  ;;  %v1785_v31 = vsel %vm1658_vm1, %v1647_v14, -inf }
 0x204   : > { %v1631_v19 = vpop.f32.mrf.mxu1 }
 0x205   : > { %v1716_v49 = vrot.slane %v1715_v10, 4  ;;  %v1632_v54 = vadd.f32 %v6126_v43, %v1631_v19 }
 0x207   : > { %v1604_v21 = vpop.f32.mrf.mxu0  ;;  %v1717_v58 = vmax.f32 %v1715_v10, %v1716_v49  ;;  %v1759_v63 = vsel %vm1658_vm1, %v1632_v54, -inf  ;;  %v1626_v49 = vadd.f32 %v6126_v43, %v6306_v3 }
 0x208   : > { %v1605_v25 = vadd.f32 %v6126_v43, %v1604_v21  ;;  %v1760_v23 = vmax.f32 %v1758_v13, %v1759_v63 }
 0x209   : > { %v1718_v21 = vrot.slane %v1717_v58, 2 }
 0x20a   : > { %v1722_v32 = vsel %vm1658_vm1, %v1605_v25, -inf  ;;  %v1692_v25 = vmax.f32 %v1690_v52, %v1691_v2  ;;  %v1761_v10 = vrot.slane %v1760_v23, 4  ;;  %v6359_v52 = vld [vmem:[%s8106_s9] ss:$0 sm:$0xff]  ;;  %s8117_s9 = smov 104  }
 0x20c   : > { %v1693_v41 = vrot.slane %v1692_v25, 1 }
 0x20f   : > { %v1607_v11 = vpop.f32.mrf.mxu0 }
 0x210   : > { %v1608_v30 = vadd.f32 %v6126_v43, %v1607_v11 }
 0x212   : > { %v1723_v29 = vsel %vm1658_vm1, %v1608_v30, -inf  ;;  %v1683_v30 = vmax.f32 %v1681_v55, %v1682_v62 }
 0x213   : > { %v1724_v37 = vmax.f32 %v1722_v32, %v1723_v29  ;;  %v1649_v47 = vpop.f32.mrf.mxu3  ;;  %v1719_v29 = vmax.f32 %v1717_v58, %v1718_v21  ;;  %v1694_v58 = vmax.f32 %v1692_v25, %v1693_v41 }
 0x214   : > { %v1650_v45 = vadd.f32 %v6126_v43, %v1649_v47  ;;  %v1684_v20 = vrot.slane %v1683_v30, 1  ;;  %v1711_v47 = vrot.slane %v1710_v28, 1 }
 0x215   : > { %v1725_v50 = vrot.slane %v1724_v37, 4  ;;  %v1720_v48 = vrot.slane %v1719_v29, 1 }
 0x216   : > { %v1786_v5 = vsel %vm1658_vm1, %v1650_v45, -inf  ;;  %v1685_v3 = vmax.f32 %v1683_v30, %v1684_v20  ;;  %v1712_v44 = vmax.f32 %v1710_v28, %v1711_v47 }
 0x217   : > { %v1610_v59 = vpop.f32.mrf.mxu0  ;;  %v1726_v39 = vmax.f32 %v1724_v37, %v1725_v50  ;;  %v1787_v37 = vmax.f32 %v1785_v31, %v1786_v5  ;;  %v1721_v60 = vmax.f32 %v1719_v29, %v1720_v48 }
 0x218   : > { %v1611_v40 = vadd.f32 %v6126_v43, %v1610_v59  ;;  %v1675_v59 = vrot.slane %v1674_v42, 1 }
 0x219   : > { %v1727_v11 = vrot.slane %v1726_v39, 2  ;;  %v1788_v54 = vrot.slane %v1787_v37, 4 }
 0x21a   : > { %v1731_v26 = vsel %vm1658_vm1, %v1611_v40, -inf }
 0x21b   : > { %v1728_v24 = vmax.f32 %v1726_v39, %v1727_v11  ;;  %v6373_v45 = vmax.f32 %v1787_v37, %v1788_v54 }
 0x21d   : > { %v1729_v8 = vrot.slane %v1728_v24, 1 }
 0x21f   : > { %v1613_v12 = vpop.f32.mrf.mxu0  ;;  %v1730_v2 = vmax.f32 %v1728_v24, %v1729_v8 }
 0x220   : > { %v1614_v9 = vadd.f32 %v6126_v43, %v1613_v12 }
 0x222   : > { %v1732_v19 = vsel %vm1658_vm1, %v1614_v9, -inf  ;;  %v1777_v9 = vsel %vm1658_vm1, %v1644_v34, -inf }
 0x223   : > { %v1733_v15 = vmax.f32 %v1731_v26, %v1732_v19 }
 0x225   : > { %v1734_v55 = vrot.slane %v1733_v15, 4 }
 0x226   : > { %v1634_v46 = vpop.f32.mrf.mxu1 }
 0x227   : > { %v1616_v33 = vpop.f32.mrf.mxu0  ;;  %v1635_v27 = vadd.f32 %v6126_v43, %v1634_v46 }
 0x228   : > { %v1617_v61 = vadd.f32 %v6126_v43, %v1616_v33  ;;  %v1701_v33 = vmax.f32 %v1699_v51, %v1700_v6  ;;  %v6361_v51 = vmax.f32 %v1760_v23, %v1761_v10 }
 0x229   : > { %v1767_v46 = vsel %vm1658_vm1, %v1635_v27, -inf }
 0x22a   : > { %v1740_v12 = vsel %vm1658_vm1, %v1617_v61, -inf  ;;  %v1702_v38 = vrot.slane %v1701_v33, 1  ;;  %v1750_v61 = vsel %vm1658_vm1, %v1626_v49, -inf  ;;  %v1763_v63 = vrot.slane %v6361_v51, 2 }
 0x22c   : > { %v1703_v39 = vmax.f32 %v1701_v33, %v1702_v38 }
 0x231   : > { %v1619_v53 = vpop.f32.mrf.mxu0 }
 0x232   : > { %v1620_v56 = vadd.f32 %v6126_v43, %v1619_v53  ;;  %v1676_v53 = vmax.f32 %v1674_v42, %v1675_v59 }
 0x234   : > { %v1741_v4 = vsel %vm1658_vm1, %v1620_v56, -inf }
 0x235   : > { %v1742_v16 = vmax.f32 %v1740_v12, %v1741_v4 }
 0x237   : > { %v1743_v22 = vrot.slane %v1742_v16, 4 }
 0x239   : > { %v6363_v56 = vmax.f32 %v1742_v16, %v1743_v22 }
 0x23b   : > { %v1745_v4 = vrot.slane %v6363_v56, 2 }
 0x23e   : > { %v1652_v7 = vpop.f32.mrf.mxu3 }
 0x23f   : > { %v1653_v1 = vadd.f32 %v6126_v43, %v1652_v7 }
 0x241   : > { %v1794_v21 = vsel %vm1658_vm1, %v1653_v1, -inf }
 0x243   : > { %v1637_v35 = vpop.f32.mrf.mxu1 }
 0x244   : > { %v1638_v18 = vadd.f32 %v6126_v43, %v1637_v35  ;;  %v6369_v35 = vmax.f32 %v1733_v15, %v1734_v55 }
 0x246   : > { %v1768_v32 = vsel %vm1658_vm1, %v1638_v18, -inf }
 0x247   : > { %v1769_v50 = vmax.f32 %v1767_v46, %v1768_v32 }
 0x249   : > { %v1770_v42 = vrot.slane %v1769_v50, 4 }
 0x24b   : > { %v1771_v14 = vmax.f32 %v1769_v50, %v1770_v42  ;;  %v1746_v42 = vmax.f32 %v6363_v56, %v1745_v4 }
 0x25b   : > { %v1655_v17 = vpop.f32.mrf.mxu3 }
 0x25c   : > { %v1656_v57 = vadd.f32 %v6126_v43, %v1655_v17 }
 0x25e   : > { %v1795_v7 = vsel %vm1658_vm1, %v1656_v57, -inf }
 0x25f   : > { %v1796_v19 = vmax.f32 %v1794_v21, %v1795_v7 }
 0x261   : > { %v1797_v32 = vrot.slane %v1796_v19, 4 }
 0x262   : > { %v1888_v62 = vpop.f32.mrf.mxu2 }
 0x263   : > { %v1889_v6 = vadd.f32 %v6359_v52, %v1888_v62  ;;  %v1798_v49 = vmax.f32 %v1796_v19, %v1797_v32 }
 0x264   : > { %v1622_v0 = vpop.f32.mrf.mxu0 }
 0x265   : > { %v1623_v11 = vadd.f32 %v6126_v43, %v1622_v0  ;;  %v1896_v40 = vrot.slane %v1889_v6, 1  ;;  %v1897_v13 = vrot.slane %v1889_v6, 2  ;;  %v1898_v12 = vrot.slane %v1889_v6, 3 }
 0x266   : > { %v1899_v18 = vrot.slane %v1889_v6, 4  ;;  %v1900_v30 = vrot.slane %v1889_v6, 5  ;;  %v1901_v16 = vrot.slane %v1889_v6, 6  ;;  %v1902_v25 = vrot.slane %v1889_v6, 7 }
 0x267   : > { %v1749_v23 = vsel %vm1658_vm1, %v1623_v11, -inf  ;;  %v6380_v5 = vadd.f32 %v1896_v40, %v1676_v53  ;;  %v6382_v27 = vadd.f32 %v1897_v13, %v1685_v3  ;;  %v6384_v59 = vadd.f32 %v1898_v12, %v1694_v58 }
 0x268   : > { %v1751_v33 = vmax.f32 %v1749_v23, %v1750_v61  ;;  %v6386_v28 = vadd.f32 %v1889_v6, %v1667_v36  ;;  %v6388_v29 = vadd.f32 %v1899_v18, %v1703_v39  ;;  %v6390_v24 = vadd.f32 %v1900_v30, %v1712_v44 }
 0x269   : > { %v1960_v15 = vrot.slane %v6380_v5, 7  ;;  %v1963_v31 = vrot.slane %v6382_v27, 6  ;;  %v6394_v10 = vadd.f32 %v1901_v16, %v1721_v60  ;;  %v6396_v36 = vadd.f32 %v1902_v25, %v1730_v2 }
 0x26a   : > { %v1752_v26 = vrot.slane %v1751_v33, 4  ;;  %v1966_v41 = vrot.slane %v6384_v59, 5  ;;  %v1969_v17 = vrot.slane %v6388_v29, 4  ;;  %v1972_v48 = vrot.slane %v6390_v24, 3 }
 0x26b   : > { %v1962_v20 = vsel %vm1961_vm2, %v1960_v15, %v6386_v28  ;;  %v1975_v8 = vrot.slane %v6394_v10, 2  ;;  %v1978_v54 = vrot.slane %v6396_v36, 1  ;;  %v1736_v3 = vrot.slane %v6369_v35, 2 }
 0x26c   : > { %v1753_v37 = vmax.f32 %v1751_v33, %v1752_v26  ;;  %v1640_v22 = vpop.f32.mrf.mxu1  ;;  %v1965_v46 = vsel %vm1964_vm3, %v1963_v31, %v1962_v20  ;;  %v1772_v58 = vrot.slane %v1771_v14, 2  ;;  %v1764_v44 = vmax.f32 %v6361_v51, %v1763_v63 }
 0x26d   : > { %v1641_v38 = vadd.f32 %v6126_v43, %v1640_v22  ;;  %v1968_v47 = vsel %vm1967_vm4, %v1966_v41, %v1965_v46  ;;  %v1790_v60 = vrot.slane %v6373_v45, 2  ;;  %v1799_v62 = vrot.slane %v1798_v49, 2 }
 0x26e   : > { %v1971_v53 = vsel %vm1970_vm5, %v1969_v17, %v1968_v47  ;;  %v1754_v34 = vrot.slane %v1753_v37, 2  ;;  %v1737_v6 = vmax.f32 %v6369_v35, %v1736_v3  ;;  %v1773_v7 = vmax.f32 %v1771_v14, %v1772_v58 }
 0x26f   : > { %v1776_v50 = vsel %vm1658_vm1, %v1641_v38, -inf  ;;  %v1974_v55 = vsel %vm1973_vm6, %v1972_v48, %v1971_v53  ;;  %v1765_v21 = vrot.slane %v1764_v44, 1  ;;  %v1791_v11 = vmax.f32 %v6373_v45, %v1790_v60 }
 0x270   : > { %v1778_v43 = vmax.f32 %v1776_v50, %v1777_v9  ;;  %v1977_v57 = vsel %vm1976_vm7, %v1975_v8, %v1974_v55  ;;  %v1755_v2 = vmax.f32 %v1753_v37, %v1754_v34  ;;  %v1747_v40 = vrot.slane %v1746_v42, 1 }
 0x271   : > { %v1980_v1 = vsel %vm1979_vm8, %v1978_v54, %v1977_v57  ;;  %v1800_v13 = vmax.f32 %v1798_v49, %v1799_v62  ;;  %v1738_v12 = vrot.slane %v1737_v6, 1  ;;  %v1774_v18 = vrot.slane %v1773_v7, 1 }
 0x272   : > { %v1779_v39 = vrot.slane %v1778_v43, 4  ;;  %v1997_v61 = vsel %vm1658_vm1, %v1980_v1, 0.0  ;;  %v1756_v51 = vrot.slane %v1755_v2, 1  ;;  %v1766_v56 = vmax.f32 %v1764_v44, %v1765_v21 }
 0x273   : > { %1998 = vadd.xlane.f32.xlu2 %v1997_v61  ;;  %v1792_v4 = vrot.slane %v1791_v11, 1  ;;  %v1748_v16 = vmax.f32 %v1746_v42, %v1747_v40  ;;  %v1801_v25 = vrot.slane %v1800_v13, 1  ;;  %v1739_v31 = vmax.f32 %v1737_v6, %v1738_v12 }
 0x274   : > { %v1780_v9 = vmax.f32 %v1778_v43, %v1779_v39  ;;  %v1757_v35 = vmax.f32 %v1755_v2, %v1756_v51  ;;  %v1775_v32 = vmax.f32 %v1773_v7, %v1774_v18  ;;  %v5616_v2 = vmov 32.0  }
 0x275   : > { %v1802_v17 = vmax.f32 %v1800_v13, %v1801_v25  ;;  %5455 = vrcp.f32 %v5616_v2 }
 0x276   : > { %v1781_v0 = vrot.slane %v1780_v9, 2 }
 0x278   : > { %v1782_v63 = vmax.f32 %v1780_v9, %v1781_v0 }
 0x27a   : > { %v1783_v30 = vrot.slane %v1782_v63, 1  ;;  %v1891_v19 = vpop.f32.mrf.mxu2 }
 0x27b   : > { %v1892_v23 = vadd.f32 %v6359_v52, %v1891_v19  ;;  %v1793_v52 = vmax.f32 %v1791_v11, %v1792_v4  ;;  %v5456_v9 = vpop.eup %5455 }
 0x27c   : > { %v1784_v14 = vmax.f32 %v1782_v63, %v1783_v30  ;;  %v2004_v6 = vmul.f32 32.0, %v5456_v9  ;;  %vm2008_vm9 = vweird.f32 %v5456_v9 }
 0x27d   : > { %v1903_v33 = vrot.slane %v1892_v23, 1  ;;  %v1904_v26 = vrot.slane %v1892_v23, 2  ;;  %v1905_v15 = vrot.slane %v1892_v23, 3  ;;  %v1906_v45 = vrot.slane %v1892_v23, 4 }
 0x27e   : > { %v1907_v37 = vrot.slane %v1892_v23, 5  ;;  %v1908_v22 = vrot.slane %v1892_v23, 6  ;;  %v1909_v20 = vrot.slane %v1892_v23, 7  ;;  %v6429_v48 = vadd.f32 %v1892_v23, %v1739_v31 }
 0x27f   : > { %v6421_v41 = vadd.f32 %v1903_v33, %v1748_v16  ;;  %v6423_v38 = vadd.f32 %v1904_v26, %v1757_v35  ;;  %v6425_v46 = vadd.f32 %v1905_v15, %v1766_v56  ;;  %v6427_v47 = vadd.f32 %v1906_v45, %v1775_v32 }
 0x280   : > { %v6431_v49 = vadd.f32 %v1907_v37, %v1784_v14  ;;  %v6435_v8 = vadd.f32 %v1908_v22, %v1793_v52  ;;  %v6437_v34 = vadd.f32 %v1909_v20, %v1802_v17  ;;  %v2005_v7 = vsub.f32 1.0, %v2004_v6 }
 0x281   : > { %v1981_v50 = vrot.slane %v6421_v41, 7  ;;  %v1983_v53 = vrot.slane %v6423_v38, 6  ;;  %v1985_v55 = vrot.slane %v6425_v46, 5  ;;  %v1987_v57 = vrot.slane %v6427_v47, 4 }
 0x282   : > { %v1989_v58 = vrot.slane %v6431_v49, 3  ;;  %v1991_v1 = vrot.slane %v6435_v8, 2  ;;  %v1993_v60 = vrot.slane %v6437_v34, 1  ;;  %v2006_v0 = vmul.f32 %v5456_v9, %v2005_v7 }
 0x283   : > { %v1982_v43 = vsel %vm1961_vm2, %v1981_v50, %v6429_v48 }
 0x284   : > { %v1984_v54 = vsel %vm1964_vm3, %v1983_v53, %v1982_v43  ;;  %v2007_v21 = vadd.f32 %v5456_v9, %v2006_v0 }
 0x285   : > { %v1986_v3 = vsel %vm1967_vm4, %v1985_v55, %v1984_v54 }
 0x286   : > { %v1988_v39 = vsel %vm1970_vm5, %v1987_v57, %v1986_v3  ;;  %v6453_v11 = vsel %vm2008_vm9, %v5456_v9, %v2007_v21  ;;  %vm2325_vm9 = vcmask 64512  }
 0x287   : > { %v1990_v44 = vsel %vm1973_vm6, %v1989_v58, %v1988_v39 }
 0x288   : > { %v1992_v61 = vsel %vm1976_vm7, %v1991_v1, %v1990_v44 }
 0x289   : > { %v1994_v42 = vsel %vm1979_vm8, %v1993_v60, %v1992_v61 }
 0x28a   : > { %v2000_v62 = vsel %vm1658_vm1, %v1994_v42, 0.0 }
 0x28b   : > { %2001 = vadd.xlane.f32.xlu0 %v2000_v62 }
 0x2e6   : > { %v1999_v40 = vpop.xlane.xlu2 %1998 }
 0x2e7   : > { %v2010_v13 = vmul.f32 %v6453_v11, %v1999_v40 }
 0x2e9   : > { %v2014_v51 = vrot.slane %v2010_v13, 1  ;;  %v2015_v63 = vrot.slane %v2010_v13, 2  ;;  %v2016_v12 = vrot.slane %v2010_v13, 3  ;;  %v2017_v18 = vrot.slane %v2010_v13, 4 }
 0x2ea   : > { %v2018_v30 = vrot.slane %v2010_v13, 5  ;;  %v2019_v19 = vrot.slane %v2010_v13, 6  ;;  %v2020_v56 = vrot.slane %v2010_v13, 7  ;;  %v6457_v4 = vsub.f32 %v6386_v28, %v2010_v13 }
 0x2eb   : > { %v6460_v23 = vsub.f32 %v6380_v5, %v2014_v51  ;;  %v6463_v16 = vsub.f32 %v6382_v27, %v2015_v63  ;;  %v6466_v25 = vsub.f32 %v6384_v59, %v2016_v12  ;;  %v6469_v35 = vsub.f32 %v6388_v29, %v2017_v18 }
 0x2ec   : > { %v6472_v14 = vsub.f32 %v6390_v24, %v2018_v30  ;;  %v6475_v33 = vsub.f32 %v6394_v10, %v2019_v19  ;;  %v6478_v26 = vsub.f32 %v6396_v36, %v2020_v56  ;;  %v2060_v37 = vmul.f32 %v6457_v4, %v6457_v4 }
 0x2ed   : > { %v2061_v15 = vmul.f32 %v6460_v23, %v6460_v23  ;;  %v2062_v45 = vmul.f32 %v6463_v16, %v6463_v16  ;;  %v2063_v31 = vmul.f32 %v6466_v25, %v6466_v25  ;;  %v2064_v32 = vmul.f32 %v6469_v35, %v6469_v35 }
 0x2ee   : > { %v2065_v22 = vmul.f32 %v6472_v14, %v6472_v14  ;;  %v2066_v17 = vmul.f32 %v6475_v33, %v6475_v33  ;;  %v2067_v50 = vmul.f32 %v6478_v26, %v6478_v26 }
 0x2ef   : > { %v2092_v20 = vrot.slane %v2061_v15, 7  ;;  %v2094_v52 = vrot.slane %v2062_v45, 6  ;;  %v2096_v43 = vrot.slane %v2063_v31, 5  ;;  %v2098_v54 = vrot.slane %v2064_v32, 4 }
 0x2f0   : > { %v2100_v3 = vrot.slane %v2065_v22, 3  ;;  %v2102_v39 = vrot.slane %v2066_v17, 2  ;;  %v2104_v44 = vrot.slane %v2067_v50, 1 }
 0x2f1   : > { %v2093_v53 = vsel %vm1961_vm2, %v2092_v20, %v2060_v37 }
 0x2f2   : > { %v2095_v55 = vsel %vm1964_vm3, %v2094_v52, %v2093_v53 }
 0x2f3   : > { %v2097_v57 = vsel %vm1967_vm4, %v2096_v43, %v2095_v55 }
 0x2f4   : > { %v2099_v58 = vsel %vm1970_vm5, %v2098_v54, %v2097_v57 }
 0x2f5   : > { %v2101_v1 = vsel %vm1973_vm6, %v2100_v3, %v2099_v58 }
 0x2f6   : > { %v2103_v60 = vsel %vm1976_vm7, %v2102_v39, %v2101_v1 }
 0x2f7   : > { %v2105_v61 = vsel %vm1979_vm8, %v2104_v44, %v2103_v60 }
 0x2f8   : > { %v2122_v42 = vsel %vm1658_vm1, %v2105_v61, 0.0 }
 0x2f9   : > { %2123 = vadd.xlane.f32.xlu1 %v2122_v42 }
 0x2fe   : > { %v2002_v62 = vpop.xlane.xlu0 %2001 }
 0x2ff   : > { %v2011_v2 = vmul.f32 %v6453_v11, %v2002_v62 }
 0x301   : > { %v2021_v9 = vrot.slane %v2011_v2, 1  ;;  %v2022_v6 = vrot.slane %v2011_v2, 2  ;;  %v2023_v7 = vrot.slane %v2011_v2, 3  ;;  %v2024_v0 = vrot.slane %v2011_v2, 4 }
 0x302   : > { %v2025_v21 = vrot.slane %v2011_v2, 5  ;;  %v2026_v40 = vrot.slane %v2011_v2, 6  ;;  %v2027_v13 = vrot.slane %v2011_v2, 7  ;;  %v6506_v51 = vsub.f32 %v6429_v48, %v2011_v2 }
 0x303   : > { %v6509_v63 = vsub.f32 %v6421_v41, %v2021_v9  ;;  %v6512_v12 = vsub.f32 %v6423_v38, %v2022_v6  ;;  %v6515_v18 = vsub.f32 %v6425_v46, %v2023_v7  ;;  %v6518_v30 = vsub.f32 %v6427_v47, %v2024_v0  ;;  %v2241_v6 = vld [vmem:[%s8034_s12 + $0x18] sm:$0xff]  ;;  %v2240_v0 = vld [vmem:[%s8034_s12 + $0x10] sm:$0xff] }
 0x304   : > { %v6521_v19 = vsub.f32 %v6431_v49, %v2025_v21  ;;  %v6524_v56 = vsub.f32 %v6435_v8, %v2026_v40  ;;  %v6527_v15 = vsub.f32 %v6437_v34, %v2027_v13  ;;  %v2068_v22 = vmul.f32 %v6506_v51, %v6506_v51  ;;  %2306 = vmatpush.msrb.mxu2 %v2241_v6  ;;  %v2239_v21 = vld [vmem:[%s8034_s12 + $0x8] sm:$0xff]  ;;  %v2238_v40 = vld [vmem:[%s8034_s12] sm:$0xff] }
 0x305   : > { %v2069_v45 = vmul.f32 %v6509_v63, %v6509_v63  ;;  %v2070_v31 = vmul.f32 %v6512_v12, %v6512_v12  ;;  %v2071_v32 = vmul.f32 %v6515_v18, %v6515_v18  ;;  %v2072_v37 = vmul.f32 %v6518_v30, %v6518_v30 }
 0x306   : > { %v2073_v20 = vmul.f32 %v6521_v19, %v6521_v19  ;;  %v2074_v50 = vmul.f32 %v6524_v56, %v6524_v56  ;;  %v2075_v53 = vmul.f32 %v6527_v15, %v6527_v15  ;;  %2307 = vmatpush.msrb.mxu2 %v2240_v0 }
 0x307   : > { %v2106_v52 = vrot.slane %v2069_v45, 7  ;;  %v2108_v17 = vrot.slane %v2070_v31, 6  ;;  %v2110_v55 = vrot.slane %v2071_v32, 5  ;;  %v2112_v57 = vrot.slane %v2072_v37, 4 }
 0x308   : > { %v2114_v58 = vrot.slane %v2073_v20, 3  ;;  %v2116_v1 = vrot.slane %v2074_v50, 2  ;;  %v2118_v60 = vrot.slane %v2075_v53, 1  ;;  %2308 = vmatpush.msrb.mxu2 %v2239_v21 }
 0x309   : > { %v2107_v43 = vsel %vm1961_vm2, %v2106_v52, %v2068_v22 }
 0x30a   : > { %v2109_v54 = vsel %vm1964_vm3, %v2108_v17, %v2107_v43  ;;  %2309 = vmatpush.msrb.mxu2 %v2238_v40 }
 0x30b   : > { %v2111_v3 = vsel %vm1967_vm4, %v2110_v55, %v2109_v54 }
 0x30c   : > { %v2113_v39 = vsel %vm1970_vm5, %v2112_v57, %v2111_v3 }
 0x30d   : > { %v2115_v44 = vsel %vm1973_vm6, %v2114_v58, %v2113_v39  ;;  %v6571_v58 = vld [vmem:[%s8107_s10] ss:$0 sm:$0xff] }
 0x30e   : > { %v2117_v61 = vsel %vm1976_vm7, %v2116_v1, %v2115_v44 }
 0x30f   : > { %v2119_v42 = vsel %vm1979_vm8, %v2118_v60, %v2117_v61 }
 0x310   : > { %v2125_v62 = vsel %vm1658_vm1, %v2119_v42, 0.0 }
 0x311   : > { %2126 = vadd.xlane.f32.xlu2 %v2125_v62 }
 0x36c   : > { %v2124_v2 = vpop.xlane.xlu1 %2123 }
 0x36d   : > { %v2128_v9 = vmul.f32 %v2124_v2, %v6453_v11 }
 0x36f   : > { %v2130_v7 = vadd.f32 1e-05, %v2128_v9 }
 0x371   : > { %5457 = vrsqrt.f32 %v2130_v7  ;;  %vm2138_vm11 = vweird.f32 %v2130_v7 }
 0x377   : > { %v5458_v13 = vpop.eup %5457 }
 0x378   : > { %v2133_v45 = vmul.f32 %v5458_v13, %v2130_v7  ;;  %vm2139_vm10 = vweird.f32 %v5458_v13 }
 0x379   : > { %vm2140_vm12 = vmor %vm2138_vm11, %vm2139_vm10  ;;  %vm2359_vm10 = vcmask 130048   ;;  %vm8074_vm11 = vcmask 195584  }
 0x37a   : > { %v2134_v31 = vmul.f32 %v5458_v13, %v2133_v45 }
 0x37c   : > { %v2135_v32 = vmul.f32 0.5, %v2134_v31 }
 0x37e   : > { %v2136_v37 = vsub.f32 1.5, %v2135_v32 }
 0x380   : > { %v2137_v22 = vmul.f32 %v5458_v13, %v2136_v37 }
 0x382   : > { %v2141_v20 = vsel %vm2140_vm12, %v5458_v13, %v2137_v22 }
 0x383   : > { %v2154_v52 = vrot.slane %v2141_v20, 1  ;;  %v2155_v17 = vrot.slane %v2141_v20, 2  ;;  %v2184_v50 = vmul.f32 %v2141_v20, %v6457_v4  ;;  %v2156_v43 = vrot.slane %v2141_v20, 3 }
 0x384   : > { %v2127_v53 = vpop.xlane.xlu2 %2126  ;;  %v2157_v54 = vrot.slane %v2141_v20, 4  ;;  %v2158_v57 = vrot.slane %v2141_v20, 5  ;;  %v2159_v3 = vrot.slane %v2141_v20, 6  ;;  %v2160_v39 = vrot.slane %v2141_v20, 7 }
 0x385   : > { %v2129_v55 = vmul.f32 %v2127_v53, %v6453_v11  ;;  %v2185_v1 = vmul.f32 %v2154_v52, %v6460_v23  ;;  %v2186_v44 = vmul.f32 %v2155_v17, %v6463_v16  ;;  %v2187_v60 = vmul.f32 %v2156_v43, %v6466_v25 }
 0x386   : > { %v2188_v61 = vmul.f32 %v2157_v54, %v6469_v35  ;;  %v2189_v42 = vmul.f32 %v2158_v57, %v6472_v14  ;;  %v2190_v62 = vmul.f32 %v2159_v3, %v6475_v33  ;;  %v2191_v2 = vmul.f32 %v2160_v39, %v6478_v26  ;;  %v6588_v35 = vld [vmem:[%s8108_s11] ss:$0 sm:$0xff] }
 0x387   : > { %v2131_v4 = vadd.f32 1e-05, %v2129_v55  ;;  %v2204_v9 = vmul.f32 %v6571_v58, %v2185_v1  ;;  %v2205_v6 = vmul.f32 %v6571_v58, %v2186_v44  ;;  %v2203_v23 = vmul.f32 %v6571_v58, %v2184_v50 }
 0x388   : > { %v2206_v16 = vmul.f32 %v6571_v58, %v2187_v60  ;;  %v2207_v25 = vmul.f32 %v6571_v58, %v2188_v61  ;;  %v2208_v14 = vmul.f32 %v6571_v58, %v2189_v42  ;;  %v2209_v33 = vmul.f32 %v6571_v58, %v2190_v62 }
 0x389   : > { %5459 = vrsqrt.f32 %v2131_v4  ;;  %v2210_v26 = vmul.f32 %v6571_v58, %v2191_v2  ;;  %v2223_v7 = vadd.f32 %v6588_v35, %v2204_v9  ;;  %v2224_v0 = vadd.f32 %v6588_v35, %v2205_v6 }
 0x38a   : > { %v2225_v21 = vadd.f32 %v6588_v35, %v2206_v16  ;;  %v2226_v40 = vadd.f32 %v6588_v35, %v2207_v25  ;;  %v2222_v13 = vadd.f32 %v6588_v35, %v2203_v23  ;;  %v2227_v45 = vadd.f32 %v6588_v35, %v2208_v14 }
 0x38b   : > { %v2262_v31 = vrot.slane %v2223_v7, 7  ;;  %v2264_v32 = vrot.slane %v2224_v0, 6  ;;  %v2228_v37 = vadd.f32 %v6588_v35, %v2209_v33  ;;  %v2229_v20 = vadd.f32 %v6588_v35, %v2210_v26 }
 0x38c   : > { %v2266_v17 = vrot.slane %v2225_v21, 5  ;;  %v2268_v43 = vrot.slane %v2226_v40, 4  ;;  %v2270_v54 = vrot.slane %v2227_v45, 3  ;;  %vm2148_vm14 = vweird.f32 %v2131_v4 }
 0x38d   : > { %v2263_v52 = vsel %vm1961_vm2, %v2262_v31, %v2222_v13  ;;  %v2272_v39 = vrot.slane %v2228_v37, 2  ;;  %v2274_v44 = vrot.slane %v2229_v20, 1 }
 0x38e   : > { %v2265_v53 = vsel %vm1964_vm3, %v2264_v32, %v2263_v52 }
 0x38f   : > { %v5460_v22 = vpop.eup %5459  ;;  %v2267_v55 = vsel %vm1967_vm4, %v2266_v17, %v2265_v53 }
 0x390   : > { %v2143_v50 = vmul.f32 %v5460_v22, %v2131_v4  ;;  %v2269_v3 = vsel %vm1970_vm5, %v2268_v43, %v2267_v55  ;;  %vm2149_vm13 = vweird.f32 %v5460_v22 }
 0x391   : > { %v2271_v1 = vsel %vm1973_vm6, %v2270_v54, %v2269_v3  ;;  %vm2150_vm15 = vmor %vm2148_vm14, %vm2149_vm13 }
 0x392   : > { %v2144_v57 = vmul.f32 %v5460_v22, %v2143_v50  ;;  %v2273_v61 = vsel %vm1976_vm7, %v2272_v39, %v2271_v1 }
 0x393   : > { %v2275_v42 = vsel %vm1979_vm8, %v2274_v44, %v2273_v61 }
 0x394   : > { %v2145_v60 = vmul.f32 0.5, %v2144_v57  ;;  %5158 = vmatmul.msk.f32.vlgmr.msrb.gmra.mxu2 %vm1658_vm1, %v2275_v42 }
 0x396   : > { %v2146_v62 = vsub.f32 1.5, %v2145_v60 }
 0x398   : > { %v2147_v2 = vmul.f32 %v5460_v22, %v2146_v62 }
 0x39a   : > { %v2151_v9 = vsel %vm2150_vm15, %v5460_v22, %v2147_v2 }
 0x39b   : > { %v2161_v6 = vrot.slane %v2151_v9, 1  ;;  %v2162_v23 = vrot.slane %v2151_v9, 2  ;;  %v2163_v16 = vrot.slane %v2151_v9, 3  ;;  %v2164_v25 = vrot.slane %v2151_v9, 4 }
 0x39c   : > { %v2165_v14 = vrot.slane %v2151_v9, 5  ;;  %v2166_v33 = vrot.slane %v2151_v9, 6  ;;  %v2167_v26 = vrot.slane %v2151_v9, 7  ;;  %v2192_v7 = vmul.f32 %v2151_v9, %v6506_v51 }
 0x39d   : > { %v2193_v0 = vmul.f32 %v2161_v6, %v6509_v63  ;;  %v2194_v21 = vmul.f32 %v2162_v23, %v6512_v12  ;;  %v2195_v40 = vmul.f32 %v2163_v16, %v6515_v18  ;;  %v2196_v13 = vmul.f32 %v2164_v25, %v6518_v30 }
 0x39e   : > { %v2197_v4 = vmul.f32 %v2165_v14, %v6521_v19  ;;  %v2198_v45 = vmul.f32 %v2166_v33, %v6524_v56  ;;  %v2199_v31 = vmul.f32 %v2167_v26, %v6527_v15  ;;  %v2211_v32 = vmul.f32 %v6571_v58, %v2192_v7 }
 0x39f   : > { %v2212_v37 = vmul.f32 %v6571_v58, %v2193_v0  ;;  %v2213_v51 = vmul.f32 %v6571_v58, %v2194_v21  ;;  %v2214_v63 = vmul.f32 %v6571_v58, %v2195_v40  ;;  %v2215_v12 = vmul.f32 %v6571_v58, %v2196_v13 }
 0x3a0   : > { %v2216_v18 = vmul.f32 %v6571_v58, %v2197_v4  ;;  %v2217_v30 = vmul.f32 %v6571_v58, %v2198_v45  ;;  %v2218_v19 = vmul.f32 %v6571_v58, %v2199_v31  ;;  %v2230_v52 = vadd.f32 %v6588_v35, %v2211_v32 }
 0x3a1   : > { %v2231_v56 = vadd.f32 %v6588_v35, %v2212_v37  ;;  %v2232_v15 = vadd.f32 %v6588_v35, %v2213_v51  ;;  %v2233_v22 = vadd.f32 %v6588_v35, %v2214_v63  ;;  %v2234_v20 = vadd.f32 %v6588_v35, %v2215_v12 }
 0x3a2   : > { %v2235_v17 = vadd.f32 %v6588_v35, %v2216_v18  ;;  %v2236_v43 = vadd.f32 %v6588_v35, %v2217_v30  ;;  %v2237_v55 = vadd.f32 %v6588_v35, %v2218_v19  ;;  %v5439_v35 = vld [vmem:[%s8035_s13] ss:$0 sm:$0xff] }
 0x3a3   : > { %v2276_v50 = vrot.slane %v2231_v56, 7  ;;  %v2278_v53 = vrot.slane %v2232_v15, 6  ;;  %v2280_v54 = vrot.slane %v2233_v22, 5  ;;  %v2282_v3 = vrot.slane %v2234_v20, 4 }
 0x3a4   : > { %v2284_v1 = vrot.slane %v2235_v17, 3  ;;  %v2286_v60 = vrot.slane %v2236_v43, 2  ;;  %v2288_v42 = vrot.slane %v2237_v55, 1 }
 0x3a5   : > { %v2277_v58 = vsel %vm1961_vm2, %v2276_v50, %v2230_v52 }
 0x3a6   : > { %v2279_v57 = vsel %vm1964_vm3, %v2278_v53, %v2277_v58 }
 0x3a7   : > { %v2281_v39 = vsel %vm1967_vm4, %v2280_v54, %v2279_v57 }
 0x3a8   : > { %v2283_v44 = vsel %vm1970_vm5, %v2282_v3, %v2281_v39 }
 0x3a9   : > { %v2285_v61 = vsel %vm1973_vm6, %v2284_v1, %v2283_v44 }
 0x3aa   : > { %v2287_v62 = vsel %vm1976_vm7, %v2286_v60, %v2285_v61 }
 0x3ab   : > { %v2289_v2 = vsel %vm1979_vm8, %v2288_v42, %v2287_v62 }
 0x3ac   : > { %5159 = vmatmul.msk.f32.gmra.mxu2 %vm1658_vm1, %v2289_v2 }
 0x417   : > { %v2311_v9 = vpop.f32.mrf.mxu2 }
 0x418   : > { %v2312_v6 = vadd.f32 %v5439_v35, %v2311_v9 }
 0x41a   : > { %2321 = vrot.lane.b32.xlu0 %v2312_v6, %s8071_s29  ;;  %v2317_v14 = vmul.f32 0.35355338, %v2312_v6 }
 0x422   : > { %2421 = vrot.lane.b32.xlu0 %v2312_v6, %s8067_s4 }
 0x42f   : > { %v2314_v23 = vpop.f32.mrf.mxu2 }
 0x430   : > { %v2315_v16 = vadd.f32 %v5439_v35, %v2314_v23 }
 0x432   : > { %2423 = vrot.lane.b32.xlu1 %v2315_v16, %s8067_s4  ;;  %2323 = vrot.lane.b32.xlu2 %v2315_v16, %s8071_s29  ;;  %v6648_v25 = vmul.f32 0.35355338, %v2315_v16  ;;  %v6664_v32 = vpack.i.bf16 %v2312_v6, %v2315_v16  ;;  %s8109_s29 = smov 96   ;;  %s8110_s4 = smov 88  }
 0x43a   : > { %2419 = vrot.lane.b32.xlu1 %v6648_v25, %s8065_s1  ;;  %2417 = vrot.lane.b32.xlu2 %v2317_v14, %s8065_s1  ;;  %s8111_s1 = smov 120  }
 0x48c   : > { %v2324_v33 = vpop.permute.xlu2 %2323  ;;  %v2322_v26 = vpop.permute.xlu0 %2321 }
 0x48d   : > { %5160 = vmatpush.xpose.msk.msrb.mxu3 %vm2325_vm9, %v2324_v33 }
 0x491   : > { %5161 = vmatpush.xpose.msk.msrb.mxu3 %vm2325_vm9, %v2322_v26 }
 0x494   : > { %5162 = vmatmul.msk.f32.vlgmr.msrb.gmra.mxu3 %vm2325_vm9, %v2317_v14  ;;  %v2422_v0 = vpop.permute.xlu0 %2421  ;;  %v2418_v21 = vpop.permute.xlu2 %2417 }
 0x49c   : > { %5163 = vmatmul.msk.f32.gmra.mxu3 %vm2325_vm9, %v6648_v25 }
 0x4a4   : > { %v2424_v7 = vpop.permute.xlu1 %2423 }
 0x4a5   : > { %5166 = vmatpush.xpose.msk.msra.mxu3 %vm2325_vm9, %v2424_v7 }
 0x4a9   : > { %5167 = vmatpush.xpose.msk.msra.mxu3 %vm2325_vm9, %v2422_v0 }
 0x4ac   : > { %5168 = vmatmul.msk.f32.vlgmr.msra.gmra.mxu3 %vm2325_vm9, %v2418_v21  ;;  %v2420_v40 = vpop.permute.xlu1 %2419 }
 0x4b4   : > { %5169 = vmatmul.msk.f32.gmra.mxu3 %vm2325_vm9, %v2420_v40 }
 0x517   : > { %v2353_v13 = vpop.f32.mrf.mxu3 }
 0x518   : > { %v2360_v4 = vsel %vm2359_vm10, %v2353_v13, -inf }
 0x519   : > { %2361 = vmax.xlane.f32.xlu0 %v2360_v4 }
 0x51f   : > { %v2356_v45 = vpop.f32.mrf.mxu3 }
 0x520   : > { %v2363_v31 = vsel %vm2359_vm10, %v2356_v45, -inf }
 0x521   : > { %2364 = vmax.xlane.f32.xlu1 %v2363_v31 }
 0x52d   : > { %5398 = vrot.lane.b32.xlu0 %v6664_v32, %s8053_s30  ;;  %s8054_s30 = smov 104  }
 0x52f   : > { %v2450_v37 = vpop.f32.mrf.mxu3 }
 0x530   : > { %v2456_v51 = vsel %vm2359_vm10, %v2450_v37, -inf }
 0x531   : > { %2457 = vmax.xlane.f32.xlu2 %v2456_v51 }
 0x535   : > { %2513 = vrot.lane.b32.xlu0 %v2317_v14, %s8063_s7 }
 0x537   : > { %v2453_v63 = vpop.f32.mrf.mxu3 }
 0x538   : > { %v2459_v12 = vsel %vm2359_vm10, %v2453_v63, -inf }
 0x53a   : > { %5393 = vrot.lane.b32.xlu1 %v6664_v32, %s8060_s0  ;;  %s8075_s0 = smov 24  }
 0x542   : > { %2517 = vrot.lane.b32.xlu1 %v2312_v6, %s8061_s27 }
 0x549   : > { %2519 = vrot.lane.b32.xlu2 %v2315_v16, %s8061_s27  ;;  %s8115_s27 = smov 64  }
 0x54a   : > { %2615 = vrot.lane.b32.xlu1 %v2315_v16, %s8057_s8 }
 0x552   : > { %2609 = vrot.lane.b32.xlu1 %v2317_v14, %s8054_s30 }
 0x55f   : > { %2460 = vmax.xlane.f32.xlu0 %v2459_v12 }
 0x573   : > { %2613 = vrot.lane.b32.xlu0 %v2312_v6, %s8057_s8  ;;  %s8069_s8 = smov 8  }
 0x58c   : > { %v2362_v18 = vpop.xlane.xlu0 %2361 }
 0x58d   : > { %v2366_v30 = vsub.f32 %v2353_v13, %v2362_v18 }
 0x58f   : > { %v2368_v19 = vmul.f32 1.442695, %v2366_v30 }
 0x591   : > { %5461 = vpow2.f32 %v2368_v19 }
 0x594   : > { %v2365_v56 = vpop.xlane.xlu1 %2364 }
 0x595   : > { %v2367_v15 = vsub.f32 %v2356_v45, %v2365_v56 }
 0x597   : > { %v5462_v22 = vpop.eup %5461  ;;  %v2370_v20 = vmul.f32 1.442695, %v2367_v15 }
 0x598   : > { %v2372_v52 = vsel %vm2359_vm10, %v5462_v22, 0.0 }
 0x599   : > { %5463 = vpow2.f32 %v2370_v20  ;;  %2373 = vadd.xlane.f32.xlu2 %v2372_v52 }
 0x59f   : > { %v5464_v17 = vpop.eup %5463  ;;  %v5399_v50 = vpop.permute.xlu0 %5398 }
 0x5a0   : > { %v2375_v53 = vsel %vm2359_vm10, %v5464_v17, 0.0  ;;  %v5400_v43 = vunpack.i.l.bf16 %v5399_v50  ;;  %v5401_v55 = vunpack.i.h.bf16 %v5399_v50 }
 0x5a1   : > { %2376 = vadd.xlane.f32.xlu2 %v2375_v53 }
 0x5a2   : > { %2504 = vmatpush.msrb.mxu1 %v5400_v43 }
 0x5a4   : > { %2505 = vmatpush.msrb.mxu1 %v5401_v55  ;;  %v2458_v58 = vpop.xlane.xlu2 %2457 }
 0x5a5   : > { %v2462_v54 = vsub.f32 %v2450_v37, %v2458_v58 }
 0x5a7   : > { %v2464_v57 = vmul.f32 1.442695, %v2462_v54  ;;  %v2514_v2 = vpop.permute.xlu0 %2513 }
 0x5a9   : > { %5465 = vpow2.f32 %v2464_v57 }
 0x5ac   : > { %v5394_v3 = vpop.permute.xlu1 %5393  ;;  %v2520_v61 = vpop.permute.xlu2 %2519 }
 0x5ad   : > { %v5395_v39 = vunpack.i.l.bf16 %v5394_v3  ;;  %v5396_v44 = vunpack.i.h.bf16 %v5394_v3 }
 0x5af   : > { %v5466_v1 = vpop.eup %5465  ;;  %2408 = vmatpush.msra.mxu2 %v5395_v39 }
 0x5b0   : > { %v2468_v60 = vsel %vm2359_vm10, %v5466_v1, 0.0 }
 0x5b1   : > { %2469 = vadd.xlane.f32.xlu0 %v2468_v60  ;;  %2409 = vmatpush.msra.mxu2 %v5396_v44 }
 0x5b3   : > { %5172 = vmatpush.xpose.msk.msrb.mxu2 %vm2325_vm9, %v2520_v61 }
 0x5b4   : > { %v2518_v42 = vpop.permute.xlu1 %2517 }
 0x5b7   : > { %5173 = vmatpush.xpose.msk.msrb.mxu2 %vm2325_vm9, %v2518_v42 }
 0x5bc   : > { %v2616_v62 = vpop.permute.xlu1 %2615 }
 0x5bd   : > { %5178 = vmatpush.xpose.msk.msra.mxu1 %vm2325_vm9, %v2616_v62 }
 0x5c5   : > { %2611 = vrot.lane.b32.xlu0 %v6648_v25, %s8054_s30  ;;  %s8056_s30 = smov 48  }
 0x5d2   : > { %v2461_v35 = vpop.xlane.xlu0 %2460 }
 0x5d3   : > { %v2463_v9 = vsub.f32 %v2453_v63, %v2461_v35  ;;  %v2610_v63 = vpop.permute.xlu1 %2609 }
 0x5d5   : > { %v2466_v6 = vmul.f32 1.442695, %v2463_v9 }
 0x5d7   : > { %5467 = vpow2.f32 %v2466_v6 }
 0x5dd   : > { %v5468_v23 = vpop.eup %5467 }
 0x5de   : > { %v2471_v16 = vsel %vm2359_vm10, %v5468_v23, 0.0 }
 0x5df   : > { %2472 = vadd.xlane.f32.xlu2 %v2471_v16 }
 0x5e5   : > { %v2614_v14 = vpop.permute.xlu0 %2613 }
 0x5e6   : > { %5179 = vmatpush.xpose.msk.msra.mxu1 %vm2325_vm9, %v2614_v14 }
 0x5f7   : > { %2515 = vrot.lane.b32.xlu2 %v6648_v25, %s8063_s7  ;;  %s8112_s7 = smov 56  }
 0x60c   : > { %v2374_v33 = vpop.xlane.xlu2 %2373 }
 0x60d   : > { %5469 = vrcp.f32 %v2374_v33 }
 0x613   : > { %v5470_v26 = vpop.eup %5469 }
 0x614   : > { %v2380_v7 = vmul.f32 %v5470_v26, %v5462_v22  ;;  %v2377_v0 = vpop.xlane.xlu2 %2376 }
 0x615   : > { %5471 = vrcp.f32 %v2377_v0 }
 0x616   : > { %5164 = vmatmul.msk.f32.vlgmr.msra.gmra.mxu2 %vm2359_vm10, %v2380_v7 }
 0x61b   : > { %v5472_v21 = vpop.eup %5471 }
 0x61c   : > { %v2381_v40 = vmul.f32 %v5472_v21, %v5464_v17 }
 0x61e   : > { %5165 = vmatmul.msk.f32.gmra.mxu2 %vm2359_vm10, %v2381_v40 }
 0x624   : > { %v2470_v13 = vpop.xlane.xlu0 %2469 }
 0x625   : > { %5473 = vrcp.f32 %v2470_v13 }
 0x626   : > { %5174 = vmatmul.msk.f32.vlgmr.msrb.gmra.mxu2 %vm2325_vm9, %v2514_v2 }
 0x62b   : > { %v5474_v4 = vpop.eup %5473 }
 0x62c   : > { %v2476_v45 = vmul.f32 %v5474_v4, %v5466_v1 }
 0x62e   : > { %5170 = vmatmul.msk.f32.vlgmr.msrb.gmra.mxu1 %vm2359_vm10, %v2476_v45 }
 0x637   : > { %v2612_v12 = vpop.permute.xlu0 %2611 }
 0x652   : > { %v2473_v25 = vpop.xlane.xlu2 %2472 }
 0x653   : > { %5475 = vrcp.f32 %v2473_v25 }
 0x659   : > { %v5476_v31 = vpop.eup %5475 }
 0x65a   : > { %v2516_v37 = vpop.permute.xlu2 %2515  ;;  %v2477_v51 = vmul.f32 %v5476_v31, %v5468_v23 }
 0x65b   : > { %5175 = vmatmul.msk.f32.gmra.mxu2 %vm2325_vm9, %v2516_v37 }
 0x65c   : > { %5171 = vmatmul.msk.f32.gmra.mxu1 %vm2359_vm10, %v2477_v51 }
 0x664   : > { %5180 = vmatmul.msk.f32.vlgmr.msra.gmra.mxu1 %vm2325_vm9, %v2610_v63 }
 0x66c   : > { %5181 = vmatmul.msk.f32.gmra.mxu1 %vm2325_vm9, %v2612_v12 }
 0x699   : > { %v6698_v18 = vpop.f32.mrf.mxu2 }
 0x6a1   : > { %v6700_v30 = vpop.f32.mrf.mxu2 }
 0x6a9   : > { %v2546_v19 = vpop.f32.mrf.mxu2 }
 0x6aa   : > { %v2552_v56 = vsel %vm2359_vm10, %v2546_v19, -inf }
 0x6ab   : > { %2553 = vmax.xlane.f32.xlu1 %v2552_v56  ;;  %v2507_v15 = vpop.f32.mrf.mxu1 }
 0x6d9   : > { %v6703_v22 = vpop.f32.mrf.mxu1 }
 0x6de   : > { %v2549_v20 = vpop.f32.mrf.mxu2 }
 0x6df   : > { %v2555_v52 = vsel %vm2359_vm10, %v2549_v20, -inf }
 0x6e0   : > { %2556 = vmax.xlane.f32.xlu0 %v2555_v52 }
 0x6e1   : > { %v2642_v17 = vpop.f32.mrf.mxu1 }
 0x6e2   : > { %v2648_v50 = vsel %vm2359_vm10, %v2642_v17, -inf }
 0x6e3   : > { %2649 = vmax.xlane.f32.xlu2 %v2648_v50 }
 0x6e9   : > { %v2645_v53 = vpop.f32.mrf.mxu1 }
 0x6ea   : > { %v2651_v43 = vsel %vm2359_vm10, %v2645_v53, -inf }
 0x6eb   : > { %2652 = vmax.xlane.f32.xlu1 %v2651_v43  ;;  %v2738_v43 = vld [vmem:[%s8036_s14 + $0x10] sm:$0xff] }
 0x704   : > { %5403 = vrot.lane.b32.xlu1 %v6664_v32, %s8056_s30  ;;  %s8059_s30 = smov 40  }
 0x71e   : > { %v2554_v55 = vpop.xlane.xlu1 %2553 }
 0x71f   : > { %v2558_v58 = vsub.f32 %v2546_v19, %v2554_v55  ;;  %v2736_v55 = vld [vmem:[%s8036_s14] sm:$0xff] }
 0x721   : > { %v2560_v54 = vmul.f32 1.442695, %v2558_v58 }
 0x723   : > { %5477 = vpow2.f32 %v2560_v54 }
 0x729   : > { %v5478_v57 = vpop.eup %5477 }
 0x72a   : > { %v2564_v3 = vsel %vm2359_vm10, %v5478_v57, 0.0 }
 0x72b   : > { %2565 = vadd.xlane.f32.xlu2 %v2564_v3 }
 0x753   : > { %v2557_v39 = vpop.xlane.xlu0 %2556 }
 0x754   : > { %v2559_v1 = vsub.f32 %v2549_v20, %v2557_v39 }
 0x756   : > { %v2562_v44 = vmul.f32 1.442695, %v2559_v1  ;;  %v2650_v60 = vpop.xlane.xlu2 %2649 }
 0x757   : > { %v2654_v61 = vsub.f32 %v2642_v17, %v2650_v60 }
 0x758   : > { %5479 = vpow2.f32 %v2562_v44 }
 0x759   : > { %v2656_v42 = vmul.f32 1.442695, %v2654_v61 }
 0x75b   : > { %5481 = vpow2.f32 %v2656_v42 }
 0x75e   : > { %v5480_v62 = vpop.eup %5479  ;;  %v2653_v2 = vpop.xlane.xlu1 %2652 }
 0x75f   : > { %v2655_v35 = vsub.f32 %v2645_v53, %v2653_v2  ;;  %v2567_v9 = vsel %vm2359_vm10, %v5480_v62, 0.0  ;;  %v2739_v53 = vld [vmem:[%s8036_s14 + $0x18] sm:$0xff] }
 0x760   : > { %2568 = vadd.xlane.f32.xlu2 %v2567_v9 }
 0x761   : > { %v5482_v6 = vpop.eup %5481  ;;  %v2658_v23 = vmul.f32 1.442695, %v2655_v35 }
 0x762   : > { %v2660_v16 = vsel %vm2359_vm10, %v5482_v6, 0.0 }
 0x763   : > { %5483 = vpow2.f32 %v2658_v23  ;;  %2661 = vadd.xlane.f32.xlu0 %v2660_v16 }
 0x769   : > { %v5484_v14 = vpop.eup %5483 }
 0x76a   : > { %v2663_v33 = vsel %vm2359_vm10, %v5484_v14, 0.0 }
 0x76b   : > { %2664 = vadd.xlane.f32.xlu2 %v2663_v33 }
 0x776   : > { %v5404_v26 = vpop.permute.xlu1 %5403 }
 0x777   : > { %v5405_v7 = vunpack.i.l.bf16 %v5404_v26  ;;  %5408 = vrot.lane.b32.xlu0 %v6664_v32, %s8059_s30  ;;  %v5406_v0 = vunpack.i.h.bf16 %v5404_v26  ;;  %s8077_s30 = smov 16  }
 0x779   : > { %2600 = vmatpush.msrb.mxu3 %v5405_v7 }
 0x77b   : > { %2601 = vmatpush.msrb.mxu3 %v5406_v0  ;;  %v5440_v0 = vld [vmem:[%s8037_s15] ss:$0 sm:$0xff] }
 0x77d   : > { %2758 = vmatpush.msra.mxu3 %v2739_v53 }
 0x77f   : > { %2759 = vmatpush.msra.mxu3 %v2738_v43 }
 0x783   : > { %2707 = vrot.lane.b32.xlu2 %v2507_v15, %s8069_s8 }
 0x79e   : > { %v2566_v21 = vpop.xlane.xlu2 %2565 }
 0x79f   : > { %5485 = vrcp.f32 %v2566_v21 }
 0x7a5   : > { %v5486_v40 = vpop.eup %5485 }
 0x7a6   : > { %v2572_v13 = vmul.f32 %v5486_v40, %v5478_v57 }
 0x7a8   : > { %5176 = vmatmul.msk.f32.vlgmr.msrb.gmra.mxu3 %vm2359_vm10, %v2572_v13 }
 0x7d3   : > { %v2569_v4 = vpop.xlane.xlu2 %2568 }
 0x7d4   : > { %5487 = vrcp.f32 %v2569_v4 }
 0x7d6   : > { %v2662_v31 = vpop.xlane.xlu0 %2661 }
 0x7d7   : > { %5489 = vrcp.f32 %v2662_v31 }
 0x7da   : > { %v5488_v45 = vpop.eup %5487 }
 0x7db   : > { %v2573_v25 = vmul.f32 %v5488_v45, %v5480_v62 }
 0x7dd   : > { %5177 = vmatmul.msk.f32.gmra.mxu3 %vm2359_vm10, %v2573_v25  ;;  %v5490_v51 = vpop.eup %5489 }
 0x7de   : > { %v2665_v32 = vpop.xlane.xlu2 %2664  ;;  %v2668_v19 = vmul.f32 %v5490_v51, %v5482_v6 }
 0x7df   : > { %5491 = vrcp.f32 %v2665_v32 }
 0x7e5   : > { %v5492_v56 = vpop.eup %5491 }
 0x7e6   : > { %v2669_v15 = vmul.f32 %v5492_v56, %v5484_v14  ;;  %v2708_v54 = vpop.permute.xlu2 %2707 }
 0x7e7   : > { %v2729_v57 = vsel %vm2325_vm9, %v6698_v18, %v2708_v54 }
 0x7e9   : > { %v5409_v37 = vpop.permute.xlu0 %5408 }
 0x7ea   : > { %v5410_v63 = vunpack.i.l.bf16 %v5409_v37  ;;  %v5411_v12 = vunpack.i.h.bf16 %v5409_v37 }
 0x7ec   : > { %2696 = vmatpush.msra.mxu2 %v5410_v63 }
 0x7ee   : > { %2697 = vmatpush.msra.mxu2 %v5411_v12 }
 0x7ef   : > { %5182 = vmatmul.msk.f32.vlgmr.msra.gmra.mxu2 %vm2359_vm10, %v2668_v19 }
 0x7f7   : > { %5183 = vmatmul.msk.f32.gmra.mxu2 %vm2359_vm10, %v2669_v15 }
 0x82b   : > { %v2603_v20 = vpop.f32.mrf.mxu3 }
 0x82c   : > { %2715 = vrot.lane.b32.xlu1 %v2603_v20, %s8077_s30 }
 0x834   : > { %2709 = vrot.lane.b32.xlu1 %v6703_v22, %s8069_s8  ;;  %v2737_v22 = vld [vmem:[%s8036_s14 + $0x8] sm:$0xff]  ;;  %s8116_s8 = smov 72  }
 0x835   : > { %2760 = vmatpush.msra.mxu3 %v2737_v22 }
 0x837   : > { %2761 = vmatpush.msra.mxu3 %v2736_v55 }
 0x860   : > { %v2606_v17 = vpop.f32.mrf.mxu3 }
 0x872   : > { %v2699_v52 = vpop.f32.mrf.mxu2 }
 0x873   : > { %2723 = vrot.lane.b32.xlu0 %v2699_v52, %s8075_s0 }
 0x87a   : > { %v2702_v50 = vpop.f32.mrf.mxu2 }
 0x87b   : > { %2717 = vrot.lane.b32.xlu0 %v2606_v17, %s8077_s30  ;;  %2725 = vrot.lane.b32.xlu1 %v2702_v50, %s8075_s0  ;;  %s8113_s30 = smov 112   ;;  %s8114_s0 = smov 80  }
 0x89e   : > { %v2716_v58 = vpop.permute.xlu1 %2715 }
 0x89f   : > { %v2731_v3 = vsel %vm2359_vm10, %v2729_v57, %v2716_v58 }
 0x8a6   : > { %v2710_v39 = vpop.permute.xlu1 %2709 }
 0x8a7   : > { %v2730_v60 = vsel %vm2325_vm9, %v6700_v30, %v2710_v39 }
 0x8e5   : > { %v2724_v1 = vpop.permute.xlu0 %2723 }
 0x8e6   : > { %v2734_v44 = vsel %vm8074_vm11, %v2731_v3, %v2724_v1 }
 0x8e7   : > { %5184 = vmatmul.msk.f32.vlgmr.msra.gmra.mxu3 %vm1658_vm1, %v2734_v44 }
 0x8ed   : > { %v2718_v61 = vpop.permute.xlu0 %2717  ;;  %v2726_v42 = vpop.permute.xlu1 %2725 }
 0x8ee   : > { %v2732_v62 = vsel %vm2359_vm10, %v2730_v60, %v2718_v61 }
 0x8ef   : > { %v2735_v2 = vsel %vm8074_vm11, %v2732_v62, %v2726_v42 }
 0x8f0   : > { %5185 = vmatmul.msk.f32.gmra.mxu3 %vm1658_vm1, %v2735_v2 }
 0x96a   : > { %v2763_v18 = vpop.f32.mrf.mxu3 }
 0x96b   : > { %v2771_v35 = vrot.slane %v2763_v18, 1  ;;  %v2772_v9 = vrot.slane %v2763_v18, 2  ;;  %v2773_v6 = vrot.slane %v2763_v18, 3  ;;  %v2774_v23 = vrot.slane %v2763_v18, 4 }
 0x96c   : > { %v2801_v16 = vadd.f32 %v2763_v18, %v6386_v28  ;;  %v2775_v14 = vrot.slane %v2763_v18, 5  ;;  %v2776_v33 = vrot.slane %v2763_v18, 6  ;;  %v2777_v26 = vrot.slane %v2763_v18, 7 }
 0x96d   : > { %v2802_v30 = vadd.f32 %v2771_v35, %v6380_v5  ;;  %v2803_v7 = vadd.f32 %v2772_v9, %v6382_v27  ;;  %v2804_v21 = vadd.f32 %v2773_v6, %v6384_v59  ;;  %v2805_v40 = vadd.f32 %v2774_v23, %v6388_v29 }
 0x96e   : > { %v2806_v13 = vadd.f32 %v2775_v14, %v6390_v24  ;;  %v2807_v4 = vadd.f32 %v2776_v33, %v6394_v10  ;;  %v2808_v28 = vadd.f32 %v2777_v26, %v6396_v36  ;;  %v6772_v59 = vadd.f32 %v5440_v0, %v2801_v16 }
 0x96f   : > { %v6760_v45 = vadd.f32 %v5440_v0, %v2802_v30  ;;  %v6762_v25 = vadd.f32 %v5440_v0, %v2803_v7  ;;  %v6764_v5 = vadd.f32 %v5440_v0, %v2804_v21  ;;  %v6766_v27 = vadd.f32 %v5440_v0, %v2805_v40 }
 0x970   : > { %v6768_v31 = vadd.f32 %v5440_v0, %v2806_v13  ;;  %v6770_v32 = vadd.f32 %v5440_v0, %v2807_v4  ;;  %v6776_v10 = vadd.f32 %v5440_v0, %v2808_v28 }
 0x971   : > { %v2855_v29 = vrot.slane %v6760_v45, 7  ;;  %v2857_v24 = vrot.slane %v6762_v25, 6  ;;  %v2859_v36 = vrot.slane %v6764_v5, 5  ;;  %v2861_v63 = vrot.slane %v6766_v27, 4 }
 0x972   : > { %v2863_v12 = vrot.slane %v6768_v31, 3  ;;  %v2865_v19 = vrot.slane %v6770_v32, 2  ;;  %v2867_v60 = vrot.slane %v6776_v10, 1 }
 0x973   : > { %v2766_v37 = vpop.f32.mrf.mxu3  ;;  %v2856_v51 = vsel %vm1961_vm2, %v2855_v29, %v6772_v59 }
 0x974   : > { %v2778_v56 = vrot.slane %v2766_v37, 1  ;;  %v2779_v15 = vrot.slane %v2766_v37, 2  ;;  %v2780_v20 = vrot.slane %v2766_v37, 3  ;;  %v2781_v52 = vrot.slane %v2766_v37, 4 }
 0x975   : > { %v2782_v17 = vrot.slane %v2766_v37, 5  ;;  %v2809_v50 = vadd.f32 %v2766_v37, %v6429_v48  ;;  %v2858_v53 = vsel %vm1964_vm3, %v2857_v24, %v2856_v51  ;;  %v2783_v43 = vrot.slane %v2766_v37, 6 }
 0x976   : > { %v2810_v22 = vadd.f32 %v2778_v56, %v6421_v41  ;;  %v2811_v55 = vadd.f32 %v2779_v15, %v6423_v38  ;;  %v2812_v58 = vadd.f32 %v2780_v20, %v6425_v46  ;;  %v2860_v54 = vsel %vm1967_vm4, %v2859_v36, %v2858_v53 }
 0x977   : > { %v2862_v57 = vsel %vm1970_vm5, %v2861_v63, %v2860_v54  ;;  %v2784_v3 = vrot.slane %v2766_v37, 7  ;;  %v2813_v39 = vadd.f32 %v2781_v52, %v6427_v47  ;;  %v2814_v1 = vadd.f32 %v2782_v17, %v6431_v49 }
 0x978   : > { %v6793_v44 = vadd.f32 %v5440_v0, %v2810_v22  ;;  %v2864_v48 = vsel %vm1973_vm6, %v2863_v12, %v2862_v57  ;;  %v2815_v41 = vadd.f32 %v2783_v43, %v6435_v8  ;;  %v6800_v61 = vadd.f32 %v5440_v0, %v2811_v55 }
 0x979   : > { %v2866_v38 = vsel %vm1976_vm7, %v2865_v19, %v2864_v48  ;;  %v2816_v46 = vadd.f32 %v2784_v3, %v6437_v34  ;;  %v6802_v42 = vadd.f32 %v5440_v0, %v2812_v58  ;;  %v6805_v62 = vadd.f32 %v5440_v0, %v2809_v50 }
 0x97a   : > { %v2868_v47 = vsel %vm1979_vm8, %v2867_v60, %v2866_v38  ;;  %v6807_v49 = vadd.f32 %v5440_v0, %v2813_v39  ;;  %v6810_v18 = vadd.f32 %v5440_v0, %v2814_v1  ;;  %v2869_v8 = vrot.slane %v6793_v44, 7 }
 0x97b   : > { %v2885_v2 = vsel %vm1658_vm1, %v2868_v47, 0.0  ;;  %v2871_v35 = vrot.slane %v6800_v61, 6  ;;  %v6814_v34 = vadd.f32 %v5440_v0, %v2815_v41  ;;  %v6816_v9 = vadd.f32 %v5440_v0, %v2816_v46 }
 0x97c   : > { %2886 = vadd.xlane.f32.xlu0 %v2885_v2  ;;  %v2870_v6 = vsel %vm1961_vm2, %v2869_v8, %v6805_v62  ;;  %v2873_v23 = vrot.slane %v6802_v42, 5  ;;  %v2875_v14 = vrot.slane %v6807_v49, 4  ;;  %v2877_v26 = vrot.slane %v6810_v18, 3 }
 0x97d   : > { %v2872_v16 = vsel %vm1964_vm3, %v2871_v35, %v2870_v6  ;;  %v2879_v7 = vrot.slane %v6814_v34, 2  ;;  %v2881_v21 = vrot.slane %v6816_v9, 1 }
 0x97e   : > { %v2874_v33 = vsel %vm1967_vm4, %v2873_v23, %v2872_v16 }
 0x97f   : > { %v2876_v30 = vsel %vm1970_vm5, %v2875_v14, %v2874_v33 }
 0x980   : > { %v2878_v0 = vsel %vm1973_vm6, %v2877_v26, %v2876_v30 }
 0x981   : > { %v2880_v40 = vsel %vm1976_vm7, %v2879_v7, %v2878_v0 }
 0x982   : > { %v2882_v13 = vsel %vm1979_vm8, %v2881_v21, %v2880_v40 }
 0x983   : > { %v2888_v4 = vsel %vm1658_vm1, %v2882_v13, 0.0 }
 0x984   : > { %2889 = vadd.xlane.f32.xlu2 %v2888_v4 }
 0x9ef   : > { %v2887_v28 = vpop.xlane.xlu0 %2886 }
 0x9f0   : > { %v2891_v29 = vmul.f32 %v2887_v28, %v6453_v11 }
 0x9f2   : > { %v2895_v24 = vrot.slane %v2891_v29, 1  ;;  %v2896_v36 = vrot.slane %v2891_v29, 2  ;;  %v2897_v37 = vrot.slane %v2891_v29, 3  ;;  %v2898_v51 = vrot.slane %v2891_v29, 4 }
 0x9f3   : > { %v2899_v63 = vrot.slane %v2891_v29, 5  ;;  %v2900_v12 = vrot.slane %v2891_v29, 6  ;;  %v2901_v19 = vrot.slane %v2891_v29, 7  ;;  %v6834_v56 = vsub.f32 %v6772_v59, %v2891_v29 }
 0x9f4   : > { %v6837_v15 = vsub.f32 %v6760_v45, %v2895_v24  ;;  %v6840_v20 = vsub.f32 %v6762_v25, %v2896_v36  ;;  %v6843_v52 = vsub.f32 %v6764_v5, %v2897_v37  ;;  %v6846_v17 = vsub.f32 %v6766_v27, %v2898_v51 }
 0x9f5   : > { %v6849_v50 = vsub.f32 %v6768_v31, %v2899_v63  ;;  %v6852_v53 = vsub.f32 %v6770_v32, %v2900_v12  ;;  %v6855_v43 = vsub.f32 %v6776_v10, %v2901_v19  ;;  %v2941_v48 = vmul.f32 %v6834_v56, %v6834_v56 }
 0x9f6   : > { %v2942_v22 = vmul.f32 %v6837_v15, %v6837_v15  ;;  %v2943_v55 = vmul.f32 %v6840_v20, %v6840_v20  ;;  %v2944_v58 = vmul.f32 %v6843_v52, %v6843_v52  ;;  %v2945_v54 = vmul.f32 %v6846_v17, %v6846_v17 }
 0x9f7   : > { %v2946_v57 = vmul.f32 %v6849_v50, %v6849_v50  ;;  %v2947_v3 = vmul.f32 %v6852_v53, %v6852_v53  ;;  %v2948_v39 = vmul.f32 %v6855_v43, %v6855_v43  ;;  %v2890_v1 = vpop.xlane.xlu2 %2889 }
 0x9f8   : > { %v2973_v60 = vrot.slane %v2942_v22, 7  ;;  %v2975_v41 = vrot.slane %v2943_v55, 6  ;;  %v2892_v38 = vmul.f32 %v2890_v1, %v6453_v11  ;;  %v2977_v46 = vrot.slane %v2944_v58, 5 }
 0x9f9   : > { %v2979_v47 = vrot.slane %v2945_v54, 4  ;;  %v2981_v8 = vrot.slane %v2946_v57, 3  ;;  %v2983_v35 = vrot.slane %v2947_v3, 2  ;;  %v2985_v6 = vrot.slane %v2948_v39, 1 }
 0x9fa   : > { %v2974_v2 = vsel %vm1961_vm2, %v2973_v60, %v2941_v48  ;;  %v2902_v16 = vrot.slane %v2892_v38, 1  ;;  %v2903_v14 = vrot.slane %v2892_v38, 2  ;;  %v2904_v33 = vrot.slane %v2892_v38, 3 }
 0x9fb   : > { %v2976_v23 = vsel %vm1964_vm3, %v2975_v41, %v2974_v2  ;;  %v2905_v30 = vrot.slane %v2892_v38, 4  ;;  %v2906_v7 = vrot.slane %v2892_v38, 5  ;;  %v2907_v0 = vrot.slane %v2892_v38, 6 }
 0x9fc   : > { %v2978_v26 = vsel %vm1967_vm4, %v2977_v46, %v2976_v23  ;;  %v2908_v40 = vrot.slane %v2892_v38, 7  ;;  %v6879_v13 = vsub.f32 %v6805_v62, %v2892_v38  ;;  %v6882_v4 = vsub.f32 %v6793_v44, %v2902_v16 }
 0x9fd   : > { %v2980_v21 = vsel %vm1970_vm5, %v2979_v47, %v2978_v26  ;;  %v6886_v29 = vsub.f32 %v6800_v61, %v2903_v14  ;;  %v6889_v24 = vsub.f32 %v6802_v42, %v2904_v33  ;;  %v6892_v36 = vsub.f32 %v6807_v49, %v2905_v30 }
 0x9fe   : > { %v2982_v28 = vsel %vm1973_vm6, %v2981_v8, %v2980_v21  ;;  %v6896_v51 = vsub.f32 %v6810_v18, %v2906_v7  ;;  %v6899_v63 = vsub.f32 %v6814_v34, %v2907_v0  ;;  %v6903_v19 = vsub.f32 %v6816_v9, %v2908_v40  ;;  %v3122_v21 = vld [vmem:[%s8040_s18 + $0x18] sm:$0xff]  ;;  %v3121_v40 = vld [vmem:[%s8040_s18 + $0x10] sm:$0xff] }
 0x9ff   : > { %v2984_v37 = vsel %vm1976_vm7, %v2983_v35, %v2982_v28  ;;  %v2950_v22 = vmul.f32 %v6882_v4, %v6882_v4  ;;  %v2951_v55 = vmul.f32 %v6886_v29, %v6886_v29  ;;  %v2952_v54 = vmul.f32 %v6889_v24, %v6889_v24  ;;  %3187 = vmatpush.msrb.mxu1 %v3122_v21 }
 0xa00   : > { %v2986_v12 = vsel %vm1979_vm8, %v2985_v6, %v2984_v37  ;;  %v2953_v57 = vmul.f32 %v6892_v36, %v6892_v36  ;;  %v2949_v3 = vmul.f32 %v6879_v13, %v6879_v13  ;;  %v2954_v39 = vmul.f32 %v6896_v51, %v6896_v51  ;;  %v3120_v37 = vld [vmem:[%s8040_s18 + $0x8] sm:$0xff] }
 0xa01   : > { %v3003_v58 = vsel %vm1658_vm1, %v2986_v12, 0.0  ;;  %v2987_v1 = vrot.slane %v2950_v22, 7  ;;  %v2989_v48 = vrot.slane %v2951_v55, 6  ;;  %v2955_v60 = vmul.f32 %v6899_v63, %v6899_v63  ;;  %3188 = vmatpush.msrb.mxu1 %v3121_v40  ;;  %v3119_v12 = vld [vmem:[%s8040_s18] sm:$0xff] }
 0xa02   : > { %3004 = vadd.xlane.f32.xlu1 %v3003_v58  ;;  %v2956_v41 = vmul.f32 %v6903_v19, %v6903_v19  ;;  %v2991_v46 = vrot.slane %v2952_v54, 5  ;;  %v2993_v2 = vrot.slane %v2953_v57, 4  ;;  %v2995_v35 = vrot.slane %v2954_v39, 3 }
 0xa03   : > { %v2988_v38 = vsel %vm1961_vm2, %v2987_v1, %v2949_v3  ;;  %v2997_v23 = vrot.slane %v2955_v60, 2  ;;  %3189 = vmatpush.msrb.mxu1 %v3120_v37 }
 0xa04   : > { %v2990_v47 = vsel %vm1964_vm3, %v2989_v48, %v2988_v38  ;;  %v2999_v14 = vrot.slane %v2956_v41, 1 }
 0xa05   : > { %v2992_v8 = vsel %vm1967_vm4, %v2991_v46, %v2990_v47  ;;  %3190 = vmatpush.msrb.mxu1 %v3119_v12 }
 0xa06   : > { %v2994_v6 = vsel %vm1970_vm5, %v2993_v2, %v2992_v8 }
 0xa07   : > { %v2996_v16 = vsel %vm1973_vm6, %v2995_v35, %v2994_v6  ;;  %v6948_v35 = vld [vmem:[%s8038_s16] ss:$0 sm:$0xff] }
 0xa08   : > { %v2998_v33 = vsel %vm1976_vm7, %v2997_v23, %v2996_v16 }
 0xa09   : > { %v3000_v26 = vsel %vm1979_vm8, %v2999_v14, %v2998_v33 }
 0xa0a   : > { %v3006_v30 = vsel %vm1658_vm1, %v3000_v26, 0.0 }
 0xa0b   : > { %3007 = vadd.xlane.f32.xlu0 %v3006_v30 }
 0xa75   : > { %v3005_v7 = vpop.xlane.xlu1 %3004 }
 0xa76   : > { %v3009_v0 = vmul.f32 %v3005_v7, %v6453_v11 }
 0xa78   : > { %v3011_v28 = vadd.f32 1e-05, %v3009_v0 }
 0xa7a   : > { %5493 = vrsqrt.f32 %v3011_v28  ;;  %vm3019_vm13 = vweird.f32 %v3011_v28 }
 0xa7e   : > { %v3008_v22 = vpop.xlane.xlu0 %3007 }
 0xa7f   : > { %v3010_v58 = vmul.f32 %v3008_v22, %v6453_v11 }
 0xa80   : > { %v5494_v55 = vpop.eup %5493 }
 0xa81   : > { %v3014_v54 = vmul.f32 %v5494_v55, %v3011_v28  ;;  %v3012_v57 = vadd.f32 1e-05, %v3010_v58  ;;  %vm3020_vm12 = vweird.f32 %v5494_v55 }
 0xa82   : > { %vm3021_vm14 = vmor %vm3019_vm13, %vm3020_vm12 }
 0xa83   : > { %v3015_v3 = vmul.f32 %v5494_v55, %v3014_v54  ;;  %5495 = vrsqrt.f32 %v3012_v57  ;;  %vm3029_vm15 = vweird.f32 %v3012_v57 }
 0xa85   : > { %v3016_v39 = vmul.f32 0.5, %v3015_v3 }
 0xa87   : > { %v3017_v1 = vsub.f32 1.5, %v3016_v39 }
 0xa89   : > { %v3018_v48 = vmul.f32 %v5494_v55, %v3017_v1  ;;  %v5496_v60 = vpop.eup %5495 }
 0xa8a   : > { %v3024_v38 = vmul.f32 %v5496_v60, %v3012_v57  ;;  %vm3030_vm11 = vweird.f32 %v5496_v60 }
 0xa8b   : > { %v3022_v41 = vsel %vm3021_vm14, %v5494_v55, %v3018_v48  ;;  %vm3031_vm12 = vmor %vm3029_vm15, %vm3030_vm11 }
 0xa8c   : > { %v3035_v46 = vrot.slane %v3022_v41, 1  ;;  %v3036_v47 = vrot.slane %v3022_v41, 2  ;;  %v3037_v2 = vrot.slane %v3022_v41, 3  ;;  %v3065_v8 = vmul.f32 %v3022_v41, %v6834_v56  ;;  %v6956_v56 = vld [vmem:[%s8039_s17] ss:$0 sm:$0xff] }
 0xa8d   : > { %v3025_v6 = vmul.f32 %v5496_v60, %v3024_v38  ;;  %v3038_v23 = vrot.slane %v3022_v41, 4  ;;  %v3039_v16 = vrot.slane %v3022_v41, 5  ;;  %v3040_v14 = vrot.slane %v3022_v41, 6 }
 0xa8e   : > { %v3066_v33 = vmul.f32 %v3035_v46, %v6837_v15  ;;  %v3041_v26 = vrot.slane %v3022_v41, 7  ;;  %v3067_v30 = vmul.f32 %v3036_v47, %v6840_v20  ;;  %v3068_v7 = vmul.f32 %v3037_v2, %v6843_v52 }
 0xa8f   : > { %v3026_v0 = vmul.f32 0.5, %v3025_v6  ;;  %v3069_v21 = vmul.f32 %v3038_v23, %v6846_v17  ;;  %v3070_v40 = vmul.f32 %v3039_v16, %v6849_v50  ;;  %v3071_v28 = vmul.f32 %v3040_v14, %v6852_v53 }
 0xa90   : > { %v3072_v37 = vmul.f32 %v3041_v26, %v6855_v43  ;;  %v3084_v15 = vmul.f32 %v6948_v35, %v3065_v8  ;;  %v3085_v20 = vmul.f32 %v6948_v35, %v3066_v33  ;;  %v3086_v52 = vmul.f32 %v6948_v35, %v3067_v30 }
 0xa91   : > { %v3027_v12 = vsub.f32 1.5, %v3026_v0  ;;  %v3087_v22 = vmul.f32 %v6948_v35, %v3068_v7  ;;  %v3088_v55 = vmul.f32 %v6948_v35, %v3069_v21  ;;  %v3089_v58 = vmul.f32 %v6948_v35, %v3070_v40 }
 0xa92   : > { %v3090_v17 = vmul.f32 %v6948_v35, %v3071_v28  ;;  %v3091_v50 = vmul.f32 %v6948_v35, %v3072_v37  ;;  %v3103_v53 = vadd.f32 %v6956_v56, %v3084_v15  ;;  %v3104_v43 = vadd.f32 %v6956_v56, %v3085_v20 }
 0xa93   : > { %v3028_v54 = vmul.f32 %v5496_v60, %v3027_v12  ;;  %v3105_v3 = vadd.f32 %v6956_v56, %v3086_v52  ;;  %v3106_v39 = vadd.f32 %v6956_v56, %v3087_v22  ;;  %v3107_v1 = vadd.f32 %v6956_v56, %v3088_v55 }
 0xa94   : > { %v3108_v48 = vadd.f32 %v6956_v56, %v3089_v58  ;;  %v3109_v41 = vadd.f32 %v6956_v56, %v3090_v17  ;;  %v3110_v38 = vadd.f32 %v6956_v56, %v3091_v50  ;;  %v3143_v46 = vrot.slane %v3104_v43, 7 }
 0xa95   : > { %v3032_v47 = vsel %vm3031_vm12, %v5496_v60, %v3028_v54  ;;  %v3145_v2 = vrot.slane %v3105_v3, 6  ;;  %v3147_v8 = vrot.slane %v3106_v39, 5  ;;  %v3149_v6 = vrot.slane %v3107_v1, 4 }
 0xa96   : > { %v3042_v23 = vrot.slane %v3032_v47, 1  ;;  %v3144_v16 = vsel %vm1961_vm2, %v3143_v46, %v3103_v53  ;;  %v3151_v14 = vrot.slane %v3108_v48, 3  ;;  %v3153_v33 = vrot.slane %v3109_v41, 2 }
 0xa97   : > { %v3146_v26 = vsel %vm1964_vm3, %v3145_v2, %v3144_v16  ;;  %v3155_v57 = vrot.slane %v3110_v38, 1  ;;  %v3043_v30 = vrot.slane %v3032_v47, 2  ;;  %v3044_v7 = vrot.slane %v3032_v47, 3 }
 0xa98   : > { %v3148_v0 = vsel %vm1967_vm4, %v3147_v8, %v3146_v26  ;;  %v3045_v21 = vrot.slane %v3032_v47, 4  ;;  %v3046_v40 = vrot.slane %v3032_v47, 5  ;;  %v3047_v28 = vrot.slane %v3032_v47, 6 }
 0xa99   : > { %v3150_v60 = vsel %vm1970_vm5, %v3149_v6, %v3148_v0  ;;  %v3048_v37 = vrot.slane %v3032_v47, 7  ;;  %v3073_v15 = vmul.f32 %v3032_v47, %v6879_v13  ;;  %v3074_v20 = vmul.f32 %v3042_v23, %v6882_v4 }
 0xa9a   : > { %v3152_v52 = vsel %vm1973_vm6, %v3151_v14, %v3150_v60  ;;  %v3075_v12 = vmul.f32 %v3043_v30, %v6886_v29  ;;  %v3076_v22 = vmul.f32 %v3044_v7, %v6889_v24  ;;  %v3077_v55 = vmul.f32 %v3045_v21, %v6892_v36  ;;  %v3222_v21 = vld [vmem:[%s8042_s20 + $0x30] sm:$0xff]  ;;  %v3219_v60 = vld [vmem:[%s8042_s20 + $0x18] sm:$0xff] }
 0xa9b   : > { %v3154_v58 = vsel %vm1976_vm7, %v3153_v33, %v3152_v52  ;;  %v3078_v17 = vmul.f32 %v3046_v40, %v6896_v51  ;;  %v3079_v50 = vmul.f32 %v3047_v28, %v6899_v63  ;;  %v3080_v53 = vmul.f32 %v3048_v37, %v6903_v19  ;;  %v3221_v40 = vld [vmem:[%s8042_s20 + $0x28] sm:$0xff]  ;;  %v3220_v28 = vld [vmem:[%s8042_s20 + $0x20] sm:$0xff]  ;;  %v3218_v37 = vld [vmem:[%s8042_s20 + $0x10] sm:$0xff] }
 0xa9c   : > { %v3156_v13 = vsel %vm1979_vm8, %v3155_v57, %v3154_v58  ;;  %v3092_v4 = vmul.f32 %v6948_v35, %v3073_v15  ;;  %v3093_v43 = vmul.f32 %v6948_v35, %v3074_v20  ;;  %v3094_v29 = vmul.f32 %v6948_v35, %v3075_v12  ;;  %v3217_v15 = vld [vmem:[%s8042_s20 + $0x8] sm:$0xff]  ;;  %v3216_v20 = vld [vmem:[%s8042_s20] sm:$0xff] }
 0xa9d   : > { %5186 = vmatmul.msk.f32.vlgmr.msrb.gmra.mxu1 %vm1658_vm1, %v3156_v13  ;;  %v3095_v24 = vmul.f32 %v6948_v35, %v3076_v22  ;;  %v3096_v36 = vmul.f32 %v6948_v35, %v3077_v55  ;;  %v3097_v51 = vmul.f32 %v6948_v35, %v3078_v17  ;;  %v3098_v63 = vmul.f32 %v6948_v35, %v3079_v50  ;;  %v5443_v52 = vld [vmem:[%s8041_s19] ss:$0 sm:$0xff] }
 0xa9e   : > { %v3099_v19 = vmul.f32 %v6948_v35, %v3080_v53  ;;  %v3112_v54 = vadd.f32 %v6956_v56, %v3093_v43  ;;  %v3113_v3 = vadd.f32 %v6956_v56, %v3094_v29  ;;  %v3111_v48 = vadd.f32 %v6956_v56, %v3092_v4 }
 0xa9f   : > { %v3114_v39 = vadd.f32 %v6956_v56, %v3095_v24  ;;  %v3115_v1 = vadd.f32 %v6956_v56, %v3096_v36  ;;  %v3116_v41 = vadd.f32 %v6956_v56, %v3097_v51  ;;  %v3117_v47 = vadd.f32 %v6956_v56, %v3098_v63 }
 0xaa0   : > { %v3157_v38 = vrot.slane %v3112_v54, 7  ;;  %v3159_v46 = vrot.slane %v3113_v3, 6  ;;  %v3118_v2 = vadd.f32 %v6956_v56, %v3099_v19  ;;  %v3223_v56 = vld [vmem:[%s8042_s20 + $0x38] sm:$0xff] }
 0xaa1   : > { %v3161_v8 = vrot.slane %v3114_v39, 5  ;;  %v3163_v23 = vrot.slane %v3115_v1, 4  ;;  %v3165_v14 = vrot.slane %v3116_v41, 3  ;;  %v3167_v26 = vrot.slane %v3117_v47, 2  ;;  %3238 = vmatpush.msrb.mxu2 %v3223_v56 }
 0xaa2   : > { %v3158_v35 = vsel %vm1961_vm2, %v3157_v38, %v3111_v48  ;;  %v3169_v30 = vrot.slane %v3118_v2, 1 }
 0xaa3   : > { %v3160_v6 = vsel %vm1964_vm3, %v3159_v46, %v3158_v35  ;;  %3239 = vmatpush.msrb.mxu2 %v3222_v21 }
 0xaa4   : > { %v3162_v16 = vsel %vm1967_vm4, %v3161_v8, %v3160_v6 }
 0xaa5   : > { %v3164_v33 = vsel %vm1970_vm5, %v3163_v23, %v3162_v16  ;;  %3240 = vmatpush.msrb.mxu2 %v3221_v40 }
 0xaa6   : > { %v3166_v57 = vsel %vm1973_vm6, %v3165_v14, %v3164_v33 }
 0xaa7   : > { %v3168_v7 = vsel %vm1976_vm7, %v3167_v26, %v3166_v57  ;;  %3241 = vmatpush.msrb.mxu2 %v3220_v28  ;;  %v5444_v57 = vld [vmem:[%s8043_s21] ss:$0 sm:$0xff] }
 0xaa8   : > { %v3170_v0 = vsel %vm1979_vm8, %v3169_v30, %v3168_v7 }
 0xaa9   : > { %5187 = vmatmul.msk.f32.gmra.mxu1 %vm1658_vm1, %v3170_v0  ;;  %3242 = vmatpush.msrb.mxu2 %v3219_v60 }
 0xaab   : > { %3243 = vmatpush.msrb.mxu2 %v3218_v37 }
 0xaad   : > { %3244 = vmatpush.msrb.mxu2 %v3217_v15 }
 0xaaf   : > { %3245 = vmatpush.msrb.mxu2 %v3216_v20 }
 0xb1a   : > { %v3192_v12 = vpop.f32.mrf.mxu1 }
 0xb1b   : > { %v3193_v22 = vadd.f32 %v5443_v52, %v3192_v12 }
 0xb1d   : > { %v3198_v55 = vmul.f32 %v3193_v22, %v3193_v22 }
 0xb1f   : > { %v3200_v58 = vmul.f32 %v3198_v55, %v3193_v22 }
 0xb21   : > { %v3202_v17 = vmul.f32 0.044715, %v3200_v58 }
 0xb23   : > { %v3204_v50 = vadd.f32 %v3202_v17, %v3193_v22 }
 0xb25   : > { %v3206_v53 = vmul.f32 0.7978846, %v3204_v50 }
 0xb26   : > { %v3195_v13 = vpop.f32.mrf.mxu1 }
 0xb27   : > { %5497 = vtanh.f32 %v3206_v53  ;;  %v3196_v4 = vadd.f32 %v5443_v52, %v3195_v13 }
 0xb29   : > { %v3199_v43 = vmul.f32 %v3196_v4, %v3196_v4 }
 0xb2b   : > { %v3201_v29 = vmul.f32 %v3199_v43, %v3196_v4 }
 0xb2d   : > { %v5498_v24 = vpop.eup %5497  ;;  %v3203_v36 = vmul.f32 0.044715, %v3201_v29 }
 0xb2e   : > { %v3210_v51 = vadd.f32 1.0, %v5498_v24 }
 0xb2f   : > { %v3205_v63 = vadd.f32 %v3203_v36, %v3196_v4 }
 0xb30   : > { %v3212_v19 = vmul.f32 0.5, %v3210_v51 }
 0xb31   : > { %v3207_v54 = vmul.f32 0.7978846, %v3205_v63 }
 0xb32   : > { %v3214_v3 = vmul.f32 %v3212_v19, %v3193_v22 }
 0xb33   : > { %5499 = vtanh.f32 %v3207_v54 }
 0xb34   : > { %5188 = vmatmul.msk.f32.vlgmr.msrb.gmra.mxu2 %vm1448_vm0, %v3214_v3 }
 0xb39   : > { %v5500_v39 = vpop.eup %5499 }
 0xb3a   : > { %v3211_v1 = vadd.f32 1.0, %v5500_v39 }
 0xb3c   : > { %v3213_v48 = vmul.f32 0.5, %v3211_v1 }
 0xb3e   : > { %v3215_v41 = vmul.f32 %v3213_v48, %v3196_v4 }
 0xb40   : > { %5189 = vmatmul.msk.f32.gmra.mxu2 %vm1448_vm0, %v3215_v41 }
 0xbb7   : > { %v3247_v38 = vpop.f32.mrf.mxu2 }
 0xbb8   : > { %v3255_v46 = vrot.slane %v3247_v38, 1  ;;  %v3256_v47 = vrot.slane %v3247_v38, 2  ;;  %v3257_v2 = vrot.slane %v3247_v38, 3  ;;  %v3258_v35 = vrot.slane %v3247_v38, 4 }
 0xbb9   : > { %v3259_v8 = vrot.slane %v3247_v38, 5  ;;  %v3285_v6 = vadd.f32 %v3247_v38, %v6772_v59  ;;  %v3260_v23 = vrot.slane %v3247_v38, 6  ;;  %v3261_v16 = vrot.slane %v3247_v38, 7 }
 0xbba   : > { %v3286_v14 = vadd.f32 %v3255_v46, %v6760_v45  ;;  %v3287_v33 = vadd.f32 %v3256_v47, %v6762_v25  ;;  %v3288_v26 = vadd.f32 %v3257_v2, %v6764_v5  ;;  %v3289_v30 = vadd.f32 %v3258_v35, %v6766_v27 }
 0xbbb   : > { %v3290_v7 = vadd.f32 %v3259_v8, %v6768_v31  ;;  %v3291_v0 = vadd.f32 %v3260_v23, %v6770_v32  ;;  %v3292_v59 = vadd.f32 %v3261_v16, %v6776_v10  ;;  %v7068_v5 = vadd.f32 %v5444_v57, %v3285_v6 }
 0xbbc   : > { %v7060_v56 = vadd.f32 %v5444_v57, %v3286_v14  ;;  %v7062_v21 = vadd.f32 %v5444_v57, %v3287_v33  ;;  %v7064_v45 = vadd.f32 %v5444_v57, %v3288_v26  ;;  %v7066_v25 = vadd.f32 %v5444_v57, %v3289_v30 }
 0xbbd   : > { %v7072_v28 = vadd.f32 %v5444_v57, %v3290_v7  ;;  %v7074_v31 = vadd.f32 %v5444_v57, %v3291_v0  ;;  %v7076_v32 = vadd.f32 %v5444_v57, %v3292_v59 }
 0xbbe   : > { %v3341_v40 = vrot.slane %v7060_v56, 7  ;;  %v3343_v27 = vrot.slane %v7062_v21, 6  ;;  %v3345_v60 = vrot.slane %v7064_v45, 5  ;;  %v3347_v15 = vrot.slane %v7066_v25, 4 }
 0xbbf   : > { %v3349_v22 = vrot.slane %v7072_v28, 3  ;;  %v3351_v55 = vrot.slane %v7074_v31, 2  ;;  %v3353_v58 = vrot.slane %v7076_v32, 1 }
 0xbc0   : > { %v3342_v10 = vsel %vm1961_vm2, %v3341_v40, %v7068_v5 }
 0xbc1   : > { %v3344_v37 = vsel %vm1964_vm3, %v3343_v27, %v3342_v10 }
 0xbc2   : > { %v3346_v20 = vsel %vm1967_vm4, %v3345_v60, %v3344_v37 }
 0xbc3   : > { %v3250_v52 = vpop.f32.mrf.mxu2  ;;  %v3348_v12 = vsel %vm1970_vm5, %v3347_v15, %v3346_v20 }
 0xbc4   : > { %v3262_v17 = vrot.slane %v3250_v52, 1  ;;  %v3263_v50 = vrot.slane %v3250_v52, 2  ;;  %v3264_v53 = vrot.slane %v3250_v52, 3  ;;  %v3265_v13 = vrot.slane %v3250_v52, 4 }
 0xbc5   : > { %v3266_v4 = vrot.slane %v3250_v52, 5  ;;  %v3293_v43 = vadd.f32 %v3250_v52, %v6805_v62  ;;  %v3350_v29 = vsel %vm1973_vm6, %v3349_v22, %v3348_v12  ;;  %v3267_v24 = vrot.slane %v3250_v52, 6 }
 0xbc6   : > { %v3294_v36 = vadd.f32 %v3262_v17, %v6793_v44  ;;  %v3295_v51 = vadd.f32 %v3263_v50, %v6800_v61  ;;  %v3296_v63 = vadd.f32 %v3264_v53, %v6802_v42  ;;  %v3352_v19 = vsel %vm1976_vm7, %v3351_v55, %v3350_v29 }
 0xbc7   : > { %v3354_v54 = vsel %vm1979_vm8, %v3353_v58, %v3352_v19  ;;  %v3268_v3 = vrot.slane %v3250_v52, 7  ;;  %v3297_v39 = vadd.f32 %v3265_v13, %v6807_v49  ;;  %v3298_v1 = vadd.f32 %v3266_v4, %v6810_v18 }
 0xbc8   : > { %v7097_v48 = vadd.f32 %v5444_v57, %v3294_v36  ;;  %v3371_v62 = vsel %vm1658_vm1, %v3354_v54, 0.0  ;;  %v3299_v41 = vadd.f32 %v3267_v24, %v6814_v34  ;;  %v7102_v61 = vadd.f32 %v5444_v57, %v3295_v51 }
 0xbc9   : > { %3372 = vadd.xlane.f32.xlu2 %v3371_v62  ;;  %v3300_v44 = vadd.f32 %v3268_v3, %v6816_v9  ;;  %v7104_v42 = vadd.f32 %v5444_v57, %v3296_v63  ;;  %v7106_v38 = vadd.f32 %v5444_v57, %v3297_v39  ;;  %v7108_v46 = vadd.f32 %v5444_v57, %v3293_v43 }
 0xbca   : > { %v7110_v49 = vadd.f32 %v5444_v57, %v3298_v1  ;;  %v3355_v18 = vrot.slane %v7097_v48, 7  ;;  %v7113_v47 = vadd.f32 %v5444_v57, %v3299_v41  ;;  %v3357_v2 = vrot.slane %v7102_v61, 6 }
 0xbcb   : > { %v7116_v34 = vadd.f32 %v5444_v57, %v3300_v44  ;;  %v3359_v35 = vrot.slane %v7104_v42, 5  ;;  %v3361_v6 = vrot.slane %v7106_v38, 4 }
 0xbcc   : > { %v3356_v9 = vsel %vm1961_vm2, %v3355_v18, %v7108_v46  ;;  %v3363_v16 = vrot.slane %v7110_v49, 3  ;;  %v3365_v33 = vrot.slane %v7113_v47, 2 }
 0xbcd   : > { %v3358_v8 = vsel %vm1964_vm3, %v3357_v2, %v3356_v9  ;;  %v3367_v57 = vrot.slane %v7116_v34, 1 }
 0xbce   : > { %v3360_v23 = vsel %vm1967_vm4, %v3359_v35, %v3358_v8 }
 0xbcf   : > { %v3362_v14 = vsel %vm1970_vm5, %v3361_v6, %v3360_v23 }
 0xbd0   : > { %v3364_v26 = vsel %vm1973_vm6, %v3363_v16, %v3362_v14 }
 0xbd1   : > { %v3366_v30 = vsel %vm1976_vm7, %v3365_v33, %v3364_v26 }
 0xbd2   : > { %v3368_v7 = vsel %vm1979_vm8, %v3367_v57, %v3366_v30 }
 0xbd3   : > { %v3374_v0 = vsel %vm1658_vm1, %v3368_v7, 0.0 }
 0xbd4   : > { %3375 = vadd.xlane.f32.xlu1 %v3374_v0 }
 0xc3c   : > { %v3373_v59 = vpop.xlane.xlu2 %3372 }
 0xc3d   : > { %v3377_v40 = vmul.f32 %v3373_v59, %v6453_v11 }
 0xc3f   : > { %v3381_v27 = vrot.slane %v3377_v40, 1  ;;  %v3382_v10 = vrot.slane %v3377_v40, 2  ;;  %v3383_v60 = vrot.slane %v3377_v40, 3  ;;  %v3384_v37 = vrot.slane %v3377_v40, 4 }
 0xc40   : > { %v3385_v15 = vrot.slane %v3377_v40, 5  ;;  %v3386_v20 = vrot.slane %v3377_v40, 6  ;;  %v3387_v52 = vrot.slane %v3377_v40, 7  ;;  %v7134_v12 = vsub.f32 %v7068_v5, %v3377_v40 }
 0xc41   : > { %v7137_v22 = vsub.f32 %v7060_v56, %v3381_v27  ;;  %v7140_v55 = vsub.f32 %v7062_v21, %v3382_v10  ;;  %v7143_v58 = vsub.f32 %v7064_v45, %v3383_v60  ;;  %v7146_v17 = vsub.f32 %v7066_v25, %v3384_v37 }
 0xc42   : > { %v7149_v50 = vsub.f32 %v7072_v28, %v3385_v15  ;;  %v7152_v53 = vsub.f32 %v7074_v31, %v3386_v20  ;;  %v7155_v13 = vsub.f32 %v7076_v32, %v3387_v52  ;;  %v3427_v24 = vmul.f32 %v7134_v12, %v7134_v12 }
 0xc43   : > { %v3428_v4 = vmul.f32 %v7137_v22, %v7137_v22  ;;  %v3429_v43 = vmul.f32 %v7140_v55, %v7140_v55  ;;  %v3430_v29 = vmul.f32 %v7143_v58, %v7143_v58  ;;  %v3431_v36 = vmul.f32 %v7146_v17, %v7146_v17 }
 0xc44   : > { %v3432_v51 = vmul.f32 %v7149_v50, %v7149_v50  ;;  %v3433_v63 = vmul.f32 %v7152_v53, %v7152_v53  ;;  %v3434_v19 = vmul.f32 %v7155_v13, %v7155_v13 }
 0xc45   : > { %v3459_v54 = vrot.slane %v3428_v4, 7  ;;  %v3461_v3 = vrot.slane %v3429_v43, 6  ;;  %v3463_v62 = vrot.slane %v3430_v29, 5  ;;  %v3465_v18 = vrot.slane %v3431_v36, 4 }
 0xc46   : > { %v3467_v9 = vrot.slane %v3432_v51, 3  ;;  %v3469_v35 = vrot.slane %v3433_v63, 2  ;;  %v3471_v8 = vrot.slane %v3434_v19, 1 }
 0xc47   : > { %v3376_v39 = vpop.xlane.xlu1 %3375  ;;  %v3460_v1 = vsel %vm1961_vm2, %v3459_v54, %v3427_v24 }
 0xc48   : > { %v3378_v41 = vmul.f32 %v3376_v39, %v6453_v11  ;;  %v3462_v44 = vsel %vm1964_vm3, %v3461_v3, %v3460_v1 }
 0xc49   : > { %v3464_v2 = vsel %vm1967_vm4, %v3463_v62, %v3462_v44 }
 0xc4a   : > { %v3466_v6 = vsel %vm1970_vm5, %v3465_v18, %v3464_v2  ;;  %v3388_v23 = vrot.slane %v3378_v41, 1  ;;  %v3389_v16 = vrot.slane %v3378_v41, 2  ;;  %v3390_v14 = vrot.slane %v3378_v41, 3 }
 0xc4b   : > { %v3468_v33 = vsel %vm1973_vm6, %v3467_v9, %v3466_v6  ;;  %v3391_v26 = vrot.slane %v3378_v41, 4  ;;  %v3392_v57 = vrot.slane %v3378_v41, 5  ;;  %v3393_v30 = vrot.slane %v3378_v41, 6 }
 0xc4c   : > { %v3470_v7 = vsel %vm1976_vm7, %v3469_v35, %v3468_v33  ;;  %v3394_v0 = vrot.slane %v3378_v41, 7  ;;  %v7181_v59 = vsub.f32 %v7108_v46, %v3378_v41  ;;  %v7184_v40 = vsub.f32 %v7097_v48, %v3388_v23 }
 0xc4d   : > { %v3472_v27 = vsel %vm1979_vm8, %v3471_v8, %v3470_v7  ;;  %v7188_v10 = vsub.f32 %v7102_v61, %v3389_v16  ;;  %v7191_v60 = vsub.f32 %v7104_v42, %v3390_v14  ;;  %v7194_v37 = vsub.f32 %v7106_v38, %v3391_v26  ;;  %v5194_v7 = vld [vmem:[%s8034_s12 + $0x30] sm:$0xff] }
 0xc4e   : > { %v3489_v15 = vsel %vm1658_vm1, %v3472_v27, 0.0  ;;  %v7198_v20 = vsub.f32 %v7110_v49, %v3392_v57  ;;  %v7201_v52 = vsub.f32 %v7113_v47, %v3393_v30  ;;  %v7204_v4 = vsub.f32 %v7116_v34, %v3394_v0  ;;  %v5195_v30 = vld [vmem:[%s8034_s12 + $0x38] sm:$0xff]  ;;  %v5193_v0 = vld [vmem:[%s8034_s12 + $0x28] sm:$0xff]  ;;  %v5192_v27 = vld [vmem:[%s8034_s12 + $0x20] sm:$0xff] }
 0xc4f   : > { %3490 = vadd.xlane.f32.xlu0 %v3489_v15  ;;  %v3436_v43 = vmul.f32 %v7184_v40, %v7184_v40  ;;  %v3437_v29 = vmul.f32 %v7188_v10, %v7188_v10  ;;  %v3438_v24 = vmul.f32 %v7191_v60, %v7191_v60  ;;  %v3439_v36 = vmul.f32 %v7194_v37, %v7194_v37 }
 0xc50   : > { %v3435_v51 = vmul.f32 %v7181_v59, %v7181_v59  ;;  %v3440_v63 = vmul.f32 %v7198_v20, %v7198_v20  ;;  %v3441_v3 = vmul.f32 %v7201_v52, %v7201_v52  ;;  %v3442_v39 = vmul.f32 %v7204_v4, %v7204_v4  ;;  %3675 = vmatpush.msrb.mxu3 %v5195_v30 }
 0xc51   : > { %v3473_v19 = vrot.slane %v3436_v43, 7  ;;  %v3475_v54 = vrot.slane %v3437_v29, 6  ;;  %v3477_v62 = vrot.slane %v3438_v24, 5  ;;  %v3479_v44 = vrot.slane %v3439_v36, 4 }
 0xc52   : > { %v3481_v2 = vrot.slane %v3440_v63, 3  ;;  %v3483_v35 = vrot.slane %v3441_v3, 2  ;;  %v3485_v6 = vrot.slane %v3442_v39, 1  ;;  %3676 = vmatpush.msrb.mxu3 %v5194_v7 }
 0xc53   : > { %v3474_v1 = vsel %vm1961_vm2, %v3473_v19, %v3435_v51 }
 0xc54   : > { %v3476_v41 = vsel %vm1964_vm3, %v3475_v54, %v3474_v1  ;;  %3677 = vmatpush.msrb.mxu3 %v5193_v0 }
 0xc55   : > { %v3478_v18 = vsel %vm1967_vm4, %v3477_v62, %v3476_v41 }
 0xc56   : > { %v3480_v9 = vsel %vm1970_vm5, %v3479_v44, %v3478_v18  ;;  %3678 = vmatpush.msrb.mxu3 %v5192_v27  ;;  %v7248_v18 = vld [vmem:[%s8107_s10 + $0x1] ss:$0 sm:$0xff]  ;;  %s5257_s10 = sshll.u32 %s5778_s6, 4 }
 0xc57   : > { %v3482_v8 = vsel %vm1973_vm6, %v3481_v2, %v3480_v9  ;;  %s5037_s6 = scalar_lea.hbm %s8046_s24, %s5257_s10 }
 0xc58   : > { %v3484_v23 = vsel %vm1976_vm7, %v3483_v35, %v3482_v8 }
 0xc59   : > { %v3486_v16 = vsel %vm1979_vm8, %v3485_v6, %v3484_v23 }
 0xc5a   : > { %v3492_v14 = vsel %vm1658_vm1, %v3486_v16, 0.0 }
 0xc5b   : > { %3493 = vadd.xlane.f32.xlu2 %v3492_v14 }
 0xcc2   : > { %v3491_v33 = vpop.xlane.xlu0 %3490 }
 0xcc3   : > { %v3495_v26 = vmul.f32 %v3491_v33, %v6453_v11 }
 0xcc5   : > { %v3497_v57 = vadd.f32 1e-05, %v3495_v26 }
 0xcc7   : > { %5501 = vrsqrt.f32 %v3497_v57  ;;  %vm3505_vm13 = vweird.f32 %v3497_v57 }
 0xccd   : > { %v5502_v15 = vpop.eup %5501 }
 0xcce   : > { %v3500_v43 = vmul.f32 %v5502_v15, %v3497_v57  ;;  %v3494_v29 = vpop.xlane.xlu2 %3493  ;;  %vm3506_vm11 = vweird.f32 %v5502_v15 }
 0xccf   : > { %v3496_v24 = vmul.f32 %v3494_v29, %v6453_v11  ;;  %vm3507_vm14 = vmor %vm3505_vm13, %vm3506_vm11  ;;  %vm8123_vm13 = vcmask 195584  }
 0xcd0   : > { %v3501_v36 = vmul.f32 %v5502_v15, %v3500_v43 }
 0xcd1   : > { %v3498_v51 = vadd.f32 1e-05, %v3496_v24 }
 0xcd2   : > { %v3502_v63 = vmul.f32 0.5, %v3501_v36 }
 0xcd3   : > { %5503 = vrsqrt.f32 %v3498_v51  ;;  %vm3515_vm15 = vweird.f32 %v3498_v51 }
 0xcd4   : > { %v3503_v19 = vsub.f32 1.5, %v3502_v63 }
 0xcd6   : > { %v3504_v54 = vmul.f32 %v5502_v15, %v3503_v19 }
 0xcd8   : > { %v3508_v3 = vsel %vm3507_vm14, %v5502_v15, %v3504_v54  ;;  %vm8124_vm14 = vmmov %vm8123_vm13 }
 0xcd9   : > { %v5504_v39 = vpop.eup %5503  ;;  %v3521_v1 = vrot.slane %v3508_v3, 1  ;;  %v3522_v62 = vrot.slane %v3508_v3, 2  ;;  %v3523_v41 = vrot.slane %v3508_v3, 3  ;;  %v3551_v44 = vmul.f32 %v3508_v3, %v7134_v12 }
 0xcda   : > { %v3510_v2 = vmul.f32 %v5504_v39, %v3498_v51  ;;  %v3524_v9 = vrot.slane %v3508_v3, 4  ;;  %v3525_v35 = vrot.slane %v3508_v3, 5  ;;  %v3526_v6 = vrot.slane %v3508_v3, 6 }
 0xcdb   : > { %v3552_v8 = vmul.f32 %v3521_v1, %v7137_v22  ;;  %v3527_v23 = vrot.slane %v3508_v3, 7  ;;  %v3553_v16 = vmul.f32 %v3522_v62, %v7140_v55  ;;  %v3554_v33 = vmul.f32 %v3523_v41, %v7143_v58  ;;  %v7265_v58 = vld [vmem:[%s8108_s11 + $0x1] ss:$0 sm:$0xff] }
 0xcdc   : > { %v3511_v14 = vmul.f32 %v5504_v39, %v3510_v2  ;;  %v3555_v12 = vmul.f32 %v3524_v9, %v7146_v17  ;;  %v3556_v26 = vmul.f32 %v3525_v35, %v7149_v50  ;;  %v3557_v57 = vmul.f32 %v3526_v6, %v7152_v53 }
 0xcdd   : > { %v3558_v30 = vmul.f32 %v3527_v23, %v7155_v13  ;;  %v3570_v7 = vmul.f32 %v7248_v18, %v3551_v44  ;;  %v3571_v0 = vmul.f32 %v7248_v18, %v3552_v8  ;;  %v3572_v27 = vmul.f32 %v7248_v18, %v3553_v16 }
 0xcde   : > { %v3512_v22 = vmul.f32 0.5, %v3511_v14  ;;  %v3573_v55 = vmul.f32 %v7248_v18, %v3554_v33  ;;  %v3574_v15 = vmul.f32 %v7248_v18, %v3555_v12  ;;  %vm3516_vm12 = vweird.f32 %v5504_v39 }
 0xcdf   : > { %v3575_v17 = vmul.f32 %v7248_v18, %v3556_v26  ;;  %v3576_v50 = vmul.f32 %v7248_v18, %v3557_v57  ;;  %v3577_v53 = vmul.f32 %v7248_v18, %v3558_v30  ;;  %v3590_v43 = vadd.f32 %v7265_v58, %v3571_v0  ;;  %vm3517_vm11 = vmor %vm3515_vm15, %vm3516_vm12 }
 0xce0   : > { %v3513_v13 = vsub.f32 1.5, %v3512_v22  ;;  %v3591_v29 = vadd.f32 %v7265_v58, %v3572_v27  ;;  %v3592_v24 = vadd.f32 %v7265_v58, %v3573_v55  ;;  %v3593_v36 = vadd.f32 %v7265_v58, %v3574_v15 }
 0xce1   : > { %v3594_v63 = vadd.f32 %v7265_v58, %v3575_v17  ;;  %v3595_v19 = vadd.f32 %v7265_v58, %v3576_v50  ;;  %v3596_v54 = vadd.f32 %v7265_v58, %v3577_v53  ;;  %v3589_v1 = vadd.f32 %v7265_v58, %v3570_v7 }
 0xce2   : > { %v3514_v3 = vmul.f32 %v5504_v39, %v3513_v13  ;;  %v3631_v62 = vrot.slane %v3590_v43, 7  ;;  %v3633_v41 = vrot.slane %v3591_v29, 6  ;;  %v3635_v44 = vrot.slane %v3592_v24, 5 }
 0xce3   : > { %v3637_v2 = vrot.slane %v3593_v36, 4  ;;  %v3639_v9 = vrot.slane %v3594_v63, 3  ;;  %v3641_v6 = vrot.slane %v3595_v19, 2  ;;  %v3643_v23 = vrot.slane %v3596_v54, 1 }
 0xce4   : > { %v3518_v35 = vsel %vm3517_vm11, %v5504_v39, %v3514_v3  ;;  %v3632_v8 = vsel %vm1961_vm2, %v3631_v62, %v3589_v1 }
 0xce5   : > { %v3528_v16 = vrot.slane %v3518_v35, 1  ;;  %v3634_v14 = vsel %vm1964_vm3, %v3633_v41, %v3632_v8  ;;  %v3529_v33 = vrot.slane %v3518_v35, 2  ;;  %v3530_v12 = vrot.slane %v3518_v35, 3 }
 0xce6   : > { %v3636_v26 = vsel %vm1967_vm4, %v3635_v44, %v3634_v14  ;;  %v3531_v57 = vrot.slane %v3518_v35, 4  ;;  %v3532_v30 = vrot.slane %v3518_v35, 5  ;;  %v3533_v7 = vrot.slane %v3518_v35, 6 }
 0xce7   : > { %v3638_v51 = vsel %vm1970_vm5, %v3637_v2, %v3636_v26  ;;  %v3534_v0 = vrot.slane %v3518_v35, 7  ;;  %v3559_v22 = vmul.f32 %v3518_v35, %v7181_v59  ;;  %v3560_v39 = vmul.f32 %v3528_v16, %v7184_v40 }
 0xce8   : > { %v3640_v27 = vsel %vm1973_vm6, %v3639_v9, %v3638_v51  ;;  %v3561_v55 = vmul.f32 %v3529_v33, %v7188_v10  ;;  %v3562_v15 = vmul.f32 %v3530_v12, %v7191_v60  ;;  %v3563_v17 = vmul.f32 %v3531_v57, %v7194_v37 }
 0xce9   : > { %v3642_v50 = vsel %vm1976_vm7, %v3641_v6, %v3640_v27  ;;  %v3564_v53 = vmul.f32 %v3532_v30, %v7198_v20  ;;  %v3565_v13 = vmul.f32 %v3533_v7, %v7201_v52  ;;  %v3566_v43 = vmul.f32 %v3534_v0, %v7204_v4 }
 0xcea   : > { %v3644_v59 = vsel %vm1979_vm8, %v3643_v23, %v3642_v50  ;;  %v3578_v40 = vmul.f32 %v7248_v18, %v3559_v22  ;;  %v3579_v29 = vmul.f32 %v7248_v18, %v3560_v39  ;;  %v3580_v10 = vmul.f32 %v7248_v18, %v3561_v55 }
 0xceb   : > { %5197 = vmatmul.msk.f32.vlgmr.msrb.gmra.mxu3 %vm1658_vm1, %v3644_v59  ;;  %v3581_v60 = vmul.f32 %v7248_v18, %v3562_v15  ;;  %v3582_v37 = vmul.f32 %v7248_v18, %v3563_v17  ;;  %v3583_v20 = vmul.f32 %v7248_v18, %v3564_v53  ;;  %v3584_v52 = vmul.f32 %v7248_v18, %v3565_v13 }
 0xcec   : > { %v3585_v4 = vmul.f32 %v7248_v18, %v3566_v43  ;;  %v3598_v24 = vadd.f32 %v7265_v58, %v3579_v29  ;;  %v3599_v36 = vadd.f32 %v7265_v58, %v3580_v10  ;;  %v3597_v54 = vadd.f32 %v7265_v58, %v3578_v40 }
 0xced   : > { %v3600_v63 = vadd.f32 %v7265_v58, %v3581_v60  ;;  %v3601_v19 = vadd.f32 %v7265_v58, %v3582_v37  ;;  %v3602_v3 = vadd.f32 %v7265_v58, %v3583_v20  ;;  %v3603_v41 = vadd.f32 %v7265_v58, %v3584_v52 }
 0xcee   : > { %v3645_v1 = vrot.slane %v3598_v24, 7  ;;  %v3647_v62 = vrot.slane %v3599_v36, 6  ;;  %v3604_v44 = vadd.f32 %v7265_v58, %v3585_v4  ;;  %v5447_v58 = vld [vmem:[%s8035_s13 + $0x1] ss:$0 sm:$0xff] }
 0xcef   : > { %v3649_v2 = vrot.slane %v3600_v63, 5  ;;  %v3651_v35 = vrot.slane %v3601_v19, 4  ;;  %v3653_v6 = vrot.slane %v3602_v3, 3  ;;  %v3655_v16 = vrot.slane %v3603_v41, 2 }
 0xcf0   : > { %v3646_v18 = vsel %vm1961_vm2, %v3645_v1, %v3597_v54  ;;  %v3657_v33 = vrot.slane %v3604_v44, 1 }
 0xcf1   : > { %v3648_v9 = vsel %vm1964_vm3, %v3647_v62, %v3646_v18 }
 0xcf2   : > { %v3650_v8 = vsel %vm1967_vm4, %v3649_v2, %v3648_v9 }
 0xcf3   : > { %v3652_v23 = vsel %vm1970_vm5, %v3651_v35, %v3650_v8 }
 0xcf4   : > { %v3654_v14 = vsel %vm1973_vm6, %v3653_v6, %v3652_v23 }
 0xcf5   : > { %v3656_v12 = vsel %vm1976_vm7, %v3655_v16, %v3654_v14 }
 0xcf6   : > { %v3658_v26 = vsel %vm1979_vm8, %v3657_v33, %v3656_v12 }
 0xcf7   : > { %5198 = vmatmul.msk.f32.gmra.mxu3 %vm1658_vm1, %v3658_v26 }
 0xd6e   : > { %v3680_v57 = vpop.f32.mrf.mxu3 }
 0xd6f   : > { %v3681_v30 = vadd.f32 %v5447_v58, %v3680_v57 }
 0xd71   : > { %3690 = vrot.lane.b32.xlu2 %v3681_v30, %s8109_s29  ;;  %v3686_v22 = vmul.f32 0.35355338, %v3681_v30 }
 0xd7a   : > { %v3683_v7 = vpop.f32.mrf.mxu3 }
 0xd7b   : > { %v3684_v51 = vadd.f32 %v5447_v58, %v3683_v7 }
 0xd7d   : > { %3790 = vrot.lane.b32.xlu0 %v3684_v51, %s8110_s4  ;;  %3692 = vrot.lane.b32.xlu1 %v3684_v51, %s8109_s29  ;;  %v7326_v0 = vmul.f32 0.35355338, %v3684_v51  ;;  %v7344_v10 = vpack.i.bf16 %v3681_v30, %v3684_v51  ;;  %s8119_s29 = smov 40  }
 0xd7f   : > { %3786 = vrot.lane.b32.xlu2 %v7326_v0, %s8111_s1 }
 0xd85   : > { %3788 = vrot.lane.b32.xlu0 %v3681_v30, %s8110_s4  ;;  %3784 = vrot.lane.b32.xlu1 %v3686_v22, %s8111_s1  ;;  %s8120_s4 = smov 8   ;;  %s8121_s1 = smov 16  }
 0xdcb   : > { %v3691_v55 = vpop.permute.xlu2 %3690 }
 0xdd9   : > { %v3787_v50 = vpop.permute.xlu2 %3786 }
 0xdef   : > { %v3791_v39 = vpop.permute.xlu0 %3790  ;;  %v3693_v27 = vpop.permute.xlu1 %3692 }
 0xdf0   : > { %5199 = vmatpush.xpose.msk.msra.mxu1 %vm2325_vm9, %v3693_v27  ;;  %5205 = vmatpush.xpose.msk.msra.mxu3 %vm2325_vm9, %v3791_v39 }
 0xdf4   : > { %5200 = vmatpush.xpose.msk.msra.mxu1 %vm2325_vm9, %v3691_v55 }
 0xdf7   : > { %v3789_v15 = vpop.permute.xlu0 %3788  ;;  %5201 = vmatmul.msk.f32.vlgmr.msra.gmra.mxu1 %vm2325_vm9, %v3686_v22  ;;  %v3785_v17 = vpop.permute.xlu1 %3784 }
 0xdf8   : > { %5206 = vmatpush.xpose.msk.msra.mxu3 %vm2325_vm9, %v3789_v15 }
 0xdfb   : > { %5207 = vmatmul.msk.f32.vlgmr.msra.gmra.mxu3 %vm2325_vm9, %v3785_v17 }
 0xdff   : > { %5202 = vmatmul.msk.f32.gmra.mxu1 %vm2325_vm9, %v7326_v0 }
 0xe03   : > { %5208 = vmatmul.msk.f32.gmra.mxu3 %vm2325_vm9, %v3787_v50 }
 0xe74   : > { %v3721_v53 = vpop.f32.mrf.mxu1 }
 0xe75   : > { %v3727_v13 = vsel %vm2359_vm10, %v3721_v53, -inf }
 0xe76   : > { %3728 = vmax.xlane.f32.xlu0 %v3727_v13 }
 0xe7c   : > { %v3724_v43 = vpop.f32.mrf.mxu1 }
 0xe7d   : > { %v3730_v59 = vsel %vm2359_vm10, %v3724_v43, -inf }
 0xe7e   : > { %v3817_v40 = vpop.f32.mrf.mxu3  ;;  %3731 = vmax.xlane.f32.xlu2 %v3730_v59 }
 0xe7f   : > { %v3823_v29 = vsel %vm2359_vm10, %v3817_v40, -inf }
 0xe80   : > { %3824 = vmax.xlane.f32.xlu1 %v3823_v29 }
 0xe86   : > { %v3820_v60 = vpop.f32.mrf.mxu3 }
 0xe87   : > { %v3826_v37 = vsel %vm2359_vm10, %v3820_v60, -inf }
 0xe8a   : > { %5418 = vrot.lane.b32.xlu0 %v7344_v10, %s8112_s7  ;;  %s8122_s7 = smov 24  }
 0xe92   : > { %3880 = vrot.lane.b32.xlu0 %v3686_v22, %s8113_s30 }
 0xe96   : > { %3886 = vrot.lane.b32.xlu2 %v3684_v51, %s8114_s0 }
 0xe99   : > { %5413 = vrot.lane.b32.xlu1 %v7344_v10, %s8115_s27  ;;  %s5040_s27 = sshll.u32 %s5037_s6, 4  ;;  %s5041_s27 = int_to_ptr.hbm [resolvable:$true] %s5040_s27 }
 0xea1   : > { %3884 = vrot.lane.b32.xlu1 %v3681_v30, %s8114_s0 }
 0xea9   : > { %3982 = vrot.lane.b32.xlu1 %v3684_v51, %s8116_s8 }
 0xeb1   : > { %3976 = vrot.lane.b32.xlu1 %v3686_v22, %s8117_s9 }
 0xebc   : > { %3827 = vmax.xlane.f32.xlu0 %v3826_v37 }
 0xed0   : > { %3980 = vrot.lane.b32.xlu0 %v3681_v30, %s8116_s8 }
 0xee9   : > { %v3729_v20 = vpop.xlane.xlu0 %3728 }
 0xeea   : > { %v3733_v52 = vsub.f32 %v3721_v53, %v3729_v20 }
 0xeec   : > { %v3735_v4 = vmul.f32 1.442695, %v3733_v52 }
 0xeee   : > { %5505 = vpow2.f32 %v3735_v4 }
 0xef1   : > { %v3732_v24 = vpop.xlane.xlu2 %3731 }
 0xef2   : > { %v3734_v36 = vsub.f32 %v3724_v43, %v3732_v24 }
 0xef3   : > { %v3825_v63 = vpop.xlane.xlu1 %3824 }
 0xef4   : > { %v5506_v19 = vpop.eup %5505  ;;  %v3737_v54 = vmul.f32 1.442695, %v3734_v36  ;;  %v3829_v3 = vsub.f32 %v3817_v40, %v3825_v63 }
 0xef5   : > { %v3739_v1 = vsel %vm2359_vm10, %v5506_v19, 0.0 }
 0xef6   : > { %5507 = vpow2.f32 %v3737_v54  ;;  %v3831_v62 = vmul.f32 1.442695, %v3829_v3  ;;  %3740 = vadd.xlane.f32.xlu2 %v3739_v1 }
 0xef8   : > { %5509 = vpow2.f32 %v3831_v62 }
 0xef9   : > { %v3887_v14 = vpop.permute.xlu2 %3886 }
 0xefc   : > { %v5508_v41 = vpop.eup %5507  ;;  %v5419_v44 = vpop.permute.xlu0 %5418 }
 0xefd   : > { %v5420_v18 = vunpack.i.l.bf16 %v5419_v44  ;;  %v3742_v2 = vsel %vm2359_vm10, %v5508_v41, 0.0  ;;  %v5421_v35 = vunpack.i.h.bf16 %v5419_v44 }
 0xefe   : > { %v5510_v9 = vpop.eup %5509  ;;  %3743 = vadd.xlane.f32.xlu2 %v3742_v2 }
 0xeff   : > { %3871 = vmatpush.msrb.mxu1 %v5420_v18  ;;  %v3835_v8 = vsel %vm2359_vm10, %v5510_v9, 0.0 }
 0xf00   : > { %3836 = vadd.xlane.f32.xlu0 %v3835_v8 }
 0xf01   : > { %3872 = vmatpush.msrb.mxu1 %v5421_v35 }
 0xf04   : > { %v3881_v26 = vpop.permute.xlu0 %3880 }
 0xf0b   : > { %v5414_v6 = vpop.permute.xlu1 %5413 }
 0xf0c   : > { %v5415_v23 = vunpack.i.l.bf16 %v5414_v6  ;;  %v5416_v16 = vunpack.i.h.bf16 %v5414_v6 }
 0xf0e   : > { %3775 = vmatpush.msra.mxu2 %v5415_v23 }
 0xf10   : > { %3776 = vmatpush.msra.mxu2 %v5416_v16 }
 0xf12   : > { %5211 = vmatpush.xpose.msk.msrb.mxu2 %vm2325_vm9, %v3887_v14 }
 0xf13   : > { %v3885_v33 = vpop.permute.xlu1 %3884 }
 0xf14   : > { %3978 = vrot.lane.b32.xlu0 %v7326_v0, %s8117_s9  ;;  %s5563_s9 = sshra.s32 %s5041_s27, 4  ;;  %s5564_s9 = int_to_ptr.hbm [resolvable:$true] %s5563_s9 }
 0xf15   : > { %p5570_p0 = scmp.lt.s32.totalorder %s5564_s9, %s8046_s24 }
 0xf16   : > { %5212 = vmatpush.xpose.msk.msrb.mxu2 %vm2325_vm9, %v3885_v33 }
 0xf1b   : > { %v3983_v12 = vpop.permute.xlu1 %3982 }
 0xf1c   : > { %5217 = vmatpush.xpose.msk.msra.mxu1 %vm2325_vm9, %v3983_v12 }
 0xf2f   : > { %v3828_v58 = vpop.xlane.xlu0 %3827 }
 0xf30   : > { %v3830_v57 = vsub.f32 %v3820_v60, %v3828_v58  ;;  %v3977_v60 = vpop.permute.xlu1 %3976 }
 0xf32   : > { %v3833_v30 = vmul.f32 1.442695, %v3830_v57 }
 0xf34   : > { %5511 = vpow2.f32 %v3833_v30 }
 0xf3a   : > { %v5512_v7 = vpop.eup %5511 }
 0xf3b   : > { %v3838_v51 = vsel %vm2359_vm10, %v5512_v7, 0.0 }
 0xf3c   : > { %3839 = vadd.xlane.f32.xlu2 %v3838_v51 }
 0xf42   : > { %v3981_v22 = vpop.permute.xlu0 %3980 }
 0xf43   : > { %5218 = vmatpush.xpose.msk.msra.mxu1 %vm2325_vm9, %v3981_v22 }
 0xf54   : > { %3882 = vrot.lane.b32.xlu2 %v7326_v0, %s8113_s30 }
 0xf69   : > { %v3741_v39 = vpop.xlane.xlu2 %3740 }
 0xf6a   : > { %5513 = vrcp.f32 %v3741_v39 }
 0xf70   : > { %v5514_v27 = vpop.eup %5513 }
 0xf71   : > { %v3747_v55 = vmul.f32 %v5514_v27, %v5506_v19  ;;  %v3744_v15 = vpop.xlane.xlu2 %3743 }
 0xf72   : > { %5515 = vrcp.f32 %v3744_v15 }
 0xf73   : > { %v3837_v17 = vpop.xlane.xlu0 %3836  ;;  %5203 = vmatmul.msk.f32.vlgmr.msra.gmra.mxu2 %vm2359_vm10, %v3747_v55 }
 0xf74   : > { %5517 = vrcp.f32 %v3837_v17 }
 0xf78   : > { %v5516_v50 = vpop.eup %5515 }
 0xf79   : > { %v3748_v53 = vmul.f32 %v5516_v50, %v5508_v41 }
 0xf7a   : > { %v5518_v13 = vpop.eup %5517 }
 0xf7b   : > { %v3843_v43 = vmul.f32 %v5518_v13, %v5510_v9  ;;  %5204 = vmatmul.msk.f32.gmra.mxu2 %vm2359_vm10, %v3748_v53 }
 0xf7d   : > { %5209 = vmatmul.msk.f32.vlgmr.msrb.gmra.mxu1 %vm2359_vm10, %v3843_v43 }
 0xf83   : > { %5213 = vmatmul.msk.f32.vlgmr.msrb.gmra.mxu2 %vm2325_vm9, %v3881_v26 }
 0xf86   : > { %v3979_v37 = vpop.permute.xlu0 %3978 }
 0xfaf   : > { %v3840_v0 = vpop.xlane.xlu2 %3839 }
 0xfb0   : > { %5519 = vrcp.f32 %v3840_v0 }
 0xfb6   : > { %v5520_v59 = vpop.eup %5519 }
 0xfb7   : > { %v3883_v40 = vpop.permute.xlu2 %3882  ;;  %v3844_v29 = vmul.f32 %v5520_v59, %v5512_v7 }
 0xfb8   : > { %5214 = vmatmul.msk.f32.gmra.mxu2 %vm2325_vm9, %v3883_v40 }
 0xfb9   : > { %5210 = vmatmul.msk.f32.gmra.mxu1 %vm2359_vm10, %v3844_v29 }
 0xfc1   : > { %5219 = vmatmul.msk.f32.vlgmr.msra.gmra.mxu1 %vm2325_vm9, %v3977_v60 }
 0xfc9   : > { %5220 = vmatmul.msk.f32.gmra.mxu1 %vm2325_vm9, %v3979_v37 }
 0xff6   : > { %v7377_v20 = vpop.f32.mrf.mxu2 }
 0xffa   : > { %v3874_v36 = vpop.f32.mrf.mxu1 }
 0xffe   : > { %v7379_v52 = vpop.f32.mrf.mxu2 }
0x1006   : > { %v3913_v4 = vpop.f32.mrf.mxu2 }
0x1007   : > { %v3919_v24 = vsel %vm2359_vm10, %v3913_v4, -inf }
0x1008   : > { %3920 = vmax.xlane.f32.xlu1 %v3919_v24 }
0x1036   : > { %v7382_v63 = vpop.f32.mrf.mxu1 }
0x103b   : > { %v3916_v19 = vpop.f32.mrf.mxu2 }
0x103c   : > { %v3922_v54 = vsel %vm2359_vm10, %v3916_v19, -inf }
0x103d   : > { %3923 = vmax.xlane.f32.xlu0 %v3922_v54 }
0x103e   : > { %v4009_v3 = vpop.f32.mrf.mxu1 }
0x103f   : > { %v4015_v1 = vsel %vm2359_vm10, %v4009_v3, -inf }
0x1040   : > { %4016 = vmax.xlane.f32.xlu2 %v4015_v1 }
0x1046   : > { %v4012_v62 = vpop.f32.mrf.mxu1 }
0x1047   : > { %v4018_v41 = vsel %vm2359_vm10, %v4012_v62, -inf }
0x1048   : > { %4019 = vmax.xlane.f32.xlu1 %v4018_v41  ;;  %v5225_v41 = vld [vmem:[%s8036_s14 + $0x30] sm:$0xff] }
0x1061   : > { %5423 = vrot.lane.b32.xlu1 %v7344_v10, %s8118_s2  ;;  %s743_s2 = sand.u32 1, %s5603_s26  }
0x1062   : > { %s5026_s8 = scalar_lea.sflag [#allocation3], %s743_s2 }
0x107b   : > { %v3921_v44 = vpop.xlane.xlu1 %3920 }
0x107c   : > { %v3925_v18 = vsub.f32 %v3913_v4, %v3921_v44  ;;  %v5223_v44 = vld [vmem:[%s8036_s14 + $0x20] sm:$0xff] }
0x107e   : > { %v3927_v2 = vmul.f32 1.442695, %v3925_v18 }
0x1080   : > { %5521 = vpow2.f32 %v3927_v2 }
0x1086   : > { %v5522_v9 = vpop.eup %5521 }
0x1087   : > { %v3931_v35 = vsel %vm2359_vm10, %v5522_v9, 0.0 }
0x1088   : > { %3932 = vadd.xlane.f32.xlu2 %v3931_v35 }
0x10b0   : > { %v3924_v8 = vpop.xlane.xlu0 %3923 }
0x10b1   : > { %v3926_v6 = vsub.f32 %v3916_v19, %v3924_v8 }
0x10b3   : > { %v3929_v23 = vmul.f32 1.442695, %v3926_v6  ;;  %v4017_v16 = vpop.xlane.xlu2 %4016 }
0x10b4   : > { %v4021_v14 = vsub.f32 %v4009_v3, %v4017_v16 }
0x10b5   : > { %5523 = vpow2.f32 %v3929_v23 }
0x10b6   : > { %v4023_v33 = vmul.f32 1.442695, %v4021_v14 }
0x10b8   : > { %5525 = vpow2.f32 %v4023_v33 }
0x10bb   : > { %v5524_v12 = vpop.eup %5523  ;;  %v4020_v26 = vpop.xlane.xlu1 %4019 }
0x10bc   : > { %v4022_v58 = vsub.f32 %v4012_v62, %v4020_v26  ;;  %v3934_v57 = vsel %vm2359_vm10, %v5524_v12, 0.0  ;;  %v5226_v62 = vld [vmem:[%s8036_s14 + $0x38] sm:$0xff] }
0x10bd   : > { %3935 = vadd.xlane.f32.xlu2 %v3934_v57 }
0x10be   : > { %v5526_v30 = vpop.eup %5525  ;;  %v4025_v7 = vmul.f32 1.442695, %v4022_v58 }
0x10bf   : > { %v4027_v51 = vsel %vm2359_vm10, %v5526_v30, 0.0 }
0x10c0   : > { %5527 = vpow2.f32 %v4025_v7  ;;  %4028 = vadd.xlane.f32.xlu0 %v4027_v51 }
0x10c6   : > { %v5528_v22 = vpop.eup %5527 }
0x10c7   : > { %v4030_v39 = vsel %vm2359_vm10, %v5528_v22, 0.0 }
0x10c8   : > { %4031 = vadd.xlane.f32.xlu2 %v4030_v39 }
0x10d3   : > { %v5424_v27 = vpop.permute.xlu1 %5423 }
0x10d4   : > { %v5425_v55 = vunpack.i.l.bf16 %v5424_v27  ;;  %5428 = vrot.lane.b32.xlu0 %v7344_v10, %s8119_s29  ;;  %v5426_v15 = vunpack.i.h.bf16 %v5424_v27  ;;  %s5119_s29 = sshll.u32 %s743_s2, 4 }
0x10d5   : > { %s745_s30 = scalar_lea.vmem [#allocation2], %s5119_s29  ;;  %s5565_s29 = scalar_lea.hbm %s5564_s9, 16 }
0x10d6   : > { %3967 = vmatpush.msrb.mxu3 %v5425_v55  ;;  %s5038_s0 = sshll.u32 %s745_s30, 4  ;;  %p5566_p11 = scmp.ne.s32.totalorder %s5564_s9, %s5565_s29  ;;  %s5039_s0 = int_to_ptr.vmem [resolvable:$true] %s5038_s0 }
0x10d8   : > { %3968 = vmatpush.msrb.mxu3 %v5426_v15  ;;  %p5567_p12 = pnand %p5566_p11, %p5795_p5 }
0x10da   : > { %4125 = vmatpush.msra.mxu3 %v5226_v62  ;;  %p5568_p13 = pneg %p5567_p12 }
0x10dc   : > { %4126 = vmatpush.msra.mxu3 %v5225_v41 }
0x10e0   : > { %4074 = vrot.lane.b32.xlu2 %v3874_v36, %s8120_s4 }
0x10fb   : > { %v3933_v17 = vpop.xlane.xlu2 %3932 }
0x10fc   : > { %5529 = vrcp.f32 %v3933_v17  ;;  %v5448_v17 = vld [vmem:[%s8037_s15 + $0x1] ss:$0 sm:$0xff] }
0x1102   : > { %v5530_v50 = vpop.eup %5529 }
0x1103   : > { %v3939_v53 = vmul.f32 %v5530_v50, %v5522_v9 }
0x1105   : > { %5215 = vmatmul.msk.f32.vlgmr.msrb.gmra.mxu3 %vm2359_vm10, %v3939_v53 }
0x1130   : > { %v3936_v13 = vpop.xlane.xlu2 %3935 }
0x1131   : > { %5531 = vrcp.f32 %v3936_v13 }
0x1133   : > { %v4029_v59 = vpop.xlane.xlu0 %4028 }
0x1134   : > { %5533 = vrcp.f32 %v4029_v59 }
0x1137   : > { %v5532_v43 = vpop.eup %5531 }
0x1138   : > { %v3940_v0 = vmul.f32 %v5532_v43, %v5524_v12 }
0x113a   : > { %5216 = vmatmul.msk.f32.gmra.mxu3 %vm2359_vm10, %v3940_v0  ;;  %v5534_v29 = vpop.eup %5533 }
0x113b   : > { %v4032_v10 = vpop.xlane.xlu2 %4031  ;;  %v4035_v4 = vmul.f32 %v5534_v29, %v5526_v30 }
0x113c   : > { %5535 = vrcp.f32 %v4032_v10 }
0x1142   : > { %v5536_v24 = vpop.eup %5535 }
0x1143   : > { %v4036_v36 = vmul.f32 %v5536_v24, %v5528_v22  ;;  %v4075_v2 = vpop.permute.xlu2 %4074 }
0x1144   : > { %v4096_v9 = vsel %vm2325_vm9, %v7377_v20, %v4075_v2 }
0x1146   : > { %v5429_v40 = vpop.permute.xlu0 %5428 }
0x1147   : > { %v5430_v60 = vunpack.i.l.bf16 %v5429_v40  ;;  %v5431_v37 = vunpack.i.h.bf16 %v5429_v40 }
0x1149   : > { %4063 = vmatpush.msra.mxu2 %v5430_v60 }
0x114b   : > { %4064 = vmatpush.msra.mxu2 %v5431_v37 }
0x114c   : > { %5221 = vmatmul.msk.f32.vlgmr.msra.gmra.mxu2 %vm2359_vm10, %v4035_v4 }
0x1154   : > { %5222 = vmatmul.msk.f32.gmra.mxu2 %vm2359_vm10, %v4036_v36 }
0x1188   : > { %v3970_v19 = vpop.f32.mrf.mxu3 }
0x1189   : > { %4082 = vrot.lane.b32.xlu1 %v3970_v19, %s8121_s1 }
0x1191   : > { %4076 = vrot.lane.b32.xlu1 %v7382_v63, %s8120_s4  ;;  %v5224_v63 = vld [vmem:[%s8036_s14 + $0x28] sm:$0xff] }
0x1192   : > { %4127 = vmatpush.msra.mxu3 %v5224_v63 }
0x1194   : > { %4128 = vmatpush.msra.mxu3 %v5223_v44 }
0x11bd   : > { %v3973_v3 = vpop.f32.mrf.mxu3 }
0x11cf   : > { %v4066_v54 = vpop.f32.mrf.mxu2 }
0x11d0   : > { %4090 = vrot.lane.b32.xlu0 %v4066_v54, %s8122_s7 }
0x11d7   : > { %v4069_v1 = vpop.f32.mrf.mxu2 }
0x11d8   : > { %4084 = vrot.lane.b32.xlu0 %v3973_v3, %s8121_s1  ;;  %4092 = vrot.lane.b32.xlu1 %v4069_v1, %s8122_s7  ;;  %s5569_s7 = scalar_lea.hbm %s8046_s24, 32 }
0x11d9   : > { %p5571_p1 = scmp.lt.s32.totalorder %s5569_s7, %s5565_s29 }
0x11db   : > { %p5572_p2 = por %p5571_p1, %p5570_p0 }
0x11dd   : > { %p5573_p3 = pnand %p5572_p2, %p5568_p13 }
0x11fb   : > { %v4083_v18 = vpop.permute.xlu1 %4082 }
0x11fc   : > { %v4098_v35 = vsel %vm2359_vm10, %v4096_v9, %v4083_v18 }
0x1203   : > { %v4077_v8 = vpop.permute.xlu1 %4076 }
0x1204   : > { %v4097_v16 = vsel %vm2325_vm9, %v7379_v52, %v4077_v8 }
0x1242   : > { %v4091_v6 = vpop.permute.xlu0 %4090 }
0x1243   : > { %v4100_v23 = vsel %vm8123_vm13, %v4098_v35, %v4091_v6 }
0x1244   : > { %5227 = vmatmul.msk.f32.vlgmr.msra.gmra.mxu3 %vm1658_vm1, %v4100_v23 }
0x124a   : > { %v4085_v14 = vpop.permute.xlu0 %4084  ;;  %v4093_v33 = vpop.permute.xlu1 %4092 }
0x124b   : > { %v4099_v12 = vsel %vm2359_vm10, %v4097_v16, %v4085_v14 }
0x124c   : > { %v4101_v26 = vsel %vm8124_vm14, %v4099_v12, %v4093_v33 }
0x124d   : > { %5228 = vmatmul.msk.f32.gmra.mxu3 %vm1658_vm1, %v4101_v26 }
0x12c7   : > { %v4130_v20 = vpop.f32.mrf.mxu3 }
0x12c8   : > { %v4138_v58 = vrot.slane %v4130_v20, 1  ;;  %v4139_v57 = vrot.slane %v4130_v20, 2  ;;  %v4140_v30 = vrot.slane %v4130_v20, 3  ;;  %v4141_v7 = vrot.slane %v4130_v20, 4 }
0x12c9   : > { %v4142_v51 = vrot.slane %v4130_v20, 5  ;;  %v4168_v22 = vadd.f32 %v4130_v20, %v7068_v5  ;;  %v4143_v39 = vrot.slane %v4130_v20, 6  ;;  %v4144_v27 = vrot.slane %v4130_v20, 7 }
0x12ca   : > { %v4169_v52 = vadd.f32 %v4138_v58, %v7060_v56  ;;  %v4170_v55 = vadd.f32 %v4139_v57, %v7062_v21  ;;  %v4171_v15 = vadd.f32 %v4140_v30, %v7064_v45  ;;  %v4172_v50 = vadd.f32 %v4141_v7, %v7066_v25 }
0x12cb   : > { %v4173_v53 = vadd.f32 %v4142_v51, %v7072_v28  ;;  %v4174_v13 = vadd.f32 %v4143_v39, %v7074_v31  ;;  %v4175_v5 = vadd.f32 %v4144_v27, %v7076_v32  ;;  %v7451_v10 = vadd.f32 %v5448_v17, %v4168_v22 }
0x12cc   : > { %v7439_v43 = vadd.f32 %v5448_v17, %v4169_v52  ;;  %v7441_v0 = vadd.f32 %v5448_v17, %v4170_v55  ;;  %v7443_v56 = vadd.f32 %v5448_v17, %v4171_v15  ;;  %v7445_v21 = vadd.f32 %v5448_v17, %v4172_v50 }
0x12cd   : > { %v7447_v45 = vadd.f32 %v5448_v17, %v4173_v53  ;;  %v7449_v59 = vadd.f32 %v5448_v17, %v4174_v13  ;;  %v7454_v28 = vadd.f32 %v5448_v17, %v4175_v5 }
0x12ce   : > { %v4225_v25 = vrot.slane %v7439_v43, 7  ;;  %v4227_v31 = vrot.slane %v7441_v0, 6  ;;  %v4229_v32 = vrot.slane %v7443_v56, 5  ;;  %v4231_v60 = vrot.slane %v7445_v21, 4 }
0x12cf   : > { %v4233_v37 = vrot.slane %v7447_v45, 3  ;;  %v4235_v4 = vrot.slane %v7449_v59, 2  ;;  %v4237_v8 = vrot.slane %v7454_v28, 1 }
0x12d0   : > { %v4133_v40 = vpop.f32.mrf.mxu3  ;;  %v4226_v29 = vsel %vm1961_vm2, %v4225_v25, %v7451_v10 }
0x12d1   : > { %v4145_v24 = vrot.slane %v4133_v40, 1  ;;  %v4146_v36 = vrot.slane %v4133_v40, 2  ;;  %v4147_v19 = vrot.slane %v4133_v40, 3  ;;  %v4148_v54 = vrot.slane %v4133_v40, 4 }
0x12d2   : > { %v4149_v3 = vrot.slane %v4133_v40, 5  ;;  %v4150_v1 = vrot.slane %v4133_v40, 6  ;;  %v4151_v62 = vrot.slane %v4133_v40, 7  ;;  %v4176_v41 = vadd.f32 %v4133_v40, %v7108_v46 }
0x12d3   : > { %v4177_v63 = vadd.f32 %v4145_v24, %v7097_v48  ;;  %v4178_v44 = vadd.f32 %v4146_v36, %v7102_v61  ;;  %v4179_v18 = vadd.f32 %v4147_v19, %v7104_v42  ;;  %v4180_v2 = vadd.f32 %v4148_v54, %v7106_v38 }
0x12d4   : > { %v4181_v9 = vadd.f32 %v4149_v3, %v7110_v49  ;;  %v4228_v35 = vsel %vm1964_vm3, %v4227_v31, %v4226_v29  ;;  %v4182_v6 = vadd.f32 %v4150_v1, %v7113_v47  ;;  %v7479_v61 = vadd.f32 %v5448_v17, %v4176_v41 }
0x12d5   : > { %v7472_v23 = vadd.f32 %v5448_v17, %v4177_v63  ;;  %v7474_v16 = vadd.f32 %v5448_v17, %v4178_v44  ;;  %v7476_v46 = vadd.f32 %v5448_v17, %v4179_v18  ;;  %v4230_v48 = vsel %vm1967_vm4, %v4229_v32, %v4228_v35 }
0x12d6   : > { %v4232_v42 = vsel %vm1970_vm5, %v4231_v60, %v4230_v48  ;;  %v4183_v38 = vadd.f32 %v4151_v62, %v7116_v34  ;;  %v7483_v49 = vadd.f32 %v5448_v17, %v4180_v2  ;;  %v7486_v33 = vadd.f32 %v5448_v17, %v4181_v9 }
0x12d7   : > { %v4234_v14 = vsel %vm1973_vm6, %v4233_v37, %v4232_v42  ;;  %v4239_v47 = vrot.slane %v7472_v23, 7  ;;  %v4241_v12 = vrot.slane %v7474_v16, 6  ;;  %v7491_v20 = vadd.f32 %v5448_v17, %v4182_v6 }
0x12d8   : > { %v4236_v26 = vsel %vm1976_vm7, %v4235_v4, %v4234_v14  ;;  %v7494_v57 = vadd.f32 %v5448_v17, %v4183_v38  ;;  %v4243_v30 = vrot.slane %v7476_v46, 5  ;;  %v4245_v22 = vrot.slane %v7483_v49, 4 }
0x12d9   : > { %v4238_v58 = vsel %vm1979_vm8, %v4237_v8, %v4236_v26  ;;  %v4240_v34 = vsel %vm1961_vm2, %v4239_v47, %v7479_v61  ;;  %v4247_v27 = vrot.slane %v7486_v33, 3  ;;  %v4249_v55 = vrot.slane %v7491_v20, 2 }
0x12da   : > { %v4255_v7 = vsel %vm1658_vm1, %v4238_v58, 0.0  ;;  %v4242_v51 = vsel %vm1964_vm3, %v4241_v12, %v4240_v34  ;;  %v4251_v17 = vrot.slane %v7494_v57, 1 }
0x12db   : > { %4256 = vadd.xlane.f32.xlu0 %v4255_v7  ;;  %v4244_v39 = vsel %vm1967_vm4, %v4243_v30, %v4242_v51 }
0x12dc   : > { %v4246_v52 = vsel %vm1970_vm5, %v4245_v22, %v4244_v39 }
0x12dd   : > { %v4248_v15 = vsel %vm1973_vm6, %v4247_v27, %v4246_v52 }
0x12de   : > { %v4250_v50 = vsel %vm1976_vm7, %v4249_v55, %v4248_v15 }
0x12df   : > { %v4252_v53 = vsel %vm1979_vm8, %v4251_v17, %v4250_v50 }
0x12e0   : > { %v4258_v13 = vsel %vm1658_vm1, %v4252_v53, 0.0 }
0x12e1   : > { %4259 = vadd.xlane.f32.xlu2 %v4258_v13 }
0x134e   : > { %v4257_v5 = vpop.xlane.xlu0 %4256 }
0x134f   : > { %v4261_v25 = vmul.f32 %v4257_v5, %v6453_v11 }
0x1351   : > { %v4265_v31 = vrot.slane %v4261_v25, 1  ;;  %v4266_v32 = vrot.slane %v4261_v25, 2  ;;  %v4267_v40 = vrot.slane %v4261_v25, 3  ;;  %v4268_v29 = vrot.slane %v4261_v25, 4 }
0x1352   : > { %v4269_v60 = vrot.slane %v4261_v25, 5  ;;  %v4270_v37 = vrot.slane %v4261_v25, 6  ;;  %v4271_v4 = vrot.slane %v4261_v25, 7  ;;  %v7513_v24 = vsub.f32 %v7451_v10, %v4261_v25 }
0x1353   : > { %v7516_v36 = vsub.f32 %v7439_v43, %v4265_v31  ;;  %v7519_v19 = vsub.f32 %v7441_v0, %v4266_v32  ;;  %v7522_v54 = vsub.f32 %v7443_v56, %v4267_v40  ;;  %v7525_v3 = vsub.f32 %v7445_v21, %v4268_v29 }
0x1354   : > { %v4260_v1 = vpop.xlane.xlu2 %4259  ;;  %v7528_v62 = vsub.f32 %v7447_v45, %v4269_v60  ;;  %v7531_v41 = vsub.f32 %v7449_v59, %v4270_v37  ;;  %v7534_v63 = vsub.f32 %v7454_v28, %v4271_v4  ;;  %v4311_v35 = vmul.f32 %v7513_v24, %v7513_v24 }
0x1355   : > { %v4262_v44 = vmul.f32 %v4260_v1, %v6453_v11  ;;  %v4312_v18 = vmul.f32 %v7516_v36, %v7516_v36  ;;  %v4313_v2 = vmul.f32 %v7519_v19, %v7519_v19  ;;  %v4314_v9 = vmul.f32 %v7522_v54, %v7522_v54 }
0x1356   : > { %v4315_v8 = vmul.f32 %v7525_v3, %v7525_v3  ;;  %v4316_v6 = vmul.f32 %v7528_v62, %v7528_v62  ;;  %v4317_v48 = vmul.f32 %v7531_v41, %v7531_v41  ;;  %v4318_v42 = vmul.f32 %v7534_v63, %v7534_v63 }
0x1357   : > { %v4343_v38 = vrot.slane %v4312_v18, 7  ;;  %v4345_v14 = vrot.slane %v4313_v2, 6  ;;  %v4272_v47 = vrot.slane %v4262_v44, 1  ;;  %v4347_v12 = vrot.slane %v4314_v9, 5 }
0x1358   : > { %v4349_v26 = vrot.slane %v4315_v8, 4  ;;  %v4351_v58 = vrot.slane %v4316_v6, 3  ;;  %v4353_v34 = vrot.slane %v4317_v48, 2  ;;  %v4273_v7 = vrot.slane %v4262_v44, 2 }
0x1359   : > { %v4344_v30 = vsel %vm1961_vm2, %v4343_v38, %v4311_v35  ;;  %v4274_v51 = vrot.slane %v4262_v44, 3  ;;  %v4275_v22 = vrot.slane %v4262_v44, 4  ;;  %v4276_v27 = vrot.slane %v4262_v44, 5 }
0x135a   : > { %v4346_v39 = vsel %vm1964_vm3, %v4345_v14, %v4344_v30  ;;  %v4277_v52 = vrot.slane %v4262_v44, 6  ;;  %v4278_v55 = vrot.slane %v4262_v44, 7  ;;  %v7557_v17 = vsub.f32 %v7479_v61, %v4262_v44 }
0x135b   : > { %v4348_v15 = vsel %vm1967_vm4, %v4347_v12, %v4346_v39  ;;  %v7560_v50 = vsub.f32 %v7472_v23, %v4272_v47  ;;  %v7563_v53 = vsub.f32 %v7474_v16, %v4273_v7  ;;  %v7567_v5 = vsub.f32 %v7476_v46, %v4274_v51 }
0x135c   : > { %v4350_v13 = vsel %vm1970_vm5, %v4349_v26, %v4348_v15  ;;  %v7570_v25 = vsub.f32 %v7483_v49, %v4275_v22  ;;  %v7573_v31 = vsub.f32 %v7486_v33, %v4276_v27  ;;  %v4355_v40 = vrot.slane %v4318_v42, 1 }
0x135d   : > { %v4352_v32 = vsel %vm1973_vm6, %v4351_v58, %v4350_v13  ;;  %v7577_v29 = vsub.f32 %v7491_v20, %v4277_v52  ;;  %v7580_v60 = vsub.f32 %v7494_v57, %v4278_v55  ;;  %v4320_v4 = vmul.f32 %v7560_v50, %v7560_v50  ;;  %v5235_v13 = vld [vmem:[%s8040_s18 + $0x38] sm:$0xff] }
0x135e   : > { %v4354_v37 = vsel %vm1976_vm7, %v4353_v34, %v4352_v32  ;;  %v4321_v1 = vmul.f32 %v7563_v53, %v7563_v53  ;;  %v4322_v44 = vmul.f32 %v7567_v5, %v7567_v5  ;;  %v4319_v2 = vmul.f32 %v7557_v17, %v7557_v17  ;;  %v5234_v32 = vld [vmem:[%s8040_s18 + $0x30] sm:$0xff]  ;;  %4559 = vmatpush.msrb.mxu1 %v5235_v13 }
0x135f   : > { %v4356_v18 = vsel %vm1979_vm8, %v4355_v40, %v4354_v37  ;;  %v4323_v9 = vmul.f32 %v7570_v25, %v7570_v25  ;;  %v4324_v8 = vmul.f32 %v7573_v31, %v7573_v31  ;;  %v4357_v6 = vrot.slane %v4320_v4, 7  ;;  %v5233_v37 = vld [vmem:[%s8040_s18 + $0x28] sm:$0xff]  ;;  %v5232_v4 = vld [vmem:[%s8040_s18 + $0x20] sm:$0xff] }
0x1360   : > { %v4373_v35 = vsel %vm1658_vm1, %v4356_v18, 0.0  ;;  %v4359_v48 = vrot.slane %v4321_v1, 6  ;;  %v4325_v42 = vmul.f32 %v7577_v29, %v7577_v29  ;;  %v4326_v38 = vmul.f32 %v7580_v60, %v7580_v60  ;;  %4560 = vmatpush.msrb.mxu1 %v5234_v32 }
0x1361   : > { %4374 = vadd.xlane.f32.xlu1 %v4373_v35  ;;  %v4358_v14 = vsel %vm1961_vm2, %v4357_v6, %v4319_v2  ;;  %v4361_v47 = vrot.slane %v4322_v44, 5  ;;  %v4363_v26 = vrot.slane %v4323_v9, 4  ;;  %v4365_v34 = vrot.slane %v4324_v8, 3 }
0x1362   : > { %v4360_v12 = vsel %vm1964_vm3, %v4359_v48, %v4358_v14  ;;  %v4367_v7 = vrot.slane %v4325_v42, 2  ;;  %v4369_v22 = vrot.slane %v4326_v38, 1  ;;  %4561 = vmatpush.msrb.mxu1 %v5233_v37 }
0x1363   : > { %v4362_v58 = vsel %vm1967_vm4, %v4361_v47, %v4360_v12 }
0x1364   : > { %v4364_v30 = vsel %vm1970_vm5, %v4363_v26, %v4362_v58  ;;  %4562 = vmatpush.msrb.mxu1 %v5232_v4 }
0x1365   : > { %v4366_v51 = vsel %vm1973_vm6, %v4365_v34, %v4364_v30  ;;  %v7627_v34 = vld [vmem:[%s8038_s16 + $0x1] ss:$0 sm:$0xff] }
0x1366   : > { %v4368_v39 = vsel %vm1976_vm7, %v4367_v7, %v4366_v51 }
0x1367   : > { %v4370_v27 = vsel %vm1979_vm8, %v4369_v22, %v4368_v39 }
0x1368   : > { %v4376_v52 = vsel %vm1658_vm1, %v4370_v27, 0.0 }
0x1369   : > { %4377 = vadd.xlane.f32.xlu0 %v4376_v52 }
0x13d4   : > { %v4375_v55 = vpop.xlane.xlu1 %4374 }
0x13d5   : > { %v4379_v15 = vmul.f32 %v4375_v55, %v6453_v11 }
0x13d7   : > { %v4381_v40 = vadd.f32 1e-05, %v4379_v15 }
0x13d9   : > { %5537 = vrsqrt.f32 %v4381_v40  ;;  %vm4389_vm10 = vweird.f32 %v4381_v40 }
0x13dc   : > { %v4378_v1 = vpop.xlane.xlu0 %4377 }
0x13dd   : > { %v4380_v44 = vmul.f32 %v4378_v1, %v6453_v11 }
0x13df   : > { %v5538_v18 = vpop.eup %5537  ;;  %v4382_v9 = vadd.f32 1e-05, %v4380_v44 }
0x13e0   : > { %v4384_v2 = vmul.f32 %v5538_v18, %v4381_v40  ;;  %vm4390_vm9 = vweird.f32 %v5538_v18 }
0x13e1   : > { %5539 = vrsqrt.f32 %v4382_v9  ;;  %vm4391_vm15 = vmor %vm4389_vm10, %vm4390_vm9  ;;  %vm4399_vm12 = vweird.f32 %v4382_v9 }
0x13e2   : > { %v4385_v35 = vmul.f32 %v5538_v18, %v4384_v2 }
0x13e4   : > { %v4386_v8 = vmul.f32 0.5, %v4385_v35 }
0x13e6   : > { %v4387_v6 = vsub.f32 1.5, %v4386_v8 }
0x13e7   : > { %v5540_v48 = vpop.eup %5539 }
0x13e8   : > { %v4388_v42 = vmul.f32 %v5538_v18, %v4387_v6  ;;  %v4394_v38 = vmul.f32 %v5540_v48, %v4382_v9  ;;  %vm4400_vm11 = vweird.f32 %v5540_v48 }
0x13e9   : > { %vm4401_vm13 = vmor %vm4399_vm12, %vm4400_vm11 }
0x13ea   : > { %v4392_v14 = vsel %vm4391_vm15, %v5538_v18, %v4388_v42  ;;  %v4395_v30 = vmul.f32 %v5540_v48, %v4394_v38 }
0x13eb   : > { %v4405_v47 = vrot.slane %v4392_v14, 1  ;;  %v4406_v12 = vrot.slane %v4392_v14, 2  ;;  %v4407_v26 = vrot.slane %v4392_v14, 3  ;;  %v4435_v58 = vmul.f32 %v4392_v14, %v7513_v24  ;;  %v7635_v24 = vld [vmem:[%s8039_s17 + $0x1] ss:$0 sm:$0xff] }
0x13ec   : > { %v4408_v7 = vrot.slane %v4392_v14, 4  ;;  %v4409_v51 = vrot.slane %v4392_v14, 5  ;;  %v4410_v22 = vrot.slane %v4392_v14, 6  ;;  %v4411_v27 = vrot.slane %v4392_v14, 7 }
0x13ed   : > { %v4436_v39 = vmul.f32 %v4405_v47, %v7516_v36  ;;  %v4437_v52 = vmul.f32 %v4406_v12, %v7519_v19  ;;  %v4438_v55 = vmul.f32 %v4407_v26, %v7522_v54  ;;  %v4396_v15 = vmul.f32 0.5, %v4395_v30 }
0x13ee   : > { %v4439_v13 = vmul.f32 %v4408_v7, %v7525_v3  ;;  %v4440_v32 = vmul.f32 %v4409_v51, %v7528_v62  ;;  %v4441_v40 = vmul.f32 %v4410_v22, %v7531_v41  ;;  %v4442_v37 = vmul.f32 %v4411_v27, %v7534_v63 }
0x13ef   : > { %v4454_v36 = vmul.f32 %v7627_v34, %v4435_v58  ;;  %v4455_v19 = vmul.f32 %v7627_v34, %v4436_v39  ;;  %v4456_v54 = vmul.f32 %v7627_v34, %v4437_v52  ;;  %v4397_v4 = vsub.f32 1.5, %v4396_v15 }
0x13f0   : > { %v4457_v1 = vmul.f32 %v7627_v34, %v4438_v55  ;;  %v4458_v44 = vmul.f32 %v7627_v34, %v4439_v13  ;;  %v4459_v18 = vmul.f32 %v7627_v34, %v4440_v32  ;;  %v4460_v3 = vmul.f32 %v7627_v34, %v4441_v40 }
0x13f1   : > { %v4461_v62 = vmul.f32 %v7627_v34, %v4442_v37  ;;  %v4473_v41 = vadd.f32 %v7635_v24, %v4454_v36  ;;  %v4474_v63 = vadd.f32 %v7635_v24, %v4455_v19  ;;  %v4398_v2 = vmul.f32 %v5540_v48, %v4397_v4 }
0x13f2   : > { %v4475_v35 = vadd.f32 %v7635_v24, %v4456_v54  ;;  %v4476_v8 = vadd.f32 %v7635_v24, %v4457_v1  ;;  %v4477_v6 = vadd.f32 %v7635_v24, %v4458_v44  ;;  %v4478_v42 = vadd.f32 %v7635_v24, %v4459_v18 }
0x13f3   : > { %v4479_v38 = vadd.f32 %v7635_v24, %v4460_v3  ;;  %v4480_v14 = vadd.f32 %v7635_v24, %v4461_v62  ;;  %v4515_v47 = vrot.slane %v4474_v63, 7  ;;  %v4402_v12 = vsel %vm4401_vm13, %v5540_v48, %v4398_v2 }
0x13f4   : > { %v4517_v26 = vrot.slane %v4475_v35, 6  ;;  %v4519_v58 = vrot.slane %v4476_v8, 5  ;;  %v4521_v30 = vrot.slane %v4477_v6, 4  ;;  %v4412_v7 = vrot.slane %v4402_v12, 1 }
0x13f5   : > { %v4516_v51 = vsel %vm1961_vm2, %v4515_v47, %v4473_v41  ;;  %v4523_v22 = vrot.slane %v4478_v42, 3  ;;  %v4525_v39 = vrot.slane %v4479_v38, 2  ;;  %v4527_v9 = vrot.slane %v4480_v14, 1 }
0x13f6   : > { %v4518_v27 = vsel %vm1964_vm3, %v4517_v26, %v4516_v51  ;;  %v4413_v52 = vrot.slane %v4402_v12, 2  ;;  %v4414_v55 = vrot.slane %v4402_v12, 3  ;;  %v4415_v13 = vrot.slane %v4402_v12, 4 }
0x13f7   : > { %v4520_v15 = vsel %vm1967_vm4, %v4519_v58, %v4518_v27  ;;  %v4416_v32 = vrot.slane %v4402_v12, 5  ;;  %v4417_v40 = vrot.slane %v4402_v12, 6  ;;  %v4418_v37 = vrot.slane %v4402_v12, 7 }
0x13f8   : > { %v4522_v48 = vsel %vm1970_vm5, %v4521_v30, %v4520_v15  ;;  %v4443_v36 = vmul.f32 %v4402_v12, %v7557_v17  ;;  %v4444_v19 = vmul.f32 %v4412_v7, %v7560_v50  ;;  %v4445_v4 = vmul.f32 %v4413_v52, %v7563_v53 }
0x13f9   : > { %v4524_v54 = vsel %vm1973_vm6, %v4523_v22, %v4522_v48  ;;  %v4446_v1 = vmul.f32 %v4414_v55, %v7567_v5  ;;  %v4447_v44 = vmul.f32 %v4415_v13, %v7570_v25  ;;  %v4448_v3 = vmul.f32 %v4416_v32, %v7573_v31  ;;  %v5245_v13 = vld [vmem:[%s8042_s20 + $0x70] sm:$0xff]  ;;  %v5244_v32 = vld [vmem:[%s8042_s20 + $0x68] sm:$0xff]  ;;  %v5242_v48 = vld [vmem:[%s8042_s20 + $0x58] sm:$0xff] }
0x13fa   : > { %v4526_v18 = vsel %vm1976_vm7, %v4525_v39, %v4524_v54  ;;  %v4449_v62 = vmul.f32 %v4417_v40, %v7577_v29  ;;  %v4450_v41 = vmul.f32 %v4418_v37, %v7580_v60  ;;  %v4462_v50 = vmul.f32 %v7627_v34, %v4443_v36  ;;  %v5243_v40 = vld [vmem:[%s8042_s20 + $0x60] sm:$0xff]  ;;  %v5241_v37 = vld [vmem:[%s8042_s20 + $0x50] sm:$0xff]  ;;  %v5240_v36 = vld [vmem:[%s8042_s20 + $0x48] sm:$0xff] }
0x13fb   : > { %v4528_v17 = vsel %vm1979_vm8, %v4527_v9, %v4526_v18  ;;  %v4463_v63 = vmul.f32 %v7627_v34, %v4444_v19  ;;  %v4464_v53 = vmul.f32 %v7627_v34, %v4445_v4  ;;  %v4465_v5 = vmul.f32 %v7627_v34, %v4446_v1  ;;  %v5239_v19 = vld [vmem:[%s8042_s20 + $0x40] sm:$0xff] }
0x13fc   : > { %5237 = vmatmul.msk.f32.vlgmr.msrb.gmra.mxu1 %vm1658_vm1, %v4528_v17  ;;  %v4466_v25 = vmul.f32 %v7627_v34, %v4447_v44  ;;  %v4467_v31 = vmul.f32 %v7627_v34, %v4448_v3  ;;  %v4468_v29 = vmul.f32 %v7627_v34, %v4449_v62  ;;  %v4469_v60 = vmul.f32 %v7627_v34, %v4450_v41  ;;  %v5451_v54 = vld [vmem:[%s8041_s19 + $0x1] ss:$0 sm:$0xff] }
0x13fd   : > { %v4482_v2 = vadd.f32 %v7635_v24, %v4463_v63  ;;  %v4483_v35 = vadd.f32 %v7635_v24, %v4464_v53  ;;  %v4484_v8 = vadd.f32 %v7635_v24, %v4465_v5  ;;  %v4481_v42 = vadd.f32 %v7635_v24, %v4462_v50 }
0x13fe   : > { %v4485_v6 = vadd.f32 %v7635_v24, %v4466_v25  ;;  %v4486_v38 = vadd.f32 %v7635_v24, %v4467_v31  ;;  %v4487_v12 = vadd.f32 %v7635_v24, %v4468_v29  ;;  %v4488_v26 = vadd.f32 %v7635_v24, %v4469_v60  ;;  %v5246_v24 = vld [vmem:[%s8042_s20 + $0x78] sm:$0xff] }
0x13ff   : > { %v4529_v14 = vrot.slane %v4482_v2, 7  ;;  %v4531_v47 = vrot.slane %v4483_v35, 6  ;;  %v4533_v58 = vrot.slane %v4484_v8, 5  ;;  %4611 = vmatpush.msrb.mxu2 %v5246_v24 }
0x1400   : > { %v4535_v7 = vrot.slane %v4485_v6, 4  ;;  %v4537_v22 = vrot.slane %v4486_v38, 3  ;;  %v4539_v27 = vrot.slane %v4487_v12, 2  ;;  %v4541_v52 = vrot.slane %v4488_v26, 1 }
0x1401   : > { %v4530_v34 = vsel %vm1961_vm2, %v4529_v14, %v4481_v42  ;;  %4612 = vmatpush.msrb.mxu2 %v5245_v13 }
0x1402   : > { %v4532_v30 = vsel %vm1964_vm3, %v4531_v47, %v4530_v34 }
0x1403   : > { %v4534_v51 = vsel %vm1967_vm4, %v4533_v58, %v4532_v30  ;;  %4613 = vmatpush.msrb.mxu2 %v5244_v32 }
0x1404   : > { %v4536_v39 = vsel %vm1970_vm5, %v4535_v7, %v4534_v51 }
0x1405   : > { %v4538_v9 = vsel %vm1973_vm6, %v4537_v22, %v4536_v39  ;;  %4614 = vmatpush.msrb.mxu2 %v5243_v40 }
0x1406   : > { %v4540_v55 = vsel %vm1976_vm7, %v4539_v27, %v4538_v9  ;;  %v5452_v27 = vld [vmem:[%s8043_s21 + $0x1] ss:$0 sm:$0xff] }
0x1407   : > { %v4542_v15 = vsel %vm1979_vm8, %v4541_v52, %v4540_v55  ;;  %4615 = vmatpush.msrb.mxu2 %v5242_v48 }
0x1408   : > { %5238 = vmatmul.msk.f32.gmra.mxu1 %vm1658_vm1, %v4542_v15 }
0x1409   : > { %4616 = vmatpush.msrb.mxu2 %v5241_v37 }
0x140b   : > { %4617 = vmatpush.msrb.mxu2 %v5240_v36 }
0x140d   : > { %4618 = vmatpush.msrb.mxu2 %v5239_v19 }
0x1479   : > { %v4564_v4 = vpop.f32.mrf.mxu1 }
0x147a   : > { %v4565_v1 = vadd.f32 %v5451_v54, %v4564_v4 }
0x147c   : > { %v4570_v44 = vmul.f32 %v4565_v1, %v4565_v1 }
0x147e   : > { %v4572_v18 = vmul.f32 %v4570_v44, %v4565_v1 }
0x1480   : > { %v4574_v3 = vmul.f32 0.044715, %v4572_v18 }
0x1482   : > { %v4576_v62 = vadd.f32 %v4574_v3, %v4565_v1 }
0x1484   : > { %v4578_v41 = vmul.f32 0.7978846, %v4576_v62 }
0x1485   : > { %v4567_v17 = vpop.f32.mrf.mxu1 }
0x1486   : > { %5541 = vtanh.f32 %v4578_v41  ;;  %v4568_v50 = vadd.f32 %v5451_v54, %v4567_v17 }
0x1488   : > { %v4571_v63 = vmul.f32 %v4568_v50, %v4568_v50 }
0x148a   : > { %v4573_v53 = vmul.f32 %v4571_v63, %v4568_v50 }
0x148c   : > { %v5542_v5 = vpop.eup %5541  ;;  %v4575_v25 = vmul.f32 0.044715, %v4573_v53 }
0x148d   : > { %v4582_v31 = vadd.f32 1.0, %v5542_v5 }
0x148e   : > { %v4577_v29 = vadd.f32 %v4575_v25, %v4568_v50 }
0x148f   : > { %v4584_v60 = vmul.f32 0.5, %v4582_v31 }
0x1490   : > { %v4579_v2 = vmul.f32 0.7978846, %v4577_v29 }
0x1491   : > { %v4586_v35 = vmul.f32 %v4584_v60, %v4565_v1 }
0x1492   : > { %5543 = vtanh.f32 %v4579_v2 }
0x1493   : > { %5247 = vmatmul.msk.f32.vlgmr.msrb.gmra.mxu2 %vm1448_vm0, %v4586_v35 }
0x1498   : > { %v5544_v8 = vpop.eup %5543 }
0x1499   : > { %v4583_v6 = vadd.f32 1.0, %v5544_v8 }
0x149b   : > { %v4585_v42 = vmul.f32 0.5, %v4583_v6 }
0x149d   : > { %v4587_v38 = vmul.f32 %v4585_v42, %v4568_v50 }
0x149f   : > { %5248 = vmatmul.msk.f32.gmra.mxu2 %vm1448_vm0, %v4587_v38 }
0x1516   : > { %v4620_v14 = vpop.f32.mrf.mxu2 }
0x1517   : > { %v4628_v47 = vrot.slane %v4620_v14, 1  ;;  %v4629_v12 = vrot.slane %v4620_v14, 2  ;;  %v4630_v26 = vrot.slane %v4620_v14, 3  ;;  %v4631_v34 = vrot.slane %v4620_v14, 4 }
0x1518   : > { %v4658_v58 = vadd.f32 %v4620_v14, %v7451_v10  ;;  %v4632_v30 = vrot.slane %v4620_v14, 5  ;;  %v4633_v7 = vrot.slane %v4620_v14, 6  ;;  %v4634_v51 = vrot.slane %v4620_v14, 7 }
0x1519   : > { %v4659_v22 = vadd.f32 %v4628_v47, %v7439_v43  ;;  %v4660_v39 = vadd.f32 %v4629_v12, %v7441_v0  ;;  %v4661_v9 = vadd.f32 %v4630_v26, %v7443_v56  ;;  %v4662_v52 = vadd.f32 %v4631_v34, %v7445_v21 }
0x151a   : > { %v4663_v55 = vadd.f32 %v4632_v30, %v7447_v45  ;;  %v4664_v15 = vadd.f32 %v4633_v7, %v7449_v59  ;;  %v4665_v10 = vadd.f32 %v4634_v51, %v7454_v28  ;;  %v7747_v32 = vadd.f32 %v5452_v27, %v4658_v58 }
0x151b   : > { %v7739_v24 = vadd.f32 %v5452_v27, %v4659_v22  ;;  %v7741_v13 = vadd.f32 %v5452_v27, %v4660_v39  ;;  %v7743_v43 = vadd.f32 %v5452_v27, %v4661_v9  ;;  %v7745_v0 = vadd.f32 %v5452_v27, %v4662_v52 }
0x151c   : > { %v7751_v40 = vadd.f32 %v5452_v27, %v4663_v55  ;;  %v7753_v45 = vadd.f32 %v5452_v27, %v4664_v15  ;;  %v7755_v59 = vadd.f32 %v5452_v27, %v4665_v10 }
0x151d   : > { %v4713_v56 = vrot.slane %v7739_v24, 7  ;;  %v4715_v21 = vrot.slane %v7741_v13, 6  ;;  %v4717_v48 = vrot.slane %v7743_v43, 5  ;;  %v4719_v36 = vrot.slane %v7745_v0, 4 }
0x151e   : > { %v4721_v1 = vrot.slane %v7751_v40, 3  ;;  %v4723_v44 = vrot.slane %v7753_v45, 2  ;;  %v4725_v18 = vrot.slane %v7755_v59, 1 }
0x151f   : > { %v4714_v28 = vsel %vm1961_vm2, %v4713_v56, %v7747_v32 }
0x1520   : > { %v4716_v37 = vsel %vm1964_vm3, %v4715_v21, %v4714_v28 }
0x1521   : > { %v4718_v19 = vsel %vm1967_vm4, %v4717_v48, %v4716_v37 }
0x1522   : > { %v4623_v54 = vpop.f32.mrf.mxu2  ;;  %v4720_v4 = vsel %vm1970_vm5, %v4719_v36, %v4718_v19 }
0x1523   : > { %v4635_v3 = vrot.slane %v4623_v54, 1  ;;  %v4636_v62 = vrot.slane %v4623_v54, 2  ;;  %v4637_v41 = vrot.slane %v4623_v54, 3  ;;  %v4638_v17 = vrot.slane %v4623_v54, 4 }
0x1524   : > { %v4639_v50 = vrot.slane %v4623_v54, 5  ;;  %v4666_v63 = vadd.f32 %v4623_v54, %v7479_v61  ;;  %v4722_v53 = vsel %vm1973_vm6, %v4721_v1, %v4720_v4  ;;  %v4640_v5 = vrot.slane %v4623_v54, 6 }
0x1525   : > { %v4667_v25 = vadd.f32 %v4635_v3, %v7472_v23  ;;  %v4668_v31 = vadd.f32 %v4636_v62, %v7474_v16  ;;  %v4669_v29 = vadd.f32 %v4637_v41, %v7476_v46  ;;  %v4670_v60 = vadd.f32 %v4638_v17, %v7483_v49 }
0x1526   : > { %v4724_v2 = vsel %vm1976_vm7, %v4723_v44, %v4722_v53  ;;  %v4641_v35 = vrot.slane %v4623_v54, 7  ;;  %v4671_v8 = vadd.f32 %v4639_v50, %v7486_v33  ;;  %v4672_v38 = vadd.f32 %v4640_v5, %v7491_v20 }
0x1527   : > { %v7775_v6 = vadd.f32 %v5452_v27, %v4667_v25  ;;  %v7777_v42 = vadd.f32 %v5452_v27, %v4668_v31  ;;  %v4726_v61 = vsel %vm1979_vm8, %v4725_v18, %v4724_v2  ;;  %v7783_v46 = vadd.f32 %v5452_v27, %v4669_v29 }
0x1528   : > { %v4743_v23 = vsel %vm1658_vm1, %v4726_v61, 0.0  ;;  %v4673_v16 = vadd.f32 %v4641_v35, %v7494_v57  ;;  %v7785_v49 = vadd.f32 %v5452_v27, %v4670_v60  ;;  %v7787_v14 = vadd.f32 %v5452_v27, %v4666_v63 }
0x1529   : > { %4744 = vadd.xlane.f32.xlu2 %v4743_v23  ;;  %v7789_v33 = vadd.f32 %v5452_v27, %v4671_v8  ;;  %v4727_v47 = vrot.slane %v7775_v6, 7  ;;  %v4729_v12 = vrot.slane %v7777_v42, 6  ;;  %v7793_v26 = vadd.f32 %v5452_v27, %v4672_v38 }
0x152a   : > { %v7795_v20 = vadd.f32 %v5452_v27, %v4673_v16  ;;  %v4731_v34 = vrot.slane %v7783_v46, 5  ;;  %v4733_v30 = vrot.slane %v7785_v49, 4 }
0x152b   : > { %v4728_v57 = vsel %vm1961_vm2, %v4727_v47, %v7787_v14  ;;  %v4735_v51 = vrot.slane %v7789_v33, 3  ;;  %v4737_v39 = vrot.slane %v7793_v26, 2 }
0x152c   : > { %v4730_v58 = vsel %vm1964_vm3, %v4729_v12, %v4728_v57  ;;  %v4739_v9 = vrot.slane %v7795_v20, 1 }
0x152d   : > { %v4732_v7 = vsel %vm1967_vm4, %v4731_v34, %v4730_v58 }
0x152e   : > { %v4734_v22 = vsel %vm1970_vm5, %v4733_v30, %v4732_v7 }
0x152f   : > { %v4736_v27 = vsel %vm1973_vm6, %v4735_v51, %v4734_v22 }
0x1530   : > { %v4738_v52 = vsel %vm1976_vm7, %v4737_v39, %v4736_v27 }
0x1531   : > { %v4740_v55 = vsel %vm1979_vm8, %v4739_v9, %v4738_v52 }
0x1532   : > { %v4746_v15 = vsel %vm1658_vm1, %v4740_v55, 0.0 }
0x1533   : > { %4747 = vadd.xlane.f32.xlu1 %v4746_v15 }
0x159c   : > { %v4745_v10 = vpop.xlane.xlu2 %4744 }
0x159d   : > { %v4749_v56 = vmul.f32 %v4745_v10, %v6453_v11 }
0x159f   : > { %v4753_v21 = vrot.slane %v4749_v56, 1  ;;  %v4754_v28 = vrot.slane %v4749_v56, 2  ;;  %v4755_v48 = vrot.slane %v4749_v56, 3  ;;  %v4756_v37 = vrot.slane %v4749_v56, 4 }
0x15a0   : > { %v4757_v36 = vrot.slane %v4749_v56, 5  ;;  %v4758_v19 = vrot.slane %v4749_v56, 6  ;;  %v4759_v54 = vrot.slane %v4749_v56, 7  ;;  %v7813_v4 = vsub.f32 %v7747_v32, %v4749_v56 }
0x15a1   : > { %v7816_v1 = vsub.f32 %v7739_v24, %v4753_v21  ;;  %v7819_v44 = vsub.f32 %v7741_v13, %v4754_v28  ;;  %v7822_v18 = vsub.f32 %v7743_v43, %v4755_v48  ;;  %v7825_v3 = vsub.f32 %v7745_v0, %v4756_v37 }
0x15a2   : > { %v7828_v62 = vsub.f32 %v7751_v40, %v4757_v36  ;;  %v7831_v41 = vsub.f32 %v7753_v45, %v4758_v19  ;;  %v7834_v32 = vsub.f32 %v7755_v59, %v4759_v54  ;;  %v4799_v17 = vmul.f32 %v7813_v4, %v7813_v4 }
0x15a3   : > { %v4800_v24 = vmul.f32 %v7816_v1, %v7816_v1  ;;  %v4801_v13 = vmul.f32 %v7819_v44, %v7819_v44  ;;  %v4802_v43 = vmul.f32 %v7822_v18, %v7822_v18  ;;  %v4803_v0 = vmul.f32 %v7825_v3, %v7825_v3 }
0x15a4   : > { %v4804_v40 = vmul.f32 %v7828_v62, %v7828_v62  ;;  %v4805_v45 = vmul.f32 %v7831_v41, %v7831_v41  ;;  %v4806_v59 = vmul.f32 %v7834_v32, %v7834_v32 }
0x15a5   : > { %v4831_v50 = vrot.slane %v4800_v24, 7  ;;  %v4833_v63 = vrot.slane %v4801_v13, 6  ;;  %v4835_v31 = vrot.slane %v4802_v43, 5  ;;  %v4837_v29 = vrot.slane %v4803_v0, 4 }
0x15a6   : > { %v4748_v53 = vpop.xlane.xlu1 %4747  ;;  %v4839_v2 = vrot.slane %v4804_v40, 3  ;;  %v4841_v35 = vrot.slane %v4805_v45, 2  ;;  %v4843_v8 = vrot.slane %v4806_v59, 1 }
0x15a7   : > { %v4750_v5 = vmul.f32 %v4748_v53, %v6453_v11  ;;  %v4832_v25 = vsel %vm1961_vm2, %v4831_v50, %v4799_v17 }
0x15a8   : > { %v4834_v60 = vsel %vm1964_vm3, %v4833_v63, %v4832_v25 }
0x15a9   : > { %v4836_v61 = vsel %vm1967_vm4, %v4835_v31, %v4834_v60  ;;  %v4760_v38 = vrot.slane %v4750_v5, 1  ;;  %v4761_v23 = vrot.slane %v4750_v5, 2  ;;  %v4762_v16 = vrot.slane %v4750_v5, 3 }
0x15aa   : > { %v4838_v47 = vsel %vm1970_vm5, %v4837_v29, %v4836_v61  ;;  %v4763_v12 = vrot.slane %v4750_v5, 4  ;;  %v4764_v57 = vrot.slane %v4750_v5, 5  ;;  %v4765_v34 = vrot.slane %v4750_v5, 6 }
0x15ab   : > { %v4840_v58 = vsel %vm1973_vm6, %v4839_v2, %v4838_v47  ;;  %v4766_v30 = vrot.slane %v4750_v5, 7  ;;  %v7859_v7 = vsub.f32 %v7787_v14, %v4750_v5  ;;  %v7862_v51 = vsub.f32 %v7775_v6, %v4760_v38 }
0x15ac   : > { %v4842_v22 = vsel %vm1976_vm7, %v4841_v35, %v4840_v58  ;;  %v7866_v39 = vsub.f32 %v7777_v42, %v4761_v23  ;;  %v7869_v27 = vsub.f32 %v7783_v46, %v4762_v16  ;;  %v7872_v9 = vsub.f32 %v7785_v49, %v4763_v12  ;;  %v7914_v16 = vld [vmem:[%s8044_s22] ss:$0 sm:$0xff] }
0x15ad   : > { %v4844_v52 = vsel %vm1979_vm8, %v4843_v8, %v4842_v22  ;;  %v7876_v55 = vsub.f32 %v7789_v33, %v4764_v57  ;;  %v7879_v14 = vsub.f32 %v7793_v26, %v4765_v34  ;;  %v7883_v15 = vsub.f32 %v7795_v20, %v4766_v30 }
0x15ae   : > { %v4861_v6 = vsel %vm1658_vm1, %v4844_v52, 0.0  ;;  %v4808_v42 = vmul.f32 %v7862_v51, %v7862_v51  ;;  %v4809_v46 = vmul.f32 %v7866_v39, %v7866_v39  ;;  %v4810_v49 = vmul.f32 %v7869_v27, %v7869_v27 }
0x15af   : > { %4862 = vadd.xlane.f32.xlu0 %v4861_v6  ;;  %v4811_v33 = vmul.f32 %v7872_v9, %v7872_v9  ;;  %v4807_v26 = vmul.f32 %v7859_v7, %v7859_v7  ;;  %v4812_v20 = vmul.f32 %v7876_v55, %v7876_v55  ;;  %v4813_v21 = vmul.f32 %v7879_v14, %v7879_v14 }
0x15b0   : > { %v4845_v10 = vrot.slane %v4808_v42, 7  ;;  %v4847_v56 = vrot.slane %v4809_v46, 6  ;;  %v4814_v28 = vmul.f32 %v7883_v15, %v7883_v15  ;;  %v4849_v37 = vrot.slane %v4810_v49, 5 }
0x15b1   : > { %v4851_v19 = vrot.slane %v4811_v33, 4  ;;  %v4853_v24 = vrot.slane %v4812_v20, 3  ;;  %v4855_v43 = vrot.slane %v4813_v21, 2 }
0x15b2   : > { %v4846_v48 = vsel %vm1961_vm2, %v4845_v10, %v4807_v26  ;;  %v4857_v40 = vrot.slane %v4814_v28, 1  ;;  %v7925_v26 = vld [vmem:[%s8045_s23] ss:$0 sm:$0xff] }
0x15b3   : > { %v4848_v36 = vsel %vm1964_vm3, %v4847_v56, %v4846_v48 }
0x15b4   : > { %v4850_v54 = vsel %vm1967_vm4, %v4849_v37, %v4848_v36 }
0x15b5   : > { %v4852_v13 = vsel %vm1970_vm5, %v4851_v19, %v4850_v54 }
0x15b6   : > { %v4854_v0 = vsel %vm1973_vm6, %v4853_v24, %v4852_v13 }
0x15b7   : > { %v4856_v45 = vsel %vm1976_vm7, %v4855_v43, %v4854_v0 }
0x15b8   : > { %v4858_v59 = vsel %vm1979_vm8, %v4857_v40, %v4856_v45 }
0x15b9   : > { %v4864_v17 = vsel %vm1658_vm1, %v4858_v59, 0.0 }
0x15ba   : > { %4865 = vadd.xlane.f32.xlu2 %v4864_v17 }
0x1622   : > { %v4863_v50 = vpop.xlane.xlu0 %4862 }
0x1623   : > { %v4867_v63 = vmul.f32 %v4863_v50, %v6453_v11 }
0x1625   : > { %v4869_v53 = vadd.f32 1e-05, %v4867_v63 }
0x1627   : > { %5545 = vrsqrt.f32 %v4869_v53  ;;  %vm4877_vm14 = vweird.f32 %v4869_v53 }
0x162d   : > { %v5546_v5 = vpop.eup %5545  ;;  %v4866_v25 = vpop.xlane.xlu2 %4865 }
0x162e   : > { %v4872_v31 = vmul.f32 %v5546_v5, %v4869_v53  ;;  %v4868_v29 = vmul.f32 %v4866_v25, %v6453_v11  ;;  %vm4878_vm0 = vweird.f32 %v5546_v5 }
0x162f   : > { %vm4879_vm9 = vmor %vm4877_vm14, %vm4878_vm0 }
0x1630   : > { %v4873_v60 = vmul.f32 %v5546_v5, %v4872_v31  ;;  %v4870_v2 = vadd.f32 1e-05, %v4868_v29 }
0x1632   : > { %v4874_v35 = vmul.f32 0.5, %v4873_v60  ;;  %5547 = vrsqrt.f32 %v4870_v2  ;;  %vm4887_vm15 = vweird.f32 %v4870_v2 }
0x1634   : > { %v4875_v8 = vsub.f32 1.5, %v4874_v35 }
0x1636   : > { %v4876_v61 = vmul.f32 %v5546_v5, %v4875_v8 }
0x1638   : > { %v4880_v38 = vsel %vm4879_vm9, %v5546_v5, %v4876_v61  ;;  %v5548_v23 = vpop.eup %5547 }
0x1639   : > { %v4893_v47 = vrot.slane %v4880_v38, 1  ;;  %v4894_v12 = vrot.slane %v4880_v38, 2  ;;  %v4895_v57 = vrot.slane %v4880_v38, 3  ;;  %v4896_v11 = vrot.slane %v4880_v38, 4 }
0x163a   : > { %v4897_v34 = vrot.slane %v4880_v38, 5  ;;  %v4898_v58 = vrot.slane %v4880_v38, 6  ;;  %v4899_v30 = vrot.slane %v4880_v38, 7  ;;  %v4923_v22 = vmul.f32 %v4880_v38, %v7813_v4 }
0x163b   : > { %v4924_v52 = vmul.f32 %v4893_v47, %v7816_v1  ;;  %v4925_v6 = vmul.f32 %v4894_v12, %v7819_v44  ;;  %v4926_v42 = vmul.f32 %v4895_v57, %v7822_v18  ;;  %v4927_v46 = vmul.f32 %v4896_v11, %v7825_v3 }
0x163c   : > { %v4928_v49 = vmul.f32 %v4897_v34, %v7828_v62  ;;  %v4882_v33 = vmul.f32 %v5548_v23, %v4870_v2  ;;  %v4942_v20 = vmul.f32 %v7914_v16, %v4923_v22  ;;  %v4929_v18 = vmul.f32 %v4898_v58, %v7831_v41 }
0x163d   : > { %v4943_v4 = vmul.f32 %v7914_v16, %v4924_v52  ;;  %v4944_v1 = vmul.f32 %v7914_v16, %v4925_v6  ;;  %v4945_v44 = vmul.f32 %v7914_v16, %v4926_v42  ;;  %v4930_v3 = vmul.f32 %v4899_v30, %v7834_v32 }
0x163e   : > { %v4883_v10 = vmul.f32 %v5548_v23, %v4882_v33  ;;  %v4946_v62 = vmul.f32 %v7914_v16, %v4927_v46  ;;  %v4961_v36 = vadd.f32 %v7925_v26, %v4942_v20  ;;  %v4947_v54 = vmul.f32 %v7914_v16, %v4928_v49 }
0x163f   : > { %v4962_v56 = vadd.f32 %v7925_v26, %v4943_v4  ;;  %v4963_v21 = vadd.f32 %v7925_v26, %v4944_v1  ;;  %v4964_v48 = vadd.f32 %v7925_v26, %v4945_v44  ;;  %vm4888_vm10 = vweird.f32 %v5548_v23 }
0x1640   : > { %v4884_v28 = vmul.f32 0.5, %v4883_v10  ;;  %v4965_v37 = vadd.f32 %v7925_v26, %v4946_v62  ;;  %v4948_v32 = vmul.f32 %v7914_v16, %v4929_v18  ;;  %v4949_v13 = vmul.f32 %v7914_v16, %v4930_v3  ;;  %vm4889_vm12 = vmor %vm4887_vm15, %vm4888_vm10 }
0x1641   : > { %v4993_v19 = vrot.slane %v4962_v56, 7  ;;  %v4995_v24 = vrot.slane %v4963_v21, 6  ;;  %v4997_v0 = vrot.slane %v4964_v48, 5  ;;  %v4966_v17 = vadd.f32 %v7925_v26, %v4947_v54 }
0x1642   : > { %v4885_v41 = vsub.f32 1.5, %v4884_v28  ;;  %v4999_v59 = vrot.slane %v4965_v37, 4  ;;  %v4967_v53 = vadd.f32 %v7925_v26, %v4948_v32  ;;  %v4968_v5 = vadd.f32 %v7925_v26, %v4949_v13 }
0x1643   : > { %v4994_v43 = vsel %vm1961_vm2, %v4993_v19, %v4961_v36 }
0x1644   : > { %v4886_v40 = vmul.f32 %v5548_v23, %v4885_v41  ;;  %v4996_v45 = vsel %vm1964_vm3, %v4995_v24, %v4994_v43  ;;  %v5003_v52 = vrot.slane %v4967_v53, 2  ;;  %v5005_v20 = vrot.slane %v4968_v5, 1 }
0x1645   : > { %v4998_v50 = vsel %vm1967_vm4, %v4997_v0, %v4996_v45 }
0x1646   : > { %v4890_v63 = vsel %vm4889_vm12, %v5548_v23, %v4886_v40  ;;  %v5000_v25 = vsel %vm1970_vm5, %v4999_v59, %v4998_v50 }
0x1647   : > { %v4900_v31 = vrot.slane %v4890_v63, 1  ;;  %v4901_v29 = vrot.slane %v4890_v63, 2  ;;  %v4902_v60 = vrot.slane %v4890_v63, 3  ;;  %v4903_v2 = vrot.slane %v4890_v63, 4 }
0x1648   : > { %v4904_v35 = vrot.slane %v4890_v63, 5  ;;  %v4905_v8 = vrot.slane %v4890_v63, 6  ;;  %v4906_v61 = vrot.slane %v4890_v63, 7  ;;  %v4931_v38 = vmul.f32 %v4890_v63, %v7859_v7 }
0x1649   : > { %v4932_v47 = vmul.f32 %v4900_v31, %v7862_v51  ;;  %v4933_v23 = vmul.f32 %v4901_v29, %v7866_v39  ;;  %v4934_v12 = vmul.f32 %v4902_v60, %v7869_v27  ;;  %v4935_v57 = vmul.f32 %v4903_v2, %v7872_v9 }
0x164a   : > { %v4936_v11 = vmul.f32 %v4904_v35, %v7876_v55  ;;  %v4950_v34 = vmul.f32 %v7914_v16, %v4931_v38  ;;  %v4937_v58 = vmul.f32 %v4905_v8, %v7879_v14  ;;  %v4938_v30 = vmul.f32 %v4906_v61, %v7883_v15 }
0x164b   : > { %v4951_v7 = vmul.f32 %v7914_v16, %v4932_v47  ;;  %v4952_v22 = vmul.f32 %v7914_v16, %v4933_v23  ;;  %v4953_v51 = vmul.f32 %v7914_v16, %v4934_v12  ;;  %v4954_v39 = vmul.f32 %v7914_v16, %v4935_v57 }
0x164c   : > { %v4955_v27 = vmul.f32 %v7914_v16, %v4936_v11  ;;  %v4956_v9 = vmul.f32 %v7914_v16, %v4937_v58  ;;  %v5001_v55 = vrot.slane %v4966_v17, 3  ;;  %v4957_v15 = vmul.f32 %v7914_v16, %v4938_v30 }
0x164d   : > { %v4970_v14 = vadd.f32 %v7925_v26, %v4951_v7  ;;  %v4971_v6 = vadd.f32 %v7925_v26, %v4952_v22  ;;  %v4972_v42 = vadd.f32 %v7925_v26, %v4953_v51  ;;  %v4969_v46 = vadd.f32 %v7925_v26, %v4950_v34 }
0x164e   : > { %v4973_v49 = vadd.f32 %v7925_v26, %v4954_v39  ;;  %v5002_v33 = vsel %vm1973_vm6, %v5001_v55, %v5000_v25  ;;  %v4974_v1 = vadd.f32 %v7925_v26, %v4955_v27  ;;  %v4975_v16 = vadd.f32 %v7925_v26, %v4956_v9 }
0x164f   : > { %v5007_v4 = vrot.slane %v4970_v14, 7  ;;  %v5004_v44 = vsel %vm1976_vm7, %v5003_v52, %v5002_v33  ;;  %v5009_v10 = vrot.slane %v4971_v6, 6  ;;  %v4976_v3 = vadd.f32 %v7925_v26, %v4957_v15 }
0x1650   : > { %v5006_v18 = vsel %vm1979_vm8, %v5005_v20, %v5004_v44  ;;  %v5011_v56 = vrot.slane %v4972_v42, 5  ;;  %v5013_v28 = vrot.slane %v4973_v49, 4  ;;  %v5015_v37 = vrot.slane %v4974_v1, 3 }
0x1651   : > { %v5008_v62 = vsel %vm1961_vm2, %v5007_v4, %v4969_v46  ;;  %5023 = vst.msk [vmem:[%s745_s30] sm:$0xff] %vm1658_vm1, %v5006_v18  ;;  %v5017_v19 = vrot.slane %v4975_v16, 2  ;;  %v5019_v54 = vrot.slane %v4976_v3, 1 }
0x1652   : > { %v5010_v21 = vsel %vm1964_vm3, %v5009_v10, %v5008_v62 }
0x1653   : > { %v5012_v48 = vsel %vm1967_vm4, %v5011_v56, %v5010_v21 }
0x1654   : > { %v5014_v36 = vsel %vm1970_vm5, %v5013_v28, %v5012_v48 }
0x1655   : > { %v5016_v26 = vsel %vm1973_vm6, %v5015_v37, %v5014_v36 }
0x1656   : > { %v5018_v24 = vsel %vm1976_vm7, %v5017_v19, %v5016_v26 }
0x1657   : > { %v5020_v41 = vsel %vm1979_vm8, %v5019_v54, %v5018_v24 }
0x1658   : > { %5024 = vst.msk [vmem:[%s745_s30 + $0x8] sm:$0xff] %vm1658_vm1, %v5020_v41 }
0x1659   : > { %5576 = shalt.err (!%p5573_p3)
}
0x165a   : > { %s5631_s2 = smov 128  }
0x165b   : > { %5274 = dma.vmem_to_hbm [thread:$0]  (%p5795_p5), %s5039_s0, 256, %s5041_s27, %s5026_s8, %s5631_s2, %s5631_s2, %s8120_s4  }
0x165c PF: > { %p5280_p4 = scmp.ge.s32.totalorder %s5611_s28, 2  ;;  %s5055_s10 = sand.u32 1, %s5599_s5  }
0x165d   : > { %s5056_s11 = scalar_lea.sflag [#allocation3], %s5055_s10 }
0x165e   : > { %p5277_p7 = pnand %p5280_p4, %p5799_p6 }
0x1660   : > { %p5278_p8 = pneg %p5277_p7 }
0x1662   : > { %5594 = dma.done.wait (%p5278_p8), %s5056_s11, 256  }
0x1663   : > { %5596 = vsyncadd (%p5278_p8), %s5056_s11, 4294967040  ;;  %s8126_s28 = sld [smem:[#allocation6_spill]]  ;;  %s8129_s5 = smov %s5603_s26 }
0x1664   : > { %s8127_s9 = sld [smem:[#allocation5_spill]] }
0x1665   : > { %s8128_s27 = sld [smem:[#allocation7_spill]] }
0x1669   : > { %p34_p9 = scmp.ge.s32.totalorder %s8126_s28, 4  }
0x166a   : > { %s8130_s26 = smov %s8127_s9 }
0x166b   :  { %36 = sbr.rel (!%p34_p9) target bundleno = 16 (0x10), region = 166 }
0x1670   :  { %5062 = vsyncpa [#allocation3], 1 }
0x1671   :  { %5064 = vsyncpa [#allocation3 + $0x1], 1 }

</bundles_post_ra>
